<compile_context>
chip_gen: v7x
topology: tpu7x:2x2x1
jax: 0.10.0
libtpu: 0.0.40
codegen_flags: <defaults>
</compile_context>

<pallas_src>
import functools

import jax
import jax.numpy as jnp
from jax import lax
from jax.experimental import pallas as pl
from jax.experimental.pallas import tpu as pltpu

LRELU_SLOPE = 0.2
BN_EPS = 1e-5

# (param name, Cout, kh, kw, stride, pad, has_bn) -- static architecture config.
LAYERS = (
    ("w1", 32, 4, 4, 2, 0, False),
    ("w2", 64, 4, 4, 2, 1, True),
    ("w3", 128, 4, 4, 2, 1, True),
    ("w4", 256, 4, 4, 2, 1, True),
    ("w5", 512, 4, 4, 2, 1, True),
)


def _round_up(x, m):
    return (x + m - 1) // m * m


# ---------------------------------------------------------------------------
# Pallas kernels
# ---------------------------------------------------------------------------
def _gemm_act_kernel(a_ref, w_ref, o_ref, *, act):
    """Single-block GEMM (bf16 in, f32 accumulate) with fused activation."""
    y = jnp.dot(a_ref[...], w_ref[...], preferred_element_type=jnp.float32)
    if act == "lrelu":
        y = jnp.where(y >= 0, y, LRELU_SLOPE * y)
    elif act == "sigmoid":
        y = jax.nn.sigmoid(y)
    o_ref[...] = y.astype(o_ref.dtype)


def _gemm_bn_lrelu_kernel(a_ref, w_ref, g_ref, b_ref, o_ref, *, m_real):
    """GEMM + train-mode BatchNorm (batch stats, biased var) + LeakyReLU(0.2).

    The whole (Mp, Np) GEMM output lives in VMEM, so the per-channel reduction
    over rows (= B*OH*OW) runs in the epilogue.  Padded rows of A are zero, so
    sum(y)/m_real and sum(y*y)/m_real are exact statistics of the real rows.
    """
    y = jnp.dot(a_ref[...], w_ref[...], preferred_element_type=jnp.float32)
    inv_m = jnp.float32(1.0 / m_real)
    mean = jnp.sum(y, axis=0, keepdims=True) * inv_m
    mean_sq = jnp.sum(y * y, axis=0, keepdims=True) * inv_m
    var = mean_sq - mean * mean          # biased variance (PyTorch train mode)
    xn = (y - mean) * lax.rsqrt(var + BN_EPS)
    out = xn * g_ref[...] + b_ref[...]
    o_ref[...] = jnp.where(out >= 0, out, LRELU_SLOPE * out).astype(o_ref.dtype)


# ---------------------------------------------------------------------------
# Pallas wrappers
# ---------------------------------------------------------------------------
def gemm_act(a, w, *, act, out_dtype=jnp.bfloat16):
    """a: (Mp, Kp) bf16, w: (Kp, Np) bf16 -> (Mp, Np) with fused activation."""
    Mp, Kp = a.shape
    Np = w.shape[1]
    kern = functools.partial(_gemm_act_kernel, act=act)
    out_shape = jax.ShapeDtypeStruct((Mp, Np), out_dtype)

    # Parallel M grid when there are enough rows (lets v7x's 2 TCs split the
    # work); otherwise a single whole-array block with no grid at all.
    tm = 0
    for cand in (512, 256):
        if Mp >= 2 * cand and Mp % cand == 0:
            tm = cand
            break
    if tm:
        return pl.pallas_call(
            kern,
            out_shape=out_shape,
            grid_spec=pltpu.PrefetchScalarGridSpec(
                num_scalar_prefetch=0,
                grid=(Mp // tm,),
                in_specs=[pl.BlockSpec((tm, Kp), lambda i: (i, 0)),
                          pl.BlockSpec((Kp, Np), lambda i: (0, 0))],
                out_specs=pl.BlockSpec((tm, Np), lambda i: (i, 0))),
            compiler_params=pltpu.CompilerParams(
                dimension_semantics=("parallel",)),
        )(a, w)
    return pl.pallas_call(kern, out_shape=out_shape)(a, w)


def gemm_bn_lrelu(a, w, gamma, beta, *, m_real, out_dtype=jnp.bfloat16):
    """Fused conv-GEMM + BatchNorm(batch stats) + LeakyReLU, single block."""
    Mp, _ = a.shape
    Np = w.shape[1]
    return pl.pallas_call(
        functools.partial(_gemm_bn_lrelu_kernel, m_real=m_real),
        out_shape=jax.ShapeDtypeStruct((Mp, Np), out_dtype),
    )(a, w, gamma, beta)


# ---------------------------------------------------------------------------
# NHWC im2col + conv layer glue
# ---------------------------------------------------------------------------
def im2col_nhwc(x, kh, kw, stride, pad):
    """x: (B, H, W, C) -> patches (B*OH*OW, kh*kw*C); reduction order (kh, kw, C)."""
    if pad:
        x = jnp.pad(x, ((0, 0), (pad, pad), (pad, pad), (0, 0)))
    B, H, W, C = x.shape
    OH = (H - kh) // stride + 1
    OW = (W - kw) // stride + 1
    taps = []
    for i in range(kh):
        for j in range(kw):
            taps.append(x[:, i:i + stride * OH:stride, j:j + stride * OW:stride, :])
    p = jnp.concatenate(taps, axis=-1)            # (B, OH, OW, kh*kw*C), C fastest
    return p.reshape(B * OH * OW, kh * kw * C), OH, OW


def conv_block(x_nhwc, w_mat, cout, kh, kw, *, stride, pad, bn=None, act="lrelu"):
    """Conv2d(bias=False) as NHWC im2col + one fused Pallas GEMM(+BN)(+act)."""
    B, _, _, C = x_nhwc.shape
    cin_p = w_mat.shape[0] // (kh * kw)
    if C < cin_p:                                  # match zero-padded Cin of the weight
        x_nhwc = jnp.pad(x_nhwc, ((0, 0), (0, 0), (0, 0), (0, cin_p - C)))
    patches, OH, OW = im2col_nhwc(x_nhwc, kh, kw, stride, pad)   # (M, K) bf16
    M = patches.shape[0]
    Mp = _round_up(M, 8)
    if Mp != M:
        patches = jnp.pad(patches, ((0, Mp - M), (0, 0)))
    if bn is None:
        y = gemm_act(patches, w_mat, act=act)
    else:
        y = gemm_bn_lrelu(patches, w_mat, bn[0], bn[1], m_real=M)
    return y[:M, :cout].reshape(B, OH, OW, cout)


# ---------------------------------------------------------------------------
# One-time parameter prep (hoisted out of the forward)
# ---------------------------------------------------------------------------
def prepare_params(params):
    """PyTorch-layout weights -> GEMM-ready, padded, bf16 matrices (done once)."""
    pp = {}
    for idx, (name, cout, kh, kw, _s, _p, has_bn) in enumerate(LAYERS, start=1):
        w = params[name]                           # (Cout, Cin, kh, kw) f32
        _, cin, _, _ = w.shape
        cin_p = _round_up(cin, 8)                  # kh*kw=16 -> K is a 128-multiple
        np_ = _round_up(cout, 128)
        wm = jnp.transpose(w, (2, 3, 1, 0))        # (kh, kw, cin, cout)
        wm = jnp.pad(wm, ((0, 0), (0, 0), (0, cin_p - cin), (0, np_ - cout)))
        pp[name] = wm.reshape(kh * kw * cin_p, np_).astype(jnp.bfloat16)
        if has_bn:
            g = params[f"g{idx}"]
            b = params[f"b{idx}"]
            pp[name + "_g"] = jnp.pad(g, (0, np_ - cout)).reshape(1, np_).astype(jnp.float32)
            pp[name + "_b"] = jnp.pad(b, (0, np_ - cout)).reshape(1, np_).astype(jnp.float32)
    # conv6 weight: (1, 512, 2, 2) -> (kh*kw*512, 1), f32 for the plain-JAX dot.
    pp["w6"] = jnp.transpose(params["w6"], (2, 3, 1, 0)).reshape(-1, 1).astype(jnp.float32)
    return pp


# ---------------------------------------------------------------------------
# D_net forward
# ---------------------------------------------------------------------------
def d_net_forward(x_nchw, pp):
    """x_nchw: (B, 3, H, W) float32 (PyTorch layout) -> (B, 1) sigmoid scores."""
    x = jnp.transpose(x_nchw, (0, 2, 3, 1)).astype(jnp.bfloat16)   # NHWC, bf16
    for name, cout, kh, kw, stride, pad, has_bn in LAYERS:
        bn = (pp[name + "_g"], pp[name + "_b"]) if has_bn else None
        x = conv_block(x, pp[name], cout, kh, kw,
                       stride=stride, pad=pad, bn=bn, act="lrelu")
    # conv6: Conv(512->1, k2, s2, p0) + Sigmoid == a (B, 2048) x (2048, 1) dot;
    # run as plain JAX per perf review (N=1 padded to 128 wastes the MXU).
    B = x.shape[0]
    patches, _, _ = im2col_nhwc(x, 2, 2, 2, 0)
    logits = jnp.dot(patches.astype(jnp.float32), pp["w6"])
    return jax.nn.sigmoid(logits).reshape(B, 1)


# ---------------------------------------------------------------------------
# Params / main
# ---------------------------------------------------------------------------
def init_params(key):
    conv_shapes = {
        "w1": (32, 3, 4, 4),
        "w2": (64, 32, 4, 4),
        "w3": (128, 64, 4, 4),
        "w4": (256, 128, 4, 4),
        "w5": (512, 256, 4, 4),
        "w6": (1, 512, 2, 2),
    }
    keys = jax.random.split(key, 14)
    params = {}
    ki = 0
    for name, sh in conv_shapes.items():
        params[name] = 0.05 * jax.random.normal(keys[ki], sh, jnp.float32)
        ki += 1
    for i, c in zip((2, 3, 4, 5), (64, 128, 256, 512)):
        params[f"g{i}"] = 1.0 + 0.1 * jax.random.normal(keys[ki], (c,), jnp.float32)
        ki += 1
        params[f"b{i}"] = 0.1 * jax.random.normal(keys[ki], (c,), jnp.float32)
        ki += 1
    return params


if __name__ == "__main__":
    key = jax.random.PRNGKey(0)
    kx, kp = jax.random.split(key)
    # 66x66 input so the conv chain ends at 1x1 spatial: 66->32->16->8->4->2->1,
    # making the final reshape(B, 1) exact (as the PyTorch module requires).
    x = jax.random.normal(kx, (2, 3, 66, 66), jnp.float32)
    params = init_params(kp)
    pp = prepare_params(params)        # one-time weight prep, outside the jit

    fwd = jax.jit(d_net_forward)
    out = fwd(x, pp)
    jax.block_until_ready(out)
    assert out.shape == (2, 1), out.shape
    assert bool(jnp.all((out >= 0.0) & (out <= 1.0)))  # sigmoid range sanity check
    print("KERNEL_OK")
</pallas_src>

<mosaic_0001>
module attributes {stable_mosaic.version = 11 : i64} {
  func.func @_gemm_act_kernel(%arg0: i32, %arg1: memref<512x128xbf16, #tpu.memory_space<vmem>>, %arg2: memref<128x128xbf16, #tpu.memory_space<vmem>>, %arg3: memref<512x128xbf16, #tpu.memory_space<vmem>>) attributes {dimension_semantics = [#tpu.dimension_semantics<parallel>], iteration_bounds = array<i64: 4>, scalar_prefetch = 0 : i64, scratch_operands = 0 : i64, tpu.core_type = #tpu.core_type<tc>, window_params = [{transform_indices = @transform_0, window_bounds = array<i64: 512, 128>}, {pipeline_mode = #tpu.pipeline_mode<synchronous>, transform_indices = @transform_1, window_bounds = array<i64: 128, 128>}, {transform_indices = @transform_2, window_bounds = array<i64: 512, 128>}]} {
    %c0 = arith.constant 0 : index
    %c0_0 = arith.constant 0 : index
    %0 = vector.load %arg1[%c0, %c0_0] : memref<512x128xbf16, #tpu.memory_space<vmem>>, vector<512x128xbf16>
    %c0_1 = arith.constant 0 : index
    %c0_2 = arith.constant 0 : index
    %1 = vector.load %arg2[%c0_1, %c0_2] : memref<128x128xbf16, #tpu.memory_space<vmem>>, vector<128x128xbf16>
    %cst = arith.constant dense<0.000000e+00> : vector<512x128xf32>
    %2 = tpu.matmul %0, %1, %cst {dimension_numbers = #tpu.dot_dimension_numbers<[1], [0], [0], [1], [0, 0, 1, 1], [], []>} : vector<512x128xbf16>, vector<128x128xbf16>, vector<512x128xf32> -> vector<512x128xf32>
    %cst_3 = arith.constant 0.000000e+00 : f32
    %3 = vector.broadcast %cst_3 : f32 to vector<512x128xf32>
    %4 = arith.cmpf oge, %2, %3 : vector<512x128xf32>
    %cst_4 = arith.constant 2.000000e-01 : f32
    %5 = vector.broadcast %cst_4 : f32 to vector<512x128xf32>
    %6 = arith.mulf %5, %2 : vector<512x128xf32>
    %7 = arith.select %4, %2, %6 : vector<512x128xi1>, vector<512x128xf32>
    %8 = arith.truncf %7 : vector<512x128xf32> to vector<512x128xbf16>
    %c0_5 = arith.constant 0 : index
    %c0_6 = arith.constant 0 : index
    %9 = vector.load %arg3[%c0_5, %c0_6] : memref<512x128xbf16, #tpu.memory_space<vmem>>, vector<512x128xbf16>
    tpu.vector_store %arg3[%c0_5, %c0_6], %8 {strides = array<i32>} : memref<512x128xbf16, #tpu.memory_space<vmem>>, vector<512x128xbf16>,
    return
  }
  func.func @transform_0(%arg0: i32) -> (i32, i32) {
    %c0_i32 = arith.constant 0 : i32
    %c0_i32_0 = arith.constant 0 : i32
    return %arg0, %c0_i32 : i32, i32
  }
  func.func @transform_1(%arg0: i32) -> (i32, i32) {
    %c0_i32 = arith.constant 0 : i32
    %c0_i32_0 = arith.constant 0 : i32
    %c0_i32_1 = arith.constant 0 : i32
    return %c0_i32, %c0_i32_0 : i32, i32
  }
  func.func @transform_2(%arg0: i32) -> (i32, i32) {
    %c0_i32 = arith.constant 0 : i32
    %c0_i32_0 = arith.constant 0 : i32
    return %arg0, %c0_i32 : i32, i32
  }
}

module attributes {stable_mosaic.version = 11 : i64} {
  func.func @_gemm_bn_lrelu_kernel(%arg0: memref<512x512xbf16, #tpu.memory_space<vmem>>, %arg1: memref<512x128xbf16, #tpu.memory_space<vmem>>, %arg2: memref<1x128xf32, #tpu.memory_space<vmem>>, %arg3: memref<1x128xf32, #tpu.memory_space<vmem>>, %arg4: memref<512x128xbf16, #tpu.memory_space<vmem>>) attributes {dimension_semantics = [], scalar_prefetch = 0 : i64, scratch_operands = 0 : i64, tpu.core_type = #tpu.core_type<tc>} {
    %c0 = arith.constant 0 : index
    %c0_0 = arith.constant 0 : index
    %0 = vector.load %arg0[%c0, %c0_0] : memref<512x512xbf16, #tpu.memory_space<vmem>>, vector<512x512xbf16>
    %c0_1 = arith.constant 0 : index
    %c0_2 = arith.constant 0 : index
    %1 = vector.load %arg1[%c0_1, %c0_2] : memref<512x128xbf16, #tpu.memory_space<vmem>>, vector<512x128xbf16>
    %cst = arith.constant dense<0.000000e+00> : vector<512x128xf32>
    %2 = tpu.matmul %0, %1, %cst {dimension_numbers = #tpu.dot_dimension_numbers<[1], [0], [0], [1], [0, 0, 1, 1], [], []>} : vector<512x512xbf16>, vector<512x128xbf16>, vector<512x128xf32> -> vector<512x128xf32>
    %cst_3 = arith.constant dense<0.000000e+00> : vector<128xf32>
    %3 = vector.multi_reduction <add>, %2, %cst_3 [0] : vector<512x128xf32> to vector<128xf32>
    %4 = vector.shape_cast %3 : vector<128xf32> to vector<1x128xf32>
    %cst_4 = arith.constant 0.001953125 : f32
    %5 = vector.broadcast %cst_4 : f32 to vector<1x128xf32>
    %6 = arith.mulf %4, %5 : vector<1x128xf32>
    %7 = arith.mulf %2, %2 : vector<512x128xf32>
    %cst_5 = arith.constant dense<0.000000e+00> : vector<128xf32>
    %8 = vector.multi_reduction <add>, %7, %cst_5 [0] : vector<512x128xf32> to vector<128xf32>
    %9 = vector.shape_cast %8 : vector<128xf32> to vector<1x128xf32>
    %cst_6 = arith.constant 0.001953125 : f32
    %10 = vector.broadcast %cst_6 : f32 to vector<1x128xf32>
    %11 = arith.mulf %9, %10 : vector<1x128xf32>
    %12 = arith.mulf %6, %6 : vector<1x128xf32>
    %13 = arith.subf %11, %12 : vector<1x128xf32>
    %14 = vector.broadcast %6 : vector<1x128xf32> to vector<512x128xf32>
    %15 = arith.subf %2, %14 : vector<512x128xf32>
    %cst_7 = arith.constant 9.99999974E-6 : f32
    %16 = vector.broadcast %cst_7 : f32 to vector<1x128xf32>
    %17 = arith.addf %13, %16 : vector<1x128xf32>
    %18 = math.rsqrt %17 : vector<1x128xf32>
    %19 = vector.broadcast %18 : vector<1x128xf32> to vector<512x128xf32>
    %20 = arith.mulf %15, %19 : vector<512x128xf32>
    %c0_8 = arith.constant 0 : index
    %c0_9 = arith.constant 0 : index
    %21 = vector.load %arg2[%c0_8, %c0_9] : memref<1x128xf32, #tpu.memory_space<vmem>>, vector<1x128xf32>
    %22 = vector.broadcast %21 : vector<1x128xf32> to vector<512x128xf32>
    %23 = arith.mulf %20, %22 : vector<512x128xf32>
    %c0_10 = arith.constant 0 : index
    %c0_11 = arith.constant 0 : index
    %24 = vector.load %arg3[%c0_10, %c0_11] : memref<1x128xf32, #tpu.memory_space<vmem>>, vector<1x128xf32>
    %25 = vector.broadcast %24 : vector<1x128xf32> to vector<512x128xf32>
    %26 = arith.addf %23, %25 : vector<512x128xf32>
    %cst_12 = arith.constant 0.000000e+00 : f32
    %27 = vector.broadcast %cst_12 : f32 to vector<512x128xf32>
    %28 = arith.cmpf oge, %26, %27 : vector<512x128xf32>
    %cst_13 = arith.constant 2.000000e-01 : f32
    %29 = vector.broadcast %cst_13 : f32 to vector<512x128xf32>
    %30 = arith.mulf %29, %26 : vector<512x128xf32>
    %31 = arith.select %28, %26, %30 : vector<512x128xi1>, vector<512x128xf32>
    %32 = arith.truncf %31 : vector<512x128xf32> to vector<512x128xbf16>
    %c0_14 = arith.constant 0 : index
    %c0_15 = arith.constant 0 : index
    %33 = vector.load %arg4[%c0_14, %c0_15] : memref<512x128xbf16, #tpu.memory_space<vmem>>, vector<512x128xbf16>
    tpu.vector_store %arg4[%c0_14, %c0_15], %32 {strides = array<i32>} : memref<512x128xbf16, #tpu.memory_space<vmem>>, vector<512x128xbf16>,
    return
  }
}

module attributes {stable_mosaic.version = 11 : i64} {
  func.func @_gemm_bn_lrelu_kernel(%arg0: memref<128x1024xbf16, #tpu.memory_space<vmem>>, %arg1: memref<1024x128xbf16, #tpu.memory_space<vmem>>, %arg2: memref<1x128xf32, #tpu.memory_space<vmem>>, %arg3: memref<1x128xf32, #tpu.memory_space<vmem>>, %arg4: memref<128x128xbf16, #tpu.memory_space<vmem>>) attributes {dimension_semantics = [], scalar_prefetch = 0 : i64, scratch_operands = 0 : i64, tpu.core_type = #tpu.core_type<tc>} {
    %c0 = arith.constant 0 : index
    %c0_0 = arith.constant 0 : index
    %0 = vector.load %arg0[%c0, %c0_0] : memref<128x1024xbf16, #tpu.memory_space<vmem>>, vector<128x1024xbf16>
    %c0_1 = arith.constant 0 : index
    %c0_2 = arith.constant 0 : index
    %1 = vector.load %arg1[%c0_1, %c0_2] : memref<1024x128xbf16, #tpu.memory_space<vmem>>, vector<1024x128xbf16>
    %cst = arith.constant dense<0.000000e+00> : vector<128x128xf32>
    %2 = tpu.matmul %0, %1, %cst {dimension_numbers = #tpu.dot_dimension_numbers<[1], [0], [0], [1], [0, 0, 1, 1], [], []>} : vector<128x1024xbf16>, vector<1024x128xbf16>, vector<128x128xf32> -> vector<128x128xf32>
    %cst_3 = arith.constant dense<0.000000e+00> : vector<128xf32>
    %3 = vector.multi_reduction <add>, %2, %cst_3 [0] : vector<128x128xf32> to vector<128xf32>
    %4 = vector.shape_cast %3 : vector<128xf32> to vector<1x128xf32>
    %cst_4 = arith.constant 7.812500e-03 : f32
    %5 = vector.broadcast %cst_4 : f32 to vector<1x128xf32>
    %6 = arith.mulf %4, %5 : vector<1x128xf32>
    %7 = arith.mulf %2, %2 : vector<128x128xf32>
    %cst_5 = arith.constant dense<0.000000e+00> : vector<128xf32>
    %8 = vector.multi_reduction <add>, %7, %cst_5 [0] : vector<128x128xf32> to vector<128xf32>
    %9 = vector.shape_cast %8 : vector<128xf32> to vector<1x128xf32>
    %cst_6 = arith.constant 7.812500e-03 : f32
    %10 = vector.broadcast %cst_6 : f32 to vector<1x128xf32>
    %11 = arith.mulf %9, %10 : vector<1x128xf32>
    %12 = arith.mulf %6, %6 : vector<1x128xf32>
    %13 = arith.subf %11, %12 : vector<1x128xf32>
    %14 = vector.broadcast %6 : vector<1x128xf32> to vector<128x128xf32>
    %15 = arith.subf %2, %14 : vector<128x128xf32>
    %cst_7 = arith.constant 9.99999974E-6 : f32
    %16 = vector.broadcast %cst_7 : f32 to vector<1x128xf32>
    %17 = arith.addf %13, %16 : vector<1x128xf32>
    %18 = math.rsqrt %17 : vector<1x128xf32>
    %19 = vector.broadcast %18 : vector<1x128xf32> to vector<128x128xf32>
    %20 = arith.mulf %15, %19 : vector<128x128xf32>
    %c0_8 = arith.constant 0 : index
    %c0_9 = arith.constant 0 : index
    %21 = vector.load %arg2[%c0_8, %c0_9] : memref<1x128xf32, #tpu.memory_space<vmem>>, vector<1x128xf32>
    %22 = vector.broadcast %21 : vector<1x128xf32> to vector<128x128xf32>
    %23 = arith.mulf %20, %22 : vector<128x128xf32>
    %c0_10 = arith.constant 0 : index
    %c0_11 = arith.constant 0 : index
    %24 = vector.load %arg3[%c0_10, %c0_11] : memref<1x128xf32, #tpu.memory_space<vmem>>, vector<1x128xf32>
    %25 = vector.broadcast %24 : vector<1x128xf32> to vector<128x128xf32>
    %26 = arith.addf %23, %25 : vector<128x128xf32>
    %cst_12 = arith.constant 0.000000e+00 : f32
    %27 = vector.broadcast %cst_12 : f32 to vector<128x128xf32>
    %28 = arith.cmpf oge, %26, %27 : vector<128x128xf32>
    %cst_13 = arith.constant 2.000000e-01 : f32
    %29 = vector.broadcast %cst_13 : f32 to vector<128x128xf32>
    %30 = arith.mulf %29, %26 : vector<128x128xf32>
    %31 = arith.select %28, %26, %30 : vector<128x128xi1>, vector<128x128xf32>
    %32 = arith.truncf %31 : vector<128x128xf32> to vector<128x128xbf16>
    %c0_14 = arith.constant 0 : index
    %c0_15 = arith.constant 0 : index
    %33 = vector.load %arg4[%c0_14, %c0_15] : memref<128x128xbf16, #tpu.memory_space<vmem>>, vector<128x128xbf16>
    tpu.vector_store %arg4[%c0_14, %c0_15], %32 {strides = array<i32>} : memref<128x128xbf16, #tpu.memory_space<vmem>>, vector<128x128xbf16>,
    return
  }
}

module attributes {stable_mosaic.version = 11 : i64} {
  func.func @_gemm_bn_lrelu_kernel(%arg0: memref<32x2048xbf16, #tpu.memory_space<vmem>>, %arg1: memref<2048x256xbf16, #tpu.memory_space<vmem>>, %arg2: memref<1x256xf32, #tpu.memory_space<vmem>>, %arg3: memref<1x256xf32, #tpu.memory_space<vmem>>, %arg4: memref<32x256xbf16, #tpu.memory_space<vmem>>) attributes {dimension_semantics = [], scalar_prefetch = 0 : i64, scratch_operands = 0 : i64, tpu.core_type = #tpu.core_type<tc>} {
    %c0 = arith.constant 0 : index
    %c0_0 = arith.constant 0 : index
    %0 = vector.load %arg0[%c0, %c0_0] : memref<32x2048xbf16, #tpu.memory_space<vmem>>, vector<32x2048xbf16>
    %c0_1 = arith.constant 0 : index
    %c0_2 = arith.constant 0 : index
    %1 = vector.load %arg1[%c0_1, %c0_2] : memref<2048x256xbf16, #tpu.memory_space<vmem>>, vector<2048x256xbf16>
    %cst = arith.constant dense<0.000000e+00> : vector<32x256xf32>
    %2 = tpu.matmul %0, %1, %cst {dimension_numbers = #tpu.dot_dimension_numbers<[1], [0], [0], [1], [0, 0, 1, 1], [], []>} : vector<32x2048xbf16>, vector<2048x256xbf16>, vector<32x256xf32> -> vector<32x256xf32>
    %cst_3 = arith.constant dense<0.000000e+00> : vector<256xf32>
    %3 = vector.multi_reduction <add>, %2, %cst_3 [0] : vector<32x256xf32> to vector<256xf32>
    %4 = vector.shape_cast %3 : vector<256xf32> to vector<1x256xf32>
    %cst_4 = arith.constant 3.125000e-02 : f32
    %5 = vector.broadcast %cst_4 : f32 to vector<1x256xf32>
    %6 = arith.mulf %4, %5 : vector<1x256xf32>
    %7 = arith.mulf %2, %2 : vector<32x256xf32>
    %cst_5 = arith.constant dense<0.000000e+00> : vector<256xf32>
    %8 = vector.multi_reduction <add>, %7, %cst_5 [0] : vector<32x256xf32> to vector<256xf32>
    %9 = vector.shape_cast %8 : vector<256xf32> to vector<1x256xf32>
    %cst_6 = arith.constant 3.125000e-02 : f32
    %10 = vector.broadcast %cst_6 : f32 to vector<1x256xf32>
    %11 = arith.mulf %9, %10 : vector<1x256xf32>
    %12 = arith.mulf %6, %6 : vector<1x256xf32>
    %13 = arith.subf %11, %12 : vector<1x256xf32>
    %14 = vector.broadcast %6 : vector<1x256xf32> to vector<32x256xf32>
    %15 = arith.subf %2, %14 : vector<32x256xf32>
    %cst_7 = arith.constant 9.99999974E-6 : f32
    %16 = vector.broadcast %cst_7 : f32 to vector<1x256xf32>
    %17 = arith.addf %13, %16 : vector<1x256xf32>
    %18 = math.rsqrt %17 : vector<1x256xf32>
    %19 = vector.broadcast %18 : vector<1x256xf32> to vector<32x256xf32>
    %20 = arith.mulf %15, %19 : vector<32x256xf32>
    %c0_8 = arith.constant 0 : index
    %c0_9 = arith.constant 0 : index
    %21 = vector.load %arg2[%c0_8, %c0_9] : memref<1x256xf32, #tpu.memory_space<vmem>>, vector<1x256xf32>
    %22 = vector.broadcast %21 : vector<1x256xf32> to vector<32x256xf32>
    %23 = arith.mulf %20, %22 : vector<32x256xf32>
    %c0_10 = arith.constant 0 : index
    %c0_11 = arith.constant 0 : index
    %24 = vector.load %arg3[%c0_10, %c0_11] : memref<1x256xf32, #tpu.memory_space<vmem>>, vector<1x256xf32>
    %25 = vector.broadcast %24 : vector<1x256xf32> to vector<32x256xf32>
    %26 = arith.addf %23, %25 : vector<32x256xf32>
    %cst_12 = arith.constant 0.000000e+00 : f32
    %27 = vector.broadcast %cst_12 : f32 to vector<32x256xf32>
    %28 = arith.cmpf oge, %26, %27 : vector<32x256xf32>
    %cst_13 = arith.constant 2.000000e-01 : f32
    %29 = vector.broadcast %cst_13 : f32 to vector<32x256xf32>
    %30 = arith.mulf %29, %26 : vector<32x256xf32>
    %31 = arith.select %28, %26, %30 : vector<32x256xi1>, vector<32x256xf32>
    %32 = arith.truncf %31 : vector<32x256xf32> to vector<32x256xbf16>
    %c0_14 = arith.constant 0 : index
    %c0_15 = arith.constant 0 : index
    %33 = vector.load %arg4[%c0_14, %c0_15] : memref<32x256xbf16, #tpu.memory_space<vmem>>, vector<32x256xbf16>
    tpu.vector_store %arg4[%c0_14, %c0_15], %32 {strides = array<i32>} : memref<32x256xbf16, #tpu.memory_space<vmem>>, vector<32x256xbf16>,
    return
  }
}

module attributes {stable_mosaic.version = 11 : i64} {
  func.func @_gemm_bn_lrelu_kernel(%arg0: memref<8x4096xbf16, #tpu.memory_space<vmem>>, %arg1: memref<4096x512xbf16, #tpu.memory_space<vmem>>, %arg2: memref<1x512xf32, #tpu.memory_space<vmem>>, %arg3: memref<1x512xf32, #tpu.memory_space<vmem>>, %arg4: memref<8x512xbf16, #tpu.memory_space<vmem>>) attributes {dimension_semantics = [], scalar_prefetch = 0 : i64, scratch_operands = 0 : i64, tpu.core_type = #tpu.core_type<tc>} {
    %c0 = arith.constant 0 : index
    %c0_0 = arith.constant 0 : index
    %0 = vector.load %arg0[%c0, %c0_0] : memref<8x4096xbf16, #tpu.memory_space<vmem>>, vector<8x4096xbf16>
    %c0_1 = arith.constant 0 : index
    %c0_2 = arith.constant 0 : index
    %1 = vector.load %arg1[%c0_1, %c0_2] : memref<4096x512xbf16, #tpu.memory_space<vmem>>, vector<4096x512xbf16>
    %cst = arith.constant dense<0.000000e+00> : vector<8x512xf32>
    %2 = tpu.matmul %0, %1, %cst {dimension_numbers = #tpu.dot_dimension_numbers<[1], [0], [0], [1], [0, 0, 1, 1], [], []>} : vector<8x4096xbf16>, vector<4096x512xbf16>, vector<8x512xf32> -> vector<8x512xf32>
    %cst_3 = arith.constant dense<0.000000e+00> : vector<512xf32>
    %3 = vector.multi_reduction <add>, %2, %cst_3 [0] : vector<8x512xf32> to vector<512xf32>
    %4 = vector.shape_cast %3 : vector<512xf32> to vector<1x512xf32>
    %cst_4 = arith.constant 1.250000e-01 : f32
    %5 = vector.broadcast %cst_4 : f32 to vector<1x512xf32>
    %6 = arith.mulf %4, %5 : vector<1x512xf32>
    %7 = arith.mulf %2, %2 : vector<8x512xf32>
    %cst_5 = arith.constant dense<0.000000e+00> : vector<512xf32>
    %8 = vector.multi_reduction <add>, %7, %cst_5 [0] : vector<8x512xf32> to vector<512xf32>
    %9 = vector.shape_cast %8 : vector<512xf32> to vector<1x512xf32>
    %cst_6 = arith.constant 1.250000e-01 : f32
    %10 = vector.broadcast %cst_6 : f32 to vector<1x512xf32>
    %11 = arith.mulf %9, %10 : vector<1x512xf32>
    %12 = arith.mulf %6, %6 : vector<1x512xf32>
    %13 = arith.subf %11, %12 : vector<1x512xf32>
    %14 = vector.broadcast %6 : vector<1x512xf32> to vector<8x512xf32>
    %15 = arith.subf %2, %14 : vector<8x512xf32>
    %cst_7 = arith.constant 9.99999974E-6 : f32
    %16 = vector.broadcast %cst_7 : f32 to vector<1x512xf32>
    %17 = arith.addf %13, %16 : vector<1x512xf32>
    %18 = math.rsqrt %17 : vector<1x512xf32>
    %19 = vector.broadcast %18 : vector<1x512xf32> to vector<8x512xf32>
    %20 = arith.mulf %15, %19 : vector<8x512xf32>
    %c0_8 = arith.constant 0 : index
    %c0_9 = arith.constant 0 : index
    %21 = vector.load %arg2[%c0_8, %c0_9] : memref<1x512xf32, #tpu.memory_space<vmem>>, vector<1x512xf32>
    %22 = vector.broadcast %21 : vector<1x512xf32> to vector<8x512xf32>
    %23 = arith.mulf %20, %22 : vector<8x512xf32>
    %c0_10 = arith.constant 0 : index
    %c0_11 = arith.constant 0 : index
    %24 = vector.load %arg3[%c0_10, %c0_11] : memref<1x512xf32, #tpu.memory_space<vmem>>, vector<1x512xf32>
    %25 = vector.broadcast %24 : vector<1x512xf32> to vector<8x512xf32>
    %26 = arith.addf %23, %25 : vector<8x512xf32>
    %cst_12 = arith.constant 0.000000e+00 : f32
    %27 = vector.broadcast %cst_12 : f32 to vector<8x512xf32>
    %28 = arith.cmpf oge, %26, %27 : vector<8x512xf32>
    %cst_13 = arith.constant 2.000000e-01 : f32
    %29 = vector.broadcast %cst_13 : f32 to vector<8x512xf32>
    %30 = arith.mulf %29, %26 : vector<8x512xf32>
    %31 = arith.select %28, %26, %30 : vector<8x512xi1>, vector<8x512xf32>
    %32 = arith.truncf %31 : vector<8x512xf32> to vector<8x512xbf16>
    %c0_14 = arith.constant 0 : index
    %c0_15 = arith.constant 0 : index
    %33 = vector.load %arg4[%c0_14, %c0_15] : memref<8x512xbf16, #tpu.memory_space<vmem>>, vector<8x512xbf16>
    tpu.vector_store %arg4[%c0_14, %c0_15], %32 {strides = array<i32>} : memref<8x512xbf16, #tpu.memory_space<vmem>>, vector<8x512xbf16>,
    return
  }
}

</mosaic_0001>

<bundles_post_ra>
// kernel: d_net_forward.5
= control target key start
LH: loop header
LB: loop body
LE: loop exit
PB: predicated region body
PF: predicated region fallthrough
CT: control target
= control target key end

     0   :  { %s1902_s9 = smov 0   ;;  %s2025_s0 = inlined_call_operand.vmem [shape: bf16[2048,128], index: 0, kind: input, shape index: {}]   ;;  %s2026_s1 = inlined_call_operand.vmem [shape: bf16[128,128], index: 1, kind: input, shape index: {}]   ;;  %s2027_s2 = inlined_call_operand.vmem [shape: bf16[2048,128], index: 2, kind: output, shape index: {}]  }
   0x1 LB: > { %s1325_s10 = sadd.s32 4294967295, %s1885_s9   ;;  %p1329_p0 = scmp.ge.s32.totalorder %s1885_s9, 1  ;;  %s1885_s9 = sphi %s1902_s9, %s12_s9  }
   0x2   : > { %p113_p1 = scmp.lt.s32.totalorder %s1885_s9, 5 }
   0x4   : > { %p114_p2 = pnand %p1329_p0, %p113_p1 }
   0x5   : > { %v1839_v0 = vld [vmem:[%s2026_s1] sm:$0xff] (!%p114_p2)   ;;  %s1330_s13 = sshll.u32 (!%p114_p2), %s1325_s10, 6  ;;  %v1840_v1 = vld [vmem:[%s2026_s1 + $0x8] sm:$0xff] (!%p114_p2)   ;;  %v1841_v2 = vld [vmem:[%s2026_s1 + $0x10] sm:$0xff] (!%p114_p2)  }
   0x6   : > { %117 = sbr.rel (%p114_p2) target bundleno = 317 (0x13d), region = 28  ;;  %p136_p3 = scmp.lt.s32.totalorder (!%p114_p2), %s1330_s13, 255  ;;  %1735 = vmatprep.subr.bf16.mxu0 (!%p114_p2), %v1839_v0  ;;  %1815 = vmatprep.subr.bf16.mxu1 (!%p114_p2), %v1839_v0  ;;  %v1842_v3 = vld [vmem:[%s2026_s1 + $0x18] sm:$0xff] (!%p114_p2)   ;;  %v1843_v6 = vld [vmem:[%s2026_s1 + $0x20] sm:$0xff] (!%p114_p2)   ;;  %v1844_v7 = vld [vmem:[%s2026_s1 + $0x28] sm:$0xff] (!%p114_p2)  }
   0x7   : > { %1736 = vmatpush3.bf16.msra.mxu0 (!%p114_p2), %v1839_v0  ;;  %1823 = vmatpush3.bf16.msra.mxu1 (!%p114_p2), %v1839_v0  ;;  %v1845_v8 = vld [vmem:[%s2026_s1 + $0x30] sm:$0xff] (!%p114_p2)   ;;  %v1846_v9 = vld [vmem:[%s2026_s1 + $0x38] sm:$0xff] (!%p114_p2)  }
   0x8   : > { %1737 = vmatprep.subr.bf16.mxu0 (!%p114_p2), %v1840_v1  ;;  %1816 = vmatprep.subr.bf16.mxu1 (!%p114_p2), %v1840_v1 }
   0xb   : > { %1738 = vmatpush3.bf16.msra.mxu0 (!%p114_p2), %v1840_v1  ;;  %1824 = vmatpush3.bf16.msra.mxu1 (!%p114_p2), %v1840_v1 }
   0xc   : > { %1739 = vmatprep.subr.bf16.mxu0 (!%p114_p2), %v1841_v2  ;;  %1817 = vmatprep.subr.bf16.mxu1 (!%p114_p2), %v1841_v2 }
   0xd   : > { %s2029_s13 = smov (!%p136_p3, %s1330_s13), 255 }
   0xe   : > { %s1331_s18 = sshll.u32 %s2029_s13, 2 }
   0xf   : > { %s1927_s21 = scalar_lea.vmem %s2025_s0, %s1331_s18  ;;  %1740 = vmatpush3.bf16.msra.mxu0 %v1841_v2  ;;  %1825 = vmatpush3.bf16.msra.mxu1 %v1841_v2  ;;  %s1981_s6 = scalar_lea.vmem %s2027_s2, %s1331_s18 }
  0x10   : > { %v1847_v4 = vld [vmem:[%s1927_s21] sm:$0xff]   ;;  %1741 = vmatprep.subr.bf16.mxu0 %v1842_v3  ;;  %1818 = vmatprep.subr.bf16.mxu1 %v1842_v3  ;;  %v1849_v10 = vld [vmem:[%s1927_s21 + $0x8] sm:$0xff]   ;;  %v1851_v12 = vld [vmem:[%s1927_s21 + $0x10] sm:$0xff]  }
  0x11   : > { %v1848_v5 = vld [vmem:[%s1927_s21 + $0x80] sm:$0xff]   ;;  %1751 = vmatprep.mubr.bf16.mxu0 %v1847_v4  ;;  %v1850_v11 = vld [vmem:[%s1927_s21 + $0x88] sm:$0xff]   ;;  %v1852_v13 = vld [vmem:[%s1927_s21 + $0x90] sm:$0xff]  }
  0x12   : > { %1783 = vmatprep.mubr.bf16.mxu1 %v1848_v5  ;;  %v1853_v14 = vld [vmem:[%s1927_s21 + $0x18] sm:$0xff]   ;;  %v1855_v16 = vld [vmem:[%s1927_s21 + $0x20] sm:$0xff]   ;;  %v1857_v18 = vld [vmem:[%s1927_s21 + $0x28] sm:$0xff]  }
  0x13   : > { %1742 = vmatpush3.bf16.msra.mxu0 %v1842_v3  ;;  %1826 = vmatpush3.bf16.msra.mxu1 %v1842_v3  ;;  %v1854_v15 = vld [vmem:[%s1927_s21 + $0x98] sm:$0xff]   ;;  %v1856_v17 = vld [vmem:[%s1927_s21 + $0xa0] sm:$0xff]   ;;  %v1858_v19 = vld [vmem:[%s1927_s21 + $0xa8] sm:$0xff]  }
  0x14   : > { %1743 = vmatprep.subr.bf16.mxu0 %v1843_v6  ;;  %1819 = vmatprep.subr.bf16.mxu1 %v1843_v6  ;;  %v1859_v20 = vld [vmem:[%s1927_s21 + $0x30] sm:$0xff]   ;;  %v1861_v22 = vld [vmem:[%s1927_s21 + $0x38] sm:$0xff]   ;;  %v1863_v24 = vld [vmem:[%s1927_s21 + $0x40] sm:$0xff]  }
  0x15   : > { %v1860_v21 = vld [vmem:[%s1927_s21 + $0xb0] sm:$0xff]   ;;  %v1862_v23 = vld [vmem:[%s1927_s21 + $0xb8] sm:$0xff]   ;;  %v1864_v25 = vld [vmem:[%s1927_s21 + $0xc0] sm:$0xff]  }
  0x16   : > { %v1865_v26 = vld [vmem:[%s1927_s21 + $0x48] sm:$0xff]   ;;  %v1867_v28 = vld [vmem:[%s1927_s21 + $0x50] sm:$0xff]   ;;  %v1869_v30 = vld [vmem:[%s1927_s21 + $0x58] sm:$0xff]  }
  0x17   : > { %1744 = vmatpush3.bf16.msra.mxu0 %v1843_v6  ;;  %1827 = vmatpush3.bf16.msra.mxu1 %v1843_v6  ;;  %v1866_v27 = vld [vmem:[%s1927_s21 + $0xc8] sm:$0xff]   ;;  %v1868_v29 = vld [vmem:[%s1927_s21 + $0xd0] sm:$0xff]   ;;  %v1870_v31 = vld [vmem:[%s1927_s21 + $0xd8] sm:$0xff]  }
  0x18   : > { %1745 = vmatprep.subr.bf16.mxu0 %v1844_v7  ;;  %1820 = vmatprep.subr.bf16.mxu1 %v1844_v7  ;;  %v1871_v32 = vld [vmem:[%s1927_s21 + $0x60] sm:$0xff]   ;;  %v1873_v34 = vld [vmem:[%s1927_s21 + $0x68] sm:$0xff]   ;;  %v1875_v36 = vld [vmem:[%s1927_s21 + $0x70] sm:$0xff]  }
  0x19   : > { %v1872_v33 = vld [vmem:[%s1927_s21 + $0xe0] sm:$0xff]   ;;  %v1874_v35 = vld [vmem:[%s1927_s21 + $0xe8] sm:$0xff]   ;;  %v1876_v37 = vld [vmem:[%s1927_s21 + $0xf0] sm:$0xff]  }
  0x1a   : > { %v1877_v38 = vld [vmem:[%s1927_s21 + $0x78] sm:$0xff]  }
  0x1b   : > { %1746 = vmatpush3.bf16.msra.mxu0 %v1844_v7  ;;  %1828 = vmatpush3.bf16.msra.mxu1 %v1844_v7  ;;  %v1878_v39 = vld [vmem:[%s1927_s21 + $0xf8] sm:$0xff]  }
  0x1c   : > { %1747 = vmatprep.subr.bf16.mxu0 %v1845_v8  ;;  %1821 = vmatprep.subr.bf16.mxu1 %v1845_v8 }
  0x1f   : > { %1748 = vmatpush3.bf16.msra.mxu0 %v1845_v8  ;;  %1829 = vmatpush3.bf16.msra.mxu1 %v1845_v8 }
  0x20   : > { %1749 = vmatprep.subr.bf16.mxu0 %v1846_v9  ;;  %1822 = vmatprep.subr.bf16.mxu1 %v1846_v9 }
  0x23   : > { %1750 = vmatpush3.bf16.msra.mxu0 %v1846_v9  ;;  %1830 = vmatpush3.bf16.msra.mxu1 %v1846_v9 }
  0x26   : > { %1752 = vmatmul.mubr.bf16.vlgmr.msra.gmra.mrb[0].mxu0 %v1849_v10  ;;  %1784 = vmatmul.mubr.bf16.vlgmr.msra.gmra.mrb[0].mxu1 %v1850_v11 }
  0x27   : > { %1755 = vmatprep.mubr.bf16.mxu0 %v1851_v12  ;;  %1787 = vmatprep.mubr.bf16.mxu1 %v1852_v13 }
  0x2e   : > { %1756 = vmatmul.mubr.bf16.gmra.mrb[4].mxu0 %v1853_v14  ;;  %1788 = vmatmul.mubr.bf16.gmra.mrb[4].mxu1 %v1854_v15 }
  0x2f   : > { %1759 = vmatprep.mubr.bf16.mxu0 %v1855_v16  ;;  %1791 = vmatprep.mubr.bf16.mxu1 %v1856_v17 }
  0x36   : > { %1760 = vmatmul.mubr.bf16.gmra.mrb[8].mxu0 %v1857_v18  ;;  %1792 = vmatmul.mubr.bf16.gmra.mrb[8].mxu1 %v1858_v19 }
  0x37   : > { %1763 = vmatprep.mubr.bf16.mxu0 %v1859_v20  ;;  %1795 = vmatprep.mubr.bf16.mxu1 %v1860_v21 }
  0x3e   : > { %1764 = vmatmul.mubr.bf16.gmra.mrb[12].mxu0 %v1861_v22  ;;  %1796 = vmatmul.mubr.bf16.gmra.mrb[12].mxu1 %v1862_v23 }
  0x3f   : > { %1767 = vmatprep.mubr.bf16.mxu0 %v1863_v24  ;;  %1799 = vmatprep.mubr.bf16.mxu1 %v1864_v25 }
  0x46   : > { %1768 = vmatmul.mubr.bf16.gmra.mrb[16].mxu0 %v1865_v26  ;;  %1800 = vmatmul.mubr.bf16.gmra.mrb[16].mxu1 %v1866_v27 }
  0x47   : > { %1771 = vmatprep.mubr.bf16.mxu0 %v1867_v28  ;;  %1803 = vmatprep.mubr.bf16.mxu1 %v1868_v29 }
  0x4e   : > { %1772 = vmatmul.mubr.bf16.gmra.mrb[20].mxu0 %v1869_v30  ;;  %1804 = vmatmul.mubr.bf16.gmra.mrb[20].mxu1 %v1870_v31 }
  0x4f   : > { %1775 = vmatprep.mubr.bf16.mxu0 %v1871_v32  ;;  %1807 = vmatprep.mubr.bf16.mxu1 %v1872_v33 }
  0x56   : > { %1776 = vmatmul.mubr.bf16.gmra.mrb[24].mxu0 %v1873_v34  ;;  %1808 = vmatmul.mubr.bf16.gmra.mrb[24].mxu1 %v1874_v35 }
  0x57   : > { %1779 = vmatprep.mubr.bf16.mxu0 %v1875_v36  ;;  %1811 = vmatprep.mubr.bf16.mxu1 %v1876_v37 }
  0x5e   : > { %1780 = vmatmul.mubr.bf16.gmra.mrb[28].mxu0 %v1877_v38  ;;  %1812 = vmatmul.mubr.bf16.gmra.mrb[28].mxu1 %v1878_v39 }
  0xf9   : > { %v1753_v40 = vpop.f32.mrb[0].mxu0  ;;  %v1785_v41 = vpop.f32.mrb[0].mxu1 }
  0xfa   : > { %vm759_vm0 = vcmp.ge.f32.partialorder %v1753_v40, 0.0  ;;  %v823_v42 = vmul.f32 0.2, %v1753_v40  ;;  %v855_v43 = vmul.f32 0.2, %v1785_v41  ;;  %vm791_vm1 = vcmp.ge.f32.partialorder %v1785_v41, 0.0 }
  0xfb   : > { %v502_v44 = vpop.f32.mrb[1].mxu0  ;;  %v630_v45 = vpop.f32.mrb[1].mxu1 }
  0xfc   : > { %v821_v46 = vmul.f32 0.2, %v502_v44  ;;  %v1754_v47 = vpop.f32.mrb[2].mxu0  ;;  %v1786_v48 = vpop.f32.mrb[2].mxu1  ;;  %v887_v49 = vsel %vm759_vm0, %v1753_v40, %v823_v42  ;;  %v853_v50 = vmul.f32 0.2, %v630_v45  ;;  %v919_v52 = vsel %vm791_vm1, %v1785_v41, %v855_v43 }
  0xfd   : > { %vm760_vm2 = vcmp.ge.f32.partialorder %v1754_v47, 0.0  ;;  %v824_v51 = vmul.f32 0.2, %v1754_v47  ;;  %vm757_vm3 = vcmp.ge.f32.partialorder %v502_v44, 0.0  ;;  %vm792_vm4 = vcmp.ge.f32.partialorder %v1786_v48, 0.0  ;;  %v505_v54 = vpop.f32.mrb[3].mxu0 }
  0xfe   : > { %v856_v53 = vmul.f32 0.2, %v1786_v48  ;;  %v633_v55 = vpop.f32.mrb[3].mxu1  ;;  %vm789_vm5 = vcmp.ge.f32.partialorder %v630_v45, 0.0  ;;  %vm758_vm6 = vcmp.ge.f32.partialorder %v505_v54, 0.0  ;;  %v885_v61 = vsel %vm757_vm3, %v502_v44, %v821_v46 }
  0xff   : > { %v888_v56 = vsel %vm760_vm2, %v1754_v47, %v824_v51  ;;  %v822_v57 = vmul.f32 0.2, %v505_v54  ;;  %vm790_vm7 = vcmp.ge.f32.partialorder %v633_v55, 0.0  ;;  %v854_v60 = vmul.f32 0.2, %v633_v55 }
 0x100   : > { %v1512_v58 = vpack.c.bf16 %v888_v56, %v887_v49  ;;  %v920_v59 = vsel %vm792_vm4, %v1786_v48, %v856_v53  ;;  %v917_v2 = vsel %vm789_vm5, %v630_v45, %v853_v50 }
 0x101   : > { %v1592_v62 = vpack.c.bf16 %v920_v59, %v919_v52  ;;  %v886_v63 = vsel %vm758_vm6, %v505_v54, %v822_v57  ;;  %v1757_v0 = vpop.f32.mrb[4].mxu0  ;;  %v1789_v1 = vpop.f32.mrb[4].mxu1  ;;  %v918_v4 = vsel %vm790_vm7, %v633_v55, %v854_v60 }
 0x102   : > { %1664 = vst [vmem:[%s1981_s6 + $0x8] sm:$0xff] %v1512_v58   ;;  %v1507_v3 = vpack.c.bf16 %v886_v63, %v885_v61  ;;  %v827_v5 = vmul.f32 0.2, %v1757_v0  ;;  %v518_v6 = vpop.f32.mrb[5].mxu0  ;;  %v646_v7 = vpop.f32.mrb[5].mxu1  ;;  %v1587_v8 = vpack.c.bf16 %v918_v4, %v917_v2  ;;  %vm763_vm8 = vcmp.ge.f32.partialorder %v1757_v0, 0.0 }
 0x103   : > { %1680 = vst [vmem:[%s1981_s6 + $0x88] sm:$0xff] %v1592_v62   ;;  %v859_v9 = vmul.f32 0.2, %v1789_v1  ;;  %v1758_v10 = vpop.f32.mrb[6].mxu0  ;;  %v1790_v11 = vpop.f32.mrb[6].mxu1  ;;  %vm795_vm9 = vcmp.ge.f32.partialorder %v1789_v1, 0.0 }
 0x104   : > { %1508 = vst [vmem:[%s1981_s6] sm:$0xff] %v1507_v3   ;;  %v825_v12 = vmul.f32 0.2, %v518_v6  ;;  %v857_v13 = vmul.f32 0.2, %v646_v7  ;;  %v521_v14 = vpop.f32.mrb[7].mxu0  ;;  %1679 = vst [vmem:[%s1981_s6 + $0x80] sm:$0xff] %v1587_v8   ;;  %v891_v17 = vsel %vm763_vm8, %v1757_v0, %v827_v5 }
 0x105   : > { %vm761_vm10 = vcmp.ge.f32.partialorder %v518_v6, 0.0  ;;  %vm764_vm11 = vcmp.ge.f32.partialorder %v1758_v10, 0.0  ;;  %v828_v15 = vmul.f32 0.2, %v1758_v10  ;;  %vm796_vm12 = vcmp.ge.f32.partialorder %v1790_v11, 0.0  ;;  %v649_v16 = vpop.f32.mrb[7].mxu1 }
 0x106   : > { %vm793_vm13 = vcmp.ge.f32.partialorder %v646_v7, 0.0  ;;  %v860_v18 = vmul.f32 0.2, %v1790_v11  ;;  %vm762_vm14 = vcmp.ge.f32.partialorder %v521_v14, 0.0  ;;  %v826_v20 = vmul.f32 0.2, %v521_v14 }
 0x107   : > { %v892_v19 = vsel %vm764_vm11, %v1758_v10, %v828_v15  ;;  %vm794_vm15 = vcmp.ge.f32.partialorder %v649_v16, 0.0  ;;  %v858_v21 = vmul.f32 0.2, %v649_v16  ;;  %v923_v22 = vsel %vm795_vm9, %v1789_v1, %v859_v9 }
 0x108   : > { %v889_v23 = vsel %vm761_vm10, %v518_v6, %v825_v12  ;;  %v1522_v24 = vpack.c.bf16 %v892_v19, %v891_v17  ;;  %v924_v25 = vsel %vm796_vm12, %v1790_v11, %v860_v18  ;;  %v921_v26 = vsel %vm793_vm13, %v646_v7, %v857_v13 }
 0x109   : > { %v1602_v27 = vpack.c.bf16 %v924_v25, %v923_v22  ;;  %v890_v28 = vsel %vm762_vm14, %v521_v14, %v826_v20  ;;  %v922_v29 = vsel %vm794_vm15, %v649_v16, %v858_v21  ;;  %v1761_v30 = vpop.f32.mrb[8].mxu0  ;;  %v1793_v31 = vpop.f32.mrb[8].mxu1 }
 0x10a   : > { %1666 = vst [vmem:[%s1981_s6 + $0x18] sm:$0xff] %v1522_v24   ;;  %v1517_v32 = vpack.c.bf16 %v890_v28, %v889_v23  ;;  %v1597_v33 = vpack.c.bf16 %v922_v29, %v921_v26  ;;  %vm767_vm0 = vcmp.ge.f32.partialorder %v1761_v30, 0.0  ;;  %v831_v34 = vmul.f32 0.2, %v1761_v30  ;;  %v534_v35 = vpop.f32.mrb[9].mxu0  ;;  %v662_v36 = vpop.f32.mrb[9].mxu1 }
 0x10b   : > { %1682 = vst [vmem:[%s1981_s6 + $0x98] sm:$0xff] %v1602_v27   ;;  %vm799_vm1 = vcmp.ge.f32.partialorder %v1793_v31, 0.0  ;;  %v863_v37 = vmul.f32 0.2, %v1793_v31  ;;  %v829_v38 = vmul.f32 0.2, %v534_v35 }
 0x10c   : > { %1665 = vst [vmem:[%s1981_s6 + $0x10] sm:$0xff] %v1517_v32   ;;  %1681 = vst [vmem:[%s1981_s6 + $0x90] sm:$0xff] %v1597_v33   ;;  %v861_v39 = vmul.f32 0.2, %v662_v36  ;;  %v1762_v40 = vpop.f32.mrb[10].mxu0  ;;  %v1794_v41 = vpop.f32.mrb[10].mxu1  ;;  %v895_v42 = vsel %vm767_vm0, %v1761_v30, %v831_v34 }
 0x10d   : > { %vm765_vm2 = vcmp.ge.f32.partialorder %v534_v35, 0.0  ;;  %vm768_vm3 = vcmp.ge.f32.partialorder %v1762_v40, 0.0  ;;  %v832_v43 = vmul.f32 0.2, %v1762_v40  ;;  %v537_v44 = vpop.f32.mrb[11].mxu0  ;;  %v665_v45 = vpop.f32.mrb[11].mxu1  ;;  %v927_v50 = vsel %vm799_vm1, %v1793_v31, %v863_v37 }
 0x10e   : > { %vm797_vm4 = vcmp.ge.f32.partialorder %v662_v36, 0.0  ;;  %vm800_vm5 = vcmp.ge.f32.partialorder %v1794_v41, 0.0  ;;  %v864_v46 = vmul.f32 0.2, %v1794_v41  ;;  %vm766_vm6 = vcmp.ge.f32.partialorder %v537_v44, 0.0 }
 0x10f   : > { %v896_v47 = vsel %vm768_vm3, %v1762_v40, %v832_v43  ;;  %v830_v48 = vmul.f32 0.2, %v537_v44  ;;  %vm798_vm7 = vcmp.ge.f32.partialorder %v665_v45, 0.0  ;;  %v862_v49 = vmul.f32 0.2, %v665_v45 }
 0x110   : > { %v893_v51 = vsel %vm765_vm2, %v534_v35, %v829_v38  ;;  %v1532_v52 = vpack.c.bf16 %v896_v47, %v895_v42  ;;  %v928_v53 = vsel %vm800_vm5, %v1794_v41, %v864_v46  ;;  %v925_v54 = vsel %vm797_vm4, %v662_v36, %v861_v39 }
 0x111   : > { %v1612_v55 = vpack.c.bf16 %v928_v53, %v927_v50  ;;  %v894_v56 = vsel %vm766_vm6, %v537_v44, %v830_v48  ;;  %v926_v57 = vsel %vm798_vm7, %v665_v45, %v862_v49  ;;  %v1765_v58 = vpop.f32.mrb[12].mxu0  ;;  %v1797_v59 = vpop.f32.mrb[12].mxu1 }
 0x112   : > { %1668 = vst [vmem:[%s1981_s6 + $0x28] sm:$0xff] %v1532_v52   ;;  %v1527_v60 = vpack.c.bf16 %v894_v56, %v893_v51  ;;  %v1607_v61 = vpack.c.bf16 %v926_v57, %v925_v54  ;;  %vm771_vm8 = vcmp.ge.f32.partialorder %v1765_v58, 0.0  ;;  %v835_v62 = vmul.f32 0.2, %v1765_v58  ;;  %v550_v63 = vpop.f32.mrb[13].mxu0  ;;  %v678_v0 = vpop.f32.mrb[13].mxu1 }
 0x113   : > { %1684 = vst [vmem:[%s1981_s6 + $0xa8] sm:$0xff] %v1612_v55   ;;  %vm803_vm9 = vcmp.ge.f32.partialorder %v1797_v59, 0.0  ;;  %v867_v1 = vmul.f32 0.2, %v1797_v59  ;;  %v833_v2 = vmul.f32 0.2, %v550_v63 }
 0x114   : > { %1667 = vst [vmem:[%s1981_s6 + $0x20] sm:$0xff] %v1527_v60   ;;  %1683 = vst [vmem:[%s1981_s6 + $0xa0] sm:$0xff] %v1607_v61   ;;  %v865_v3 = vmul.f32 0.2, %v678_v0  ;;  %v1766_v4 = vpop.f32.mrb[14].mxu0  ;;  %v1798_v5 = vpop.f32.mrb[14].mxu1  ;;  %v899_v6 = vsel %vm771_vm8, %v1765_v58, %v835_v62 }
 0x115   : > { %vm769_vm10 = vcmp.ge.f32.partialorder %v550_v63, 0.0  ;;  %vm772_vm11 = vcmp.ge.f32.partialorder %v1766_v4, 0.0  ;;  %v836_v7 = vmul.f32 0.2, %v1766_v4  ;;  %v553_v8 = vpop.f32.mrb[15].mxu0  ;;  %v681_v9 = vpop.f32.mrb[15].mxu1  ;;  %v931_v14 = vsel %vm803_vm9, %v1797_v59, %v867_v1 }
 0x116   : > { %vm801_vm12 = vcmp.ge.f32.partialorder %v678_v0, 0.0  ;;  %vm804_vm13 = vcmp.ge.f32.partialorder %v1798_v5, 0.0  ;;  %v868_v10 = vmul.f32 0.2, %v1798_v5  ;;  %vm770_vm14 = vcmp.ge.f32.partialorder %v553_v8, 0.0 }
 0x117   : > { %v900_v11 = vsel %vm772_vm11, %v1766_v4, %v836_v7  ;;  %v834_v12 = vmul.f32 0.2, %v553_v8  ;;  %vm802_vm15 = vcmp.ge.f32.partialorder %v681_v9, 0.0  ;;  %v866_v13 = vmul.f32 0.2, %v681_v9 }
 0x118   : > { %v897_v15 = vsel %vm769_vm10, %v550_v63, %v833_v2  ;;  %v1542_v16 = vpack.c.bf16 %v900_v11, %v899_v6  ;;  %v932_v17 = vsel %vm804_vm13, %v1798_v5, %v868_v10  ;;  %v929_v18 = vsel %vm801_vm12, %v678_v0, %v865_v3 }
 0x119   : > { %v1622_v19 = vpack.c.bf16 %v932_v17, %v931_v14  ;;  %v898_v20 = vsel %vm770_vm14, %v553_v8, %v834_v12  ;;  %v930_v21 = vsel %vm802_vm15, %v681_v9, %v866_v13  ;;  %v1769_v22 = vpop.f32.mrb[16].mxu0  ;;  %v1801_v23 = vpop.f32.mrb[16].mxu1 }
 0x11a   : > { %1670 = vst [vmem:[%s1981_s6 + $0x38] sm:$0xff] %v1542_v16   ;;  %v1537_v24 = vpack.c.bf16 %v898_v20, %v897_v15  ;;  %v1617_v25 = vpack.c.bf16 %v930_v21, %v929_v18  ;;  %vm775_vm0 = vcmp.ge.f32.partialorder %v1769_v22, 0.0  ;;  %v839_v26 = vmul.f32 0.2, %v1769_v22  ;;  %v566_v27 = vpop.f32.mrb[17].mxu0  ;;  %v694_v28 = vpop.f32.mrb[17].mxu1 }
 0x11b   : > { %1686 = vst [vmem:[%s1981_s6 + $0xb8] sm:$0xff] %v1622_v19   ;;  %vm807_vm1 = vcmp.ge.f32.partialorder %v1801_v23, 0.0  ;;  %v871_v29 = vmul.f32 0.2, %v1801_v23  ;;  %v837_v30 = vmul.f32 0.2, %v566_v27 }
 0x11c   : > { %1669 = vst [vmem:[%s1981_s6 + $0x30] sm:$0xff] %v1537_v24   ;;  %1685 = vst [vmem:[%s1981_s6 + $0xb0] sm:$0xff] %v1617_v25   ;;  %v869_v31 = vmul.f32 0.2, %v694_v28  ;;  %v1770_v32 = vpop.f32.mrb[18].mxu0  ;;  %v1802_v33 = vpop.f32.mrb[18].mxu1  ;;  %v903_v34 = vsel %vm775_vm0, %v1769_v22, %v839_v26 }
 0x11d   : > { %vm773_vm2 = vcmp.ge.f32.partialorder %v566_v27, 0.0  ;;  %vm776_vm3 = vcmp.ge.f32.partialorder %v1770_v32, 0.0  ;;  %v840_v35 = vmul.f32 0.2, %v1770_v32  ;;  %v569_v36 = vpop.f32.mrb[19].mxu0  ;;  %v697_v37 = vpop.f32.mrb[19].mxu1  ;;  %v935_v42 = vsel %vm807_vm1, %v1801_v23, %v871_v29 }
 0x11e   : > { %vm805_vm4 = vcmp.ge.f32.partialorder %v694_v28, 0.0  ;;  %vm808_vm5 = vcmp.ge.f32.partialorder %v1802_v33, 0.0  ;;  %v872_v38 = vmul.f32 0.2, %v1802_v33  ;;  %vm774_vm6 = vcmp.ge.f32.partialorder %v569_v36, 0.0 }
 0x11f   : > { %v904_v39 = vsel %vm776_vm3, %v1770_v32, %v840_v35  ;;  %v838_v40 = vmul.f32 0.2, %v569_v36  ;;  %vm806_vm7 = vcmp.ge.f32.partialorder %v697_v37, 0.0  ;;  %v870_v41 = vmul.f32 0.2, %v697_v37 }
 0x120   : > { %v901_v43 = vsel %vm773_vm2, %v566_v27, %v837_v30  ;;  %v1552_v44 = vpack.c.bf16 %v904_v39, %v903_v34  ;;  %v936_v45 = vsel %vm808_vm5, %v1802_v33, %v872_v38  ;;  %v933_v46 = vsel %vm805_vm4, %v694_v28, %v869_v31 }
 0x121   : > { %v1632_v47 = vpack.c.bf16 %v936_v45, %v935_v42  ;;  %v902_v48 = vsel %vm774_vm6, %v569_v36, %v838_v40  ;;  %v934_v49 = vsel %vm806_vm7, %v697_v37, %v870_v41  ;;  %v1773_v50 = vpop.f32.mrb[20].mxu0  ;;  %v1805_v51 = vpop.f32.mrb[20].mxu1 }
 0x122   : > { %1672 = vst [vmem:[%s1981_s6 + $0x48] sm:$0xff] %v1552_v44   ;;  %v1547_v52 = vpack.c.bf16 %v902_v48, %v901_v43  ;;  %v1627_v53 = vpack.c.bf16 %v934_v49, %v933_v46  ;;  %vm779_vm8 = vcmp.ge.f32.partialorder %v1773_v50, 0.0  ;;  %v843_v54 = vmul.f32 0.2, %v1773_v50  ;;  %v582_v55 = vpop.f32.mrb[21].mxu0  ;;  %v710_v56 = vpop.f32.mrb[21].mxu1 }
 0x123   : > { %1688 = vst [vmem:[%s1981_s6 + $0xc8] sm:$0xff] %v1632_v47   ;;  %vm811_vm9 = vcmp.ge.f32.partialorder %v1805_v51, 0.0  ;;  %v875_v57 = vmul.f32 0.2, %v1805_v51  ;;  %v841_v58 = vmul.f32 0.2, %v582_v55 }
 0x124   : > { %1671 = vst [vmem:[%s1981_s6 + $0x40] sm:$0xff] %v1547_v52   ;;  %1687 = vst [vmem:[%s1981_s6 + $0xc0] sm:$0xff] %v1627_v53   ;;  %v873_v59 = vmul.f32 0.2, %v710_v56  ;;  %v1774_v60 = vpop.f32.mrb[22].mxu0  ;;  %v1806_v61 = vpop.f32.mrb[22].mxu1  ;;  %v907_v62 = vsel %vm779_vm8, %v1773_v50, %v843_v54 }
 0x125   : > { %vm777_vm10 = vcmp.ge.f32.partialorder %v582_v55, 0.0  ;;  %vm780_vm11 = vcmp.ge.f32.partialorder %v1774_v60, 0.0  ;;  %v844_v63 = vmul.f32 0.2, %v1774_v60  ;;  %v585_v0 = vpop.f32.mrb[23].mxu0  ;;  %v713_v1 = vpop.f32.mrb[23].mxu1  ;;  %v939_v6 = vsel %vm811_vm9, %v1805_v51, %v875_v57 }
 0x126   : > { %vm809_vm12 = vcmp.ge.f32.partialorder %v710_v56, 0.0  ;;  %vm812_vm13 = vcmp.ge.f32.partialorder %v1806_v61, 0.0  ;;  %v876_v2 = vmul.f32 0.2, %v1806_v61  ;;  %vm778_vm14 = vcmp.ge.f32.partialorder %v585_v0, 0.0 }
 0x127   : > { %v908_v3 = vsel %vm780_vm11, %v1774_v60, %v844_v63  ;;  %v842_v4 = vmul.f32 0.2, %v585_v0  ;;  %vm810_vm15 = vcmp.ge.f32.partialorder %v713_v1, 0.0  ;;  %v874_v5 = vmul.f32 0.2, %v713_v1 }
 0x128   : > { %v905_v7 = vsel %vm777_vm10, %v582_v55, %v841_v58  ;;  %v1562_v8 = vpack.c.bf16 %v908_v3, %v907_v62  ;;  %v940_v9 = vsel %vm812_vm13, %v1806_v61, %v876_v2  ;;  %v937_v10 = vsel %vm809_vm12, %v710_v56, %v873_v59 }
 0x129   : > { %v1642_v11 = vpack.c.bf16 %v940_v9, %v939_v6  ;;  %v906_v12 = vsel %vm778_vm14, %v585_v0, %v842_v4  ;;  %v938_v13 = vsel %vm810_vm15, %v713_v1, %v874_v5  ;;  %v1777_v14 = vpop.f32.mrb[24].mxu0  ;;  %v1809_v15 = vpop.f32.mrb[24].mxu1 }
 0x12a   : > { %1674 = vst [vmem:[%s1981_s6 + $0x58] sm:$0xff] %v1562_v8   ;;  %v1557_v16 = vpack.c.bf16 %v906_v12, %v905_v7  ;;  %v1637_v17 = vpack.c.bf16 %v938_v13, %v937_v10  ;;  %vm783_vm0 = vcmp.ge.f32.partialorder %v1777_v14, 0.0  ;;  %v847_v18 = vmul.f32 0.2, %v1777_v14  ;;  %v598_v19 = vpop.f32.mrb[25].mxu0  ;;  %v726_v20 = vpop.f32.mrb[25].mxu1 }
 0x12b   : > { %1690 = vst [vmem:[%s1981_s6 + $0xd8] sm:$0xff] %v1642_v11   ;;  %vm815_vm1 = vcmp.ge.f32.partialorder %v1809_v15, 0.0  ;;  %v879_v21 = vmul.f32 0.2, %v1809_v15  ;;  %v845_v22 = vmul.f32 0.2, %v598_v19 }
 0x12c   : > { %1673 = vst [vmem:[%s1981_s6 + $0x50] sm:$0xff] %v1557_v16   ;;  %1689 = vst [vmem:[%s1981_s6 + $0xd0] sm:$0xff] %v1637_v17   ;;  %v877_v23 = vmul.f32 0.2, %v726_v20  ;;  %v1778_v24 = vpop.f32.mrb[26].mxu0  ;;  %v1810_v25 = vpop.f32.mrb[26].mxu1  ;;  %v911_v26 = vsel %vm783_vm0, %v1777_v14, %v847_v18 }
 0x12d   : > { %vm781_vm2 = vcmp.ge.f32.partialorder %v598_v19, 0.0  ;;  %vm784_vm3 = vcmp.ge.f32.partialorder %v1778_v24, 0.0  ;;  %v848_v27 = vmul.f32 0.2, %v1778_v24  ;;  %v601_v28 = vpop.f32.mrb[27].mxu0  ;;  %v729_v29 = vpop.f32.mrb[27].mxu1  ;;  %v943_v34 = vsel %vm815_vm1, %v1809_v15, %v879_v21 }
 0x12e   : > { %vm813_vm4 = vcmp.ge.f32.partialorder %v726_v20, 0.0  ;;  %vm816_vm5 = vcmp.ge.f32.partialorder %v1810_v25, 0.0  ;;  %v880_v30 = vmul.f32 0.2, %v1810_v25  ;;  %vm782_vm6 = vcmp.ge.f32.partialorder %v601_v28, 0.0 }
 0x12f   : > { %v912_v31 = vsel %vm784_vm3, %v1778_v24, %v848_v27  ;;  %v846_v32 = vmul.f32 0.2, %v601_v28  ;;  %vm814_vm7 = vcmp.ge.f32.partialorder %v729_v29, 0.0  ;;  %v878_v33 = vmul.f32 0.2, %v729_v29 }
 0x130   : > { %v909_v35 = vsel %vm781_vm2, %v598_v19, %v845_v22  ;;  %v1572_v36 = vpack.c.bf16 %v912_v31, %v911_v26  ;;  %v944_v37 = vsel %vm816_vm5, %v1810_v25, %v880_v30  ;;  %v941_v38 = vsel %vm813_vm4, %v726_v20, %v877_v23 }
 0x131   : > { %v1652_v39 = vpack.c.bf16 %v944_v37, %v943_v34  ;;  %v910_v40 = vsel %vm782_vm6, %v601_v28, %v846_v32  ;;  %v942_v41 = vsel %vm814_vm7, %v729_v29, %v878_v33  ;;  %v1781_v42 = vpop.f32.mrb[28].mxu0  ;;  %v1813_v43 = vpop.f32.mrb[28].mxu1 }
 0x132   : > { %1676 = vst [vmem:[%s1981_s6 + $0x68] sm:$0xff] %v1572_v36   ;;  %v1567_v44 = vpack.c.bf16 %v910_v40, %v909_v35  ;;  %v1647_v45 = vpack.c.bf16 %v942_v41, %v941_v38  ;;  %vm787_vm8 = vcmp.ge.f32.partialorder %v1781_v42, 0.0  ;;  %v851_v46 = vmul.f32 0.2, %v1781_v42  ;;  %v614_v47 = vpop.f32.mrb[29].mxu0  ;;  %v742_v48 = vpop.f32.mrb[29].mxu1 }
 0x133   : > { %1692 = vst [vmem:[%s1981_s6 + $0xe8] sm:$0xff] %v1652_v39   ;;  %vm819_vm9 = vcmp.ge.f32.partialorder %v1813_v43, 0.0  ;;  %v883_v49 = vmul.f32 0.2, %v1813_v43  ;;  %v849_v50 = vmul.f32 0.2, %v614_v47 }
 0x134   : > { %1675 = vst [vmem:[%s1981_s6 + $0x60] sm:$0xff] %v1567_v44   ;;  %1691 = vst [vmem:[%s1981_s6 + $0xe0] sm:$0xff] %v1647_v45   ;;  %v881_v51 = vmul.f32 0.2, %v742_v48  ;;  %v1782_v52 = vpop.f32.mrb[30].mxu0  ;;  %v1814_v53 = vpop.f32.mrb[30].mxu1  ;;  %v915_v54 = vsel %vm787_vm8, %v1781_v42, %v851_v46 }
 0x135   : > { %vm785_vm10 = vcmp.ge.f32.partialorder %v614_v47, 0.0  ;;  %vm788_vm11 = vcmp.ge.f32.partialorder %v1782_v52, 0.0  ;;  %v852_v55 = vmul.f32 0.2, %v1782_v52  ;;  %v617_v56 = vpop.f32.mrb[31].mxu0  ;;  %v745_v57 = vpop.f32.mrb[31].mxu1  ;;  %v947_v62 = vsel %vm819_vm9, %v1813_v43, %v883_v49 }
 0x136   : > { %vm817_vm12 = vcmp.ge.f32.partialorder %v742_v48, 0.0  ;;  %vm820_vm13 = vcmp.ge.f32.partialorder %v1814_v53, 0.0  ;;  %v884_v58 = vmul.f32 0.2, %v1814_v53  ;;  %vm786_vm14 = vcmp.ge.f32.partialorder %v617_v56, 0.0 }
 0x137   : > { %v916_v59 = vsel %vm788_vm11, %v1782_v52, %v852_v55  ;;  %v850_v60 = vmul.f32 0.2, %v617_v56  ;;  %vm818_vm15 = vcmp.ge.f32.partialorder %v745_v57, 0.0  ;;  %v882_v61 = vmul.f32 0.2, %v745_v57 }
 0x138   : > { %v913_v63 = vsel %vm785_vm10, %v614_v47, %v849_v50  ;;  %v1582_v0 = vpack.c.bf16 %v916_v59, %v915_v54  ;;  %v948_v1 = vsel %vm820_vm13, %v1814_v53, %v884_v58  ;;  %v945_v2 = vsel %vm817_vm12, %v742_v48, %v881_v51 }
 0x139   : > { %v1662_v3 = vpack.c.bf16 %v948_v1, %v947_v62  ;;  %v914_v4 = vsel %vm786_vm14, %v617_v56, %v850_v60  ;;  %v946_v5 = vsel %vm818_vm15, %v745_v57, %v882_v61 }
 0x13a   : > { %1678 = vst [vmem:[%s1981_s6 + $0x78] sm:$0xff] %v1582_v0   ;;  %v1577_v6 = vpack.c.bf16 %v914_v4, %v913_v63  ;;  %v1657_v7 = vpack.c.bf16 %v946_v5, %v945_v2 }
 0x13b   : > { %1694 = vst [vmem:[%s1981_s6 + $0xf8] sm:$0xff] %v1662_v3  }
 0x13c   : > { %1677 = vst [vmem:[%s1981_s6 + $0x70] sm:$0xff] %v1577_v6   ;;  %1693 = vst [vmem:[%s1981_s6 + $0xf0] sm:$0xff] %v1657_v7  }
 0x13d PF: > { %s12_s9 = sadd.s32 1, %s1885_s9  }
 0x13e   : > { %p9_p4 = scmp.ge.s32.totalorder %s12_s9, 6  }
 0x140   :  { %11 = sbr.rel (!%p9_p4) target bundleno = 1 (0x1), region = 58 }

// kernel: d_net_forward.7
= control target key start
LH: loop header
LB: loop body
LE: loop exit
PB: predicated region body
PF: predicated region fallthrough
CT: control target
= control target key end

     0   :  { %s2694_s1 = inlined_call_operand.vmem [shape: bf16[1024,128], index: 1, kind: input, shape index: {}]   ;;  %s2695_s0 = inlined_call_operand.vmem [shape: bf16[128,1024], index: 0, kind: input, shape index: {}]   ;;  %s2696_s2 = inlined_call_operand.vmem [shape: f32[1,128], index: 2, kind: input, shape index: {}]   ;;  %s2697_s3 = inlined_call_operand.vmem [shape: f32[1,128], index: 3, kind: input, shape index: {}]   ;;  %s2698_s4 = inlined_call_operand.vmem [shape: bf16[128,128], index: 4, kind: output, shape index: {}]  }
   0x1   :  { %v2041_v0 = vld [vmem:[%s2694_s1 + $0x40] sm:$0xff]   ;;  %v2045_v4 = vld [vmem:[%s2694_s1 + $0x48] sm:$0xff]   ;;  %v2049_v8 = vld [vmem:[%s2694_s1 + $0x50] sm:$0xff]  }
   0x2   :  { %v2042_v1 = vld [vmem:[%s2694_s1 + $0xc0] sm:$0xff]   ;;  %1785 = vmatprep.subr.bf16.mxu0 %v2041_v0  ;;  %v2046_v5 = vld [vmem:[%s2694_s1 + $0xc8] sm:$0xff]   ;;  %v2050_v9 = vld [vmem:[%s2694_s1 + $0xd0] sm:$0xff]  }
   0x3   :  { %v2043_v2 = vld [vmem:[%s2694_s1] sm:$0xff]   ;;  %1849 = vmatprep.subr.bf16.mxu1 %v2042_v1  ;;  %v2047_v6 = vld [vmem:[%s2694_s1 + $0x8] sm:$0xff]   ;;  %v2051_v10 = vld [vmem:[%s2694_s1 + $0x10] sm:$0xff]  }
   0x4   :  { %v2044_v3 = vld [vmem:[%s2694_s1 + $0x80] sm:$0xff]   ;;  %1786 = vmatpush3.bf16.msra.mxu0 %v2043_v2  ;;  %v2048_v7 = vld [vmem:[%s2694_s1 + $0x88] sm:$0xff]   ;;  %v2052_v11 = vld [vmem:[%s2694_s1 + $0x90] sm:$0xff]  }
   0x5   :  { %1850 = vmatpush3.bf16.msra.mxu1 %v2044_v3  ;;  %1787 = vmatprep.subr.bf16.mxu0 %v2045_v4  ;;  %v2053_v12 = vld [vmem:[%s2694_s1 + $0x58] sm:$0xff]   ;;  %v2057_v16 = vld [vmem:[%s2694_s1 + $0x60] sm:$0xff]   ;;  %v2061_v20 = vld [vmem:[%s2694_s1 + $0x68] sm:$0xff]  }
   0x6   :  { %1851 = vmatprep.subr.bf16.mxu1 %v2046_v5  ;;  %v2054_v13 = vld [vmem:[%s2694_s1 + $0xd8] sm:$0xff]   ;;  %v2058_v17 = vld [vmem:[%s2694_s1 + $0xe0] sm:$0xff]   ;;  %v2062_v21 = vld [vmem:[%s2694_s1 + $0xe8] sm:$0xff]  }
   0x7   :  { %v2055_v14 = vld [vmem:[%s2694_s1 + $0x18] sm:$0xff]   ;;  %v2059_v18 = vld [vmem:[%s2694_s1 + $0x20] sm:$0xff]   ;;  %v2063_v22 = vld [vmem:[%s2694_s1 + $0x28] sm:$0xff]  }
   0x8   :  { %1788 = vmatpush3.bf16.msra.mxu0 %v2047_v6  ;;  %v2056_v15 = vld [vmem:[%s2694_s1 + $0x98] sm:$0xff]   ;;  %v2060_v19 = vld [vmem:[%s2694_s1 + $0xa0] sm:$0xff]   ;;  %v2064_v23 = vld [vmem:[%s2694_s1 + $0xa8] sm:$0xff]  }
   0x9   :  { %1852 = vmatpush3.bf16.msra.mxu1 %v2048_v7  ;;  %1789 = vmatprep.subr.bf16.mxu0 %v2049_v8  ;;  %v2065_v24 = vld [vmem:[%s2694_s1 + $0x70] sm:$0xff]   ;;  %v2069_v28 = vld [vmem:[%s2694_s1 + $0x78] sm:$0xff]   ;;  %v18_v32 = vld [vmem:[%s2695_s0] sm:$0xff] }
   0xa   :  { %1853 = vmatprep.subr.bf16.mxu1 %v2050_v9  ;;  %v2066_v25 = vld [vmem:[%s2694_s1 + $0xf0] sm:$0xff]   ;;  %v2070_v29 = vld [vmem:[%s2694_s1 + $0xf8] sm:$0xff]   ;;  %v22_v33 = vld [vmem:[%s2695_s0 + $0x20] sm:$0xff] }
   0xb   :  { %v2067_v26 = vld [vmem:[%s2694_s1 + $0x30] sm:$0xff]   ;;  %v2071_v30 = vld [vmem:[%s2694_s1 + $0x38] sm:$0xff]   ;;  %v19_v34 = vld [vmem:[%s2695_s0 + $0x8] sm:$0xff]  ;;  %v1576_v35 = vcombine.low %v18_v32, %v22_v33  ;;  %v1577_v36 = vcombine.high %v18_v32, %v22_v33 }
   0xc   :  { %1790 = vmatpush3.bf16.msra.mxu0 %v2051_v10  ;;  %v2068_v27 = vld [vmem:[%s2694_s1 + $0xb0] sm:$0xff]   ;;  %v2072_v31 = vld [vmem:[%s2694_s1 + $0xb8] sm:$0xff]   ;;  %v23_v37 = vld [vmem:[%s2695_s0 + $0x28] sm:$0xff] }
   0xd   :  { %1854 = vmatpush3.bf16.msra.mxu1 %v2052_v11  ;;  %1791 = vmatprep.subr.bf16.mxu0 %v2053_v12  ;;  %v1578_v38 = vcombine.low %v19_v34, %v23_v37  ;;  %v1579_v39 = vcombine.high %v19_v34, %v23_v37  ;;  %v2073_v40 = vld [vmem:[%s2694_s1 + $0x140] sm:$0xff]   ;;  %v27_v47 = vld [vmem:[%s2695_s0 + $0x48] sm:$0xff]  ;;  %v2081_v62 = vld [vmem:[%s2694_s1 + $0x150] sm:$0xff]  }
   0xe   :  { %1855 = vmatprep.subr.bf16.mxu1 %v2054_v13  ;;  %946 = vmatprep.mubr.bf16.mxu0 %v1577_v36  ;;  %v2074_v41 = vld [vmem:[%s2694_s1 + $0x100] sm:$0xff]   ;;  %v31_v48 = vld [vmem:[%s2695_s0 + $0x68] sm:$0xff]  ;;  %v2082_v63 = vld [vmem:[%s2694_s1 + $0x110] sm:$0xff]  }
   0xf   :  { %1043 = vmatprep.mubr.bf16.mxu1 %v1579_v39  ;;  %v2075_v42 = vld [vmem:[%s2694_s1 + $0x1c0] sm:$0xff]   ;;  %v1587_v49 = vcombine.high %v27_v47, %v31_v48  ;;  %v2077_v50 = vld [vmem:[%s2694_s1 + $0x148] sm:$0xff]   ;;  %v1586_v53 = vcombine.low %v27_v47, %v31_v48  ;;  %v2083_v0 = vld [vmem:[%s2694_s1 + $0x1d0] sm:$0xff]  }
  0x10   :  { %1792 = vmatpush3.bf16.msra.mxu0 %v2055_v14  ;;  %v2076_v43 = vld [vmem:[%s2694_s1 + $0x180] sm:$0xff]   ;;  %v2078_v52 = vld [vmem:[%s2694_s1 + $0x108] sm:$0xff]   ;;  %v2084_v1 = vld [vmem:[%s2694_s1 + $0x190] sm:$0xff]  }
  0x11   :  { %1856 = vmatpush3.bf16.msra.mxu1 %v2056_v15  ;;  %1793 = vmatprep.subr.bf16.mxu0 %v2057_v16  ;;  %v26_v44 = vld [vmem:[%s2695_s0 + $0x40] sm:$0xff]  ;;  %v2079_v54 = vld [vmem:[%s2694_s1 + $0x1c8] sm:$0xff]   ;;  %v2085_v10 = vld [vmem:[%s2694_s1 + $0x158] sm:$0xff]  }
  0x12   :  { %1857 = vmatprep.subr.bf16.mxu1 %v2058_v17  ;;  %v30_v45 = vld [vmem:[%s2695_s0 + $0x60] sm:$0xff]  ;;  %v2080_v55 = vld [vmem:[%s2694_s1 + $0x188] sm:$0xff]   ;;  %v2086_v11 = vld [vmem:[%s2694_s1 + $0x118] sm:$0xff]  }
  0x13   :  { %v1585_v46 = vcombine.high %v26_v44, %v30_v45  ;;  %v1584_v51 = vcombine.low %v26_v44, %v30_v45  ;;  %v34_v56 = vld [vmem:[%s2695_s0 + $0x80] sm:$0xff]  ;;  %v35_v58 = vld [vmem:[%s2695_s0 + $0x88] sm:$0xff]  ;;  %v2087_v12 = vld [vmem:[%s2694_s1 + $0x1d8] sm:$0xff]  }
  0x14   :  { %1794 = vmatpush3.bf16.msra.mxu0 %v2059_v18  ;;  %v38_v57 = vld [vmem:[%s2695_s0 + $0xa0] sm:$0xff]  ;;  %v39_v59 = vld [vmem:[%s2695_s0 + $0xa8] sm:$0xff]  ;;  %v2088_v13 = vld [vmem:[%s2694_s1 + $0x198] sm:$0xff]  }
  0x15   :  { %1858 = vmatpush3.bf16.msra.mxu1 %v2060_v19  ;;  %1795 = vmatprep.subr.bf16.mxu0 %v2061_v20  ;;  %v1593_v60 = vcombine.high %v34_v56, %v38_v57  ;;  %v1595_v61 = vcombine.high %v35_v58, %v39_v59  ;;  %v1592_v2 = vcombine.low %v34_v56, %v38_v57  ;;  %v42_v3 = vld [vmem:[%s2695_s0 + $0xc0] sm:$0xff]  ;;  %v43_v5 = vld [vmem:[%s2695_s0 + $0xc8] sm:$0xff]  ;;  %v2098_v39 = vld [vmem:[%s2694_s1 + $0x130] sm:$0xff]  }
  0x16   :  { %1859 = vmatprep.subr.bf16.mxu1 %v2062_v21  ;;  %v46_v4 = vld [vmem:[%s2695_s0 + $0xe0] sm:$0xff]  ;;  %v1594_v6 = vcombine.low %v35_v58, %v39_v59  ;;  %v47_v8 = vld [vmem:[%s2695_s0 + $0xe8] sm:$0xff]  ;;  %v2102_v48 = vld [vmem:[%s2694_s1 + $0x138] sm:$0xff]  }
  0x17   :  { %v1601_v7 = vcombine.high %v42_v3, %v46_v4  ;;  %v1603_v9 = vcombine.high %v43_v5, %v47_v8  ;;  %v50_v14 = vld [vmem:[%s2695_s0 + $0x100] sm:$0xff]  ;;  %v51_v16 = vld [vmem:[%s2695_s0 + $0x108] sm:$0xff]  ;;  %v1600_v19 = vcombine.low %v42_v3, %v46_v4  ;;  %v1602_v21 = vcombine.low %v43_v5, %v47_v8  ;;  %v29_v8 = vld [vmem:[%s2695_s0 + $0x58] sm:$0xff] }
  0x18   :  { %1796 = vmatpush3.bf16.msra.mxu0 %v2063_v22  ;;  %v54_v15 = vld [vmem:[%s2695_s0 + $0x120] sm:$0xff]  ;;  %v55_v17 = vld [vmem:[%s2695_s0 + $0x128] sm:$0xff] }
  0x19   :  { %1860 = vmatpush3.bf16.msra.mxu1 %v2064_v23  ;;  %1797 = vmatprep.subr.bf16.mxu0 %v2065_v24  ;;  %v2089_v18 = vld [vmem:[%s2694_s1 + $0x160] sm:$0xff]   ;;  %v1609_v22 = vcombine.high %v50_v14, %v54_v15  ;;  %v1611_v24 = vcombine.high %v51_v16, %v55_v17  ;;  %v2095_v32 = vld [vmem:[%s2694_s1 + $0x1e8] sm:$0xff]   ;;  %v1608_v34 = vcombine.low %v50_v14, %v54_v15  ;;  %v36_v14 = vld [vmem:[%s2695_s0 + $0x90] sm:$0xff] }
  0x1a   :  { %1861 = vmatprep.subr.bf16.mxu1 %v2066_v25  ;;  %v2090_v20 = vld [vmem:[%s2694_s1 + $0x120] sm:$0xff]   ;;  %v2096_v33 = vld [vmem:[%s2694_s1 + $0x1a8] sm:$0xff]   ;;  %v40_v15 = vld [vmem:[%s2695_s0 + $0xb0] sm:$0xff] }
  0x1b   :  { %v2091_v23 = vld [vmem:[%s2694_s1 + $0x1e0] sm:$0xff]   ;;  %v67_v44 = vld [vmem:[%s2695_s0 + $0x188] sm:$0xff] }
  0x1c   :  { %1798 = vmatpush3.bf16.msra.mxu0 %v2067_v26  ;;  %v2092_v25 = vld [vmem:[%s2694_s1 + $0x1a0] sm:$0xff]   ;;  %v71_v45 = vld [vmem:[%s2695_s0 + $0x1a8] sm:$0xff] }
  0x1d   :  { %1862 = vmatpush3.bf16.msra.mxu1 %v2068_v27  ;;  %1799 = vmatprep.subr.bf16.mxu0 %v2069_v28  ;;  %v58_v26 = vld [vmem:[%s2695_s0 + $0x140] sm:$0xff]  ;;  %v2093_v28 = vld [vmem:[%s2694_s1 + $0x168] sm:$0xff]   ;;  %v1626_v59 = vcombine.low %v67_v44, %v71_v45 }
  0x1e   :  { %1863 = vmatprep.subr.bf16.mxu1 %v2070_v29  ;;  %v62_v27 = vld [vmem:[%s2695_s0 + $0x160] sm:$0xff]  ;;  %v59_v29 = vld [vmem:[%s2695_s0 + $0x148] sm:$0xff] }
  0x1f   :  { %v1617_v36 = vcombine.high %v58_v26, %v62_v27  ;;  %v1616_v47 = vcombine.low %v58_v26, %v62_v27  ;;  %v75_v56 = vld [vmem:[%s2695_s0 + $0x1c8] sm:$0xff]  ;;  %v1596_v26 = vcombine.low %v36_v14, %v40_v15 }
  0x20   :  { %1800 = vmatpush3.bf16.msra.mxu0 %v2071_v30  ;;  %v63_v30 = vld [vmem:[%s2695_s0 + $0x168] sm:$0xff] }
  0x21   :  { %1864 = vmatpush3.bf16.msra.mxu1 %v2072_v31  ;;  %1913 = vmatprep.subr.bf16.mxu0 %v2073_v40  ;;  %v2094_v31 = vld [vmem:[%s2694_s1 + $0x128] sm:$0xff]   ;;  %v1619_v37 = vcombine.high %v59_v29, %v63_v30  ;;  %v2099_v40 = vld [vmem:[%s2694_s1 + $0x1f0] sm:$0xff]  }
  0x22   :  { %1977 = vmatprep.subr.bf16.mxu1 %v2075_v42  ;;  %v70_v42 = vld [vmem:[%s2695_s0 + $0x1a0] sm:$0xff]  ;;  %v79_v57 = vld [vmem:[%s2695_s0 + $0x1e8] sm:$0xff] }
  0x23   :  { %947 = vmatmul.mubr.bf16.vlgmr.msra.gmra.mrb[0].mxu0 %v1576_v35  ;;  %v1610_v35 = vcombine.low %v51_v16, %v55_v17  ;;  %v1634_v3 = vcombine.low %v75_v56, %v79_v57  ;;  %v37_v16 = vld [vmem:[%s2695_s0 + $0x98] sm:$0xff] }
  0x24   :  { %1044 = vmatmul.mubr.bf16.vlgmr.msra.gmra.mrb[0].mxu1 %v1578_v38  ;;  %1914 = vmatpush3.bf16.msra.mxu0 %v2074_v41  ;;  %v2097_v38 = vld [vmem:[%s2694_s1 + $0x170] sm:$0xff]   ;;  %v66_v41 = vld [vmem:[%s2695_s0 + $0x180] sm:$0xff]  ;;  %v41_v17 = vld [vmem:[%s2695_s0 + $0xb8] sm:$0xff] }
  0x25   :  { %1978 = vmatpush3.bf16.msra.mxu1 %v2076_v43  ;;  %954 = vmatprep.mubr.bf16.mxu0 %v1585_v46  ;;  %v2100_v43 = vld [vmem:[%s2694_s1 + $0x1b0] sm:$0xff]   ;;  %v2101_v46 = vld [vmem:[%s2694_s1 + $0x178] sm:$0xff]   ;;  %v1624_v58 = vcombine.low %v66_v41, %v70_v42  ;;  %v1598_v27 = vcombine.low %v37_v16, %v41_v17 }
  0x26   :  { %1051 = vmatprep.mubr.bf16.mxu1 %v1587_v49  ;;  %1915 = vmatprep.subr.bf16.mxu0 %v2077_v50  ;;  %v1618_v49 = vcombine.low %v59_v29, %v63_v30  ;;  %v1625_v50 = vcombine.high %v66_v41, %v70_v42  ;;  %v52_v30 = vld [vmem:[%s2695_s0 + $0x110] sm:$0xff]  ;;  %v65_v41 = vld [vmem:[%s2695_s0 + $0x178] sm:$0xff] }
  0x27   :  { %1979 = vmatprep.subr.bf16.mxu1 %v2079_v54  ;;  %v74_v54 = vld [vmem:[%s2695_s0 + $0x1c0] sm:$0xff] }
  0x28   :  { %1916 = vmatpush3.bf16.msra.mxu0 %v2078_v52  ;;  %v1627_v52 = vcombine.high %v67_v44, %v71_v45 }
  0x29   :  { %1980 = vmatpush3.bf16.msra.mxu1 %v2080_v55  ;;  %1917 = vmatprep.subr.bf16.mxu0 %v2081_v62  ;;  %v78_v55 = vld [vmem:[%s2695_s0 + $0x1e0] sm:$0xff]  ;;  %v20_v62 = vld [vmem:[%s2695_s0 + $0x10] sm:$0xff] }
  0x2a   :  { %1981 = vmatprep.subr.bf16.mxu1 %v2083_v0  ;;  %v21_v0 = vld [vmem:[%s2695_s0 + $0x18] sm:$0xff] }
  0x2b   :  { %955 = vmatmul.mubr.bf16.gmra.mrb[4].mxu0 %v1584_v51  ;;  %v2103_v51 = vld [vmem:[%s2694_s1 + $0x1f8] sm:$0xff]  }
  0x2c   :  { %1052 = vmatmul.mubr.bf16.gmra.mrb[4].mxu1 %v1586_v53  ;;  %962 = vmatprep.mubr.bf16.mxu0 %v1593_v60  ;;  %v2104_v53 = vld [vmem:[%s2694_s1 + $0x1b8] sm:$0xff]   ;;  %v1633_v60 = vcombine.high %v74_v54, %v78_v55 }
  0x2d   :  { %1059 = vmatprep.mubr.bf16.mxu1 %v1595_v61  ;;  %1918 = vmatpush3.bf16.msra.mxu0 %v2082_v63  ;;  %v1635_v61 = vcombine.high %v75_v56, %v79_v57  ;;  %v24_v63 = vld [vmem:[%s2695_s0 + $0x30] sm:$0xff]  ;;  %v77_v56 = vld [vmem:[%s2695_s0 + $0x1d8] sm:$0xff] }
  0x2e   :  { %1982 = vmatpush3.bf16.msra.mxu1 %v2084_v1  ;;  %1919 = vmatprep.subr.bf16.mxu0 %v2085_v10  ;;  %v25_v1 = vld [vmem:[%s2695_s0 + $0x38] sm:$0xff]  ;;  %v1581_v4 = vcombine.high %v20_v62, %v24_v63  ;;  %v1580_v10 = vcombine.low %v20_v62, %v24_v63 }
  0x2f   :  { %1983 = vmatprep.subr.bf16.mxu1 %v2087_v12  ;;  %v1583_v5 = vcombine.high %v21_v0, %v25_v1  ;;  %v81_v57 = vld [vmem:[%s2695_s0 + $0x1f8] sm:$0xff] }
  0x30   :  { %v1638_v63 = vcombine.low %v77_v56, %v81_v57 }
  0x31   :  { %1920 = vmatpush3.bf16.msra.mxu0 %v2086_v11  ;;  %v1582_v11 = vcombine.low %v21_v0, %v25_v1 }
  0x32   :  { %1984 = vmatpush3.bf16.msra.mxu1 %v2088_v13  ;;  %1921 = vmatprep.subr.bf16.mxu0 %v2089_v18 }
  0x33   :  { %963 = vmatmul.mubr.bf16.gmra.mrb[8].mxu0 %v1592_v2  ;;  %1985 = vmatprep.subr.bf16.mxu1 %v2091_v23  ;;  %v1632_v2 = vcombine.low %v74_v54, %v78_v55  ;;  %v48_v23 = vld [vmem:[%s2695_s0 + $0xf0] sm:$0xff] }
  0x34   :  { %1060 = vmatmul.mubr.bf16.gmra.mrb[8].mxu1 %v1594_v6  ;;  %970 = vmatprep.mubr.bf16.mxu0 %v1601_v7  ;;  %v28_v6 = vld [vmem:[%s2695_s0 + $0x50] sm:$0xff] }
  0x35   :  { %1067 = vmatprep.mubr.bf16.mxu1 %v1603_v9  ;;  %1922 = vmatpush3.bf16.msra.mxu0 %v2090_v20  ;;  %v32_v7 = vld [vmem:[%s2695_s0 + $0x70] sm:$0xff]  ;;  %v33_v9 = vld [vmem:[%s2695_s0 + $0x78] sm:$0xff]  ;;  %v1597_v20 = vcombine.high %v36_v14, %v40_v15 }
  0x36   :  { %1986 = vmatpush3.bf16.msra.mxu1 %v2092_v25  ;;  %1923 = vmatprep.subr.bf16.mxu0 %v2093_v28  ;;  %v1589_v12 = vcombine.high %v28_v6, %v32_v7  ;;  %v1591_v13 = vcombine.high %v29_v8, %v33_v9  ;;  %v1588_v18 = vcombine.low %v28_v6, %v32_v7  ;;  %v49_v25 = vld [vmem:[%s2695_s0 + $0xf8] sm:$0xff]  ;;  %v76_v54 = vld [vmem:[%s2695_s0 + $0x1d0] sm:$0xff] }
  0x37   :  { %1987 = vmatprep.subr.bf16.mxu1 %v2095_v32  ;;  %v53_v32 = vld [vmem:[%s2695_s0 + $0x118] sm:$0xff]  ;;  %v80_v55 = vld [vmem:[%s2695_s0 + $0x1f0] sm:$0xff] }
  0x38   :  { %v1636_v62 = vcombine.low %v76_v54, %v80_v55 }
  0x39   :  { %1924 = vmatpush3.bf16.msra.mxu0 %v2094_v31  ;;  %v56_v31 = vld [vmem:[%s2695_s0 + $0x130] sm:$0xff] }
  0x3a   :  { %1988 = vmatpush3.bf16.msra.mxu1 %v2096_v33  ;;  %1925 = vmatprep.subr.bf16.mxu0 %v2097_v38  ;;  %v57_v33 = vld [vmem:[%s2695_s0 + $0x138] sm:$0xff]  ;;  %v60_v38 = vld [vmem:[%s2695_s0 + $0x150] sm:$0xff]  ;;  %v1612_v42 = vcombine.low %v52_v30, %v56_v31 }
  0x3b   :  { %971 = vmatmul.mubr.bf16.gmra.mrb[12].mxu0 %v1600_v19  ;;  %1989 = vmatprep.subr.bf16.mxu1 %v2099_v40  ;;  %v1590_v19 = vcombine.low %v29_v8, %v33_v9  ;;  %v61_v40 = vld [vmem:[%s2695_s0 + $0x158] sm:$0xff] }
  0x3c   :  { %1068 = vmatmul.mubr.bf16.gmra.mrb[12].mxu1 %v1602_v21  ;;  %978 = vmatprep.mubr.bf16.mxu0 %v1609_v22  ;;  %v1599_v21 = vcombine.high %v37_v16, %v41_v17  ;;  %v44_v22 = vld [vmem:[%s2695_s0 + $0xd0] sm:$0xff]  ;;  %v1623_v45 = vcombine.high %v61_v40, %v65_v41 }
  0x3d   :  { %1075 = vmatprep.mubr.bf16.mxu1 %v1611_v24  ;;  %1926 = vmatpush3.bf16.msra.mxu0 %v2098_v39  ;;  %v45_v24 = vld [vmem:[%s2695_s0 + $0xd8] sm:$0xff]  ;;  %v1605_v28 = vcombine.high %v44_v22, %v48_v23  ;;  %v64_v39 = vld [vmem:[%s2695_s0 + $0x170] sm:$0xff] }
  0x3e   :  { %1990 = vmatpush3.bf16.msra.mxu1 %v2100_v43  ;;  %1927 = vmatprep.subr.bf16.mxu0 %v2101_v46  ;;  %v1607_v29 = vcombine.high %v45_v24, %v49_v25  ;;  %v1614_v43 = vcombine.low %v53_v32, %v57_v33  ;;  %v1621_v44 = vcombine.high %v60_v38, %v64_v39  ;;  %v68_v46 = vld [vmem:[%s2695_s0 + $0x190] sm:$0xff] }
  0x3f   :  { %1991 = vmatprep.subr.bf16.mxu1 %v2103_v51  ;;  %v1622_v51 = vcombine.low %v61_v40, %v65_v41 }
  0x41   :  { %1928 = vmatpush3.bf16.msra.mxu0 %v2102_v48  ;;  %v69_v48 = vld [vmem:[%s2695_s0 + $0x198] sm:$0xff] }
  0x42   :  { %1992 = vmatpush3.bf16.msra.mxu1 %v2104_v53 }
  0x43   :  { %979 = vmatmul.mubr.bf16.gmra.mrb[16].mxu0 %v1608_v34  ;;  %v1604_v34 = vcombine.low %v44_v22, %v48_v23 }
  0x44   :  { %1076 = vmatmul.mubr.bf16.gmra.mrb[16].mxu1 %v1610_v35  ;;  %986 = vmatprep.mubr.bf16.mxu0 %v1617_v36  ;;  %v1606_v35 = vcombine.low %v45_v24, %v49_v25  ;;  %v1613_v36 = vcombine.high %v52_v30, %v56_v31 }
  0x45   :  { %1083 = vmatprep.mubr.bf16.mxu1 %v1619_v37  ;;  %v1615_v37 = vcombine.high %v53_v32, %v57_v33 }
  0x4b   :  { %987 = vmatmul.mubr.bf16.gmra.mrb[20].mxu0 %v1616_v47  ;;  %v72_v47 = vld [vmem:[%s2695_s0 + $0x1b0] sm:$0xff] }
  0x4c   :  { %1084 = vmatmul.mubr.bf16.gmra.mrb[20].mxu1 %v1618_v49  ;;  %994 = vmatprep.mubr.bf16.mxu0 %v1625_v50  ;;  %v73_v49 = vld [vmem:[%s2695_s0 + $0x1b8] sm:$0xff]  ;;  %v1620_v50 = vcombine.low %v60_v38, %v64_v39 }
  0x4d   :  { %1091 = vmatprep.mubr.bf16.mxu1 %v1627_v52  ;;  %v1629_v52 = vcombine.high %v68_v46, %v72_v47  ;;  %v1631_v53 = vcombine.high %v69_v48, %v73_v49 }
  0x53   :  { %995 = vmatmul.mubr.bf16.gmra.mrb[24].mxu0 %v1624_v58  ;;  %v1628_v58 = vcombine.low %v68_v46, %v72_v47 }
  0x54   :  { %1092 = vmatmul.mubr.bf16.gmra.mrb[24].mxu1 %v1626_v59  ;;  %1002 = vmatprep.mubr.bf16.mxu0 %v1633_v60  ;;  %v1630_v59 = vcombine.low %v69_v48, %v73_v49  ;;  %v1637_v60 = vcombine.high %v76_v54, %v80_v55 }
  0x55   :  { %1099 = vmatprep.mubr.bf16.mxu1 %v1635_v61  ;;  %v1639_v61 = vcombine.high %v77_v56, %v81_v57 }
  0x5b   :  { %1003 = vmatmul.mubr.bf16.gmra.mrb[28].mxu0 %v1632_v2 }
  0x5c   :  { %1100 = vmatmul.mubr.bf16.gmra.mrb[28].mxu1 %v1634_v3  ;;  %1140 = vmatprep.mubr.bf16.mxu0 %v1581_v4 }
  0x5d   :  { %1237 = vmatprep.mubr.bf16.mxu1 %v1583_v5 }
  0x63   :  { %1141 = vmatmul.mubr.bf16.vlgmr.msra.gmra.mrb[32].mxu0 %v1580_v10 }
  0x64   :  { %1238 = vmatmul.mubr.bf16.vlgmr.msra.gmra.mrb[32].mxu1 %v1582_v11  ;;  %1148 = vmatprep.mubr.bf16.mxu0 %v1589_v12 }
  0x65   :  { %1245 = vmatprep.mubr.bf16.mxu1 %v1591_v13 }
  0x6b   :  { %1149 = vmatmul.mubr.bf16.gmra.mrb[36].mxu0 %v1588_v18 }
  0x6c   :  { %1246 = vmatmul.mubr.bf16.gmra.mrb[36].mxu1 %v1590_v19  ;;  %1156 = vmatprep.mubr.bf16.mxu0 %v1597_v20 }
  0x6d   :  { %1253 = vmatprep.mubr.bf16.mxu1 %v1599_v21 }
  0x73   :  { %1157 = vmatmul.mubr.bf16.gmra.mrb[40].mxu0 %v1596_v26 }
  0x74   :  { %1254 = vmatmul.mubr.bf16.gmra.mrb[40].mxu1 %v1598_v27  ;;  %1164 = vmatprep.mubr.bf16.mxu0 %v1605_v28 }
  0x75   :  { %1261 = vmatprep.mubr.bf16.mxu1 %v1607_v29 }
  0x7b   :  { %1165 = vmatmul.mubr.bf16.gmra.mrb[44].mxu0 %v1604_v34 }
  0x7c   :  { %1262 = vmatmul.mubr.bf16.gmra.mrb[44].mxu1 %v1606_v35  ;;  %1172 = vmatprep.mubr.bf16.mxu0 %v1613_v36 }
  0x7d   :  { %1269 = vmatprep.mubr.bf16.mxu1 %v1615_v37 }
  0x83   :  { %1173 = vmatmul.mubr.bf16.gmra.mrb[48].mxu0 %v1612_v42 }
  0x84   :  { %1270 = vmatmul.mubr.bf16.gmra.mrb[48].mxu1 %v1614_v43  ;;  %1180 = vmatprep.mubr.bf16.mxu0 %v1621_v44 }
  0x85   :  { %1277 = vmatprep.mubr.bf16.mxu1 %v1623_v45 }
  0x8b   :  { %1181 = vmatmul.mubr.bf16.gmra.mrb[52].mxu0 %v1620_v50 }
  0x8c   :  { %1278 = vmatmul.mubr.bf16.gmra.mrb[52].mxu1 %v1622_v51  ;;  %1188 = vmatprep.mubr.bf16.mxu0 %v1629_v52 }
  0x8d   :  { %1285 = vmatprep.mubr.bf16.mxu1 %v1631_v53 }
  0x93   :  { %1189 = vmatmul.mubr.bf16.gmra.mrb[56].mxu0 %v1628_v58 }
  0x94   :  { %1286 = vmatmul.mubr.bf16.gmra.mrb[56].mxu1 %v1630_v59  ;;  %1196 = vmatprep.mubr.bf16.mxu0 %v1637_v60 }
  0x95   :  { %1293 = vmatprep.mubr.bf16.mxu1 %v1639_v61 }
  0x9b   :  { %1197 = vmatmul.mubr.bf16.gmra.mrb[60].mxu0 %v1636_v62 }
  0x9c   :  { %1294 = vmatmul.mubr.bf16.gmra.mrb[60].mxu1 %v1638_v63 }
  0xf6   :  { %v1801_v0 = vpop.f32.mrb[0].mxu0 }
  0xf7   :  { %v1865_v1 = vpop.f32.mrb[0].mxu1  ;;  %v1802_v2 = vpop.f32.mrb[1].mxu0 }
  0xf8   :  { %v1803_v3 = vadd.f32 %v1802_v2, %v1801_v0  ;;  %v1866_v4 = vpop.f32.mrb[1].mxu1  ;;  %v1804_v5 = vpop.f32.mrb[2].mxu0 }
  0xf9   :  { %v1867_v6 = vadd.f32 %v1866_v4, %v1865_v1  ;;  %v1868_v7 = vpop.f32.mrb[2].mxu1  ;;  %v1805_v8 = vpop.f32.mrb[3].mxu0 }
  0xfa   :  { %v1806_v9 = vadd.f32 %v1805_v8, %v1804_v5  ;;  %v1869_v10 = vpop.f32.mrb[3].mxu1 }
  0xfb   :  { %v2516_v11 = vadd.f32 %v1867_v6, %v1803_v3  ;;  %v1870_v12 = vadd.f32 %v1869_v10, %v1868_v7 }
  0xfd   :  { %v2518_v13 = vadd.f32 %v1870_v12, %v1806_v9 }
  0xfe   :  { %v1807_v14 = vpop.f32.mrb[4].mxu0 }
  0xff   :  { %v1871_v15 = vpop.f32.mrb[4].mxu1  ;;  %v1808_v16 = vpop.f32.mrb[5].mxu0 }
 0x100   :  { %v1809_v17 = vadd.f32 %v1808_v16, %v1807_v14  ;;  %v1872_v18 = vpop.f32.mrb[5].mxu1  ;;  %v1810_v19 = vpop.f32.mrb[6].mxu0 }
 0x101   :  { %v1873_v20 = vadd.f32 %v1872_v18, %v1871_v15  ;;  %v1874_v21 = vpop.f32.mrb[6].mxu1  ;;  %v1811_v22 = vpop.f32.mrb[7].mxu0 }
 0x102   :  { %v1812_v23 = vadd.f32 %v1811_v22, %v1810_v19  ;;  %v1875_v24 = vpop.f32.mrb[7].mxu1 }
 0x103   :  { %v2520_v25 = vadd.f32 %v1873_v20, %v1809_v17  ;;  %v1876_v26 = vadd.f32 %v1875_v24, %v1874_v21 }
 0x105   :  { %v2522_v27 = vadd.f32 %v1876_v26, %v1812_v23 }
 0x106   :  { %v1813_v28 = vpop.f32.mrb[8].mxu0 }
 0x107   :  { %v1877_v29 = vpop.f32.mrb[8].mxu1  ;;  %v1814_v30 = vpop.f32.mrb[9].mxu0 }
 0x108   :  { %v1815_v31 = vadd.f32 %v1814_v30, %v1813_v28  ;;  %v1878_v32 = vpop.f32.mrb[9].mxu1  ;;  %v1816_v33 = vpop.f32.mrb[10].mxu0 }
 0x109   :  { %v1879_v34 = vadd.f32 %v1878_v32, %v1877_v29  ;;  %v1880_v35 = vpop.f32.mrb[10].mxu1  ;;  %v1817_v36 = vpop.f32.mrb[11].mxu0 }
 0x10a   :  { %v1818_v37 = vadd.f32 %v1817_v36, %v1816_v33  ;;  %v1881_v38 = vpop.f32.mrb[11].mxu1 }
 0x10b   :  { %v2524_v39 = vadd.f32 %v1879_v34, %v1815_v31  ;;  %v1882_v40 = vadd.f32 %v1881_v38, %v1880_v35 }
 0x10d   :  { %v2526_v41 = vadd.f32 %v1882_v40, %v1818_v37 }
 0x10e   :  { %v1819_v42 = vpop.f32.mrb[12].mxu0 }
 0x10f   :  { %v1883_v43 = vpop.f32.mrb[12].mxu1  ;;  %v1820_v44 = vpop.f32.mrb[13].mxu0 }
 0x110   :  { %v1821_v45 = vadd.f32 %v1820_v44, %v1819_v42  ;;  %v1884_v46 = vpop.f32.mrb[13].mxu1  ;;  %v1822_v47 = vpop.f32.mrb[14].mxu0 }
 0x111   :  { %v1885_v48 = vadd.f32 %v1884_v46, %v1883_v43  ;;  %v1886_v49 = vpop.f32.mrb[14].mxu1  ;;  %v1823_v50 = vpop.f32.mrb[15].mxu0 }
 0x112   :  { %v1824_v51 = vadd.f32 %v1823_v50, %v1822_v47  ;;  %v1887_v52 = vpop.f32.mrb[15].mxu1 }
 0x113   :  { %v2528_v53 = vadd.f32 %v1885_v48, %v1821_v45  ;;  %v1888_v54 = vadd.f32 %v1887_v52, %v1886_v49 }
 0x115   :  { %v2530_v55 = vadd.f32 %v1888_v54, %v1824_v51 }
 0x116   :  { %v1825_v56 = vpop.f32.mrb[16].mxu0 }
 0x117   :  { %v1889_v57 = vpop.f32.mrb[16].mxu1  ;;  %v1826_v58 = vpop.f32.mrb[17].mxu0 }
 0x118   :  { %v1827_v59 = vadd.f32 %v1826_v58, %v1825_v56  ;;  %v1890_v60 = vpop.f32.mrb[17].mxu1  ;;  %v1828_v61 = vpop.f32.mrb[18].mxu0 }
 0x119   :  { %v1891_v62 = vadd.f32 %v1890_v60, %v1889_v57  ;;  %v1892_v63 = vpop.f32.mrb[18].mxu1  ;;  %v1829_v0 = vpop.f32.mrb[19].mxu0 }
 0x11a   :  { %v1830_v1 = vadd.f32 %v1829_v0, %v1828_v61  ;;  %v1893_v2 = vpop.f32.mrb[19].mxu1 }
 0x11b   :  { %v2532_v3 = vadd.f32 %v1891_v62, %v1827_v59  ;;  %v1894_v4 = vadd.f32 %v1893_v2, %v1892_v63 }
 0x11d   :  { %v2534_v5 = vadd.f32 %v1894_v4, %v1830_v1 }
 0x11e   :  { %v1831_v6 = vpop.f32.mrb[20].mxu0 }
 0x11f   :  { %v1895_v7 = vpop.f32.mrb[20].mxu1  ;;  %v1832_v8 = vpop.f32.mrb[21].mxu0 }
 0x120   :  { %v1833_v9 = vadd.f32 %v1832_v8, %v1831_v6  ;;  %v1896_v10 = vpop.f32.mrb[21].mxu1  ;;  %v1834_v12 = vpop.f32.mrb[22].mxu0 }
 0x121   :  { %v1897_v14 = vadd.f32 %v1896_v10, %v1895_v7  ;;  %v1898_v15 = vpop.f32.mrb[22].mxu1  ;;  %v1835_v16 = vpop.f32.mrb[23].mxu0 }
 0x122   :  { %v1836_v17 = vadd.f32 %v1835_v16, %v1834_v12  ;;  %v1899_v18 = vpop.f32.mrb[23].mxu1 }
 0x123   :  { %v2536_v19 = vadd.f32 %v1897_v14, %v1833_v9  ;;  %v1900_v20 = vadd.f32 %v1899_v18, %v1898_v15 }
 0x125   :  { %v2538_v21 = vadd.f32 %v1900_v20, %v1836_v17 }
 0x126   :  { %v1837_v22 = vpop.f32.mrb[24].mxu0 }
 0x127   :  { %v1901_v23 = vpop.f32.mrb[24].mxu1  ;;  %v1838_v24 = vpop.f32.mrb[25].mxu0 }
 0x128   :  { %v1839_v26 = vadd.f32 %v1838_v24, %v1837_v22  ;;  %v1902_v28 = vpop.f32.mrb[25].mxu1  ;;  %v1840_v29 = vpop.f32.mrb[26].mxu0 }
 0x129   :  { %v1903_v30 = vadd.f32 %v1902_v28, %v1901_v23  ;;  %v1904_v31 = vpop.f32.mrb[26].mxu1  ;;  %v1841_v32 = vpop.f32.mrb[27].mxu0 }
 0x12a   :  { %v1842_v33 = vadd.f32 %v1841_v32, %v1840_v29  ;;  %v1905_v34 = vpop.f32.mrb[27].mxu1 }
 0x12b   :  { %v2540_v35 = vadd.f32 %v1903_v30, %v1839_v26  ;;  %v1906_v36 = vadd.f32 %v1905_v34, %v1904_v31 }
 0x12d   :  { %v2542_v37 = vadd.f32 %v1906_v36, %v1842_v33 }
 0x12e   :  { %v1843_v38 = vpop.f32.mrb[28].mxu0 }
 0x12f   :  { %v1907_v40 = vpop.f32.mrb[28].mxu1  ;;  %v1844_v42 = vpop.f32.mrb[29].mxu0 }
 0x130   :  { %v1845_v43 = vadd.f32 %v1844_v42, %v1843_v38  ;;  %v1908_v44 = vpop.f32.mrb[29].mxu1  ;;  %v1846_v45 = vpop.f32.mrb[30].mxu0 }
 0x131   :  { %v1909_v46 = vadd.f32 %v1908_v44, %v1907_v40  ;;  %v1910_v47 = vpop.f32.mrb[30].mxu1  ;;  %v1847_v48 = vpop.f32.mrb[31].mxu0 }
 0x132   :  { %v1848_v49 = vadd.f32 %v1847_v48, %v1846_v45  ;;  %v1911_v50 = vpop.f32.mrb[31].mxu1 }
 0x133   :  { %v2544_v51 = vadd.f32 %v1909_v46, %v1845_v43  ;;  %v1912_v52 = vadd.f32 %v1911_v50, %v1910_v47 }
 0x135   :  { %v2546_v54 = vadd.f32 %v1912_v52, %v1848_v49 }
 0x136   :  { %v1929_v56 = vpop.f32.mrb[32].mxu0 }
 0x137   :  { %v1993_v57 = vpop.f32.mrb[32].mxu1  ;;  %v1930_v58 = vpop.f32.mrb[33].mxu0 }
 0x138   :  { %v1931_v59 = vadd.f32 %v1930_v58, %v1929_v56  ;;  %v1994_v60 = vpop.f32.mrb[33].mxu1  ;;  %v1932_v61 = vpop.f32.mrb[34].mxu0 }
 0x139   :  { %v1995_v62 = vadd.f32 %v1994_v60, %v1993_v57  ;;  %v1996_v63 = vpop.f32.mrb[34].mxu1  ;;  %v1933_v0 = vpop.f32.mrb[35].mxu0 }
 0x13a   :  { %v1143_v1 = vadd.f32 %v1931_v59, %v2516_v11  ;;  %v1934_v2 = vadd.f32 %v1933_v0, %v1932_v61  ;;  %v1997_v4 = vpop.f32.mrb[35].mxu1 }
 0x13b   :  { %v1998_v6 = vadd.f32 %v1997_v4, %v1996_v63 }
 0x13c   :  { %v2549_v7 = vadd.f32 %v1995_v62, %v1143_v1  ;;  %v1146_v8 = vadd.f32 %v1934_v2, %v2518_v13 }
 0x13e   :  { %v2552_v9 = vadd.f32 %v1998_v6, %v1146_v8  ;;  %v1935_v10 = vpop.f32.mrb[36].mxu0  ;;  %v1324_v15 = vmul.f32 %v2549_v7, %v2549_v7 }
 0x13f   :  { %v1999_v12 = vpop.f32.mrb[36].mxu1  ;;  %v1936_v14 = vpop.f32.mrb[37].mxu0 }
 0x140   :  { %v1302_v16 = vadd.f32 %v2552_v9, %v2549_v7  ;;  %v1325_v11 = vmul.f32 %v2552_v9, %v2552_v9  ;;  %v1937_v17 = vadd.f32 %v1936_v14, %v1935_v10  ;;  %v2000_v18 = vpop.f32.mrb[37].mxu1  ;;  %v1938_v20 = vpop.f32.mrb[38].mxu0 }
 0x141   :  { %v2001_v22 = vadd.f32 %v2000_v18, %v1999_v12  ;;  %v2002_v23 = vpop.f32.mrb[38].mxu1  ;;  %v1939_v13 = vpop.f32.mrb[39].mxu0 }
 0x142   :  { %v1340_v24 = vadd.f32 %v1325_v11, %v1324_v15  ;;  %v1151_v26 = vadd.f32 %v1937_v17, %v2520_v25  ;;  %v1940_v28 = vadd.f32 %v1939_v13, %v1938_v20  ;;  %v2003_v29 = vpop.f32.mrb[39].mxu1 }
 0x143   :  { %v2004_v30 = vadd.f32 %v2003_v29, %v2002_v23 }
 0x144   :  { %v2561_v31 = vadd.f32 %v2001_v22, %v1151_v26  ;;  %v1154_v32 = vadd.f32 %v1940_v28, %v2522_v27 }
 0x146   :  { %v1303_v33 = vadd.f32 %v1302_v16, %v2561_v31  ;;  %v1326_v34 = vmul.f32 %v2561_v31, %v2561_v31  ;;  %v2567_v36 = vadd.f32 %v2004_v30, %v1154_v32  ;;  %v1941_v38 = vpop.f32.mrb[40].mxu0 }
 0x147   :  { %v2005_v40 = vpop.f32.mrb[40].mxu1  ;;  %v1942_v42 = vpop.f32.mrb[41].mxu0 }
 0x148   :  { %v1341_v43 = vadd.f32 %v1340_v24, %v1326_v34  ;;  %v1304_v25 = vadd.f32 %v1303_v33, %v2567_v36  ;;  %v1327_v44 = vmul.f32 %v2567_v36, %v2567_v36  ;;  %v1943_v45 = vadd.f32 %v1942_v42, %v1941_v38  ;;  %v2006_v46 = vpop.f32.mrb[41].mxu1  ;;  %v1944_v47 = vpop.f32.mrb[42].mxu0 }
 0x149   :  { %v2007_v27 = vadd.f32 %v2006_v46, %v2005_v40  ;;  %v2008_v48 = vpop.f32.mrb[42].mxu1  ;;  %v1945_v49 = vpop.f32.mrb[43].mxu0 }
 0x14a   :  { %v1342_v50 = vadd.f32 %v1341_v43, %v1327_v44  ;;  %v1159_v52 = vadd.f32 %v1943_v45, %v2524_v39  ;;  %v1946_v56 = vadd.f32 %v1945_v49, %v1944_v47  ;;  %v2009_v57 = vpop.f32.mrb[43].mxu1 }
 0x14b   :  { %v2010_v58 = vadd.f32 %v2009_v57, %v2008_v48 }
 0x14c   :  { %v2573_v59 = vadd.f32 %v2007_v27, %v1159_v52  ;;  %v1162_v60 = vadd.f32 %v1946_v56, %v2526_v41 }
 0x14e   :  { %v1305_v61 = vadd.f32 %v1304_v25, %v2573_v59  ;;  %v1328_v62 = vmul.f32 %v2573_v59, %v2573_v59  ;;  %v2579_v63 = vadd.f32 %v2010_v58, %v1162_v60  ;;  %v1947_v0 = vpop.f32.mrb[44].mxu0 }
 0x14f   :  { %v2011_v1 = vpop.f32.mrb[44].mxu1  ;;  %v1948_v2 = vpop.f32.mrb[45].mxu0 }
 0x150   :  { %v1343_v4 = vadd.f32 %v1342_v50, %v1328_v62  ;;  %v1306_v39 = vadd.f32 %v1305_v61, %v2579_v63  ;;  %v1329_v6 = vmul.f32 %v2579_v63, %v2579_v63  ;;  %v1949_v8 = vadd.f32 %v1948_v2, %v1947_v0  ;;  %v2012_v10 = vpop.f32.mrb[45].mxu1  ;;  %v1950_v12 = vpop.f32.mrb[46].mxu0 }
 0x151   :  { %v2013_v41 = vadd.f32 %v2012_v10, %v2011_v1  ;;  %v2014_v14 = vpop.f32.mrb[46].mxu1  ;;  %v1951_v15 = vpop.f32.mrb[47].mxu0 }
 0x152   :  { %v1344_v16 = vadd.f32 %v1343_v4, %v1329_v6  ;;  %v1167_v11 = vadd.f32 %v1949_v8, %v2528_v53  ;;  %v1952_v17 = vadd.f32 %v1951_v15, %v1950_v12  ;;  %v2015_v18 = vpop.f32.mrb[47].mxu1 }
 0x153   :  { %v2016_v20 = vadd.f32 %v2015_v18, %v2014_v14 }
 0x154   :  { %v2585_v22 = vadd.f32 %v2013_v41, %v1167_v11  ;;  %v1170_v23 = vadd.f32 %v1952_v17, %v2530_v55 }
 0x156   :  { %v1307_v13 = vadd.f32 %v1306_v39, %v2585_v22  ;;  %v1330_v24 = vmul.f32 %v2585_v22, %v2585_v22  ;;  %v2591_v26 = vadd.f32 %v2016_v20, %v1170_v23  ;;  %v1953_v28 = vpop.f32.mrb[48].mxu0 }
 0x157   :  { %v2017_v29 = vpop.f32.mrb[48].mxu1  ;;  %v1954_v30 = vpop.f32.mrb[49].mxu0 }
 0x158   :  { %v1345_v32 = vadd.f32 %v1344_v16, %v1330_v24  ;;  %v1308_v53 = vadd.f32 %v1307_v13, %v2591_v26  ;;  %v1331_v33 = vmul.f32 %v2591_v26, %v2591_v26  ;;  %v1955_v34 = vadd.f32 %v1954_v30, %v1953_v28  ;;  %v2018_v38 = vpop.f32.mrb[49].mxu1  ;;  %v1956_v40 = vpop.f32.mrb[50].mxu0 }
 0x159   :  { %v2019_v55 = vadd.f32 %v2018_v38, %v2017_v29  ;;  %v2020_v42 = vpop.f32.mrb[50].mxu1  ;;  %v1957_v43 = vpop.f32.mrb[51].mxu0 }
 0x15a   :  { %v1346_v25 = vadd.f32 %v1345_v32, %v1331_v33  ;;  %v1175_v44 = vadd.f32 %v1955_v34, %v2532_v3  ;;  %v1958_v45 = vadd.f32 %v1957_v43, %v1956_v40  ;;  %v2021_v46 = vpop.f32.mrb[51].mxu1 }
 0x15b   :  { %v2022_v47 = vadd.f32 %v2021_v46, %v2020_v42 }
 0x15c   :  { %v2597_v27 = vadd.f32 %v2019_v55, %v1175_v44  ;;  %v1178_v48 = vadd.f32 %v1958_v45, %v2534_v5 }
 0x15e   :  { %v1309_v49 = vadd.f32 %v1308_v53, %v2597_v27  ;;  %v1332_v50 = vmul.f32 %v2597_v27, %v2597_v27  ;;  %v2603_v52 = vadd.f32 %v2022_v47, %v1178_v48  ;;  %v1959_v56 = vpop.f32.mrb[52].mxu0 }
 0x15f   :  { %v2023_v57 = vpop.f32.mrb[52].mxu1  ;;  %v1960_v58 = vpop.f32.mrb[53].mxu0 }
 0x160   :  { %v1347_v60 = vadd.f32 %v1346_v25, %v1332_v50  ;;  %v1310_v3 = vadd.f32 %v1309_v49, %v2603_v52  ;;  %v1333_v61 = vmul.f32 %v2603_v52, %v2603_v52  ;;  %v1961_v62 = vadd.f32 %v1960_v58, %v1959_v56  ;;  %v2024_v0 = vpop.f32.mrb[53].mxu1  ;;  %v1962_v1 = vpop.f32.mrb[54].mxu0 }
 0x161   :  { %v2025_v5 = vadd.f32 %v2024_v0, %v2023_v57  ;;  %v2026_v2 = vpop.f32.mrb[54].mxu1  ;;  %v1963_v4 = vpop.f32.mrb[55].mxu0 }
 0x162   :  { %v1348_v39 = vadd.f32 %v1347_v60, %v1333_v61  ;;  %v1183_v6 = vadd.f32 %v1961_v62, %v2536_v19  ;;  %v1964_v8 = vadd.f32 %v1963_v4, %v1962_v1  ;;  %v2027_v10 = vpop.f32.mrb[55].mxu1 }
 0x163   :  { %v2028_v12 = vadd.f32 %v2027_v10, %v2026_v2 }
 0x164   :  { %v2609_v41 = vadd.f32 %v2025_v5, %v1183_v6  ;;  %v1186_v14 = vadd.f32 %v1964_v8, %v2538_v21 }
 0x166   :  { %v1311_v15 = vadd.f32 %v1310_v3, %v2609_v41  ;;  %v1334_v16 = vmul.f32 %v2609_v41, %v2609_v41  ;;  %v2615_v11 = vadd.f32 %v2028_v12, %v1186_v14  ;;  %v1965_v17 = vpop.f32.mrb[56].mxu0 }
 0x167   :  { %v2029_v18 = vpop.f32.mrb[56].mxu1  ;;  %v1966_v20 = vpop.f32.mrb[57].mxu0 }
 0x168   :  { %v1349_v23 = vadd.f32 %v1348_v39, %v1334_v16  ;;  %v1312_v19 = vadd.f32 %v1311_v15, %v2615_v11  ;;  %v1335_v13 = vmul.f32 %v2615_v11, %v2615_v11  ;;  %v1967_v24 = vadd.f32 %v1966_v20, %v1965_v17  ;;  %v2030_v28 = vpop.f32.mrb[57].mxu1  ;;  %v1968_v29 = vpop.f32.mrb[58].mxu0 }
 0x169   :  { %v2031_v21 = vadd.f32 %v2030_v28, %v2029_v18  ;;  %v2032_v30 = vpop.f32.mrb[58].mxu1  ;;  %v1969_v32 = vpop.f32.mrb[59].mxu0 }
 0x16a   :  { %v1350_v53 = vadd.f32 %v1349_v23, %v1335_v13  ;;  %v1191_v33 = vadd.f32 %v1967_v24, %v2540_v35  ;;  %v1970_v34 = vadd.f32 %v1969_v32, %v1968_v29  ;;  %v2033_v38 = vpop.f32.mrb[59].mxu1 }
 0x16b   :  { %v2034_v40 = vadd.f32 %v2033_v38, %v2032_v30 }
 0x16c   :  { %v2621_v55 = vadd.f32 %v2031_v21, %v1191_v33  ;;  %v1194_v42 = vadd.f32 %v1970_v34, %v2542_v37 }
 0x16e   :  { %v1313_v43 = vadd.f32 %v1312_v19, %v2621_v55  ;;  %v1336_v25 = vmul.f32 %v2621_v55, %v2621_v55  ;;  %v2627_v44 = vadd.f32 %v2034_v40, %v1194_v42  ;;  %v1971_v45 = vpop.f32.mrb[60].mxu0 }
 0x16f   :  { %v2035_v46 = vpop.f32.mrb[60].mxu1  ;;  %v1972_v47 = vpop.f32.mrb[61].mxu0 }
 0x170   :  { %v1351_v48 = vadd.f32 %v1350_v53, %v1336_v25  ;;  %v1314_v35 = vadd.f32 %v1313_v43, %v2627_v44  ;;  %v1337_v49 = vmul.f32 %v2627_v44, %v2627_v44  ;;  %v1973_v50 = vadd.f32 %v1972_v47, %v1971_v45  ;;  %v2036_v56 = vpop.f32.mrb[61].mxu1  ;;  %v1974_v57 = vpop.f32.mrb[62].mxu0 }
 0x171   :  { %v2037_v37 = vadd.f32 %v2036_v56, %v2035_v46  ;;  %v2038_v58 = vpop.f32.mrb[62].mxu1  ;;  %v1975_v60 = vpop.f32.mrb[63].mxu0 }
 0x172   :  { %v1352_v3 = vadd.f32 %v1351_v48, %v1337_v49  ;;  %v1199_v61 = vadd.f32 %v1973_v50, %v2544_v51  ;;  %v1976_v62 = vadd.f32 %v1975_v60, %v1974_v57  ;;  %v2039_v0 = vpop.f32.mrb[63].mxu1 }
 0x173   :  { %v2040_v1 = vadd.f32 %v2039_v0, %v2038_v58 }
 0x174   :  { %v1296_v5 = vadd.f32 %v2037_v37, %v1199_v61  ;;  %v1202_v2 = vadd.f32 %v1976_v62, %v2546_v54 }
 0x176   :  { %v1315_v4 = vadd.f32 %v1314_v35, %v1296_v5  ;;  %v1338_v39 = vmul.f32 %v1296_v5, %v1296_v5  ;;  %v1299_v6 = vadd.f32 %v2040_v1, %v1202_v2 }
 0x178   :  { %v1353_v8 = vadd.f32 %v1352_v3, %v1338_v39  ;;  %v1316_v10 = vadd.f32 %v1315_v4, %v1299_v6  ;;  %v1339_v12 = vmul.f32 %v1299_v6, %v1299_v6 }
 0x17a   :  { %v1317_v14 = vrot.slane %v1316_v10, 4  ;;  %v1354_v15 = vadd.f32 %v1353_v8, %v1339_v12 }
 0x17c   :  { %v1318_v16 = vadd.f32 %v1317_v14, %v1316_v10  ;;  %v1355_v17 = vrot.slane %v1354_v15, 4 }
 0x17e   :  { %v1319_v18 = vrot.slane %v1318_v16, 2  ;;  %v1356_v20 = vadd.f32 %v1355_v17, %v1354_v15 }
 0x180   :  { %v1320_v23 = vadd.f32 %v1319_v18, %v1318_v16  ;;  %v1357_v51 = vrot.slane %v1356_v20, 2 }
 0x182   :  { %v1321_v19 = vrot.slane %v1320_v23, 1  ;;  %v1358_v13 = vadd.f32 %v1357_v51, %v1356_v20 }
 0x184   :  { %v1322_v24 = vadd.f32 %v1321_v19, %v1320_v23  ;;  %v1359_v28 = vrot.slane %v1358_v13, 1 }
 0x186   :  { %v1323_v29 = vmul.f32 0.0078125, %v1322_v24  ;;  %v1360_v54 = vadd.f32 %v1359_v28, %v1358_v13 }
 0x188   :  { %v1361_v21 = vmul.f32 0.0078125, %v1360_v54  ;;  %v1362_v30 = vmul.f32 %v1323_v29, %v1323_v29  ;;  %v1364_v32 = vsub.f32 %v2549_v7, %v1323_v29  ;;  %v1365_v53 = vsub.f32 %v2552_v9, %v1323_v29 }
 0x189   :  { %v1366_v33 = vsub.f32 %v2561_v31, %v1323_v29  ;;  %v1367_v34 = vsub.f32 %v2567_v36, %v1323_v29  ;;  %v1368_v38 = vsub.f32 %v2573_v59, %v1323_v29  ;;  %v1369_v40 = vsub.f32 %v2579_v63, %v1323_v29 }
 0x18a   :  { %v1363_v42 = vsub.f32 %v1361_v21, %v1362_v30  ;;  %v1370_v43 = vsub.f32 %v2585_v22, %v1323_v29  ;;  %v1371_v25 = vsub.f32 %v2591_v26, %v1323_v29  ;;  %v1372_v45 = vsub.f32 %v2597_v27, %v1323_v29 }
 0x18b   :  { %v1373_v46 = vsub.f32 %v2603_v52, %v1323_v29  ;;  %v1374_v7 = vsub.f32 %v2609_v41, %v1323_v29  ;;  %v1375_v9 = vsub.f32 %v2615_v11, %v1323_v29  ;;  %v1376_v31 = vsub.f32 %v2621_v55, %v1323_v29  ;;  %v1704_v41 = vld [vmem:[%s2696_s2] ss:$0 sm:$0xff] }
 0x18c   :  { %v1377_v36 = vsub.f32 %v2627_v44, %v1323_v29  ;;  %v1378_v59 = vsub.f32 %v1296_v5, %v1323_v29  ;;  %v1379_v47 = vsub.f32 %v1299_v6, %v1323_v29  ;;  %v1380_v63 = vadd.f32 1e-05, %v1363_v42  ;;  %v1705_v6 = vld [vmem:[%s2697_s3] ss:$0 sm:$0xff] }
 0x18e   :  { %2105 = vrsqrt.f32 %v1380_v63 }
 0x198   :  { %v2106_v48 = vpop.eup %2105 }
 0x199   :  { %v1382_v22 = vmul.f32 %v2106_v48, %v1364_v32  ;;  %v1383_v35 = vmul.f32 %v2106_v48, %v1365_v53  ;;  %v1384_v26 = vmul.f32 %v2106_v48, %v1366_v33  ;;  %v1385_v49 = vmul.f32 %v2106_v48, %v1367_v34 }
 0x19a   :  { %v1386_v27 = vmul.f32 %v2106_v48, %v1368_v38  ;;  %v1387_v50 = vmul.f32 %v2106_v48, %v1369_v40  ;;  %v1388_v52 = vmul.f32 %v2106_v48, %v1370_v43  ;;  %v1389_v56 = vmul.f32 %v2106_v48, %v1371_v25 }
 0x19b   :  { %v1390_v11 = vmul.f32 %v2106_v48, %v1372_v45  ;;  %v1391_v55 = vmul.f32 %v2106_v48, %v1373_v46  ;;  %v1392_v44 = vmul.f32 %v2106_v48, %v1374_v7  ;;  %v1393_v57 = vmul.f32 %v2106_v48, %v1375_v9 }
 0x19c   :  { %v1394_v37 = vmul.f32 %v2106_v48, %v1376_v31  ;;  %v1395_v58 = vmul.f32 %v2106_v48, %v1377_v36  ;;  %v1396_v60 = vmul.f32 %v2106_v48, %v1378_v59  ;;  %v1397_v3 = vmul.f32 %v2106_v48, %v1379_v47 }
 0x19d   :  { %v1405_v61 = vmul.f32 %v1704_v41, %v1382_v22  ;;  %v1406_v62 = vmul.f32 %v1704_v41, %v1383_v35  ;;  %v1407_v0 = vmul.f32 %v1704_v41, %v1384_v26  ;;  %v1408_v1 = vmul.f32 %v1704_v41, %v1385_v49 }
 0x19e   :  { %v1409_v5 = vmul.f32 %v1704_v41, %v1386_v27  ;;  %v1410_v2 = vmul.f32 %v1704_v41, %v1387_v50  ;;  %v1411_v4 = vmul.f32 %v1704_v41, %v1388_v52  ;;  %v1412_v39 = vmul.f32 %v1704_v41, %v1389_v56 }
 0x19f   :  { %v1413_v8 = vmul.f32 %v1704_v41, %v1390_v11  ;;  %v1414_v10 = vmul.f32 %v1704_v41, %v1391_v55  ;;  %v1415_v12 = vmul.f32 %v1704_v41, %v1392_v44  ;;  %v1416_v14 = vmul.f32 %v1704_v41, %v1393_v57 }
 0x1a0   :  { %v1417_v15 = vmul.f32 %v1704_v41, %v1394_v37  ;;  %v1418_v16 = vmul.f32 %v1704_v41, %v1395_v58  ;;  %v1419_v17 = vmul.f32 %v1704_v41, %v1396_v60  ;;  %v1420_v18 = vmul.f32 %v1704_v41, %v1397_v3 }
 0x1a1   :  { %v1428_v20 = vadd.f32 %v1705_v6, %v1405_v61  ;;  %v1429_v23 = vadd.f32 %v1705_v6, %v1406_v62  ;;  %v1430_v51 = vadd.f32 %v1705_v6, %v1407_v0  ;;  %v1431_v19 = vadd.f32 %v1705_v6, %v1408_v1 }
 0x1a2   :  { %v1432_v13 = vadd.f32 %v1705_v6, %v1409_v5  ;;  %v1433_v24 = vadd.f32 %v1705_v6, %v1410_v2  ;;  %v1434_v28 = vadd.f32 %v1705_v6, %v1411_v4  ;;  %v1435_v29 = vadd.f32 %v1705_v6, %v1412_v39 }
 0x1a3   :  { %v1436_v54 = vadd.f32 %v1705_v6, %v1413_v8  ;;  %v1437_v21 = vadd.f32 %v1705_v6, %v1414_v10  ;;  %v1438_v30 = vadd.f32 %v1705_v6, %v1415_v12  ;;  %v1439_v32 = vadd.f32 %v1705_v6, %v1416_v14 }
 0x1a4   :  { %v1440_v53 = vadd.f32 %v1705_v6, %v1417_v15  ;;  %v1441_v33 = vadd.f32 %v1705_v6, %v1418_v16  ;;  %v1442_v34 = vadd.f32 %v1705_v6, %v1419_v17  ;;  %v1443_v38 = vadd.f32 %v1705_v6, %v1420_v18 }
 0x1a5   :  { %vm1444_vm0 = vcmp.ge.f32.partialorder %v1428_v20, 0.0  ;;  %vm1445_vm1 = vcmp.ge.f32.partialorder %v1429_v23, 0.0  ;;  %vm1446_vm2 = vcmp.ge.f32.partialorder %v1430_v51, 0.0  ;;  %vm1447_vm3 = vcmp.ge.f32.partialorder %v1431_v19, 0.0 }
 0x1a6   :  { %vm1448_vm4 = vcmp.ge.f32.partialorder %v1432_v13, 0.0  ;;  %vm1449_vm5 = vcmp.ge.f32.partialorder %v1433_v24, 0.0  ;;  %vm1450_vm6 = vcmp.ge.f32.partialorder %v1434_v28, 0.0  ;;  %vm1451_vm7 = vcmp.ge.f32.partialorder %v1435_v29, 0.0 }
 0x1a7   :  { %vm1452_vm8 = vcmp.ge.f32.partialorder %v1436_v54, 0.0  ;;  %vm1453_vm9 = vcmp.ge.f32.partialorder %v1437_v21, 0.0  ;;  %vm1454_vm10 = vcmp.ge.f32.partialorder %v1438_v30, 0.0  ;;  %vm1455_vm11 = vcmp.ge.f32.partialorder %v1439_v32, 0.0 }
 0x1a8   :  { %vm1456_vm12 = vcmp.ge.f32.partialorder %v1440_v53, 0.0  ;;  %vm1457_vm13 = vcmp.ge.f32.partialorder %v1441_v33, 0.0  ;;  %vm1458_vm14 = vcmp.ge.f32.partialorder %v1442_v34, 0.0  ;;  %vm1459_vm15 = vcmp.ge.f32.partialorder %v1443_v38, 0.0 }
 0x1a9   :  { %v1460_v40 = vmul.f32 0.2, %v1428_v20  ;;  %v1461_v42 = vmul.f32 0.2, %v1429_v23  ;;  %v1462_v43 = vmul.f32 0.2, %v1430_v51 }
 0x1aa   :  { %v1463_v25 = vmul.f32 0.2, %v1431_v19  ;;  %v1464_v45 = vmul.f32 0.2, %v1432_v13  ;;  %v1465_v46 = vmul.f32 0.2, %v1433_v24 }
 0x1ab   :  { %v1466_v7 = vmul.f32 0.2, %v1434_v28  ;;  %v1467_v9 = vmul.f32 0.2, %v1435_v29  ;;  %v1468_v31 = vmul.f32 0.2, %v1436_v54  ;;  %v1476_v36 = vsel %vm1444_vm0, %v1428_v20, %v1460_v40 }
 0x1ac   :  { %v1469_v59 = vmul.f32 0.2, %v1437_v21  ;;  %v1470_v47 = vmul.f32 0.2, %v1438_v30  ;;  %v1471_v63 = vmul.f32 0.2, %v1439_v32  ;;  %v1477_v48 = vsel %vm1445_vm1, %v1429_v23, %v1461_v42 }
 0x1ad   :  { %v1472_v22 = vmul.f32 0.2, %v1440_v53  ;;  %v1473_v35 = vmul.f32 0.2, %v1441_v33  ;;  %v1474_v26 = vmul.f32 0.2, %v1442_v34  ;;  %v1478_v49 = vsel %vm1446_vm2, %v1430_v51, %v1462_v43 }
 0x1ae   :  { %v1475_v27 = vmul.f32 0.2, %v1443_v38  ;;  %v1479_v50 = vsel %vm1447_vm3, %v1431_v19, %v1463_v25  ;;  %v1480_v52 = vsel %vm1448_vm4, %v1432_v13, %v1464_v45  ;;  %v1481_v56 = vsel %vm1449_vm5, %v1433_v24, %v1465_v46 }
 0x1af   :  { %v1482_v41 = vsel %vm1450_vm6, %v1434_v28, %v1466_v7  ;;  %v1483_v11 = vsel %vm1451_vm7, %v1435_v29, %v1467_v9  ;;  %v1484_v55 = vsel %vm1452_vm8, %v1436_v54, %v1468_v31  ;;  %v1485_v44 = vsel %vm1453_vm9, %v1437_v21, %v1469_v59 }
 0x1b0   :  { %v1486_v57 = vsel %vm1454_vm10, %v1438_v30, %v1470_v47  ;;  %v1487_v37 = vsel %vm1455_vm11, %v1439_v32, %v1471_v63  ;;  %v1488_v58 = vsel %vm1456_vm12, %v1440_v53, %v1472_v22  ;;  %v1489_v60 = vsel %vm1457_vm13, %v1441_v33, %v1473_v35 }
 0x1b1   :  { %v1490_v3 = vsel %vm1458_vm14, %v1442_v34, %v1474_v26  ;;  %v1491_v61 = vsel %vm1459_vm15, %v1443_v38, %v1475_v27  ;;  %v1741_v62 = vpack.c.bf16 %v1477_v48, %v1476_v36  ;;  %v1746_v0 = vpack.c.bf16 %v1479_v50, %v1478_v49 }
 0x1b2   :  { %v1751_v1 = vpack.c.bf16 %v1481_v56, %v1480_v52  ;;  %v1756_v5 = vpack.c.bf16 %v1483_v11, %v1482_v41  ;;  %v1761_v2 = vpack.c.bf16 %v1485_v44, %v1484_v55  ;;  %v1766_v4 = vpack.c.bf16 %v1487_v37, %v1486_v57 }
 0x1b3   :  { %1742 = vst [vmem:[%s2698_s4] sm:$0xff] %v1741_v62   ;;  %1778 = vst [vmem:[%s2698_s4 + $0x8] sm:$0xff] %v1746_v0   ;;  %v1771_v39 = vpack.c.bf16 %v1489_v60, %v1488_v58  ;;  %v1776_v6 = vpack.c.bf16 %v1491_v61, %v1490_v3 }
 0x1b4   :  { %1779 = vst [vmem:[%s2698_s4 + $0x10] sm:$0xff] %v1751_v1   ;;  %1780 = vst [vmem:[%s2698_s4 + $0x18] sm:$0xff] %v1756_v5  }
 0x1b5   :  { %1781 = vst [vmem:[%s2698_s4 + $0x20] sm:$0xff] %v1761_v2   ;;  %1782 = vst [vmem:[%s2698_s4 + $0x28] sm:$0xff] %v1766_v4  }
 0x1b6   :  { %1783 = vst [vmem:[%s2698_s4 + $0x30] sm:$0xff] %v1771_v39   ;;  %1784 = vst [vmem:[%s2698_s4 + $0x38] sm:$0xff] %v1776_v6  }

// kernel: d_net_forward.6
= control target key start
LH: loop header
LB: loop body
LE: loop exit
PB: predicated region body
PF: predicated region fallthrough
CT: control target
= control target key end

     0   :  { %v3386_v0 = vmov 0   ;;  %s5880_s1 = inlined_call_operand.vmem [shape: bf16[512,128], index: 1, kind: input, shape index: {}]   ;;  %s5881_s0 = inlined_call_operand.vmem [shape: bf16[512,512], index: 0, kind: input, shape index: {}]   ;;  %s5882_s2 = inlined_call_operand.vmem [shape: f32[1,128], index: 2, kind: input, shape index: {}]   ;;  %s5883_s3 = inlined_call_operand.vmem [shape: f32[1,128], index: 3, kind: input, shape index: {}]   ;;  %s5884_s4 = inlined_call_operand.vmem [shape: bf16[512,128], index: 4, kind: output, shape index: {}]  }
   0x1   :  { %1042 = vmatprep.subr.bf16.mxu1 %v3386_v0  ;;  %1331 = vmatprep.subr.bf16.mxu0 %v3386_v0  ;;  %v3160_v1 = vld [vmem:[%s5880_s1] sm:$0xff]   ;;  %v3162_v3 = vld [vmem:[%s5880_s1 + $0x8] sm:$0xff]   ;;  %v3164_v5 = vld [vmem:[%s5880_s1 + $0x10] sm:$0xff]  }
   0x2   :  { %v3161_v2 = vld [vmem:[%s5880_s1 + $0x80] sm:$0xff]   ;;  %1043 = vmatpush1.bf16.msra.mxu1 %v3160_v1  ;;  %v3163_v4 = vld [vmem:[%s5880_s1 + $0x88] sm:$0xff]   ;;  %v3165_v6 = vld [vmem:[%s5880_s1 + $0x90] sm:$0xff]  }
   0x3   :  { %1332 = vmatpush1.bf16.msra.mxu0 %v3161_v2  ;;  %1044 = vmatprep.subr.bf16.mxu1 %v3386_v0  ;;  %v3166_v7 = vld [vmem:[%s5880_s1 + $0x18] sm:$0xff]   ;;  %v3168_v9 = vld [vmem:[%s5880_s1 + $0x20] sm:$0xff]   ;;  %v3170_v11 = vld [vmem:[%s5880_s1 + $0x28] sm:$0xff]  }
   0x4   :  { %1333 = vmatprep.subr.bf16.mxu0 %v3386_v0  ;;  %v3167_v8 = vld [vmem:[%s5880_s1 + $0x98] sm:$0xff]   ;;  %v3169_v10 = vld [vmem:[%s5880_s1 + $0xa0] sm:$0xff]   ;;  %v3171_v12 = vld [vmem:[%s5880_s1 + $0xa8] sm:$0xff]  }
   0x5   :  { %v3172_v13 = vld [vmem:[%s5880_s1 + $0x30] sm:$0xff]   ;;  %v3174_v15 = vld [vmem:[%s5880_s1 + $0x38] sm:$0xff]   ;;  %v3176_v17 = vld [vmem:[%s5880_s1 + $0x40] sm:$0xff]  }
   0x6   :  { %1045 = vmatpush1.bf16.msra.mxu1 %v3162_v3  ;;  %v3173_v14 = vld [vmem:[%s5880_s1 + $0xb0] sm:$0xff]   ;;  %v3175_v16 = vld [vmem:[%s5880_s1 + $0xb8] sm:$0xff]   ;;  %v3177_v18 = vld [vmem:[%s5880_s1 + $0xc0] sm:$0xff]  }
   0x7   :  { %1334 = vmatpush1.bf16.msra.mxu0 %v3163_v4  ;;  %1046 = vmatprep.subr.bf16.mxu1 %v3386_v0  ;;  %v3194_v19 = vld [vmem:[%s5881_s0 + $0x4] ss:$16 sps:$4 sm:$0xff]   ;;  %v3178_v20 = vld [vmem:[%s5880_s1 + $0x48] sm:$0xff]   ;;  %v3182_v25 = vld [vmem:[%s5880_s1 + $0x58] sm:$0xff]  }
   0x8   :  { %1335 = vmatprep.subr.bf16.mxu0 %v3386_v0  ;;  %v3197_v21 = vld [vmem:[%s5881_s0 + $0xc] ss:$16 sps:$4 sm:$0xff]   ;;  %1074 = vmatprep.mubr.bf16.mxu1 %v3194_v19  ;;  %v3180_v23 = vld [vmem:[%s5880_s1 + $0x50] sm:$0xff]   ;;  %v3184_v27 = vld [vmem:[%s5880_s1 + $0x60] sm:$0xff]  }
   0x9   :  { %v3179_v22 = vld [vmem:[%s5880_s1 + $0xc8] sm:$0xff]   ;;  %1363 = vmatprep.mubr.bf16.mxu0 %v3197_v21  ;;  %v3181_v24 = vld [vmem:[%s5880_s1 + $0xd0] sm:$0xff]   ;;  %v3183_v26 = vld [vmem:[%s5880_s1 + $0xd8] sm:$0xff]  }
   0xa   :  { %1047 = vmatpush1.bf16.msra.mxu1 %v3164_v5  ;;  %v3185_v28 = vld [vmem:[%s5880_s1 + $0xe0] sm:$0xff]   ;;  %v3186_v29 = vld [vmem:[%s5880_s1 + $0x68] sm:$0xff]   ;;  %v3188_v31 = vld [vmem:[%s5880_s1 + $0x70] sm:$0xff]  }
   0xb   :  { %1336 = vmatpush1.bf16.msra.mxu0 %v3165_v6  ;;  %1048 = vmatprep.subr.bf16.mxu1 %v3386_v0  ;;  %v3187_v30 = vld [vmem:[%s5880_s1 + $0xe8] sm:$0xff]   ;;  %v3189_v32 = vld [vmem:[%s5880_s1 + $0xf0] sm:$0xff]   ;;  %v3190_v33 = vld [vmem:[%s5880_s1 + $0x78] sm:$0xff]  }
   0xc   :  { %1337 = vmatprep.subr.bf16.mxu0 %v3386_v0  ;;  %v3191_v34 = vld [vmem:[%s5880_s1 + $0xf8] sm:$0xff]   ;;  %v3192_v35 = vld [vmem:[%s5881_s0] ss:$16 sps:$4 sm:$0xff]   ;;  %v3198_v37 = vld [vmem:[%s5881_s0 + $0x24] ss:$16 sps:$4 sm:$0xff]  }
   0xd   :  { %v3195_v36 = vld [vmem:[%s5881_s0 + $0x8] ss:$16 sps:$4 sm:$0xff]   ;;  %v3200_v38 = vld [vmem:[%s5881_s0 + $0x2c] ss:$16 sps:$4 sm:$0xff]   ;;  %v3202_v39 = vld [vmem:[%s5881_s0 + $0x20] ss:$16 sps:$4 sm:$0xff]  }
   0xe   :  { %1049 = vmatpush1.bf16.msra.mxu1 %v3166_v7  ;;  %v3203_v40 = vld [vmem:[%s5881_s0 + $0x28] ss:$16 sps:$4 sm:$0xff]   ;;  %v3204_v41 = vld [vmem:[%s5881_s0 + $0x44] ss:$16 sps:$4 sm:$0xff]   ;;  %v3206_v42 = vld [vmem:[%s5881_s0 + $0x4c] ss:$16 sps:$4 sm:$0xff]  }
   0xf   :  { %1338 = vmatpush1.bf16.msra.mxu0 %v3167_v8  ;;  %1050 = vmatprep.subr.bf16.mxu1 %v3386_v0  ;;  %v3208_v43 = vld [vmem:[%s5881_s0 + $0x40] ss:$16 sps:$4 sm:$0xff]   ;;  %v3209_v44 = vld [vmem:[%s5881_s0 + $0x48] ss:$16 sps:$4 sm:$0xff]   ;;  %v3210_v45 = vld [vmem:[%s5881_s0 + $0x64] ss:$16 sps:$4 sm:$0xff]  }
  0x10   :  { %1339 = vmatprep.subr.bf16.mxu0 %v3386_v0  ;;  %v3212_v46 = vld [vmem:[%s5881_s0 + $0x6c] ss:$16 sps:$4 sm:$0xff]   ;;  %v3214_v47 = vld [vmem:[%s5881_s0 + $0x60] ss:$16 sps:$4 sm:$0xff]   ;;  %v3215_v48 = vld [vmem:[%s5881_s0 + $0x68] ss:$16 sps:$4 sm:$0xff]  }
  0x11   :  { %v3216_v49 = vld [vmem:[%s5881_s0 + $0x84] ss:$16 sps:$4 sm:$0xff]   ;;  %v3218_v50 = vld [vmem:[%s5881_s0 + $0x8c] ss:$16 sps:$4 sm:$0xff]   ;;  %v3220_v51 = vld [vmem:[%s5881_s0 + $0x80] ss:$16 sps:$4 sm:$0xff]  }
  0x12   :  { %1051 = vmatpush1.bf16.msra.mxu1 %v3168_v9  ;;  %v3221_v52 = vld [vmem:[%s5881_s0 + $0x88] ss:$16 sps:$4 sm:$0xff]   ;;  %v3222_v53 = vld [vmem:[%s5881_s0 + $0xa4] ss:$16 sps:$4 sm:$0xff]   ;;  %v3224_v54 = vld [vmem:[%s5881_s0 + $0xac] ss:$16 sps:$4 sm:$0xff]  }
  0x13   :  { %1340 = vmatpush1.bf16.msra.mxu0 %v3169_v10  ;;  %1052 = vmatprep.subr.bf16.mxu1 %v3386_v0  ;;  %v3226_v55 = vld [vmem:[%s5881_s0 + $0xa0] ss:$16 sps:$4 sm:$0xff]   ;;  %v3227_v56 = vld [vmem:[%s5881_s0 + $0xa8] ss:$16 sps:$4 sm:$0xff]   ;;  %v3228_v57 = vld [vmem:[%s5881_s0 + $0xc4] ss:$16 sps:$4 sm:$0xff]  }
  0x14   :  { %1341 = vmatprep.subr.bf16.mxu0 %v3386_v0  ;;  %v3230_v58 = vld [vmem:[%s5881_s0 + $0xcc] ss:$16 sps:$4 sm:$0xff]   ;;  %v3232_v59 = vld [vmem:[%s5881_s0 + $0xc0] ss:$16 sps:$4 sm:$0xff]   ;;  %v3233_v60 = vld [vmem:[%s5881_s0 + $0xc8] ss:$16 sps:$4 sm:$0xff]  }
  0x15   :  { %v3234_v61 = vld [vmem:[%s5881_s0 + $0xe4] ss:$16 sps:$4 sm:$0xff]   ;;  %v3236_v62 = vld [vmem:[%s5881_s0 + $0xec] ss:$16 sps:$4 sm:$0xff]   ;;  %v3238_v63 = vld [vmem:[%s5881_s0 + $0xe0] ss:$16 sps:$4 sm:$0xff]  }
  0x16   :  { %1053 = vmatpush1.bf16.msra.mxu1 %v3170_v11  ;;  %v3240_v1 = vld [vmem:[%s5881_s0 + $0x104] ss:$16 sps:$4 sm:$0xff]   ;;  %v3242_v2 = vld [vmem:[%s5881_s0 + $0x10c] ss:$16 sps:$4 sm:$0xff]   ;;  %v3244_v3 = vld [vmem:[%s5881_s0 + $0x100] ss:$16 sps:$4 sm:$0xff]  }
  0x17   :  { %1342 = vmatpush1.bf16.msra.mxu0 %v3171_v12  ;;  %1054 = vmatprep.subr.bf16.mxu1 %v3386_v0  ;;  %v3245_v4 = vld [vmem:[%s5881_s0 + $0x108] ss:$16 sps:$4 sm:$0xff]   ;;  %v3246_v5 = vld [vmem:[%s5881_s0 + $0x124] ss:$16 sps:$4 sm:$0xff]   ;;  %v3248_v6 = vld [vmem:[%s5881_s0 + $0x12c] ss:$16 sps:$4 sm:$0xff]  }
  0x18   :  { %1343 = vmatprep.subr.bf16.mxu0 %v3386_v0  ;;  %v3250_v7 = vld [vmem:[%s5881_s0 + $0x120] ss:$16 sps:$4 sm:$0xff]   ;;  %v3251_v8 = vld [vmem:[%s5881_s0 + $0x128] ss:$16 sps:$4 sm:$0xff]   ;;  %v3252_v9 = vld [vmem:[%s5881_s0 + $0x144] ss:$16 sps:$4 sm:$0xff]  }
  0x19   :  { %v3254_v10 = vld [vmem:[%s5881_s0 + $0x14c] ss:$16 sps:$4 sm:$0xff]   ;;  %v3256_v11 = vld [vmem:[%s5881_s0 + $0x140] ss:$16 sps:$4 sm:$0xff]   ;;  %v3257_v12 = vld [vmem:[%s5881_s0 + $0x148] ss:$16 sps:$4 sm:$0xff]  }
  0x1a   :  { %1055 = vmatpush1.bf16.msra.mxu1 %v3172_v13  ;;  %v3258_v13 = vld [vmem:[%s5881_s0 + $0x164] ss:$16 sps:$4 sm:$0xff]   ;;  %v3268_v19 = vld [vmem:[%s5881_s0 + $0x180] ss:$16 sps:$4 sm:$0xff]  }
  0x1b   :  { %1344 = vmatpush1.bf16.msra.mxu0 %v3173_v14  ;;  %1056 = vmatprep.subr.bf16.mxu1 %v3386_v0  ;;  %v3260_v14 = vld [vmem:[%s5881_s0 + $0x16c] ss:$16 sps:$4 sm:$0xff]   ;;  %v3270_v21 = vld [vmem:[%s5881_s0 + $0x1a4] ss:$16 sps:$4 sm:$0xff]  }
  0x1c   :  { %1345 = vmatprep.subr.bf16.mxu0 %v3386_v0 }
  0x1e   :  { %1057 = vmatpush1.bf16.msra.mxu1 %v3174_v15  ;;  %v3262_v15 = vld [vmem:[%s5881_s0 + $0x160] ss:$16 sps:$4 sm:$0xff]  }
  0x1f   :  { %1346 = vmatpush1.bf16.msra.mxu0 %v3175_v16  ;;  %1058 = vmatprep.subr.bf16.mxu1 %v3386_v0  ;;  %v3263_v16 = vld [vmem:[%s5881_s0 + $0x168] ss:$16 sps:$4 sm:$0xff]  }
  0x20   :  { %1347 = vmatprep.subr.bf16.mxu0 %v3386_v0 }
  0x22   :  { %1059 = vmatpush1.bf16.msra.mxu1 %v3176_v17  ;;  %v3264_v17 = vld [vmem:[%s5881_s0 + $0x184] ss:$16 sps:$4 sm:$0xff]  }
  0x23   :  { %1348 = vmatpush1.bf16.msra.mxu0 %v3177_v18  ;;  %1060 = vmatprep.subr.bf16.mxu1 %v3386_v0  ;;  %v3266_v18 = vld [vmem:[%s5881_s0 + $0x18c] ss:$16 sps:$4 sm:$0xff]  }
  0x24   :  { %1349 = vmatprep.subr.bf16.mxu0 %v3386_v0 }
  0x26   :  { %1061 = vmatpush1.bf16.msra.mxu1 %v3178_v20  ;;  %v3269_v20 = vld [vmem:[%s5881_s0 + $0x188] ss:$16 sps:$4 sm:$0xff]  }
  0x27   :  { %1350 = vmatpush1.bf16.msra.mxu0 %v3179_v22  ;;  %1062 = vmatprep.subr.bf16.mxu1 %v3386_v0  ;;  %v3272_v22 = vld [vmem:[%s5881_s0 + $0x1ac] ss:$16 sps:$4 sm:$0xff]  }
  0x28   :  { %1351 = vmatprep.subr.bf16.mxu0 %v3386_v0 }
  0x2a   :  { %1063 = vmatpush1.bf16.msra.mxu1 %v3180_v23  ;;  %v3274_v23 = vld [vmem:[%s5881_s0 + $0x1a0] ss:$16 sps:$4 sm:$0xff]  }
  0x2b   :  { %1352 = vmatpush1.bf16.msra.mxu0 %v3181_v24  ;;  %1064 = vmatprep.subr.bf16.mxu1 %v3386_v0  ;;  %v3275_v24 = vld [vmem:[%s5881_s0 + $0x1a8] ss:$16 sps:$4 sm:$0xff]  }
  0x2c   :  { %1353 = vmatprep.subr.bf16.mxu0 %v3386_v0 }
  0x2e   :  { %1065 = vmatpush1.bf16.msra.mxu1 %v3182_v25  ;;  %v3276_v25 = vld [vmem:[%s5881_s0 + $0x1c4] ss:$16 sps:$4 sm:$0xff]  }
  0x2f   :  { %1354 = vmatpush1.bf16.msra.mxu0 %v3183_v26  ;;  %1066 = vmatprep.subr.bf16.mxu1 %v3386_v0  ;;  %v3278_v26 = vld [vmem:[%s5881_s0 + $0x1cc] ss:$16 sps:$4 sm:$0xff]  }
  0x30   :  { %1355 = vmatprep.subr.bf16.mxu0 %v3386_v0 }
  0x32   :  { %1067 = vmatpush1.bf16.msra.mxu1 %v3184_v27  ;;  %v3280_v27 = vld [vmem:[%s5881_s0 + $0x1c0] ss:$16 sps:$4 sm:$0xff]  }
  0x33   :  { %1356 = vmatpush1.bf16.msra.mxu0 %v3185_v28  ;;  %1068 = vmatprep.subr.bf16.mxu1 %v3386_v0  ;;  %v3281_v28 = vld [vmem:[%s5881_s0 + $0x1c8] ss:$16 sps:$4 sm:$0xff]  }
  0x34   :  { %1357 = vmatprep.subr.bf16.mxu0 %v3386_v0 }
  0x36   :  { %1069 = vmatpush1.bf16.msra.mxu1 %v3186_v29  ;;  %v3282_v29 = vld [vmem:[%s5881_s0 + $0x1e4] ss:$16 sps:$4 sm:$0xff]  }
  0x37   :  { %1358 = vmatpush1.bf16.msra.mxu0 %v3187_v30  ;;  %1070 = vmatprep.subr.bf16.mxu1 %v3386_v0  ;;  %v3284_v30 = vld [vmem:[%s5881_s0 + $0x1ec] ss:$16 sps:$4 sm:$0xff]  }
  0x38   :  { %1359 = vmatprep.subr.bf16.mxu0 %v3386_v0 }
  0x3a   :  { %1071 = vmatpush1.bf16.msra.mxu1 %v3188_v31  ;;  %v3286_v31 = vld [vmem:[%s5881_s0 + $0x1e0] ss:$16 sps:$4 sm:$0xff]  }
  0x3b   :  { %1360 = vmatpush1.bf16.msra.mxu0 %v3189_v32  ;;  %1072 = vmatprep.subr.bf16.mxu1 %v3386_v0  ;;  %v3287_v32 = vld [vmem:[%s5881_s0 + $0x1e8] ss:$16 sps:$4 sm:$0xff]  }
  0x3c   :  { %1361 = vmatprep.subr.bf16.mxu0 %v3386_v0  ;;  %v3239_v0 = vld [vmem:[%s5881_s0 + $0xe8] ss:$16 sps:$4 sm:$0xff]  }
  0x3e   :  { %1073 = vmatpush1.bf16.msra.mxu1 %v3190_v33  ;;  %v3288_v33 = vld [vmem:[%s5881_s0 + $0x204] ss:$16 sps:$4 sm:$0xff]  }
  0x3f   :  { %1362 = vmatpush1.bf16.msra.mxu0 %v3191_v34  ;;  %v3290_v34 = vld [vmem:[%s5881_s0 + $0x20c] ss:$16 sps:$4 sm:$0xff]  }
  0x41   :  { %1075 = vmatmul.mubr.bf16.vlgmr.msra.gmra.mrb[0].mxu1 %v3192_v35  ;;  %v3292_v35 = vld [vmem:[%s5881_s0 + $0x200] ss:$16 sps:$4 sm:$0xff]  }
  0x42   :  { %1364 = vmatmul.mubr.bf16.vlgmr.msra.gmra.mrb[0].mxu0 %v3195_v36  ;;  %1082 = vmatprep.mubr.bf16.mxu1 %v3198_v37  ;;  %v3293_v36 = vld [vmem:[%s5881_s0 + $0x208] ss:$16 sps:$4 sm:$0xff]   ;;  %v3294_v37 = vld [vmem:[%s5881_s0 + $0x224] ss:$16 sps:$4 sm:$0xff]  }
  0x43   :  { %1371 = vmatprep.mubr.bf16.mxu0 %v3200_v38  ;;  %v3296_v38 = vld [vmem:[%s5881_s0 + $0x22c] ss:$16 sps:$4 sm:$0xff]  }
  0x49   :  { %1083 = vmatmul.mubr.bf16.gmra.mrb[4].mxu1 %v3202_v39  ;;  %v3298_v39 = vld [vmem:[%s5881_s0 + $0x220] ss:$16 sps:$4 sm:$0xff]  }
  0x4a   :  { %1372 = vmatmul.mubr.bf16.gmra.mrb[4].mxu0 %v3203_v40  ;;  %1090 = vmatprep.mubr.bf16.mxu1 %v3204_v41  ;;  %v3299_v40 = vld [vmem:[%s5881_s0 + $0x228] ss:$16 sps:$4 sm:$0xff]   ;;  %v3300_v41 = vld [vmem:[%s5881_s0 + $0x244] ss:$16 sps:$4 sm:$0xff]  }
  0x4b   :  { %1379 = vmatprep.mubr.bf16.mxu0 %v3206_v42  ;;  %v3302_v42 = vld [vmem:[%s5881_s0 + $0x24c] ss:$16 sps:$4 sm:$0xff]  }
  0x51   :  { %1091 = vmatmul.mubr.bf16.gmra.mrb[8].mxu1 %v3208_v43  ;;  %v3304_v43 = vld [vmem:[%s5881_s0 + $0x240] ss:$16 sps:$4 sm:$0xff]  }
  0x52   :  { %1380 = vmatmul.mubr.bf16.gmra.mrb[8].mxu0 %v3209_v44  ;;  %1098 = vmatprep.mubr.bf16.mxu1 %v3210_v45  ;;  %v3305_v44 = vld [vmem:[%s5881_s0 + $0x248] ss:$16 sps:$4 sm:$0xff]   ;;  %v3306_v45 = vld [vmem:[%s5881_s0 + $0x264] ss:$16 sps:$4 sm:$0xff]  }
  0x53   :  { %1387 = vmatprep.mubr.bf16.mxu0 %v3212_v46  ;;  %v3308_v46 = vld [vmem:[%s5881_s0 + $0x26c] ss:$16 sps:$4 sm:$0xff]  }
  0x59   :  { %1099 = vmatmul.mubr.bf16.gmra.mrb[12].mxu1 %v3214_v47  ;;  %v3310_v47 = vld [vmem:[%s5881_s0 + $0x260] ss:$16 sps:$4 sm:$0xff]  }
  0x5a   :  { %1388 = vmatmul.mubr.bf16.gmra.mrb[12].mxu0 %v3215_v48  ;;  %1106 = vmatprep.mubr.bf16.mxu1 %v3216_v49  ;;  %v3311_v48 = vld [vmem:[%s5881_s0 + $0x268] ss:$16 sps:$4 sm:$0xff]   ;;  %v3312_v49 = vld [vmem:[%s5881_s0 + $0x284] ss:$16 sps:$4 sm:$0xff]  }
  0x5b   :  { %1395 = vmatprep.mubr.bf16.mxu0 %v3218_v50  ;;  %v3314_v50 = vld [vmem:[%s5881_s0 + $0x28c] ss:$16 sps:$4 sm:$0xff]  }
  0x61   :  { %1107 = vmatmul.mubr.bf16.gmra.mrb[16].mxu1 %v3220_v51  ;;  %v3316_v51 = vld [vmem:[%s5881_s0 + $0x280] ss:$16 sps:$4 sm:$0xff]  }
  0x62   :  { %1396 = vmatmul.mubr.bf16.gmra.mrb[16].mxu0 %v3221_v52  ;;  %1114 = vmatprep.mubr.bf16.mxu1 %v3222_v53  ;;  %v3317_v52 = vld [vmem:[%s5881_s0 + $0x288] ss:$16 sps:$4 sm:$0xff]   ;;  %v3318_v53 = vld [vmem:[%s5881_s0 + $0x2a4] ss:$16 sps:$4 sm:$0xff]  }
  0x63   :  { %1403 = vmatprep.mubr.bf16.mxu0 %v3224_v54  ;;  %v3320_v54 = vld [vmem:[%s5881_s0 + $0x2ac] ss:$16 sps:$4 sm:$0xff]  }
  0x69   :  { %1115 = vmatmul.mubr.bf16.gmra.mrb[20].mxu1 %v3226_v55  ;;  %v3322_v55 = vld [vmem:[%s5881_s0 + $0x2a0] ss:$16 sps:$4 sm:$0xff]  }
  0x6a   :  { %1404 = vmatmul.mubr.bf16.gmra.mrb[20].mxu0 %v3227_v56  ;;  %1122 = vmatprep.mubr.bf16.mxu1 %v3228_v57  ;;  %v3323_v56 = vld [vmem:[%s5881_s0 + $0x2a8] ss:$16 sps:$4 sm:$0xff]   ;;  %v3324_v57 = vld [vmem:[%s5881_s0 + $0x2c4] ss:$16 sps:$4 sm:$0xff]  }
  0x6b   :  { %1411 = vmatprep.mubr.bf16.mxu0 %v3230_v58  ;;  %v3326_v58 = vld [vmem:[%s5881_s0 + $0x2cc] ss:$16 sps:$4 sm:$0xff]  }
  0x71   :  { %1123 = vmatmul.mubr.bf16.gmra.mrb[24].mxu1 %v3232_v59  ;;  %v3328_v59 = vld [vmem:[%s5881_s0 + $0x2c0] ss:$16 sps:$4 sm:$0xff]  }
  0x72   :  { %1412 = vmatmul.mubr.bf16.gmra.mrb[24].mxu0 %v3233_v60  ;;  %1130 = vmatprep.mubr.bf16.mxu1 %v3234_v61  ;;  %v3329_v60 = vld [vmem:[%s5881_s0 + $0x2c8] ss:$16 sps:$4 sm:$0xff]   ;;  %v3330_v61 = vld [vmem:[%s5881_s0 + $0x2e4] ss:$16 sps:$4 sm:$0xff]  }
  0x73   :  { %1419 = vmatprep.mubr.bf16.mxu0 %v3236_v62  ;;  %v3332_v62 = vld [vmem:[%s5881_s0 + $0x2ec] ss:$16 sps:$4 sm:$0xff]  }
  0x79   :  { %1131 = vmatmul.mubr.bf16.gmra.mrb[28].mxu1 %v3238_v63  ;;  %v3334_v63 = vld [vmem:[%s5881_s0 + $0x2e0] ss:$16 sps:$4 sm:$0xff]  }
  0x7a   :  { %1420 = vmatmul.mubr.bf16.gmra.mrb[28].mxu0 %v3239_v0  ;;  %1138 = vmatprep.mubr.bf16.mxu1 %v3240_v1  ;;  %v3335_v0 = vld [vmem:[%s5881_s0 + $0x2e8] ss:$16 sps:$4 sm:$0xff]   ;;  %v3336_v1 = vld [vmem:[%s5881_s0 + $0x304] ss:$16 sps:$4 sm:$0xff]  }
  0x7b   :  { %1427 = vmatprep.mubr.bf16.mxu0 %v3242_v2  ;;  %v3338_v2 = vld [vmem:[%s5881_s0 + $0x30c] ss:$16 sps:$4 sm:$0xff]  }
  0x81   :  { %1139 = vmatmul.mubr.bf16.gmra.mrb[32].mxu1 %v3244_v3  ;;  %v3340_v3 = vld [vmem:[%s5881_s0 + $0x300] ss:$16 sps:$4 sm:$0xff]  }
  0x82   :  { %1428 = vmatmul.mubr.bf16.gmra.mrb[32].mxu0 %v3245_v4  ;;  %1146 = vmatprep.mubr.bf16.mxu1 %v3246_v5  ;;  %v3341_v4 = vld [vmem:[%s5881_s0 + $0x308] ss:$16 sps:$4 sm:$0xff]   ;;  %v3342_v5 = vld [vmem:[%s5881_s0 + $0x324] ss:$16 sps:$4 sm:$0xff]  }
  0x83   :  { %1435 = vmatprep.mubr.bf16.mxu0 %v3248_v6  ;;  %v3344_v6 = vld [vmem:[%s5881_s0 + $0x32c] ss:$16 sps:$4 sm:$0xff]  }
  0x89   :  { %1147 = vmatmul.mubr.bf16.gmra.mrb[36].mxu1 %v3250_v7  ;;  %v3346_v7 = vld [vmem:[%s5881_s0 + $0x320] ss:$16 sps:$4 sm:$0xff]  }
  0x8a   :  { %1436 = vmatmul.mubr.bf16.gmra.mrb[36].mxu0 %v3251_v8  ;;  %1154 = vmatprep.mubr.bf16.mxu1 %v3252_v9  ;;  %v3347_v8 = vld [vmem:[%s5881_s0 + $0x328] ss:$16 sps:$4 sm:$0xff]   ;;  %v3348_v9 = vld [vmem:[%s5881_s0 + $0x344] ss:$16 sps:$4 sm:$0xff]  }
  0x8b   :  { %1443 = vmatprep.mubr.bf16.mxu0 %v3254_v10  ;;  %v3350_v10 = vld [vmem:[%s5881_s0 + $0x34c] ss:$16 sps:$4 sm:$0xff]  }
  0x91   :  { %1155 = vmatmul.mubr.bf16.gmra.mrb[40].mxu1 %v3256_v11  ;;  %v3352_v11 = vld [vmem:[%s5881_s0 + $0x340] ss:$16 sps:$4 sm:$0xff]  }
  0x92   :  { %1444 = vmatmul.mubr.bf16.gmra.mrb[40].mxu0 %v3257_v12  ;;  %1162 = vmatprep.mubr.bf16.mxu1 %v3258_v13  ;;  %v3353_v12 = vld [vmem:[%s5881_s0 + $0x348] ss:$16 sps:$4 sm:$0xff]   ;;  %v3354_v13 = vld [vmem:[%s5881_s0 + $0x364] ss:$16 sps:$4 sm:$0xff]  }
  0x93   :  { %1451 = vmatprep.mubr.bf16.mxu0 %v3260_v14  ;;  %v3356_v14 = vld [vmem:[%s5881_s0 + $0x36c] ss:$16 sps:$4 sm:$0xff]  }
  0x99   :  { %1163 = vmatmul.mubr.bf16.gmra.mrb[44].mxu1 %v3262_v15 }
  0x9a   :  { %1452 = vmatmul.mubr.bf16.gmra.mrb[44].mxu0 %v3263_v16  ;;  %1170 = vmatprep.mubr.bf16.mxu1 %v3264_v17 }
  0x9b   :  { %1459 = vmatprep.mubr.bf16.mxu0 %v3266_v18  ;;  %v3358_v18 = vld [vmem:[%s5881_s0 + $0x360] ss:$16 sps:$4 sm:$0xff]  }
  0xa1   :  { %1171 = vmatmul.mubr.bf16.gmra.mrb[48].mxu1 %v3268_v19 }
  0xa2   :  { %1460 = vmatmul.mubr.bf16.gmra.mrb[48].mxu0 %v3269_v20  ;;  %1178 = vmatprep.mubr.bf16.mxu1 %v3270_v21 }
  0xa3   :  { %1467 = vmatprep.mubr.bf16.mxu0 %v3272_v22  ;;  %v3359_v22 = vld [vmem:[%s5881_s0 + $0x368] ss:$16 sps:$4 sm:$0xff]  }
  0xa9   :  { %1179 = vmatmul.mubr.bf16.gmra.mrb[52].mxu1 %v3274_v23  ;;  %v3360_v23 = vld [vmem:[%s5881_s0 + $0x384] ss:$16 sps:$4 sm:$0xff]  }
  0xaa   :  { %1468 = vmatmul.mubr.bf16.gmra.mrb[52].mxu0 %v3275_v24  ;;  %1186 = vmatprep.mubr.bf16.mxu1 %v3276_v25 }
  0xab   :  { %1475 = vmatprep.mubr.bf16.mxu0 %v3278_v26  ;;  %v3362_v26 = vld [vmem:[%s5881_s0 + $0x38c] ss:$16 sps:$4 sm:$0xff]  }
  0xb1   :  { %1187 = vmatmul.mubr.bf16.gmra.mrb[56].mxu1 %v3280_v27 }
  0xb2   :  { %1476 = vmatmul.mubr.bf16.gmra.mrb[56].mxu0 %v3281_v28  ;;  %1194 = vmatprep.mubr.bf16.mxu1 %v3282_v29 }
  0xb3   :  { %1483 = vmatprep.mubr.bf16.mxu0 %v3284_v30 }
  0xb9   :  { %1195 = vmatmul.mubr.bf16.gmra.mrb[60].mxu1 %v3286_v31 }
  0xba   :  { %1484 = vmatmul.mubr.bf16.gmra.mrb[60].mxu0 %v3287_v32  ;;  %1202 = vmatprep.mubr.bf16.mxu1 %v3288_v33  ;;  %v3364_v32 = vld [vmem:[%s5881_s0 + $0x380] ss:$16 sps:$4 sm:$0xff]  }
  0xbb   :  { %1491 = vmatprep.mubr.bf16.mxu0 %v3290_v34 }
  0xc1   :  { %1203 = vmatmul.mubr.bf16.gmra.mrb[64].mxu1 %v3292_v35 }
  0xc2   :  { %1492 = vmatmul.mubr.bf16.gmra.mrb[64].mxu0 %v3293_v36  ;;  %1210 = vmatprep.mubr.bf16.mxu1 %v3294_v37  ;;  %v3365_v36 = vld [vmem:[%s5881_s0 + $0x388] ss:$16 sps:$4 sm:$0xff]   ;;  %v3366_v37 = vld [vmem:[%s5881_s0 + $0x3a4] ss:$16 sps:$4 sm:$0xff]  }
  0xc3   :  { %1499 = vmatprep.mubr.bf16.mxu0 %v3296_v38 }
  0xc9   :  { %1211 = vmatmul.mubr.bf16.gmra.mrb[68].mxu1 %v3298_v39 }
  0xca   :  { %1500 = vmatmul.mubr.bf16.gmra.mrb[68].mxu0 %v3299_v40  ;;  %1218 = vmatprep.mubr.bf16.mxu1 %v3300_v41  ;;  %v3368_v40 = vld [vmem:[%s5881_s0 + $0x3ac] ss:$16 sps:$4 sm:$0xff]  }
  0xcb   :  { %1507 = vmatprep.mubr.bf16.mxu0 %v3302_v42 }
  0xd1   :  { %1219 = vmatmul.mubr.bf16.gmra.mrb[72].mxu1 %v3304_v43 }
  0xd2   :  { %1508 = vmatmul.mubr.bf16.gmra.mrb[72].mxu0 %v3305_v44  ;;  %1226 = vmatprep.mubr.bf16.mxu1 %v3306_v45 }
  0xd3   :  { %1515 = vmatprep.mubr.bf16.mxu0 %v3308_v46  ;;  %v3370_v46 = vld [vmem:[%s5881_s0 + $0x3a0] ss:$16 sps:$4 sm:$0xff]  }
  0xd9   :  { %1227 = vmatmul.mubr.bf16.gmra.mrb[76].mxu1 %v3310_v47 }
  0xda   :  { %1516 = vmatmul.mubr.bf16.gmra.mrb[76].mxu0 %v3311_v48  ;;  %1234 = vmatprep.mubr.bf16.mxu1 %v3312_v49 }
  0xdb   :  { %1523 = vmatprep.mubr.bf16.mxu0 %v3314_v50  ;;  %v3371_v50 = vld [vmem:[%s5881_s0 + $0x3a8] ss:$16 sps:$4 sm:$0xff]  }
  0xe1   :  { %1235 = vmatmul.mubr.bf16.gmra.mrb[80].mxu1 %v3316_v51  ;;  %v3372_v51 = vld [vmem:[%s5881_s0 + $0x3c4] ss:$16 sps:$4 sm:$0xff]  }
  0xe2   :  { %1524 = vmatmul.mubr.bf16.gmra.mrb[80].mxu0 %v3317_v52  ;;  %1242 = vmatprep.mubr.bf16.mxu1 %v3318_v53 }
  0xe3   :  { %1531 = vmatprep.mubr.bf16.mxu0 %v3320_v54  ;;  %v3374_v54 = vld [vmem:[%s5881_s0 + $0x3cc] ss:$16 sps:$4 sm:$0xff]  }
  0xe9   :  { %1243 = vmatmul.mubr.bf16.gmra.mrb[84].mxu1 %v3322_v55 }
  0xea   :  { %1532 = vmatmul.mubr.bf16.gmra.mrb[84].mxu0 %v3323_v56  ;;  %1250 = vmatprep.mubr.bf16.mxu1 %v3324_v57 }
  0xeb   :  { %1539 = vmatprep.mubr.bf16.mxu0 %v3326_v58 }
  0xf1   :  { %1251 = vmatmul.mubr.bf16.gmra.mrb[88].mxu1 %v3328_v59 }
  0xf2   :  { %1540 = vmatmul.mubr.bf16.gmra.mrb[88].mxu0 %v3329_v60  ;;  %1258 = vmatprep.mubr.bf16.mxu1 %v3330_v61  ;;  %v3376_v60 = vld [vmem:[%s5881_s0 + $0x3c0] ss:$16 sps:$4 sm:$0xff]  }
  0xf3   :  { %1547 = vmatprep.mubr.bf16.mxu0 %v3332_v62 }
  0xf9   :  { %1259 = vmatmul.mubr.bf16.gmra.mrb[92].mxu1 %v3334_v63 }
  0xfa   :  { %1548 = vmatmul.mubr.bf16.gmra.mrb[92].mxu0 %v3335_v0  ;;  %1266 = vmatprep.mubr.bf16.mxu1 %v3336_v1  ;;  %v3377_v0 = vld [vmem:[%s5881_s0 + $0x3c8] ss:$16 sps:$4 sm:$0xff]   ;;  %v3378_v1 = vld [vmem:[%s5881_s0 + $0x3e4] ss:$16 sps:$4 sm:$0xff]  }
  0xfb   :  { %1555 = vmatprep.mubr.bf16.mxu0 %v3338_v2 }
 0x101   :  { %1267 = vmatmul.mubr.bf16.gmra.mrb[96].mxu1 %v3340_v3 }
 0x102   :  { %1556 = vmatmul.mubr.bf16.gmra.mrb[96].mxu0 %v3341_v4  ;;  %1274 = vmatprep.mubr.bf16.mxu1 %v3342_v5  ;;  %v3380_v4 = vld [vmem:[%s5881_s0 + $0x3ec] ss:$16 sps:$4 sm:$0xff]  }
 0x103   :  { %1563 = vmatprep.mubr.bf16.mxu0 %v3344_v6 }
 0x109   :  { %1275 = vmatmul.mubr.bf16.gmra.mrb[100].mxu1 %v3346_v7 }
 0x10a   :  { %1564 = vmatmul.mubr.bf16.gmra.mrb[100].mxu0 %v3347_v8  ;;  %1282 = vmatprep.mubr.bf16.mxu1 %v3348_v9 }
 0x10b   :  { %1571 = vmatprep.mubr.bf16.mxu0 %v3350_v10  ;;  %v3382_v10 = vld [vmem:[%s5881_s0 + $0x3e0] ss:$16 sps:$4 sm:$0xff]  }
 0x111   :  { %1283 = vmatmul.mubr.bf16.gmra.mrb[104].mxu1 %v3352_v11 }
 0x112   :  { %1572 = vmatmul.mubr.bf16.gmra.mrb[104].mxu0 %v3353_v12  ;;  %1290 = vmatprep.mubr.bf16.mxu1 %v3354_v13 }
 0x113   :  { %1579 = vmatprep.mubr.bf16.mxu0 %v3356_v14  ;;  %v3383_v14 = vld [vmem:[%s5881_s0 + $0x3e8] ss:$16 sps:$4 sm:$0xff]  }
 0x114   :  { %v1076_v15 = vpop.f32.mrb[0].mxu1 }
 0x115   :  { %v1365_v16 = vpop.f32.mrb[0].mxu0  ;;  %v1078_v17 = vpop.f32.mrb[1].mxu1 }
 0x116   :  { %v3873_v19 = vadd.f32 %v1365_v16, %v1076_v15  ;;  %v1367_v20 = vpop.f32.mrb[1].mxu0  ;;  %v1079_v21 = vpop.f32.mrb[2].mxu1 }
 0x117   :  { %v1368_v24 = vpop.f32.mrb[2].mxu0  ;;  %v1081_v25 = vpop.f32.mrb[3].mxu1 }
 0x118   :  { %v3884_v27 = vadd.f32 %v1368_v24, %v1079_v21  ;;  %v1370_v28 = vpop.f32.mrb[3].mxu0 }
 0x119   :  { %1291 = vmatmul.mubr.bf16.gmra.mrb[108].mxu1 %v3358_v18 }
 0x11a   :  { %1580 = vmatmul.mubr.bf16.gmra.mrb[108].mxu0 %v3359_v22  ;;  %1298 = vmatprep.mubr.bf16.mxu1 %v3360_v23 }
 0x11b   :  { %1587 = vmatprep.mubr.bf16.mxu0 %v3362_v26 }
 0x11c   :  { %v1084_v29 = vpop.f32.mrb[4].mxu1 }
 0x11d   :  { %v1373_v30 = vpop.f32.mrb[4].mxu0  ;;  %v1086_v31 = vpop.f32.mrb[5].mxu1 }
 0x11e   :  { %v3889_v33 = vadd.f32 %v1373_v30, %v1084_v29  ;;  %v1375_v34 = vpop.f32.mrb[5].mxu0  ;;  %v1087_v35 = vpop.f32.mrb[6].mxu1 }
 0x11f   :  { %v1376_v38 = vpop.f32.mrb[6].mxu0  ;;  %v1089_v39 = vpop.f32.mrb[7].mxu1 }
 0x120   :  { %v3900_v41 = vadd.f32 %v1376_v38, %v1087_v35  ;;  %v1378_v42 = vpop.f32.mrb[7].mxu0 }
 0x121   :  { %1299 = vmatmul.mubr.bf16.gmra.mrb[112].mxu1 %v3364_v32 }
 0x122   :  { %1588 = vmatmul.mubr.bf16.gmra.mrb[112].mxu0 %v3365_v36  ;;  %1306 = vmatprep.mubr.bf16.mxu1 %v3366_v37 }
 0x123   :  { %1595 = vmatprep.mubr.bf16.mxu0 %v3368_v40 }
 0x124   :  { %v1092_v43 = vpop.f32.mrb[8].mxu1 }
 0x125   :  { %v1381_v44 = vpop.f32.mrb[8].mxu0  ;;  %v1094_v45 = vpop.f32.mrb[9].mxu1 }
 0x126   :  { %v3905_v47 = vadd.f32 %v1381_v44, %v1092_v43  ;;  %v1383_v48 = vpop.f32.mrb[9].mxu0  ;;  %v1095_v49 = vpop.f32.mrb[10].mxu1  ;;  %v1691_v43 = vmul.f32 %v3884_v27, %v3884_v27 }
 0x127   :  { %v1384_v52 = vpop.f32.mrb[10].mxu0  ;;  %v1097_v53 = vpop.f32.mrb[11].mxu1  ;;  %v1690_v48 = vmul.f32 %v3873_v19, %v3873_v19 }
 0x128   :  { %v3916_v55 = vadd.f32 %v1384_v52, %v1095_v49  ;;  %v1386_v56 = vpop.f32.mrb[11].mxu0  ;;  %v1620_v49 = vadd.f32 %v3884_v27, %v3873_v19 }
 0x129   :  { %1307 = vmatmul.mubr.bf16.gmra.mrb[116].mxu1 %v3370_v46 }
 0x12a   :  { %1596 = vmatmul.mubr.bf16.gmra.mrb[116].mxu0 %v3371_v50  ;;  %1314 = vmatprep.mubr.bf16.mxu1 %v3372_v51  ;;  %v1692_v50 = vmul.f32 %v3889_v33, %v3889_v33 }
 0x12b   :  { %1603 = vmatprep.mubr.bf16.mxu0 %v3374_v54 }
 0x12c   :  { %v1100_v57 = vpop.f32.mrb[12].mxu1 }
 0x12d   :  { %v1389_v58 = vpop.f32.mrb[12].mxu0  ;;  %v1102_v59 = vpop.f32.mrb[13].mxu1 }
 0x12e   :  { %v3921_v61 = vadd.f32 %v1389_v58, %v1100_v57  ;;  %v1391_v62 = vpop.f32.mrb[13].mxu0  ;;  %v1103_v63 = vpop.f32.mrb[14].mxu1  ;;  %v1754_v57 = vadd.f32 %v1691_v43, %v1690_v48  ;;  %v1621_v58 = vadd.f32 %v1620_v49, %v3889_v33 }
 0x12f   :  { %v1392_v2 = vpop.f32.mrb[14].mxu0  ;;  %v1105_v3 = vpop.f32.mrb[15].mxu1 }
 0x130   :  { %v3932_v5 = vadd.f32 %v1392_v2, %v1103_v63  ;;  %v1394_v6 = vpop.f32.mrb[15].mxu0  ;;  %v1755_v62 = vadd.f32 %v1754_v57, %v1692_v50  ;;  %v1693_v63 = vmul.f32 %v3900_v41, %v3900_v41 }
 0x131   :  { %1315 = vmatmul.mubr.bf16.gmra.mrb[120].mxu1 %v3376_v60 }
 0x132   :  { %1604 = vmatmul.mubr.bf16.gmra.mrb[120].mxu0 %v3377_v0  ;;  %1322 = vmatprep.mubr.bf16.mxu1 %v3378_v1  ;;  %v1622_v0 = vadd.f32 %v1621_v58, %v3900_v41  ;;  %v1694_v1 = vmul.f32 %v3905_v47, %v3905_v47  ;;  %v1756_v6 = vadd.f32 %v1755_v62, %v1693_v63 }
 0x133   :  { %1611 = vmatprep.mubr.bf16.mxu0 %v3380_v4 }
 0x134   :  { %v1108_v7 = vpop.f32.mrb[16].mxu1 }
 0x135   :  { %v1397_v8 = vpop.f32.mrb[16].mxu0  ;;  %v1110_v9 = vpop.f32.mrb[17].mxu1 }
 0x136   :  { %v3937_v11 = vadd.f32 %v1397_v8, %v1108_v7  ;;  %v1399_v12 = vpop.f32.mrb[17].mxu0  ;;  %v1111_v13 = vpop.f32.mrb[18].mxu1  ;;  %v1623_v7 = vadd.f32 %v1622_v0, %v3905_v47 }
 0x137   :  { %v1400_v15 = vpop.f32.mrb[18].mxu0  ;;  %v1113_v16 = vpop.f32.mrb[19].mxu1 }
 0x138   :  { %v3942_v17 = vadd.f32 %v1400_v15, %v1111_v13  ;;  %v1402_v18 = vpop.f32.mrb[19].mxu0  ;;  %v1695_v15 = vmul.f32 %v3916_v55, %v3916_v55 }
 0x139   :  { %1323 = vmatmul.mubr.bf16.gmra.mrb[124].mxu1 %v3382_v10 }
 0x13a   :  { %1612 = vmatmul.mubr.bf16.gmra.mrb[124].mxu0 %v3383_v14  ;;  %v1757_v14 = vadd.f32 %v1756_v6, %v1694_v1  ;;  %v1699_v49 = vmul.f32 %v3942_v17, %v3942_v17 }
 0x13c   :  { %v1116_v20 = vpop.f32.mrb[20].mxu1 }
 0x13d   :  { %v1405_v21 = vpop.f32.mrb[20].mxu0  ;;  %v1118_v22 = vpop.f32.mrb[21].mxu1 }
 0x13e   :  { %v3944_v23 = vadd.f32 %v1405_v21, %v1116_v20  ;;  %v1407_v24 = vpop.f32.mrb[21].mxu0  ;;  %v1119_v25 = vpop.f32.mrb[22].mxu1  ;;  %v1624_v20 = vadd.f32 %v1623_v7, %v3916_v55  ;;  %v1696_v21 = vmul.f32 %v3921_v61, %v3921_v61  ;;  %v1758_v22 = vadd.f32 %v1757_v14, %v1695_v15 }
 0x13f   :  { %v1408_v26 = vpop.f32.mrb[22].mxu0  ;;  %v1121_v28 = vpop.f32.mrb[23].mxu1 }
 0x140   :  { %v3946_v29 = vadd.f32 %v1408_v26, %v1119_v25  ;;  %v1410_v30 = vpop.f32.mrb[23].mxu0  ;;  %v1625_v24 = vadd.f32 %v1624_v20, %v3921_v61 }
 0x141   :  { %v1759_v30 = vadd.f32 %v1758_v22, %v1696_v21 }
 0x142   :  { %v1701_v6 = vmul.f32 %v3946_v29, %v3946_v29 }
 0x144   :  { %v1124_v31 = vpop.f32.mrb[24].mxu1 }
 0x145   :  { %v1413_v32 = vpop.f32.mrb[24].mxu0  ;;  %v1126_v34 = vpop.f32.mrb[25].mxu1 }
 0x146   :  { %v3948_v35 = vadd.f32 %v1413_v32, %v1124_v31  ;;  %v1415_v36 = vpop.f32.mrb[25].mxu0  ;;  %v1127_v37 = vpop.f32.mrb[26].mxu1  ;;  %v1697_v31 = vmul.f32 %v3932_v5, %v3932_v5 }
 0x147   :  { %v1416_v38 = vpop.f32.mrb[26].mxu0  ;;  %v1129_v39 = vpop.f32.mrb[27].mxu1 }
 0x148   :  { %v3950_v40 = vadd.f32 %v1416_v38, %v1127_v37  ;;  %v1418_v42 = vpop.f32.mrb[27].mxu0  ;;  %v1626_v39 = vadd.f32 %v1625_v24, %v3932_v5 }
 0x149   :  { %v1698_v42 = vmul.f32 %v3937_v11, %v3937_v11 }
 0x14c   :  { %v1132_v44 = vpop.f32.mrb[28].mxu1 }
 0x14d   :  { %v1421_v45 = vpop.f32.mrb[28].mxu0  ;;  %v1134_v46 = vpop.f32.mrb[29].mxu1 }
 0x14e   :  { %v3960_v51 = vadd.f32 %v1421_v45, %v1132_v44  ;;  %v1423_v52 = vpop.f32.mrb[29].mxu0  ;;  %v1135_v53 = vpop.f32.mrb[30].mxu1  ;;  %v1760_v45 = vadd.f32 %v1759_v30, %v1697_v31  ;;  %v1627_v46 = vadd.f32 %v1626_v39, %v3937_v11 }
 0x14f   :  { %v1424_v54 = vpop.f32.mrb[30].mxu0  ;;  %v1137_v56 = vpop.f32.mrb[31].mxu1 }
 0x150   :  { %v3963_v59 = vadd.f32 %v1424_v54, %v1135_v53  ;;  %v1426_v60 = vpop.f32.mrb[31].mxu0  ;;  %v1761_v48 = vadd.f32 %v1760_v45, %v1698_v42  ;;  %v1628_v54 = vadd.f32 %v1627_v46, %v3942_v17  ;;  %v1700_v56 = vmul.f32 %v3944_v23, %v3944_v23 }
 0x152   :  { %v1762_v0 = vadd.f32 %v1761_v48, %v1699_v49  ;;  %v1629_v1 = vadd.f32 %v1628_v54, %v3944_v23  ;;  %v1705_v45 = vmul.f32 %v3963_v59, %v3963_v59 }
 0x154   :  { %v1140_v2 = vpop.f32.mrb[32].mxu1  ;;  %v1630_v7 = vadd.f32 %v1629_v1, %v3946_v29 }
 0x155   :  { %v1429_v3 = vpop.f32.mrb[32].mxu0  ;;  %v1142_v4 = vpop.f32.mrb[33].mxu1 }
 0x156   :  { %v3971_v8 = vadd.f32 %v1429_v3, %v1140_v2  ;;  %v1431_v9 = vpop.f32.mrb[33].mxu0  ;;  %v1143_v10 = vpop.f32.mrb[34].mxu1  ;;  %v1763_v4 = vadd.f32 %v1762_v0, %v1700_v56  ;;  %v1631_v15 = vadd.f32 %v1630_v7, %v3948_v35 }
 0x157   :  { %v1432_v12 = vpop.f32.mrb[34].mxu0  ;;  %v1145_v13 = vpop.f32.mrb[35].mxu1  ;;  %v1702_v9 = vmul.f32 %v3948_v35, %v3948_v35 }
 0x158   :  { %v3975_v16 = vadd.f32 %v1432_v12, %v1143_v10  ;;  %v1434_v18 = vpop.f32.mrb[35].mxu0  ;;  %v1764_v14 = vadd.f32 %v1763_v4, %v1701_v6  ;;  %v1632_v31 = vadd.f32 %v1631_v15, %v3950_v40  ;;  %v1706_v54 = vmul.f32 %v3971_v8, %v3971_v8 }
 0x15a   :  { %v1707_v0 = vmul.f32 %v3975_v16, %v3975_v16 }
 0x15c   :  { %v1148_v25 = vpop.f32.mrb[36].mxu1 }
 0x15d   :  { %v1437_v26 = vpop.f32.mrb[36].mxu0  ;;  %v1150_v28 = vpop.f32.mrb[37].mxu1 }
 0x15e   :  { %v3983_v32 = vadd.f32 %v1437_v26, %v1148_v25  ;;  %v1439_v34 = vpop.f32.mrb[37].mxu0  ;;  %v1151_v36 = vpop.f32.mrb[38].mxu1  ;;  %v1765_v25 = vadd.f32 %v1764_v14, %v1702_v9  ;;  %v1703_v26 = vmul.f32 %v3950_v40, %v3950_v40 }
 0x15f   :  { %v1440_v37 = vpop.f32.mrb[38].mxu0  ;;  %v1153_v38 = vpop.f32.mrb[39].mxu1  ;;  %v1704_v34 = vmul.f32 %v3960_v51, %v3960_v51 }
 0x160   :  { %v3988_v43 = vadd.f32 %v1440_v37, %v1151_v36  ;;  %v1442_v44 = vpop.f32.mrb[39].mxu0  ;;  %v1766_v36 = vadd.f32 %v1765_v25, %v1703_v26  ;;  %v1633_v37 = vadd.f32 %v1632_v31, %v3960_v51  ;;  %v1708_v7 = vmul.f32 %v3983_v32, %v3983_v32 }
 0x162   :  { %v1767_v44 = vadd.f32 %v1766_v36, %v1704_v34  ;;  %v1709_v25 = vmul.f32 %v3988_v43, %v3988_v43 }
 0x164   :  { %v1156_v50 = vpop.f32.mrb[40].mxu1 }
 0x165   :  { %v1445_v52 = vpop.f32.mrb[40].mxu0  ;;  %v1158_v53 = vpop.f32.mrb[41].mxu1 }
 0x166   :  { %v3996_v57 = vadd.f32 %v1445_v52, %v1156_v50  ;;  %v1447_v58 = vpop.f32.mrb[41].mxu0  ;;  %v1159_v60 = vpop.f32.mrb[42].mxu1  ;;  %v1634_v53 = vadd.f32 %v1633_v37, %v3963_v59 }
 0x167   :  { %v1448_v62 = vpop.f32.mrb[42].mxu0  ;;  %v1161_v63 = vpop.f32.mrb[43].mxu1 }
 0x168   :  { %v3999_v2 = vadd.f32 %v1448_v62, %v1159_v60  ;;  %v1450_v3 = vpop.f32.mrb[43].mxu0  ;;  %v1768_v60 = vadd.f32 %v1767_v44, %v1705_v45  ;;  %v1635_v62 = vadd.f32 %v1634_v53, %v3971_v8 }
 0x16a   :  { %v1769_v63 = vadd.f32 %v1768_v60, %v1706_v54  ;;  %v1636_v6 = vadd.f32 %v1635_v62, %v3975_v16 }
 0x16c   :  { %v1164_v10 = vpop.f32.mrb[44].mxu1  ;;  %v1770_v15 = vadd.f32 %v1769_v63, %v1707_v0 }
 0x16d   :  { %v1453_v12 = vpop.f32.mrb[44].mxu0  ;;  %v1166_v13 = vpop.f32.mrb[45].mxu1 }
 0x16e   :  { %v4007_v18 = vadd.f32 %v1453_v12, %v1164_v10  ;;  %v1455_v20 = vpop.f32.mrb[45].mxu0  ;;  %v1167_v21 = vpop.f32.mrb[46].mxu1 }
 0x16f   :  { %v1456_v22 = vpop.f32.mrb[46].mxu0  ;;  %v1169_v24 = vpop.f32.mrb[47].mxu1  ;;  %v1637_v20 = vadd.f32 %v1636_v6, %v3983_v32 }
 0x170   :  { %v4011_v28 = vadd.f32 %v1456_v22, %v1167_v21  ;;  %v1458_v30 = vpop.f32.mrb[47].mxu0  ;;  %v1771_v24 = vadd.f32 %v1770_v15, %v1708_v7 }
 0x171   :  { %v1638_v26 = vadd.f32 %v1637_v20, %v3988_v43  ;;  %v1710_v30 = vmul.f32 %v3996_v57, %v3996_v57 }
 0x172   :  { %v1772_v37 = vadd.f32 %v1771_v24, %v1709_v25 }
 0x174   :  { %v1172_v38 = vpop.f32.mrb[48].mxu1 }
 0x175   :  { %v1461_v39 = vpop.f32.mrb[48].mxu0  ;;  %v1174_v42 = vpop.f32.mrb[49].mxu1 }
 0x176   :  { %v4019_v46 = vadd.f32 %v1461_v39, %v1172_v38  ;;  %v1463_v48 = vpop.f32.mrb[49].mxu0  ;;  %v1175_v49 = vpop.f32.mrb[50].mxu1  ;;  %v1639_v38 = vadd.f32 %v1638_v26, %v3996_v57 }
 0x177   :  { %v1464_v50 = vpop.f32.mrb[50].mxu0  ;;  %v1177_v52 = vpop.f32.mrb[51].mxu1 }
 0x178   :  { %v4024_v56 = vadd.f32 %v1464_v50, %v1175_v49  ;;  %v1466_v58 = vpop.f32.mrb[51].mxu0  ;;  %v1773_v49 = vadd.f32 %v1772_v37, %v1710_v30  ;;  %v1711_v50 = vmul.f32 %v3999_v2, %v3999_v2  ;;  %v1640_v54 = vadd.f32 %v1639_v38, %v3999_v2 }
 0x179   :  { %v1712_v58 = vmul.f32 %v4007_v18, %v4007_v18  ;;  %v1714_v15 = vmul.f32 %v4019_v46, %v4019_v46 }
 0x17a   :  { %v1774_v60 = vadd.f32 %v1773_v49, %v1711_v50  ;;  %v1641_v62 = vadd.f32 %v1640_v54, %v4007_v18  ;;  %v1715_v30 = vmul.f32 %v4024_v56, %v4024_v56 }
 0x17c   :  { %v1180_v1 = vpop.f32.mrb[52].mxu1 }
 0x17d   :  { %v1469_v3 = vpop.f32.mrb[52].mxu0  ;;  %v1182_v4 = vpop.f32.mrb[53].mxu1 }
 0x17e   :  { %v4032_v9 = vadd.f32 %v1469_v3, %v1180_v1  ;;  %v1471_v10 = vpop.f32.mrb[53].mxu0  ;;  %v1183_v12 = vpop.f32.mrb[54].mxu1  ;;  %v1775_v3 = vadd.f32 %v1774_v60, %v1712_v58  ;;  %v1713_v4 = vmul.f32 %v4011_v28, %v4011_v28 }
 0x17f   :  { %v1472_v13 = vpop.f32.mrb[54].mxu0  ;;  %v1185_v14 = vpop.f32.mrb[55].mxu1 }
 0x180   :  { %v4035_v21 = vadd.f32 %v1472_v13, %v1183_v12  ;;  %v1474_v22 = vpop.f32.mrb[55].mxu0  ;;  %v1642_v14 = vadd.f32 %v1641_v62, %v4011_v28  ;;  %v1776_v24 = vadd.f32 %v1775_v3, %v1713_v4  ;;  %v1716_v38 = vmul.f32 %v4032_v9, %v4032_v9 }
 0x182   :  { %v1643_v25 = vadd.f32 %v1642_v14, %v4019_v46  ;;  %v1777_v26 = vadd.f32 %v1776_v24, %v1714_v15  ;;  %v1717_v62 = vmul.f32 %v4035_v21, %v4035_v21 }
 0x184   :  { %v1188_v31 = vpop.f32.mrb[56].mxu1  ;;  %v1644_v37 = vadd.f32 %v1643_v25, %v4024_v56  ;;  %v1778_v50 = vadd.f32 %v1777_v26, %v1715_v30 }
 0x185   :  { %v1477_v34 = vpop.f32.mrb[56].mxu0  ;;  %v1190_v36 = vpop.f32.mrb[57].mxu1 }
 0x186   :  { %v4043_v39 = vadd.f32 %v1477_v34, %v1188_v31  ;;  %v1479_v42 = vpop.f32.mrb[57].mxu0  ;;  %v1191_v44 = vpop.f32.mrb[58].mxu1  ;;  %v1779_v60 = vadd.f32 %v1778_v50, %v1716_v38 }
 0x187   :  { %v1480_v45 = vpop.f32.mrb[58].mxu0  ;;  %v1193_v48 = vpop.f32.mrb[59].mxu1 }
 0x188   :  { %v4047_v52 = vadd.f32 %v1480_v45, %v1191_v44  ;;  %v1482_v53 = vpop.f32.mrb[59].mxu0 }
 0x189   :  { %v1645_v53 = vadd.f32 %v1644_v37, %v4032_v9 }
 0x18a   :  { %v1719_v25 = vmul.f32 %v4047_v52, %v4047_v52 }
 0x18c   :  { %v1196_v63 = vpop.f32.mrb[60].mxu1 }
 0x18d   :  { %v1485_v0 = vpop.f32.mrb[60].mxu0  ;;  %v1198_v1 = vpop.f32.mrb[61].mxu1 }
 0x18e   :  { %v4055_v6 = vadd.f32 %v1485_v0, %v1196_v63  ;;  %v1487_v7 = vpop.f32.mrb[61].mxu0  ;;  %v1199_v10 = vpop.f32.mrb[62].mxu1  ;;  %v1646_v63 = vadd.f32 %v1645_v53, %v4035_v21  ;;  %v1718_v0 = vmul.f32 %v4043_v39, %v4043_v39 }
 0x18f   :  { %v1488_v12 = vpop.f32.mrb[62].mxu0  ;;  %v1201_v13 = vpop.f32.mrb[63].mxu1  ;;  %v1780_v7 = vadd.f32 %v1779_v60, %v1717_v62 }
 0x190   :  { %5949 = vst [vmem:[#allocation2_spill] sm:$0xff] %v4055_v6  ;;  %v4060_v20 = vadd.f32 %v1488_v12, %v1199_v10  ;;  %v1490_v22 = vpop.f32.mrb[63].mxu0  ;;  %v1647_v10 = vadd.f32 %v1646_v63, %v4043_v39 }
 0x191   :  { %v1781_v24 = vadd.f32 %v1780_v7, %v1718_v0 }
 0x192   :  { %5950 = vst [vmem:[#allocation3_spill] sm:$0xff] %v4060_v20 }
 0x194   :  { %v1204_v31 = vpop.f32.mrb[64].mxu1 }
 0x195   :  { %v1493_v34 = vpop.f32.mrb[64].mxu0  ;;  %v1206_v36 = vpop.f32.mrb[65].mxu1 }
 0x196   :  { %v4068_v42 = vadd.f32 %v1493_v34, %v1204_v31  ;;  %v1495_v44 = vpop.f32.mrb[65].mxu0  ;;  %v1207_v45 = vpop.f32.mrb[66].mxu1  ;;  %v1648_v31 = vadd.f32 %v1647_v10, %v4047_v52  ;;  %v1720_v34 = vmul.f32 %v4055_v6, %v4055_v6  ;;  %v1782_v36 = vadd.f32 %v1781_v24, %v1719_v25 }
 0x197   :  { %v1496_v48 = vpop.f32.mrb[66].mxu0  ;;  %v1209_v49 = vpop.f32.mrb[67].mxu1 }
 0x198   :  { %5951 = vst [vmem:[#allocation4_spill] sm:$0xff] %v4068_v42  ;;  %v4071_v54 = vadd.f32 %v1496_v48, %v1207_v45  ;;  %v1498_v58 = vpop.f32.mrb[67].mxu0  ;;  %v1649_v37 = vadd.f32 %v1648_v31, %v4055_v6  ;;  %v1783_v48 = vadd.f32 %v1782_v36, %v1720_v34  ;;  %v1721_v49 = vmul.f32 %v4060_v20, %v4060_v20 }
 0x199   :  { %v1722_v0 = vmul.f32 %v4068_v42, %v4068_v42 }
 0x19a   :  { %5952 = vst [vmem:[#allocation5_spill] sm:$0xff] %v4071_v54  ;;  %v1650_v63 = vadd.f32 %v1649_v37, %v4060_v20 }
 0x19c   :  { %v1212_v1 = vpop.f32.mrb[68].mxu1  ;;  %v1651_v7 = vadd.f32 %v1650_v63, %v4068_v42 }
 0x19d   :  { %v1501_v3 = vpop.f32.mrb[68].mxu0  ;;  %v1214_v4 = vpop.f32.mrb[69].mxu1 }
 0x19e   :  { %v4079_v12 = vadd.f32 %v1501_v3, %v1212_v1  ;;  %v1503_v13 = vpop.f32.mrb[69].mxu0  ;;  %v1215_v14 = vpop.f32.mrb[70].mxu1  ;;  %v1784_v4 = vadd.f32 %v1783_v48, %v1721_v49  ;;  %v1652_v24 = vadd.f32 %v1651_v7, %v4071_v54 }
 0x19f   :  { %v1504_v15 = vpop.f32.mrb[70].mxu0  ;;  %v1217_v22 = vpop.f32.mrb[71].mxu1  ;;  %v1723_v13 = vmul.f32 %v4071_v54, %v4071_v54 }
 0x1a0   :  { %5953 = vst [vmem:[#allocation6_spill] sm:$0xff] %v4079_v12  ;;  %v4083_v26 = vadd.f32 %v1504_v15, %v1215_v14  ;;  %v1506_v30 = vpop.f32.mrb[71].mxu0  ;;  %v1785_v10 = vadd.f32 %v1784_v4, %v1722_v0  ;;  %v1724_v25 = vmul.f32 %v4079_v12, %v4079_v12 }
 0x1a2   :  { %5954 = vst [vmem:[#allocation7_spill] sm:$0xff] %v4083_v26 }
 0x1a4   :  { %v1220_v38 = vpop.f32.mrb[72].mxu1 }
 0x1a5   :  { %v1509_v44 = vpop.f32.mrb[72].mxu0  ;;  %v1222_v45 = vpop.f32.mrb[73].mxu1 }
 0x1a6   :  { %v4091_v50 = vadd.f32 %v1509_v44, %v1220_v38  ;;  %v1511_v53 = vpop.f32.mrb[73].mxu0  ;;  %v1223_v58 = vpop.f32.mrb[74].mxu1  ;;  %v1786_v38 = vadd.f32 %v1785_v10, %v1723_v13  ;;  %v1653_v44 = vadd.f32 %v1652_v24, %v4079_v12 }
 0x1a7   :  { %v1512_v60 = vpop.f32.mrb[74].mxu0  ;;  %v1225_v62 = vpop.f32.mrb[75].mxu1  ;;  %v1725_v53 = vmul.f32 %v4083_v26, %v4083_v26 }
 0x1a8   :  { %5955 = vst [vmem:[#allocation8_spill] sm:$0xff] %v4091_v50  ;;  %v4096_v1 = vadd.f32 %v1512_v60, %v1223_v58  ;;  %v1514_v3 = vpop.f32.mrb[75].mxu0  ;;  %v1787_v49 = vadd.f32 %v1786_v38, %v1724_v25  ;;  %v1654_v58 = vadd.f32 %v1653_v44, %v4083_v26  ;;  %v1726_v60 = vmul.f32 %v4091_v50, %v4091_v50 }
 0x1aa   :  { %5956 = vst [vmem:[#allocation9_spill] sm:$0xff] %v4096_v1  ;;  %v1788_v3 = vadd.f32 %v1787_v49, %v1725_v53  ;;  %v1655_v4 = vadd.f32 %v1654_v58, %v4091_v50  ;;  %v1727_v24 = vmul.f32 %v4096_v1, %v4096_v1 }
 0x1ac   :  { %v1228_v14 = vpop.f32.mrb[76].mxu1 }
 0x1ad   :  { %v1517_v15 = vpop.f32.mrb[76].mxu0  ;;  %v1230_v22 = vpop.f32.mrb[77].mxu1 }
 0x1ae   :  { %v4104_v30 = vadd.f32 %v1517_v15, %v1228_v14  ;;  %v1519_v31 = vpop.f32.mrb[77].mxu0  ;;  %v1231_v34 = vpop.f32.mrb[78].mxu1  ;;  %v1789_v22 = vadd.f32 %v1788_v3, %v1726_v60 }
 0x1af   :  { %v1520_v36 = vpop.f32.mrb[78].mxu0  ;;  %v1233_v37 = vpop.f32.mrb[79].mxu1 }
 0x1b0   :  { %5957 = vst [vmem:[#allocation10_spill] sm:$0xff] %v4104_v30  ;;  %v4107_v45 = vadd.f32 %v1520_v36, %v1231_v34  ;;  %v1522_v48 = vpop.f32.mrb[79].mxu0  ;;  %v1656_v34 = vadd.f32 %v1655_v4, %v4096_v1  ;;  %v1728_v36 = vmul.f32 %v4104_v30, %v4104_v30  ;;  %v1790_v37 = vadd.f32 %v1789_v22, %v1727_v24 }
 0x1b2   :  { %5958 = vst [vmem:[#allocation11_spill] sm:$0xff] %v4107_v45  ;;  %v1657_v38 = vadd.f32 %v1656_v34, %v4104_v30  ;;  %v1791_v53 = vadd.f32 %v1790_v37, %v1728_v36  ;;  %v1729_v58 = vmul.f32 %v4107_v45, %v4107_v45 }
 0x1b4   :  { %v1236_v62 = vpop.f32.mrb[80].mxu1  ;;  %v1658_v4 = vadd.f32 %v1657_v38, %v4107_v45 }
 0x1b5   :  { %v1525_v63 = vpop.f32.mrb[80].mxu0  ;;  %v1238_v0 = vpop.f32.mrb[81].mxu1 }
 0x1b6   :  { %v4115_v7 = vadd.f32 %v1525_v63, %v1236_v62  ;;  %v1527_v10 = vpop.f32.mrb[81].mxu0  ;;  %v1239_v13 = vpop.f32.mrb[82].mxu1 }
 0x1b7   :  { %v1528_v14 = vpop.f32.mrb[82].mxu0  ;;  %v1241_v15 = vpop.f32.mrb[83].mxu1 }
 0x1b8   :  { %5959 = vst [vmem:[#allocation12_spill] sm:$0xff] %v4115_v7  ;;  %v4119_v25 = vadd.f32 %v1528_v14, %v1239_v13  ;;  %v1530_v31 = vpop.f32.mrb[83].mxu0  ;;  %v1730_v10 = vmul.f32 %v4115_v7, %v4115_v7  ;;  %v1792_v15 = vadd.f32 %v1791_v53, %v1729_v58  ;;  %v1659_v22 = vadd.f32 %v1658_v4, %v4115_v7 }
 0x1ba   :  { %5960 = vst [vmem:[#allocation13_spill] sm:$0xff] %v4119_v25  ;;  %v1793_v24 = vadd.f32 %v1792_v15, %v1730_v10  ;;  %v1731_v31 = vmul.f32 %v4119_v25, %v4119_v25 }
 0x1bc   :  { %v1244_v44 = vpop.f32.mrb[84].mxu1  ;;  %v1794_v58 = vadd.f32 %v1793_v24, %v1731_v31 }
 0x1bd   :  { %v1533_v48 = vpop.f32.mrb[84].mxu0  ;;  %v1246_v49 = vpop.f32.mrb[85].mxu1 }
 0x1be   :  { %v4127_v60 = vadd.f32 %v1533_v48, %v1244_v44  ;;  %v1535_v62 = vpop.f32.mrb[85].mxu0  ;;  %v1247_v63 = vpop.f32.mrb[86].mxu1  ;;  %v1660_v44 = vadd.f32 %v1659_v22, %v4119_v25 }
 0x1bf   :  { %v1536_v0 = vpop.f32.mrb[86].mxu0  ;;  %v1249_v3 = vpop.f32.mrb[87].mxu1 }
 0x1c0   :  { %5961 = vst [vmem:[#allocation14_spill] sm:$0xff] %v4127_v60  ;;  %v4132_v13 = vadd.f32 %v1536_v0, %v1247_v63  ;;  %v1538_v14 = vpop.f32.mrb[87].mxu0  ;;  %v1732_v38 = vmul.f32 %v4127_v60, %v4127_v60  ;;  %v1661_v0 = vadd.f32 %v1660_v44, %v4127_v60 }
 0x1c2   :  { %5962 = vst [vmem:[#allocation15_spill] sm:$0xff] %v4132_v13  ;;  %v1795_v10 = vadd.f32 %v1794_v58, %v1732_v38  ;;  %v1733_v14 = vmul.f32 %v4132_v13, %v4132_v13  ;;  %v1662_v15 = vadd.f32 %v1661_v0, %v4132_v13 }
 0x1c4   :  { %v1252_v34 = vpop.f32.mrb[88].mxu1 }
 0x1c5   :  { %v1541_v36 = vpop.f32.mrb[88].mxu0  ;;  %v1254_v37 = vpop.f32.mrb[89].mxu1 }
 0x1c6   :  { %v4140_v48 = vadd.f32 %v1541_v36, %v1252_v34  ;;  %v1543_v49 = vpop.f32.mrb[89].mxu0  ;;  %v1255_v62 = vpop.f32.mrb[90].mxu1 }
 0x1c7   :  { %v1544_v63 = vpop.f32.mrb[90].mxu0  ;;  %v1257_v53 = vpop.f32.mrb[91].mxu1  ;;  %v1796_v49 = vadd.f32 %v1795_v10, %v1733_v14 }
 0x1c8   :  { %5963 = vst [vmem:[#allocation16_spill] sm:$0xff] %v4140_v48  ;;  %v4143_v3 = vadd.f32 %v1544_v63, %v1255_v62  ;;  %v1546_v4 = vpop.f32.mrb[91].mxu0  ;;  %v1734_v22 = vmul.f32 %v4140_v48, %v4140_v48  ;;  %v1663_v24 = vadd.f32 %v1662_v15, %v4140_v48 }
 0x1ca   :  { %5964 = vst [vmem:[#allocation17_spill] sm:$0xff] %v4143_v3  ;;  %v1797_v53 = vadd.f32 %v1796_v49, %v1734_v22  ;;  %v1735_v58 = vmul.f32 %v4143_v3, %v4143_v3  ;;  %v1664_v13 = vadd.f32 %v1663_v24, %v4143_v3 }
 0x1cc   :  { %v1260_v34 = vpop.f32.mrb[92].mxu1  ;;  %v1798_v14 = vadd.f32 %v1797_v53, %v1735_v58 }
 0x1cd   :  { %v1549_v36 = vpop.f32.mrb[92].mxu0  ;;  %v1262_v37 = vpop.f32.mrb[93].mxu1 }
 0x1ce   :  { %v4151_v31 = vadd.f32 %v1549_v36, %v1260_v34  ;;  %v1551_v44 = vpop.f32.mrb[93].mxu0  ;;  %v1263_v62 = vpop.f32.mrb[94].mxu1 }
 0x1cf   :  { %v1552_v63 = vpop.f32.mrb[94].mxu0  ;;  %v1265_v38 = vpop.f32.mrb[95].mxu1 }
 0x1d0   :  { %5965 = vst [vmem:[#allocation18_spill] sm:$0xff] %v4151_v31  ;;  %v4155_v0 = vadd.f32 %v1552_v63, %v1263_v62  ;;  %v1554_v4 = vpop.f32.mrb[95].mxu0  ;;  %v1736_v10 = vmul.f32 %v4151_v31, %v4151_v31  ;;  %v1665_v15 = vadd.f32 %v1664_v13, %v4151_v31 }
 0x1d2   :  { %5966 = vst [vmem:[#allocation19_spill] sm:$0xff] %v4155_v0  ;;  %v1799_v44 = vadd.f32 %v1798_v14, %v1736_v10  ;;  %v1737_v22 = vmul.f32 %v4155_v0, %v4155_v0  ;;  %v1666_v24 = vadd.f32 %v1665_v15, %v4155_v0 }
 0x1d4   :  { %v1268_v34 = vpop.f32.mrb[96].mxu1  ;;  %v1800_v31 = vadd.f32 %v1799_v44, %v1737_v22 }
 0x1d5   :  { %v1557_v36 = vpop.f32.mrb[96].mxu0  ;;  %v1270_v37 = vpop.f32.mrb[97].mxu1 }
 0x1d6   :  { %v4163_v49 = vadd.f32 %v1557_v36, %v1268_v34  ;;  %v1559_v62 = vpop.f32.mrb[97].mxu0  ;;  %v1271_v63 = vpop.f32.mrb[98].mxu1 }
 0x1d7   :  { %v1560_v38 = vpop.f32.mrb[98].mxu0  ;;  %v1273_v4 = vpop.f32.mrb[99].mxu1 }
 0x1d8   :  { %5967 = vst [vmem:[#allocation20_spill] sm:$0xff] %v4163_v49  ;;  %v1738_v53 = vmul.f32 %v4163_v49, %v4163_v49  ;;  %v4168_v58 = vadd.f32 %v1560_v38, %v1271_v63  ;;  %v1562_v13 = vpop.f32.mrb[99].mxu0  ;;  %v1667_v10 = vadd.f32 %v1666_v24, %v4163_v49 }
 0x1da   :  { %5968 = vst [vmem:[#allocation21_spill] sm:$0xff] %v4168_v58  ;;  %v1801_v14 = vadd.f32 %v1800_v31, %v1738_v53  ;;  %v1739_v34 = vmul.f32 %v4168_v58, %v4168_v58  ;;  %v1668_v4 = vadd.f32 %v1667_v10, %v4168_v58 }
 0x1dc   :  { %v1276_v36 = vpop.f32.mrb[100].mxu1  ;;  %v1802_v38 = vadd.f32 %v1801_v14, %v1739_v34 }
 0x1dd   :  { %v1565_v37 = vpop.f32.mrb[100].mxu0  ;;  %v1278_v62 = vpop.f32.mrb[101].mxu1 }
 0x1de   :  { %v4174_v3 = vadd.f32 %v1565_v37, %v1276_v36  ;;  %v1567_v15 = vpop.f32.mrb[101].mxu0  ;;  %v1279_v0 = vpop.f32.mrb[102].mxu1 }
 0x1df   :  { %v1568_v48 = vpop.f32.mrb[102].mxu0  ;;  %v1281_v63 = vpop.f32.mrb[103].mxu1 }
 0x1e0   :  { %v1669_v44 = vadd.f32 %v1668_v4, %v4174_v3  ;;  %v1740_v31 = vmul.f32 %v4174_v3, %v4174_v3  ;;  %v4179_v22 = vadd.f32 %v1568_v48, %v1279_v0  ;;  %v1570_v24 = vpop.f32.mrb[103].mxu0 }
 0x1e2   :  { %v1803_v53 = vadd.f32 %v1802_v38, %v1740_v31  ;;  %v1670_v13 = vadd.f32 %v1669_v44, %v4179_v22  ;;  %v1741_v10 = vmul.f32 %v4179_v22, %v4179_v22 }
 0x1e4   :  { %v1804_v36 = vadd.f32 %v1803_v53, %v1741_v10  ;;  %v1284_v37 = vpop.f32.mrb[104].mxu1 }
 0x1e5   :  { %v1573_v62 = vpop.f32.mrb[104].mxu0  ;;  %v1286_v15 = vpop.f32.mrb[105].mxu1 }
 0x1e6   :  { %v4184_v63 = vadd.f32 %v1573_v62, %v1284_v37  ;;  %v1575_v14 = vpop.f32.mrb[105].mxu0  ;;  %v1287_v34 = vpop.f32.mrb[106].mxu1 }
 0x1e7   :  { %v1576_v4 = vpop.f32.mrb[106].mxu0  ;;  %v1289_v58 = vpop.f32.mrb[107].mxu1 }
 0x1e8   :  { %v1671_v48 = vadd.f32 %v1670_v13, %v4184_v63  ;;  %v1742_v0 = vmul.f32 %v4184_v63, %v4184_v63  ;;  %v4189_v38 = vadd.f32 %v1576_v4, %v1287_v34  ;;  %v1578_v44 = vpop.f32.mrb[107].mxu0 }
 0x1ea   :  { %v1805_v31 = vadd.f32 %v1804_v36, %v1742_v0  ;;  %v1672_v24 = vadd.f32 %v1671_v48, %v4189_v38  ;;  %v1743_v53 = vmul.f32 %v4189_v38, %v4189_v38 }
 0x1ec   :  { %v1806_v10 = vadd.f32 %v1805_v31, %v1743_v53  ;;  %v1292_v37 = vpop.f32.mrb[108].mxu1 }
 0x1ed   :  { %v1581_v62 = vpop.f32.mrb[108].mxu0  ;;  %v1294_v15 = vpop.f32.mrb[109].mxu1 }
 0x1ee   :  { %v4194_v14 = vadd.f32 %v1581_v62, %v1292_v37  ;;  %v1583_v58 = vpop.f32.mrb[109].mxu0  ;;  %v1295_v13 = vpop.f32.mrb[110].mxu1 }
 0x1ef   :  { %v1584_v49 = vpop.f32.mrb[110].mxu0  ;;  %v1297_v60 = vpop.f32.mrb[111].mxu1 }
 0x1f0   :  { %v1673_v34 = vadd.f32 %v1672_v24, %v4194_v14  ;;  %v1744_v36 = vmul.f32 %v4194_v14, %v4194_v14  ;;  %v4199_v4 = vadd.f32 %v1584_v49, %v1295_v13  ;;  %v1586_v48 = vpop.f32.mrb[111].mxu0 }
 0x1f2   :  { %5969 = vst [vmem:[#allocation22_spill] sm:$0xff] %v4199_v4  ;;  %v1807_v0 = vadd.f32 %v1806_v10, %v1744_v36  ;;  %v1674_v44 = vadd.f32 %v1673_v34, %v4199_v4  ;;  %v1745_v31 = vmul.f32 %v4199_v4, %v4199_v4 }
 0x1f4   :  { %v1808_v53 = vadd.f32 %v1807_v0, %v1745_v31  ;;  %v1300_v37 = vpop.f32.mrb[112].mxu1 }
 0x1f5   :  { %v1589_v62 = vpop.f32.mrb[112].mxu0  ;;  %v1302_v15 = vpop.f32.mrb[113].mxu1 }
 0x1f6   :  { %v4204_v58 = vadd.f32 %v1589_v62, %v1300_v37  ;;  %v1591_v60 = vpop.f32.mrb[113].mxu0  ;;  %v1303_v24 = vpop.f32.mrb[114].mxu1 }
 0x1f7   :  { %v1592_v25 = vpop.f32.mrb[114].mxu0  ;;  %v1305_v7 = vpop.f32.mrb[115].mxu1 }
 0x1f8   :  { %5970 = vst [vmem:[#allocation23_spill] sm:$0xff] %v4204_v58  ;;  %v1675_v49 = vadd.f32 %v1674_v44, %v4204_v58  ;;  %v1746_v10 = vmul.f32 %v4204_v58, %v4204_v58  ;;  %v4209_v13 = vadd.f32 %v1592_v25, %v1303_v24  ;;  %v1594_v34 = vpop.f32.mrb[115].mxu0  ;;  %v5997_v58 = vld [vmem:[#allocation21_spill] sm:$0xff] }
 0x1fa   :  { %5971 = vst [vmem:[#allocation24_spill] sm:$0xff] %v4209_v13  ;;  %v1809_v36 = vadd.f32 %v1808_v53, %v1746_v10  ;;  %v1676_v48 = vadd.f32 %v1675_v49, %v4209_v13  ;;  %v1747_v0 = vmul.f32 %v4209_v13, %v4209_v13  ;;  %v5996_v13 = vld [vmem:[#allocation20_spill] sm:$0xff] }
 0x1fc   :  { %v1810_v31 = vadd.f32 %v1809_v36, %v1747_v0  ;;  %v1308_v37 = vpop.f32.mrb[116].mxu1 }
 0x1fd   :  { %v1597_v62 = vpop.f32.mrb[116].mxu0  ;;  %v1310_v15 = vpop.f32.mrb[117].mxu1 }
 0x1fe   :  { %v4214_v60 = vadd.f32 %v1597_v62, %v1308_v37  ;;  %v1599_v7 = vpop.f32.mrb[117].mxu0  ;;  %v1311_v44 = vpop.f32.mrb[118].mxu1 }
 0x1ff   :  { %v1600_v45 = vpop.f32.mrb[118].mxu0  ;;  %v1313_v30 = vpop.f32.mrb[119].mxu1 }
 0x200   :  { %5972 = vst [vmem:[#allocation25_spill] sm:$0xff] %v4214_v60  ;;  %v1677_v25 = vadd.f32 %v1676_v48, %v4214_v60  ;;  %v1748_v53 = vmul.f32 %v4214_v60, %v4214_v60  ;;  %v4219_v24 = vadd.f32 %v1600_v45, %v1311_v44  ;;  %v1602_v49 = vpop.f32.mrb[119].mxu0  ;;  %v5995_v60 = vld [vmem:[#allocation19_spill] sm:$0xff] }
 0x202   :  { %5973 = vst [vmem:[#allocation26_spill] sm:$0xff] %v4219_v24  ;;  %v1811_v10 = vadd.f32 %v1810_v31, %v1748_v53  ;;  %v1678_v34 = vadd.f32 %v1677_v25, %v4219_v24  ;;  %v1749_v36 = vmul.f32 %v4219_v24, %v4219_v24 }
 0x204   :  { %v1812_v0 = vadd.f32 %v1811_v10, %v1749_v36  ;;  %v1316_v37 = vpop.f32.mrb[120].mxu1 }
 0x205   :  { %v1605_v62 = vpop.f32.mrb[120].mxu0  ;;  %v1318_v15 = vpop.f32.mrb[121].mxu1 }
 0x206   :  { %v4224_v7 = vadd.f32 %v1605_v62, %v1316_v37  ;;  %v1607_v30 = vpop.f32.mrb[121].mxu0  ;;  %v1319_v48 = vpop.f32.mrb[122].mxu1 }
 0x207   :  { %v1608_v1 = vpop.f32.mrb[122].mxu0  ;;  %v1321_v50 = vpop.f32.mrb[123].mxu1 }
 0x208   :  { %5974 = vst [vmem:[#allocation27_spill] sm:$0xff] %v4224_v7  ;;  %v1679_v45 = vadd.f32 %v1678_v34, %v4224_v7  ;;  %v1750_v31 = vmul.f32 %v4224_v7, %v4224_v7  ;;  %v4229_v44 = vadd.f32 %v1608_v1, %v1319_v48  ;;  %v1610_v25 = vpop.f32.mrb[123].mxu0 }
 0x20a   :  { %5975 = vst [vmem:[#allocation28_spill] sm:$0xff] %v4229_v44  ;;  %v1813_v53 = vadd.f32 %v1812_v0, %v1750_v31  ;;  %v1680_v49 = vadd.f32 %v1679_v45, %v4229_v44  ;;  %v1751_v10 = vmul.f32 %v4229_v44, %v4229_v44 }
 0x20c   :  { %v1814_v36 = vadd.f32 %v1813_v53, %v1751_v10  ;;  %v1324_v37 = vpop.f32.mrb[124].mxu1 }
 0x20d   :  { %v1613_v62 = vpop.f32.mrb[124].mxu0  ;;  %v1326_v15 = vpop.f32.mrb[125].mxu1 }
 0x20e   :  { %v4234_v30 = vadd.f32 %v1613_v62, %v1324_v37  ;;  %v1615_v50 = vpop.f32.mrb[125].mxu0  ;;  %v1327_v34 = vpop.f32.mrb[126].mxu1 }
 0x20f   :  { %v1616_v26 = vpop.f32.mrb[126].mxu0  ;;  %v1329_v12 = vpop.f32.mrb[127].mxu1 }
 0x210   :  { %5976 = vst [vmem:[#allocation29_spill] sm:$0xff] %v4234_v30  ;;  %v1681_v1 = vadd.f32 %v1680_v49, %v4234_v30  ;;  %v1752_v0 = vmul.f32 %v4234_v30, %v4234_v30  ;;  %v4239_v48 = vadd.f32 %v1616_v26, %v1327_v34  ;;  %v1618_v45 = vpop.f32.mrb[127].mxu0 }
 0x212   :  { %5977 = vst [vmem:[#allocation30_spill] sm:$0xff] %v4239_v48  ;;  %v1815_v31 = vadd.f32 %v1814_v36, %v1752_v0  ;;  %v1682_v25 = vadd.f32 %v1681_v1, %v4239_v48  ;;  %v1753_v53 = vmul.f32 %v4239_v48, %v4239_v48 }
 0x214   :  { %v1683_v10 = vrot.slane %v1682_v25, 4  ;;  %v1816_v37 = vadd.f32 %v1815_v31, %v1753_v53 }
 0x216   :  { %v1684_v62 = vadd.f32 %v1683_v10, %v1682_v25  ;;  %v1817_v15 = vrot.slane %v1816_v37, 4 }
 0x218   :  { %v1685_v50 = vrot.slane %v1684_v62, 2  ;;  %v1818_v12 = vadd.f32 %v1817_v15, %v1816_v37 }
 0x21a   :  { %v1686_v54 = vadd.f32 %v1685_v50, %v1684_v62  ;;  %v1819_v49 = vrot.slane %v1818_v12, 2 }
 0x21c   :  { %v1687_v42 = vrot.slane %v1686_v54, 1  ;;  %v1820_v20 = vadd.f32 %v1819_v49, %v1818_v12 }
 0x21e   :  { %v1688_v6 = vadd.f32 %v1687_v42, %v1686_v54  ;;  %v1821_v26 = vrot.slane %v1820_v20, 1 }
 0x220   :  { %v4244_v34 = vmul.f32 0.001953125, %v1688_v6  ;;  %v1822_v36 = vadd.f32 %v1821_v26, %v1820_v20 }
 0x222   :  { %v1823_v0 = vmul.f32 0.001953125, %v1822_v36  ;;  %v1824_v1 = vmul.f32 %v4244_v34, %v4244_v34  ;;  %v1829_v15 = vsub.f32 %v3900_v41, %v4244_v34  ;;  %v1830_v50 = vsub.f32 %v3905_v47, %v4244_v34 }
 0x223   :  { %v1831_v12 = vsub.f32 %v3916_v55, %v4244_v34  ;;  %v1832_v49 = vsub.f32 %v3921_v61, %v4244_v34  ;;  %v1833_v26 = vsub.f32 %v3932_v5, %v4244_v34  ;;  %v1834_v36 = vsub.f32 %v3937_v11, %v4244_v34 }
 0x224   :  { %v1825_v45 = vsub.f32 %v1823_v0, %v1824_v1  ;;  %v1836_v41 = vsub.f32 %v3944_v23, %v4244_v34  ;;  %v1837_v47 = vsub.f32 %v3946_v29, %v4244_v34  ;;  %v1838_v55 = vsub.f32 %v3948_v35, %v4244_v34 }
 0x225   :  { %v1839_v61 = vsub.f32 %v3950_v40, %v4244_v34  ;;  %v1840_v5 = vsub.f32 %v3960_v51, %v4244_v34  ;;  %v1841_v11 = vsub.f32 %v3963_v59, %v4244_v34  ;;  %v1843_v23 = vsub.f32 %v3975_v16, %v4244_v34 }
 0x226   :  { %v1890_v1 = vadd.f32 1e-05, %v1825_v45  ;;  %v1835_v45 = vsub.f32 %v3942_v17, %v4244_v34  ;;  %v1842_v17 = vsub.f32 %v3971_v8, %v4244_v34  ;;  %v1844_v29 = vsub.f32 %v3983_v32, %v4244_v34 }
 0x227   :  { %v1845_v35 = vsub.f32 %v3988_v43, %v4244_v34  ;;  %v1846_v40 = vsub.f32 %v3996_v57, %v4244_v34  ;;  %v1847_v51 = vsub.f32 %v3999_v2, %v4244_v34  ;;  %v1848_v59 = vsub.f32 %v4007_v18, %v4244_v34 }
 0x228   :  { %3384 = vrsqrt.f32 %v1890_v1  ;;  %v1849_v8 = vsub.f32 %v4011_v28, %v4244_v34  ;;  %v1850_v16 = vsub.f32 %v4019_v46, %v4244_v34  ;;  %v1851_v32 = vsub.f32 %v4024_v56, %v4244_v34  ;;  %v5978_v28 = vld [vmem:[#allocation2_spill] sm:$0xff]  ;;  %v5979_v46 = vld [vmem:[#allocation3_spill] sm:$0xff]  ;;  %v5980_v56 = vld [vmem:[#allocation4_spill] sm:$0xff] }
 0x229   :  { %v1852_v43 = vsub.f32 %v4032_v9, %v4244_v34  ;;  %v1853_v57 = vsub.f32 %v4035_v21, %v4244_v34  ;;  %v1854_v2 = vsub.f32 %v4043_v39, %v4244_v34  ;;  %v1855_v18 = vsub.f32 %v4047_v52, %v4244_v34  ;;  %v5981_v9 = vld [vmem:[#allocation5_spill] sm:$0xff]  ;;  %v5982_v21 = vld [vmem:[#allocation6_spill] sm:$0xff]  ;;  %v5983_v39 = vld [vmem:[#allocation7_spill] sm:$0xff] }
 0x22a   :  { %v1856_v1 = vsub.f32 %v5978_v28, %v4244_v34  ;;  %v1857_v0 = vsub.f32 %v5979_v46, %v4244_v34  ;;  %v1858_v62 = vsub.f32 %v5980_v56, %v4244_v34  ;;  %v1859_v37 = vsub.f32 %v5981_v9, %v4244_v34  ;;  %v5984_v52 = vld [vmem:[#allocation8_spill] sm:$0xff]  ;;  %v5985_v28 = vld [vmem:[#allocation9_spill] sm:$0xff]  ;;  %v5986_v46 = vld [vmem:[#allocation10_spill] sm:$0xff] }
 0x22b   :  { %v1860_v10 = vsub.f32 %v5982_v21, %v4244_v34  ;;  %v1861_v54 = vsub.f32 %v5983_v39, %v4244_v34  ;;  %v1862_v20 = vsub.f32 %v5984_v52, %v4244_v34  ;;  %v1863_v6 = vsub.f32 %v5985_v28, %v4244_v34  ;;  %v5987_v56 = vld [vmem:[#allocation11_spill] sm:$0xff]  ;;  %v5988_v9 = vld [vmem:[#allocation12_spill] sm:$0xff]  ;;  %v5989_v21 = vld [vmem:[#allocation13_spill] sm:$0xff] }
 0x22c   :  { %v1864_v42 = vsub.f32 %v5986_v46, %v4244_v34  ;;  %v1865_v53 = vsub.f32 %v5987_v56, %v4244_v34  ;;  %v1866_v25 = vsub.f32 %v5988_v9, %v4244_v34  ;;  %v1867_v31 = vsub.f32 %v5989_v21, %v4244_v34  ;;  %v5990_v39 = vld [vmem:[#allocation14_spill] sm:$0xff]  ;;  %v5991_v52 = vld [vmem:[#allocation15_spill] sm:$0xff]  ;;  %v5992_v28 = vld [vmem:[#allocation16_spill] sm:$0xff] }
 0x22d   :  { %v1868_v48 = vsub.f32 %v5990_v39, %v4244_v34  ;;  %v1869_v30 = vsub.f32 %v5991_v52, %v4244_v34  ;;  %v1870_v44 = vsub.f32 %v5992_v28, %v4244_v34  ;;  %v5993_v46 = vld [vmem:[#allocation17_spill] sm:$0xff]  ;;  %v5994_v56 = vld [vmem:[#allocation18_spill] sm:$0xff]  ;;  %v1873_v21 = vsub.f32 %v5995_v60, %v4244_v34 }
 0x22e   :  { %v1871_v7 = vsub.f32 %v5993_v46, %v4244_v34  ;;  %v1872_v9 = vsub.f32 %v5994_v56, %v4244_v34  ;;  %v1874_v39 = vsub.f32 %v5996_v13, %v4244_v34  ;;  %v1875_v52 = vsub.f32 %v5997_v58, %v4244_v34 }
 0x22f   :  { %v5998_v28 = vsub.f32 %v3873_v19, %v4244_v34  ;;  %v5999_v46 = vsub.f32 %v3884_v27, %v4244_v34  ;;  %v6000_v60 = vsub.f32 %v3889_v33, %v4244_v34 }
 0x232   :  { %v4368_v24 = vpop.eup %3384 }
 0x233   :  { %v4382_v4 = vmul.f32 %v4368_v24, %v5998_v28  ;;  %v4388_v56 = vmul.f32 %v4368_v24, %v5999_v46  ;;  %v4394_v13 = vmul.f32 %v4368_v24, %v6000_v60  ;;  %v4397_v58 = vmul.f32 %v4368_v24, %v1829_v15 }
 0x234   :  { %v4400_v19 = vmul.f32 %v4368_v24, %v1830_v50  ;;  %v4403_v28 = vmul.f32 %v4368_v24, %v1831_v12  ;;  %v4406_v27 = vmul.f32 %v4368_v24, %v1832_v49  ;;  %v4409_v46 = vmul.f32 %v4368_v24, %v1833_v26 }
 0x235   :  { %v4412_v33 = vmul.f32 %v4368_v24, %v1834_v36  ;;  %v4415_v60 = vmul.f32 %v4368_v24, %v1835_v45  ;;  %v4418_v15 = vmul.f32 %v4368_v24, %v1836_v41  ;;  %v4421_v50 = vmul.f32 %v4368_v24, %v1837_v47 }
 0x236   :  { %v4424_v12 = vmul.f32 %v4368_v24, %v1838_v55  ;;  %v4427_v49 = vmul.f32 %v4368_v24, %v1839_v61  ;;  %v4430_v26 = vmul.f32 %v4368_v24, %v1840_v5  ;;  %v4433_v36 = vmul.f32 %v4368_v24, %v1841_v11 }
 0x237   :  { %v4436_v45 = vmul.f32 %v4368_v24, %v1842_v17  ;;  %v4439_v41 = vmul.f32 %v4368_v24, %v1843_v23  ;;  %v4442_v47 = vmul.f32 %v4368_v24, %v1844_v29  ;;  %v4445_v55 = vmul.f32 %v4368_v24, %v1845_v35 }
 0x238   :  { %v4448_v61 = vmul.f32 %v4368_v24, %v1846_v40  ;;  %v4451_v5 = vmul.f32 %v4368_v24, %v1847_v51  ;;  %v4454_v11 = vmul.f32 %v4368_v24, %v1848_v59  ;;  %v4457_v17 = vmul.f32 %v4368_v24, %v1849_v8 }
 0x239   :  { %v4460_v23 = vmul.f32 %v4368_v24, %v1850_v16  ;;  %v4463_v29 = vmul.f32 %v4368_v24, %v1851_v32  ;;  %v4466_v35 = vmul.f32 %v4368_v24, %v1852_v43  ;;  %v4469_v40 = vmul.f32 %v4368_v24, %v1853_v57 }
 0x23a   :  { %v4472_v51 = vmul.f32 %v4368_v24, %v1854_v2  ;;  %v4475_v59 = vmul.f32 %v4368_v24, %v1855_v18  ;;  %v4478_v8 = vmul.f32 %v4368_v24, %v1856_v1  ;;  %v4481_v16 = vmul.f32 %v4368_v24, %v1857_v0 }
 0x23b   :  { %v4484_v32 = vmul.f32 %v4368_v24, %v1858_v62  ;;  %v4487_v43 = vmul.f32 %v4368_v24, %v1859_v37  ;;  %v4490_v57 = vmul.f32 %v4368_v24, %v1860_v10  ;;  %v4493_v2 = vmul.f32 %v4368_v24, %v1861_v54 }
 0x23c   :  { %v4496_v18 = vmul.f32 %v4368_v24, %v1862_v20  ;;  %v4499_v1 = vmul.f32 %v4368_v24, %v1863_v6  ;;  %v4502_v0 = vmul.f32 %v4368_v24, %v1864_v42  ;;  %v4505_v62 = vmul.f32 %v4368_v24, %v1865_v53 }
 0x23d   :  { %v4508_v37 = vmul.f32 %v4368_v24, %v1866_v25  ;;  %v4511_v10 = vmul.f32 %v4368_v24, %v1867_v31  ;;  %v4514_v54 = vmul.f32 %v4368_v24, %v1868_v48  ;;  %v4517_v20 = vmul.f32 %v4368_v24, %v1869_v30 }
 0x23e   :  { %v4520_v6 = vmul.f32 %v4368_v24, %v1870_v44  ;;  %v4523_v42 = vmul.f32 %v4368_v24, %v1871_v7  ;;  %v4526_v53 = vmul.f32 %v4368_v24, %v1872_v9  ;;  %v4529_v25 = vmul.f32 %v4368_v24, %v1873_v21 }
 0x23f   :  { %v4532_v31 = vmul.f32 %v4368_v24, %v1874_v39  ;;  %v4535_v48 = vmul.f32 %v4368_v24, %v1875_v52  ;;  %v6001_v30 = vsub.f32 %v4174_v3, %v4244_v34  ;;  %v6002_v7 = vsub.f32 %v4179_v22, %v4244_v34 }
 0x240   :  { %v6004_v21 = vsub.f32 %v4184_v63, %v4244_v34  ;;  %v6006_v52 = vsub.f32 %v4189_v38, %v4244_v34 }
 0x241   :  { %v4541_v44 = vmul.f32 %v4368_v24, %v6001_v30  ;;  %v4547_v9 = vmul.f32 %v4368_v24, %v6002_v7  ;;  %v6008_v30 = vsub.f32 %v4194_v14, %v4244_v34  ;;  %v6010_v7 = vld [vmem:[#allocation22_spill] sm:$0xff] }
 0x242   :  { %v4553_v39 = vmul.f32 %v4368_v24, %v6004_v21  ;;  %v4559_v3 = vmul.f32 %v4368_v24, %v6006_v52  ;;  %v6013_v21 = vld [vmem:[#allocation23_spill] sm:$0xff]  ;;  %v6016_v52 = vld [vmem:[#allocation24_spill] sm:$0xff] }
 0x243   :  { %6003 = vst [vmem:[#allocation2_spill] sm:$0xff] %v4547_v9  ;;  %v4565_v22 = vmul.f32 %v4368_v24, %v6008_v30  ;;  %v6011_v9 = vsub.f32 %v6010_v7, %v4244_v34  ;;  %v6019_v30 = vld [vmem:[#allocation25_spill] sm:$0xff] }
 0x244   :  { %6005 = vst [vmem:[#allocation3_spill] sm:$0xff] %v4553_v39  ;;  %6007 = vst [vmem:[#allocation4_spill] sm:$0xff] %v4559_v3  ;;  %v6014_v39 = vsub.f32 %v6013_v21, %v4244_v34  ;;  %v6017_v3 = vsub.f32 %v6016_v52, %v4244_v34 }
 0x245   :  { %6009 = vst [vmem:[#allocation5_spill] sm:$0xff] %v4565_v22  ;;  %v4571_v63 = vmul.f32 %v4368_v24, %v6011_v9  ;;  %v6020_v22 = vsub.f32 %v6019_v30, %v4244_v34  ;;  %v6022_v9 = vld [vmem:[#allocation26_spill] sm:$0xff] }
 0x246   :  { %v4577_v38 = vmul.f32 %v4368_v24, %v6014_v39  ;;  %v4583_v14 = vmul.f32 %v4368_v24, %v6017_v3  ;;  %v6025_v39 = vld [vmem:[#allocation27_spill] sm:$0xff]  ;;  %v6027_v3 = vld [vmem:[#allocation28_spill] sm:$0xff] }
 0x247   :  { %6012 = vst [vmem:[#allocation6_spill] sm:$0xff] %v4571_v63  ;;  %v4589_v7 = vmul.f32 %v4368_v24, %v6020_v22  ;;  %v6023_v63 = vsub.f32 %v6022_v9, %v4244_v34  ;;  %v6029_v22 = vld [vmem:[#allocation29_spill] sm:$0xff] }
 0x248   :  { %6015 = vst [vmem:[#allocation7_spill] sm:$0xff] %v4577_v38  ;;  %6018 = vst [vmem:[#allocation8_spill] sm:$0xff] %v4583_v14  ;;  %v6026_v38 = vsub.f32 %v6025_v39, %v4244_v34  ;;  %v6028_v14 = vsub.f32 %v6027_v3, %v4244_v34 }
 0x249   :  { %6021 = vst [vmem:[#allocation9_spill] sm:$0xff] %v4589_v7  ;;  %v4595_v21 = vmul.f32 %v4368_v24, %v6023_v63  ;;  %v6030_v7 = vsub.f32 %v6029_v22, %v4244_v34  ;;  %v6031_v63 = vld [vmem:[#allocation30_spill] sm:$0xff] }
 0x24a   :  { %v4601_v52 = vmul.f32 %v4368_v24, %v6026_v38  ;;  %v4607_v30 = vmul.f32 %v4368_v24, %v6028_v14  ;;  %v4624_v38 = vld [vmem:[%s5882_s2] ss:$0 sm:$0xff] }
 0x24b   :  { %6024 = vst [vmem:[#allocation10_spill] sm:$0xff] %v4595_v21  ;;  %v4613_v9 = vmul.f32 %v4368_v24, %v6030_v7  ;;  %v6032_v21 = vsub.f32 %v6031_v63, %v4244_v34  ;;  %v4628_v14 = vmul.f32 %v4624_v38, %v4382_v4  ;;  %v4632_v3 = vmul.f32 %v4624_v38, %v4388_v56  ;;  %v6038_v22 = vld [vmem:[#allocation3_spill] sm:$0xff]  ;;  %v6040_v63 = vld [vmem:[#allocation4_spill] sm:$0xff] }
 0x24c   :  { %v4636_v7 = vmul.f32 %v4624_v38, %v4394_v13  ;;  %v4644_v34 = vmul.f32 %v4624_v38, %v4400_v19  ;;  %v4648_v4 = vmul.f32 %v4624_v38, %v4403_v28  ;;  %v4652_v56 = vmul.f32 %v4624_v38, %v4406_v27 }
 0x24d   :  { %v4619_v39 = vmul.f32 %v4368_v24, %v6032_v21  ;;  %v4640_v24 = vmul.f32 %v4624_v38, %v4397_v58  ;;  %v4656_v13 = vmul.f32 %v4624_v38, %v4409_v46  ;;  %v4660_v58 = vmul.f32 %v4624_v38, %v4412_v33  ;;  %v6036_v21 = vld [vmem:[#allocation2_spill] sm:$0xff] }
 0x24e   :  { %v4664_v19 = vmul.f32 %v4624_v38, %v4415_v60  ;;  %v4668_v28 = vmul.f32 %v4624_v38, %v4418_v15  ;;  %v4672_v27 = vmul.f32 %v4624_v38, %v4421_v50  ;;  %v4676_v46 = vmul.f32 %v4624_v38, %v4424_v12 }
 0x24f   :  { %v4680_v33 = vmul.f32 %v4624_v38, %v4427_v49  ;;  %v4684_v60 = vmul.f32 %v4624_v38, %v4430_v26  ;;  %v4688_v15 = vmul.f32 %v4624_v38, %v4433_v36  ;;  %v4692_v50 = vmul.f32 %v4624_v38, %v4436_v45 }
 0x250   :  { %v4696_v12 = vmul.f32 %v4624_v38, %v4439_v41  ;;  %v4700_v49 = vmul.f32 %v4624_v38, %v4442_v47  ;;  %v4704_v26 = vmul.f32 %v4624_v38, %v4445_v55  ;;  %v4708_v36 = vmul.f32 %v4624_v38, %v4448_v61 }
 0x251   :  { %v4712_v45 = vmul.f32 %v4624_v38, %v4451_v5  ;;  %v4716_v41 = vmul.f32 %v4624_v38, %v4454_v11  ;;  %v4720_v47 = vmul.f32 %v4624_v38, %v4457_v17  ;;  %v4724_v55 = vmul.f32 %v4624_v38, %v4460_v23 }
 0x252   :  { %v4728_v61 = vmul.f32 %v4624_v38, %v4463_v29  ;;  %v4732_v5 = vmul.f32 %v4624_v38, %v4466_v35  ;;  %v4736_v11 = vmul.f32 %v4624_v38, %v4469_v40  ;;  %v4740_v17 = vmul.f32 %v4624_v38, %v4472_v51 }
 0x253   :  { %v4744_v23 = vmul.f32 %v4624_v38, %v4475_v59  ;;  %v4748_v29 = vmul.f32 %v4624_v38, %v4478_v8  ;;  %v4752_v35 = vmul.f32 %v4624_v38, %v4481_v16  ;;  %v4756_v40 = vmul.f32 %v4624_v38, %v4484_v32 }
 0x254   :  { %v4760_v51 = vmul.f32 %v4624_v38, %v4487_v43  ;;  %v4764_v59 = vmul.f32 %v4624_v38, %v4490_v57  ;;  %v4768_v8 = vmul.f32 %v4624_v38, %v4493_v2  ;;  %v4772_v16 = vmul.f32 %v4624_v38, %v4496_v18 }
 0x255   :  { %v4776_v32 = vmul.f32 %v4624_v38, %v4499_v1  ;;  %v4780_v43 = vmul.f32 %v4624_v38, %v4502_v0  ;;  %v4784_v57 = vmul.f32 %v4624_v38, %v4505_v62  ;;  %v4788_v2 = vmul.f32 %v4624_v38, %v4508_v37 }
 0x256   :  { %v4792_v18 = vmul.f32 %v4624_v38, %v4511_v10  ;;  %v4796_v1 = vmul.f32 %v4624_v38, %v4514_v54  ;;  %v4800_v0 = vmul.f32 %v4624_v38, %v4517_v20  ;;  %v4804_v62 = vmul.f32 %v4624_v38, %v4520_v6 }
 0x257   :  { %v4808_v37 = vmul.f32 %v4624_v38, %v4523_v42  ;;  %v4812_v10 = vmul.f32 %v4624_v38, %v4526_v53  ;;  %v4816_v54 = vmul.f32 %v4624_v38, %v4529_v25  ;;  %v4820_v20 = vmul.f32 %v4624_v38, %v4532_v31 }
 0x258   :  { %v4824_v6 = vmul.f32 %v4624_v38, %v4535_v48  ;;  %v4828_v42 = vmul.f32 %v4624_v38, %v4541_v44  ;;  %v4832_v53 = vmul.f32 %v4624_v38, %v6036_v21  ;;  %v4836_v25 = vmul.f32 %v4624_v38, %v6038_v22  ;;  %v4849_v44 = vld [vmem:[%s5883_s3] ss:$0 sm:$0xff] }
 0x259   :  { %6033 = vst [vmem:[#allocation11_spill] sm:$0xff] %v4820_v20  ;;  %v4840_v31 = vmul.f32 %v4624_v38, %v6040_v63  ;;  %v6042_v20 = vld [vmem:[#allocation5_spill] sm:$0xff] }
 0x25a   :  { %6034 = vst [vmem:[#allocation12_spill] sm:$0xff] %v4824_v6  ;;  %6035 = vst [vmem:[#allocation13_spill] sm:$0xff] %v4828_v42  ;;  %v4844_v48 = vmul.f32 %v4624_v38, %v6042_v20  ;;  %v6044_v42 = vld [vmem:[#allocation6_spill] sm:$0xff] }
 0x25b   :  { %6037 = vst [vmem:[#allocation14_spill] sm:$0xff] %v4832_v53  ;;  %6039 = vst [vmem:[#allocation15_spill] sm:$0xff] %v4836_v25  ;;  %v4853_v21 = vmul.f32 %v4624_v38, %v6044_v42  ;;  %v6045_v53 = vld [vmem:[#allocation7_spill] sm:$0xff]  ;;  %v6046_v25 = vld [vmem:[#allocation8_spill] sm:$0xff]  ;;  %v4873_v42 = vmul.f32 %v4624_v38, %v4601_v52  ;;  %v4893_v52 = vadd.f32 %v4849_v44, %v4632_v3 }
 0x25c   :  { %6041 = vst [vmem:[#allocation16_spill] sm:$0xff] %v4840_v31  ;;  %6043 = vst [vmem:[#allocation17_spill] sm:$0xff] %v4844_v48  ;;  %v4857_v22 = vmul.f32 %v4624_v38, %v6045_v53  ;;  %v4861_v63 = vmul.f32 %v4624_v38, %v6046_v25  ;;  %v6047_v31 = vld [vmem:[#allocation9_spill] sm:$0xff]  ;;  %v6048_v48 = vld [vmem:[#allocation10_spill] sm:$0xff]  ;;  %v4877_v53 = vmul.f32 %v4624_v38, %v4607_v30 }
 0x25d   :  { %v4865_v20 = vmul.f32 %v4624_v38, %v6047_v31  ;;  %v4869_v6 = vmul.f32 %v4624_v38, %v6048_v48  ;;  %v4881_v25 = vmul.f32 %v4624_v38, %v4613_v9  ;;  %v4885_v31 = vmul.f32 %v4624_v38, %v4619_v39 }
 0x25e   :  { %v4889_v48 = vadd.f32 %v4849_v44, %v4628_v14  ;;  %v4897_v30 = vadd.f32 %v4849_v44, %v4636_v7  ;;  %v4901_v9 = vadd.f32 %v4849_v44, %v4640_v24  ;;  %v4905_v39 = vadd.f32 %v4849_v44, %v4644_v34 }
 0x25f   :  { %v4909_v38 = vadd.f32 %v4849_v44, %v4648_v4  ;;  %v4913_v14 = vadd.f32 %v4849_v44, %v4652_v56  ;;  %v4917_v3 = vadd.f32 %v4849_v44, %v4656_v13  ;;  %v4921_v7 = vadd.f32 %v4849_v44, %v4660_v58 }
 0x260   :  { %v4925_v24 = vadd.f32 %v4849_v44, %v4664_v19  ;;  %v4929_v34 = vadd.f32 %v4849_v44, %v4668_v28  ;;  %v4933_v4 = vadd.f32 %v4849_v44, %v4672_v27  ;;  %v4937_v56 = vadd.f32 %v4849_v44, %v4676_v46 }
 0x261   :  { %v4941_v13 = vadd.f32 %v4849_v44, %v4680_v33  ;;  %v4945_v58 = vadd.f32 %v4849_v44, %v4684_v60  ;;  %v4949_v19 = vadd.f32 %v4849_v44, %v4688_v15  ;;  %v4953_v28 = vadd.f32 %v4849_v44, %v4692_v50 }
 0x262   :  { %v4957_v27 = vadd.f32 %v4849_v44, %v4696_v12  ;;  %v4961_v46 = vadd.f32 %v4849_v44, %v4700_v49  ;;  %v4965_v33 = vadd.f32 %v4849_v44, %v4704_v26  ;;  %v4969_v60 = vadd.f32 %v4849_v44, %v4708_v36 }
 0x263   :  { %v4973_v15 = vadd.f32 %v4849_v44, %v4712_v45  ;;  %v4977_v50 = vadd.f32 %v4849_v44, %v4716_v41  ;;  %v4981_v12 = vadd.f32 %v4849_v44, %v4720_v47  ;;  %v4985_v49 = vadd.f32 %v4849_v44, %v4724_v55 }
 0x264   :  { %v4989_v26 = vadd.f32 %v4849_v44, %v4728_v61  ;;  %v4993_v36 = vadd.f32 %v4849_v44, %v4732_v5  ;;  %v4997_v45 = vadd.f32 %v4849_v44, %v4736_v11  ;;  %v5001_v41 = vadd.f32 %v4849_v44, %v4740_v17 }
 0x265   :  { %v5005_v47 = vadd.f32 %v4849_v44, %v4744_v23  ;;  %v5009_v55 = vadd.f32 %v4849_v44, %v4748_v29  ;;  %v5013_v61 = vadd.f32 %v4849_v44, %v4752_v35  ;;  %v5017_v5 = vadd.f32 %v4849_v44, %v4756_v40 }
 0x266   :  { %v5021_v11 = vadd.f32 %v4849_v44, %v4760_v51  ;;  %v5025_v17 = vadd.f32 %v4849_v44, %v4764_v59  ;;  %v5029_v23 = vadd.f32 %v4849_v44, %v4768_v8  ;;  %v5033_v29 = vadd.f32 %v4849_v44, %v4772_v16 }
 0x267   :  { %v5037_v35 = vadd.f32 %v4849_v44, %v4776_v32  ;;  %v5041_v40 = vadd.f32 %v4849_v44, %v4780_v43  ;;  %v5045_v51 = vadd.f32 %v4849_v44, %v4784_v57  ;;  %v5049_v59 = vadd.f32 %v4849_v44, %v4788_v2 }
 0x268   :  { %v5053_v8 = vadd.f32 %v4849_v44, %v4792_v18  ;;  %v5057_v16 = vadd.f32 %v4849_v44, %v4796_v1  ;;  %v5061_v32 = vadd.f32 %v4849_v44, %v4800_v0  ;;  %v5065_v43 = vadd.f32 %v4849_v44, %v4804_v62  ;;  %v6055_v1 = vld [vmem:[#allocation11_spill] sm:$0xff] }
 0x269   :  { %6049 = vst [vmem:[#allocation18_spill] sm:$0xff] %v5037_v35  ;;  %v5069_v57 = vadd.f32 %v4849_v44, %v4808_v37  ;;  %v5073_v2 = vadd.f32 %v4849_v44, %v4812_v10  ;;  %v5077_v18 = vadd.f32 %v4849_v44, %v4816_v54  ;;  %v5081_v0 = vadd.f32 %v4849_v44, %v6055_v1 }
 0x26a   :  { %6050 = vst [vmem:[#allocation19_spill] sm:$0xff] %v5061_v32  ;;  %6051 = vst [vmem:[#allocation20_spill] sm:$0xff] %v5065_v43  ;;  %v6057_v32 = vld [vmem:[#allocation12_spill] sm:$0xff]  ;;  %v6059_v43 = vld [vmem:[#allocation13_spill] sm:$0xff]  ;;  %vm2098_vm0 = vcmp.ge.f32.partialorder %v4889_v48, 0.0  ;;  %vm2099_vm1 = vcmp.ge.f32.partialorder %v4893_v52, 0.0 }
 0x26b   :  { %6052 = vst [vmem:[#allocation21_spill] sm:$0xff] %v5069_v57  ;;  %6053 = vst [vmem:[#allocation22_spill] sm:$0xff] %v5073_v2  ;;  %v5085_v62 = vadd.f32 %v4849_v44, %v6057_v32  ;;  %v5089_v37 = vadd.f32 %v4849_v44, %v6059_v43  ;;  %v6061_v57 = vld [vmem:[#allocation14_spill] sm:$0xff]  ;;  %v6063_v2 = vld [vmem:[#allocation15_spill] sm:$0xff]  ;;  %v5109_v43 = vadd.f32 %v4849_v44, %v4853_v21  ;;  %vm2100_vm2 = vcmp.ge.f32.partialorder %v4897_v30, 0.0 }
 0x26c   :  { %6054 = vst [vmem:[#allocation23_spill] sm:$0xff] %v5077_v18  ;;  %6056 = vst [vmem:[#allocation24_spill] sm:$0xff] %v5081_v0  ;;  %v5093_v10 = vadd.f32 %v4849_v44, %v6061_v57  ;;  %v5097_v54 = vadd.f32 %v4849_v44, %v6063_v2  ;;  %v6065_v18 = vld [vmem:[#allocation16_spill] sm:$0xff]  ;;  %v6067_v0 = vld [vmem:[#allocation17_spill] sm:$0xff]  ;;  %v5113_v57 = vadd.f32 %v4849_v44, %v4857_v22  ;;  %vm2101_vm3 = vcmp.ge.f32.partialorder %v4901_v9, 0.0 }
 0x26d   :  { %6058 = vst [vmem:[#allocation25_spill] sm:$0xff] %v5085_v62  ;;  %6060 = vst [vmem:[#allocation26_spill] sm:$0xff] %v5089_v37  ;;  %v5101_v1 = vadd.f32 %v4849_v44, %v6065_v18  ;;  %v5105_v32 = vadd.f32 %v4849_v44, %v6067_v0  ;;  %v5117_v2 = vadd.f32 %v4849_v44, %v4861_v63  ;;  %vm2102_vm4 = vcmp.ge.f32.partialorder %v4905_v39, 0.0 }
 0x26e   :  { %6062 = vst [vmem:[#allocation27_spill] sm:$0xff] %v5093_v10  ;;  %6064 = vst [vmem:[#allocation28_spill] sm:$0xff] %v5097_v54  ;;  %v5121_v18 = vadd.f32 %v4849_v44, %v4865_v20  ;;  %v5125_v0 = vadd.f32 %v4849_v44, %v4869_v6  ;;  %v5129_v21 = vadd.f32 %v4849_v44, %v4873_v42  ;;  %vm2103_vm5 = vcmp.ge.f32.partialorder %v4909_v38, 0.0 }
 0x26f   :  { %6066 = vst [vmem:[#allocation29_spill] sm:$0xff] %v5101_v1  ;;  %6068 = vst [vmem:[#allocation30_spill] sm:$0xff] %v5105_v32  ;;  %v5133_v22 = vadd.f32 %v4849_v44, %v4877_v53  ;;  %vm2104_vm6 = vcmp.ge.f32.partialorder %v4913_v14, 0.0  ;;  %vm2105_vm7 = vcmp.ge.f32.partialorder %v4917_v3, 0.0  ;;  %vm2106_vm8 = vcmp.ge.f32.partialorder %v4921_v7, 0.0 }
 0x270   :  { %6069 = vst [vmem:[#allocation2_spill] sm:$0xff] %v5109_v43  ;;  %6070 = vst [vmem:[#allocation3_spill] sm:$0xff] %v5113_v57  ;;  %v5146_v6 = vadd.f32 %v4849_v44, %v4881_v25  ;;  %vm2107_vm9 = vcmp.ge.f32.partialorder %v4925_v24, 0.0  ;;  %v2162_v63 = vmul.f32 0.2, %v4889_v48  ;;  %v5154_v53 = vadd.f32 %v4849_v44, %v4885_v31 }
 0x271   :  { %6071 = vst [vmem:[#allocation4_spill] sm:$0xff] %v5117_v2  ;;  %6072 = vst [vmem:[#allocation5_spill] sm:$0xff] %v5121_v18  ;;  %v2163_v20 = vmul.f32 0.2, %v4893_v52  ;;  %v2164_v42 = vmul.f32 0.2, %v4897_v30 }
 0x272   :  { %6073 = vst [vmem:[#allocation6_spill] sm:$0xff] %v5125_v0  ;;  %6074 = vst [vmem:[#allocation7_spill] sm:$0xff] %v5129_v21  ;;  %vm2108_vm10 = vcmp.ge.f32.partialorder %v4929_v34, 0.0  ;;  %v2166_v21 = vmul.f32 0.2, %v4905_v39  ;;  %vm2109_vm11 = vcmp.ge.f32.partialorder %v4933_v4, 0.0  ;;  %v5167_v44 = vsel %vm2098_vm0, %v4889_v48, %v2162_v63 }
 0x273   :  { %6075 = vst [vmem:[#allocation8_spill] sm:$0xff] %v5133_v22  ;;  %6076 = vst [vmem:[#allocation9_spill] sm:$0xff] %v5146_v6  ;;  %v2165_v22 = vmul.f32 0.2, %v4901_v9  ;;  %v2167_v25 = vmul.f32 0.2, %v4909_v38  ;;  %v5178_v57 = vsel %vm2099_vm1, %v4893_v52, %v2163_v20 }
 0x274   :  { %6077 = vst [vmem:[#allocation10_spill] sm:$0xff] %v5154_v53  ;;  %v2168_v6 = vmul.f32 0.2, %v4913_v14  ;;  %v2169_v0 = vmul.f32 0.2, %v4917_v3  ;;  %6078 = vst [vmem:[#allocation11_spill] sm:$0xff] %v5167_v44  ;;  %v5193_v44 = vsel %vm2100_vm2, %v4897_v30, %v2164_v42 }
 0x275   :  { %v2170_v18 = vmul.f32 0.2, %v4921_v7  ;;  %vm2110_vm12 = vcmp.ge.f32.partialorder %v4937_v56, 0.0  ;;  %v2171_v31 = vmul.f32 0.2, %v4925_v24  ;;  %6079 = vst [vmem:[#allocation12_spill] sm:$0xff] %v5178_v57  ;;  %v5208_v32 = vsel %vm2101_vm3, %v4901_v9, %v2165_v22 }
 0x276   :  { %v2172_v53 = vmul.f32 0.2, %v4929_v34  ;;  %v5173_v2 = vmul.f32 0.2, %v4933_v4  ;;  %vm2111_vm13 = vcmp.ge.f32.partialorder %v4941_v13, 0.0  ;;  %6080 = vst [vmem:[#allocation13_spill] sm:$0xff] %v5193_v44 }
 0x277   :  { %v5182_v43 = vmul.f32 0.2, %v4937_v56  ;;  %v5185_v48 = vmul.f32 0.2, %v4941_v13  ;;  %v5188_v63 = vmul.f32 0.2, %v4945_v58 }
 0x278   :  { %vm2112_vm14 = vcmp.ge.f32.partialorder %v4945_v58, 0.0  ;;  %v5197_v52 = vmul.f32 0.2, %v4949_v19  ;;  %v5200_v20 = vmul.f32 0.2, %v4953_v28  ;;  %6082 = vst [vmem:[#allocation15_spill] sm:$0xff] %v5208_v32 }
 0x279   :  { %v5203_v57 = vmul.f32 0.2, %v4957_v27  ;;  %vm2113_vm15 = vcmp.ge.f32.partialorder %v4949_v19, 0.0  ;;  %v5212_v30 = vmul.f32 0.2, %v4961_v46  ;;  %vm2114_vm0 = vcmp.ge.f32.partialorder %v4953_v28, 0.0 }
 0x27a   :  { %v5215_v42 = vmul.f32 0.2, %v4965_v33  ;;  %v5218_v44 = vmul.f32 0.2, %v4969_v60  ;;  %v5227_v9 = vmul.f32 0.2, %v4973_v15 }
 0x27b   :  { %6081 = vst [vmem:[#allocation14_spill] sm:$0xff] %v5203_v57  ;;  %v5223_v57 = vsel %vm2102_vm4, %v4905_v39, %v2166_v21  ;;  %v5230_v22 = vmul.f32 0.2, %v4977_v50  ;;  %v5233_v32 = vmul.f32 0.2, %v4981_v12  ;;  %vm2115_vm1 = vcmp.ge.f32.partialorder %v4957_v27, 0.0 }
 0x27c   :  { %6083 = vst [vmem:[#allocation16_spill] sm:$0xff] %v5218_v44  ;;  %6084 = vst [vmem:[#allocation17_spill] sm:$0xff] %v5223_v57  ;;  %v5238_v44 = vsel %vm2103_vm5, %v4909_v38, %v2167_v25  ;;  %v5242_v39 = vmul.f32 0.2, %v4985_v49  ;;  %v5245_v21 = vmul.f32 0.2, %v4989_v26 }
 0x27d   :  { %6085 = vst [vmem:[#allocation31_spill] sm:$0xff] %v5233_v32  ;;  %6086 = vst [vmem:[#allocation32_spill] sm:$0xff] %v5238_v44  ;;  %v5248_v57 = vmul.f32 0.2, %v4993_v36  ;;  %v5253_v32 = vsel %vm2104_vm6, %v4913_v14, %v2168_v6  ;;  %vm2116_vm2 = vcmp.ge.f32.partialorder %v4961_v46, 0.0  ;;  %vm2117_vm3 = vcmp.ge.f32.partialorder %v4965_v33, 0.0 }
 0x27e   :  { %6088 = vst [vmem:[#allocation34_spill] sm:$0xff] %v5253_v32  ;;  %v5257_v38 = vmul.f32 0.2, %v4997_v45  ;;  %v5260_v25 = vmul.f32 0.2, %v5001_v41  ;;  %vm2120_vm6 = vcmp.ge.f32.partialorder %v4977_v50, 0.0 }
 0x27f   :  { %6087 = vst [vmem:[#allocation33_spill] sm:$0xff] %v5248_v57  ;;  %v5263_v44 = vmul.f32 0.2, %v5005_v47  ;;  %v5268_v57 = vsel %vm2105_vm7, %v4917_v3, %v2169_v0  ;;  %v5274_v14 = vmul.f32 0.2, %v5009_v55  ;;  %v5285_v3 = vsel %vm2106_vm8, %v4921_v7, %v2170_v18 }
 0x280   :  { %6089 = vst [vmem:[#allocation35_spill] sm:$0xff] %v5268_v57  ;;  %v5277_v6 = vmul.f32 0.2, %v5013_v61  ;;  %v5280_v32 = vmul.f32 0.2, %v5017_v5  ;;  %6091 = vst [vmem:[#allocation37_spill] sm:$0xff] %v5285_v3  ;;  %v5303_v7 = vsel %vm2107_vm9, %v4925_v24, %v2171_v31  ;;  %v5321_v24 = vsel %vm2108_vm10, %v4929_v34, %v2172_v53 }
 0x281   :  { %v5292_v0 = vmul.f32 0.2, %v5021_v11  ;;  %v5295_v57 = vmul.f32 0.2, %v5025_v17  ;;  %6093 = vst [vmem:[#allocation39_spill] sm:$0xff] %v5303_v7  ;;  %vm2124_vm8 = vcmp.ge.f32.partialorder %v4993_v36, 0.0  ;;  %v5340_v34 = vsel %vm2109_vm11, %v4933_v4, %v5173_v2 }
 0x282   :  { %6090 = vst [vmem:[#allocation36_spill] sm:$0xff] %v5280_v32  ;;  %v5298_v32 = vmul.f32 0.2, %v5029_v23  ;;  %v5310_v18 = vmul.f32 0.2, %v5033_v29  ;;  %6095 = vst [vmem:[#allocation41_spill] sm:$0xff] %v5321_v24  ;;  %v5359_v4 = vsel %vm2110_vm12, %v4937_v56, %v5182_v43  ;;  %v5378_v56 = vsel %vm2111_vm13, %v4941_v13, %v5185_v48 }
 0x283   :  { %v5313_v3 = vmul.f32 0.2, %v5037_v35  ;;  %vm2128_vm9 = vcmp.ge.f32.partialorder %v5009_v55, 0.0  ;;  %v5328_v31 = vmul.f32 0.2, %v5045_v51  ;;  %6099 = vst [vmem:[#allocation45_spill] sm:$0xff] %v5340_v34  ;;  %v5397_v13 = vsel %vm2112_vm14, %v4945_v58, %v5188_v63 }
 0x284   :  { %6092 = vst [vmem:[#allocation38_spill] sm:$0xff] %v5298_v32  ;;  %v5316_v32 = vmul.f32 0.2, %v5041_v40  ;;  %v5331_v7 = vmul.f32 0.2, %v5049_v59  ;;  %vm2132_vm10 = vcmp.ge.f32.partialorder %v5025_v17, 0.0  ;;  %v5416_v58 = vsel %vm2113_vm15, %v4949_v19, %v5197_v52 }
 0x285   :  { %6096 = vst [vmem:[#allocation42_spill] sm:$0xff] %v5328_v31  ;;  %v5347_v53 = vmul.f32 0.2, %v5057_v16  ;;  %v6101_v24 = vld [vmem:[#allocation19_spill] sm:$0xff]  ;;  %6105 = vst [vmem:[#allocation47_spill] sm:$0xff] %v5359_v4  ;;  %vm2136_vm11 = vcmp.ge.f32.partialorder %v5041_v40, 0.0  ;;  %v5429_v19 = vsel %vm2114_vm0, %v4953_v28, %v5200_v20 }
 0x286   :  { %6094 = vst [vmem:[#allocation40_spill] sm:$0xff] %v5316_v32  ;;  %6097 = vst [vmem:[#allocation43_spill] sm:$0xff] %v5331_v7  ;;  %v5334_v32 = vmul.f32 0.2, %v5053_v8  ;;  %v5350_v7 = vmul.f32 0.2, %v6101_v24 }
 0x287   :  { %6100 = vst [vmem:[#allocation46_spill] sm:$0xff] %v5347_v53  ;;  %v6106_v2 = vld [vmem:[#allocation21_spill] sm:$0xff]  ;;  %vm2140_vm12 = vcmp.ge.f32.partialorder %v5057_v16, 0.0  ;;  %v6112_v43 = vld [vmem:[#allocation24_spill] sm:$0xff]  ;;  %6115 = vst [vmem:[#allocation49_spill] sm:$0xff] %v5397_v13  ;;  %vm2148_vm14 = vcmp.ge.f32.partialorder %v5089_v37, 0.0 }
 0x288   :  { %6098 = vst [vmem:[#allocation44_spill] sm:$0xff] %v5334_v32  ;;  %6102 = vst [vmem:[#allocation19_spill] sm:$0xff] %v5350_v7  ;;  %v6103_v32 = vld [vmem:[#allocation20_spill] sm:$0xff]  ;;  %v5366_v34 = vmul.f32 0.2, %v6106_v2  ;;  %v6107_v7 = vld [vmem:[#allocation22_spill] sm:$0xff] }
 0x289   :  { %v5353_v31 = vmul.f32 0.2, %v6103_v32  ;;  %v5369_v53 = vmul.f32 0.2, %v6107_v7  ;;  %v5385_v4 = vmul.f32 0.2, %v6112_v43 }
 0x28a   :  { %vm2144_vm13 = vcmp.ge.f32.partialorder %v6107_v7, 0.0  ;;  %v5404_v48 = vmul.f32 0.2, %v5093_v10  ;;  %6119 = vst [vmem:[#allocation53_spill] sm:$0xff] %v5416_v58  ;;  %v6120_v63 = vld [vmem:[#allocation30_spill] sm:$0xff]  ;;  %6123 = vst [vmem:[#allocation54_spill] sm:$0xff] %v5429_v19 }
 0x28b   :  { %6104 = vst [vmem:[#allocation20_spill] sm:$0xff] %v5353_v31  ;;  %6108 = vst [vmem:[#allocation21_spill] sm:$0xff] %v5369_v53  ;;  %v6109_v31 = vld [vmem:[#allocation23_spill] sm:$0xff]  ;;  %v5388_v53 = vmul.f32 0.2, %v5085_v62  ;;  %vm2152_vm15 = vcmp.ge.f32.partialorder %v6120_v63, 0.0 }
 0x28c   :  { %v5372_v35 = vmul.f32 0.2, %v6109_v31  ;;  %6111 = vst [vmem:[#allocation23_spill] sm:$0xff] %v5378_v56  ;;  %6116 = vst [vmem:[#allocation50_spill] sm:$0xff] %v5404_v48  ;;  %v5407_v56 = vmul.f32 0.2, %v5097_v54 }
 0x28d   :  { %6113 = vst [vmem:[#allocation24_spill] sm:$0xff] %v5388_v53  ;;  %v2216_v13 = vmul.f32 0.2, %v6120_v63  ;;  %v6122_v62 = vld [vmem:[#allocation3_spill] sm:$0xff]  ;;  %v6124_v52 = vld [vmem:[#allocation4_spill] sm:$0xff]  ;;  %v6126_v10 = vld [vmem:[#allocation6_spill] sm:$0xff] }
 0x28e   :  { %6110 = vst [vmem:[#allocation22_spill] sm:$0xff] %v5372_v35  ;;  %v5391_v35 = vmul.f32 0.2, %v5089_v37  ;;  %6117 = vst [vmem:[#allocation51_spill] sm:$0xff] %v5407_v56  ;;  %v6121_v56 = vld [vmem:[#allocation2_spill] sm:$0xff]  ;;  %v6129_v20 = vld [vmem:[#allocation7_spill] sm:$0xff] }
 0x28f   :  { %v2217_v48 = vmul.f32 0.2, %v6121_v56  ;;  %v2219_v58 = vmul.f32 0.2, %v6124_v52  ;;  %v2221_v37 = vmul.f32 0.2, %v6126_v10 }
 0x290   :  { %6114 = vst [vmem:[#allocation48_spill] sm:$0xff] %v5391_v35  ;;  %v5410_v35 = vmul.f32 0.2, %v5101_v1  ;;  %v6125_v1 = vld [vmem:[#allocation5_spill] sm:$0xff]  ;;  %v6127_v53 = vld [vmem:[#allocation14_spill] sm:$0xff]  ;;  %vm2158_vm4 = vcmp.ge.f32.partialorder %v6129_v20, 0.0 }
 0x291   :  { %v2220_v54 = vmul.f32 0.2, %v6125_v1  ;;  %v5442_v28 = vsel %vm2115_vm1, %v4957_v27, %v6127_v53  ;;  %vm2156_vm0 = vcmp.ge.f32.partialorder %v6125_v1, 0.0  ;;  %v6130_v19 = vld [vmem:[#allocation8_spill] sm:$0xff]  ;;  %v2222_v52 = vmul.f32 0.2, %v6129_v20 }
 0x292   :  { %6118 = vst [vmem:[#allocation52_spill] sm:$0xff] %v5410_v35  ;;  %v2218_v35 = vmul.f32 0.2, %v6122_v62  ;;  %6128 = vst [vmem:[#allocation5_spill] sm:$0xff] %v5442_v28  ;;  %v2223_v62 = vmul.f32 0.2, %v6130_v19  ;;  %v5455_v27 = vsel %vm2116_vm2, %v4961_v46, %v5212_v30  ;;  %v5464_v20 = vsel %vm2117_vm3, %v4965_v33, %v5215_v42 }
 0x293   :  { %v6131_v56 = vld [vmem:[#allocation9_spill] sm:$0xff]  ;;  %v6132_v53 = vld [vmem:[#allocation10_spill] sm:$0xff]  ;;  %v6133_v19 = vld [vmem:[#allocation16_spill] sm:$0xff]  ;;  %vm6134_vm7 = vcmp.ge.f32.partialorder %v4969_v60, 0.0  ;;  %vm6135_vm2 = vcmp.ge.f32.partialorder %v4973_v15, 0.0  ;;  %v5482_v30 = vsel %vm2120_vm6, %v4977_v50, %v5230_v22  ;;  %vm6137_vm3 = vcmp.ge.f32.partialorder %v4981_v12, 0.0 }
 0x294   :  { %v2224_v63 = vmul.f32 0.2, %v6131_v56  ;;  %vm2160_vm1 = vcmp.ge.f32.partialorder %v6131_v56, 0.0  ;;  %vm2161_vm5 = vcmp.ge.f32.partialorder %v6132_v53, 0.0  ;;  %v2225_v28 = vmul.f32 0.2, %v6132_v53 }
 0x295   :  { %v5470_v10 = vsel %vm6134_vm7, %v4969_v60, %v6133_v19  ;;  %v5476_v46 = vsel %vm6135_vm2, %v4973_v15, %v5227_v9  ;;  %v6136_v33 = vld [vmem:[#allocation31_spill] sm:$0xff]  ;;  %vm6138_vm7 = vcmp.ge.f32.partialorder %v4985_v49, 0.0  ;;  %vm6139_vm2 = vcmp.ge.f32.partialorder %v4989_v26, 0.0  ;;  %v6140_v50 = vld [vmem:[#allocation33_spill] sm:$0xff] }
 0x296   :  { %v5488_v42 = vsel %vm6137_vm3, %v4981_v12, %v6136_v33  ;;  %v5494_v60 = vsel %vm6138_vm7, %v4985_v49, %v5242_v39  ;;  %v5500_v15 = vsel %vm6139_vm2, %v4989_v26, %v5245_v21  ;;  %v5506_v9 = vsel %vm2124_vm8, %v4993_v36, %v6140_v50  ;;  %v6174_v50 = vld [vmem:[#allocation26_spill] sm:$0xff] }
 0x297   :  { %vm6141_vm6 = vcmp.ge.f32.partialorder %v4997_v45, 0.0  ;;  %vm6142_vm3 = vcmp.ge.f32.partialorder %v5001_v41, 0.0  ;;  %vm6143_vm7 = vcmp.ge.f32.partialorder %v5005_v47, 0.0  ;;  %v5530_v36 = vsel %vm2128_vm9, %v5009_v55, %v5274_v14 }
 0x298   :  { %v5512_v12 = vsel %vm6141_vm6, %v4997_v45, %v5257_v38  ;;  %v5518_v49 = vsel %vm6142_vm3, %v5001_v41, %v5260_v25  ;;  %v5524_v26 = vsel %vm6143_vm7, %v5005_v47, %v5263_v44  ;;  %vm6144_vm8 = vcmp.ge.f32.partialorder %v5013_v61, 0.0  ;;  %v6145_v41 = vld [vmem:[#allocation36_spill] sm:$0xff] }
 0x299   :  { %v5536_v45 = vsel %vm6144_vm8, %v5013_v61, %v5277_v6  ;;  %vm6146_vm2 = vcmp.ge.f32.partialorder %v5017_v5, 0.0  ;;  %vm6147_vm6 = vcmp.ge.f32.partialorder %v5021_v11, 0.0  ;;  %v5554_v55 = vsel %vm2132_vm10, %v5025_v17, %v5295_v57  ;;  %v6148_v61 = vld [vmem:[#allocation38_spill] sm:$0xff]  ;;  %v6153_v17 = vld [vmem:[#allocation40_spill] sm:$0xff] }
 0x29a   :  { %v5542_v22 = vsel %vm6146_vm2, %v5017_v5, %v6145_v41  ;;  %v5548_v47 = vsel %vm6147_vm6, %v5021_v11, %v5292_v0  ;;  %vm6149_vm9 = vcmp.ge.f32.partialorder %v5029_v23, 0.0  ;;  %vm6150_vm3 = vcmp.ge.f32.partialorder %v5033_v29, 0.0  ;;  %v6151_v11 = vld [vmem:[#allocation18_spill] sm:$0xff]  ;;  %v6158_v25 = vld [vmem:[#allocation44_spill] sm:$0xff] }
 0x29b   :  { %v5560_v44 = vsel %vm6149_vm9, %v5029_v23, %v6148_v61  ;;  %v5566_v5 = vsel %vm6150_vm3, %v5033_v29, %v5310_v18  ;;  %vm6152_vm7 = vcmp.ge.f32.partialorder %v6151_v11, 0.0  ;;  %v5578_v57 = vsel %vm2136_vm11, %v5041_v40, %v6153_v17  ;;  %v6154_v23 = vld [vmem:[#allocation42_spill] sm:$0xff]  ;;  %v6156_v29 = vld [vmem:[#allocation43_spill] sm:$0xff] }
 0x29c   :  { %v5572_v39 = vsel %vm6152_vm7, %v6151_v11, %v5313_v3  ;;  %vm6155_vm10 = vcmp.ge.f32.partialorder %v5045_v51, 0.0  ;;  %vm6157_vm8 = vcmp.ge.f32.partialorder %v5049_v59, 0.0  ;;  %vm6159_vm2 = vcmp.ge.f32.partialorder %v5053_v8, 0.0  ;;  %v6160_v40 = vld [vmem:[#allocation46_spill] sm:$0xff]  ;;  %v6176_v61 = vld [vmem:[#allocation27_spill] sm:$0xff] }
 0x29d   :  { %v5584_v21 = vsel %vm6155_vm10, %v5045_v51, %v6154_v23  ;;  %v5590_v38 = vsel %vm6157_vm8, %v5049_v59, %v6156_v29  ;;  %v5596_v14 = vsel %vm6159_vm2, %v5053_v8, %v6158_v25  ;;  %v5602_v6 = vsel %vm2140_vm12, %v5057_v16, %v6160_v40  ;;  %v6161_v51 = vld [vmem:[#allocation19_spill] sm:$0xff]  ;;  %v6163_v59 = vld [vmem:[#allocation20_spill] sm:$0xff]  ;;  %v6166_v16 = vld [vmem:[#allocation21_spill] sm:$0xff] }
 0x29e   :  { %vm6162_vm11 = vcmp.ge.f32.partialorder %v6101_v24, 0.0  ;;  %vm6164_vm6 = vcmp.ge.f32.partialorder %v6103_v32, 0.0  ;;  %vm6165_vm9 = vcmp.ge.f32.partialorder %v6106_v2, 0.0  ;;  %v5626_v18 = vsel %vm2144_vm13, %v6107_v7, %v6166_v16  ;;  %v6173_v7 = vld [vmem:[#allocation48_spill] sm:$0xff]  ;;  %v6182_v29 = vld [vmem:[#allocation29_spill] sm:$0xff]  ;;  %v6184_v40 = vld [vmem:[#allocation30_spill] sm:$0xff] }
 0x29f   :  { %v5608_v3 = vsel %vm6162_vm11, %v6101_v24, %v6161_v51  ;;  %v5614_v0 = vsel %vm6164_vm6, %v6103_v32, %v6163_v59  ;;  %v5620_v8 = vsel %vm6165_vm9, %v6106_v2, %v5366_v34  ;;  %v6167_v24 = vld [vmem:[#allocation22_spill] sm:$0xff]  ;;  %vm6168_vm12 = vcmp.ge.f32.partialorder %v6109_v31, 0.0  ;;  %v6170_v34 = vld [vmem:[#allocation24_spill] sm:$0xff]  ;;  %v6171_v2 = vld [vmem:[#allocation25_spill] sm:$0xff] }
 0x2a0   :  { %v5632_v19 = vsel %vm6168_vm12, %v6109_v31, %v6167_v24  ;;  %vm6169_vm3 = vcmp.ge.f32.partialorder %v6112_v43, 0.0  ;;  %vm6172_vm7 = vcmp.ge.f32.partialorder %v6171_v2, 0.0  ;;  %v5650_v41 = vsel %vm2148_vm14, %v6174_v50, %v6173_v7  ;;  %v6175_v31 = vld [vmem:[#allocation50_spill] sm:$0xff]  ;;  %v6181_v23 = vld [vmem:[#allocation52_spill] sm:$0xff]  ;;  %v6187_v24 = vld [vmem:[#allocation3_spill] sm:$0xff] }
 0x2a1   :  { %v5638_v32 = vsel %vm6169_vm3, %v6112_v43, %v5385_v4  ;;  %v5644_v33 = vsel %vm6172_vm7, %v6171_v2, %v6170_v34  ;;  %vm6177_vm13 = vcmp.ge.f32.partialorder %v6176_v61, 0.0  ;;  %v6178_v4 = vld [vmem:[#allocation51_spill] sm:$0xff]  ;;  %v6179_v43 = vld [vmem:[#allocation28_spill] sm:$0xff]  ;;  %vm6183_vm8 = vcmp.ge.f32.partialorder %v6182_v29, 0.0  ;;  %v6185_v59 = vld [vmem:[#allocation2_spill] sm:$0xff] }
 0x2a2   :  { %v5656_v11 = vsel %vm6177_vm13, %v6176_v61, %v6175_v31  ;;  %vm6180_vm10 = vcmp.ge.f32.partialorder %v6179_v43, 0.0  ;;  %v5668_v25 = vsel %vm6183_vm8, %v6182_v29, %v6181_v23  ;;  %v5673_v51 = vsel %vm2152_vm15, %v6184_v40, %v2216_v13  ;;  %v6189_v2 = vld [vmem:[#allocation4_spill] sm:$0xff]  ;;  %v6191_v50 = vld [vmem:[#allocation6_spill] sm:$0xff]  ;;  %v6193_v31 = vld [vmem:[#allocation7_spill] sm:$0xff] }
 0x2a3   :  { %v5662_v17 = vsel %vm6180_vm10, %v6179_v43, %v6178_v4  ;;  %vm6186_vm14 = vcmp.ge.f32.partialorder %v6185_v59, 0.0  ;;  %vm6188_vm2 = vcmp.ge.f32.partialorder %v6187_v24, 0.0  ;;  %vm6190_vm11 = vcmp.ge.f32.partialorder %v6189_v2, 0.0  ;;  %v6194_v61 = vld [vmem:[#allocation8_spill] sm:$0xff]  ;;  %v6201_v23 = vld [vmem:[#allocation15_spill] sm:$0xff]  ;;  %v6202_v40 = vld [vmem:[#allocation17_spill] sm:$0xff] }
 0x2a4   :  { %v5678_v16 = vsel %vm6186_vm14, %v6185_v59, %v2217_v48  ;;  %v5683_v34 = vsel %vm6188_vm2, %v6187_v24, %v2218_v35  ;;  %v5688_v7 = vsel %vm6190_vm11, %v6189_v2, %v2219_v58  ;;  %v5693_v13 = vsel %vm2156_vm0, %v6125_v1, %v2220_v54  ;;  %v6198_v1 = vld [vmem:[#allocation11_spill] sm:$0xff]  ;;  %v6199_v4 = vld [vmem:[#allocation12_spill] sm:$0xff]  ;;  %v6204_v24 = vld [vmem:[#allocation34_spill] sm:$0xff] }
 0x2a5   :  { %vm6192_vm15 = vcmp.ge.f32.partialorder %v6191_v50, 0.0  ;;  %v5703_v35 = vsel %vm2158_vm4, %v6193_v31, %v2222_v52  ;;  %vm6195_vm6 = vcmp.ge.f32.partialorder %v6194_v61, 0.0  ;;  %v5713_v54 = vsel %vm2160_vm1, %v6131_v56, %v2224_v63  ;;  %v6200_v52 = vld [vmem:[#allocation13_spill] sm:$0xff]  ;;  %v6203_v59 = vld [vmem:[#allocation32_spill] sm:$0xff]  ;;  %v6205_v2 = vld [vmem:[#allocation35_spill] sm:$0xff] }
 0x2a6   :  { %v5698_v48 = vsel %vm6192_vm15, %v6191_v50, %v2221_v37  ;;  %v5708_v58 = vsel %vm6195_vm6, %v6194_v61, %v2223_v62  ;;  %6197 = vst [vmem:[#allocation9_spill] sm:$0xff] %v5713_v54  ;;  %v5718_v37 = vsel %vm2161_vm5, %v6132_v53, %v2225_v28  ;;  %v2907_v43 = vpack.c.bf16 %v6199_v4, %v6198_v1  ;;  %v6206_v31 = vld [vmem:[#allocation37_spill] sm:$0xff]  ;;  %v6207_v56 = vld [vmem:[#allocation39_spill] sm:$0xff] }
 0x2a7   :  { %6196 = vst [vmem:[#allocation14_spill] sm:$0xff] %v5708_v58  ;;  %v2912_v29 = vpack.c.bf16 %v6201_v23, %v6200_v52  ;;  %v2917_v62 = vpack.c.bf16 %v6203_v59, %v6202_v40  ;;  %v2922_v50 = vpack.c.bf16 %v6205_v2, %v6204_v24  ;;  %v2927_v63 = vpack.c.bf16 %v6207_v56, %v6206_v31  ;;  %v6208_v61 = vld [vmem:[#allocation41_spill] sm:$0xff]  ;;  %v6210_v28 = vld [vmem:[#allocation47_spill] sm:$0xff]  ;;  %v6214_v40 = vld [vmem:[#allocation54_spill] sm:$0xff] }
 0x2a8   :  { %v6209_v54 = vld [vmem:[#allocation45_spill] sm:$0xff]  ;;  %2908 = vst [vmem:[%s5884_s4] sm:$0xff] %v2907_v43   ;;  %v6211_v53 = vld [vmem:[#allocation23_spill] sm:$0xff]  ;;  %v2957_v43 = vpack.c.bf16 %v5476_v46, %v5470_v10  ;;  %v2977_v10 = vpack.c.bf16 %v5524_v26, %v5518_v49  ;;  %v2982_v46 = vpack.c.bf16 %v5536_v45, %v5530_v36  ;;  %v3017_v49 = vpack.c.bf16 %v5620_v8, %v5614_v0 }
 0x2a9   :  { %v2932_v58 = vpack.c.bf16 %v6209_v54, %v6208_v61  ;;  %3064 = vst [vmem:[%s5884_s4 + $0x8] sm:$0xff] %v2912_v29   ;;  %v2937_v1 = vpack.c.bf16 %v6211_v53, %v6210_v28  ;;  %v6212_v4 = vld [vmem:[#allocation49_spill] sm:$0xff]  ;;  %v2952_v54 = vpack.c.bf16 %v5464_v20, %v5455_v27  ;;  %3065 = vst [vmem:[%s5884_s4 + $0x10] sm:$0xff] %v2917_v62  }
 0x2aa   :  { %v6213_v52 = vld [vmem:[#allocation53_spill] sm:$0xff]  ;;  %3066 = vst [vmem:[%s5884_s4 + $0x18] sm:$0xff] %v2922_v50   ;;  %3067 = vst [vmem:[%s5884_s4 + $0x20] sm:$0xff] %v2927_v63   ;;  %v2962_v20 = vpack.c.bf16 %v5488_v42, %v5482_v30  ;;  %v2967_v27 = vpack.c.bf16 %v5500_v15, %v5494_v60  ;;  %v2972_v29 = vpack.c.bf16 %v5512_v12, %v5506_v9 }
 0x2ab   :  { %v2942_v23 = vpack.c.bf16 %v6213_v52, %v6212_v4  ;;  %v6215_v59 = vld [vmem:[#allocation5_spill] sm:$0xff]  ;;  %3068 = vst [vmem:[%s5884_s4 + $0x28] sm:$0xff] %v2932_v58   ;;  %3069 = vst [vmem:[%s5884_s4 + $0x30] sm:$0xff] %v2937_v1   ;;  %v2987_v30 = vpack.c.bf16 %v5548_v47, %v5542_v22  ;;  %v2992_v42 = vpack.c.bf16 %v5560_v44, %v5554_v55 }
 0x2ac   :  { %v2947_v24 = vpack.c.bf16 %v6215_v59, %v6214_v40  ;;  %3072 = vst [vmem:[%s5884_s4 + $0x48] sm:$0xff] %v2952_v54   ;;  %3073 = vst [vmem:[%s5884_s4 + $0x50] sm:$0xff] %v2957_v43   ;;  %v2997_v60 = vpack.c.bf16 %v5572_v39, %v5566_v5  ;;  %v3002_v15 = vpack.c.bf16 %v5584_v21, %v5578_v57 }
 0x2ad   :  { %3070 = vst [vmem:[%s5884_s4 + $0x38] sm:$0xff] %v2942_v23   ;;  %3074 = vst [vmem:[%s5884_s4 + $0x58] sm:$0xff] %v2962_v20   ;;  %v3007_v9 = vpack.c.bf16 %v5596_v14, %v5590_v38  ;;  %v3012_v12 = vpack.c.bf16 %v5608_v3, %v5602_v6  ;;  %v3022_v26 = vpack.c.bf16 %v5632_v19, %v5626_v18  ;;  %v6217_v57 = vld [vmem:[#allocation9_spill] sm:$0xff] }
 0x2ae   :  { %3071 = vst [vmem:[%s5884_s4 + $0x40] sm:$0xff] %v2947_v24   ;;  %3075 = vst [vmem:[%s5884_s4 + $0x60] sm:$0xff] %v2967_v27   ;;  %v3027_v36 = vpack.c.bf16 %v5644_v33, %v5638_v32  ;;  %v3032_v45 = vpack.c.bf16 %v5656_v11, %v5650_v41  ;;  %v3037_v22 = vpack.c.bf16 %v5668_v25, %v5662_v17  ;;  %v6216_v5 = vld [vmem:[#allocation14_spill] sm:$0xff] }
 0x2af   :  { %3076 = vst [vmem:[%s5884_s4 + $0x68] sm:$0xff] %v2972_v29   ;;  %3077 = vst [vmem:[%s5884_s4 + $0x70] sm:$0xff] %v2977_v10   ;;  %v3042_v47 = vpack.c.bf16 %v5678_v16, %v5673_v51  ;;  %v3047_v55 = vpack.c.bf16 %v5688_v7, %v5683_v34  ;;  %v3052_v44 = vpack.c.bf16 %v5698_v48, %v5693_v13 }
 0x2b0   :  { %3078 = vst [vmem:[%s5884_s4 + $0x78] sm:$0xff] %v2982_v46   ;;  %3079 = vst [vmem:[%s5884_s4 + $0x80] sm:$0xff] %v2987_v30   ;;  %v3057_v39 = vpack.c.bf16 %v6216_v5, %v5703_v35  ;;  %v3062_v21 = vpack.c.bf16 %v5718_v37, %v6217_v57 }
 0x2b1   :  { %3080 = vst [vmem:[%s5884_s4 + $0x88] sm:$0xff] %v2992_v42   ;;  %3081 = vst [vmem:[%s5884_s4 + $0x90] sm:$0xff] %v2997_v60  }
 0x2b2   :  { %3082 = vst [vmem:[%s5884_s4 + $0x98] sm:$0xff] %v3002_v15   ;;  %3083 = vst [vmem:[%s5884_s4 + $0xa0] sm:$0xff] %v3007_v9  }
 0x2b3   :  { %3084 = vst [vmem:[%s5884_s4 + $0xa8] sm:$0xff] %v3012_v12   ;;  %3085 = vst [vmem:[%s5884_s4 + $0xb0] sm:$0xff] %v3017_v49  }
 0x2b4   :  { %3086 = vst [vmem:[%s5884_s4 + $0xb8] sm:$0xff] %v3022_v26   ;;  %3087 = vst [vmem:[%s5884_s4 + $0xc0] sm:$0xff] %v3027_v36  }
 0x2b5   :  { %3088 = vst [vmem:[%s5884_s4 + $0xc8] sm:$0xff] %v3032_v45   ;;  %3089 = vst [vmem:[%s5884_s4 + $0xd0] sm:$0xff] %v3037_v22  }
 0x2b6   :  { %3090 = vst [vmem:[%s5884_s4 + $0xd8] sm:$0xff] %v3042_v47   ;;  %3091 = vst [vmem:[%s5884_s4 + $0xe0] sm:$0xff] %v3047_v55  }
 0x2b7   :  { %3092 = vst [vmem:[%s5884_s4 + $0xe8] sm:$0xff] %v3052_v44   ;;  %3093 = vst [vmem:[%s5884_s4 + $0xf0] sm:$0xff] %v3057_v39  }
 0x2b8   :  { %3094 = vst [vmem:[%s5884_s4 + $0xf8] sm:$0xff] %v3062_v21  }

// kernel: d_net_forward.8
= control target key start
LH: loop header
LB: loop body
LE: loop exit
PB: predicated region body
PF: predicated region fallthrough
CT: control target
= control target key end

     0   :  { %s4082_s1 = inlined_call_operand.vmem [shape: bf16[2048,256], index: 1, kind: input, shape index: {}]   ;;  %s4083_s0 = inlined_call_operand.vmem [shape: bf16[32,2048], index: 0, kind: input, shape index: {}]   ;;  %s4084_s2 = inlined_call_operand.vmem [shape: f32[1,256], index: 2, kind: input, shape index: {}]   ;;  %s4085_s3 = inlined_call_operand.vmem [shape: f32[1,256], index: 3, kind: input, shape index: {}]   ;;  %s4086_s4 = inlined_call_operand.vmem [shape: bf16[32,256], index: 4, kind: output, shape index: {}]  }
   0x1   :  { %v2689_v0 = vld [vmem:[%s4082_s1 + $0x4] ss:$8 sps:$4 sm:$0xff]   ;;  %v2693_v2 = vld [vmem:[%s4082_s1] ss:$8 sps:$4 sm:$0xff]   ;;  %v2695_v4 = vld [vmem:[%s4082_s1 + $0x14] ss:$8 sps:$4 sm:$0xff]  }
   0x2   :  { %v2691_v1 = vld [vmem:[%s4082_s1 + $0x404] ss:$8 sps:$4 sm:$0xff]   ;;  %1745 = vmatprep.subr.bf16.mxu1 %v2689_v0  ;;  %v2694_v3 = vld [vmem:[%s4082_s1 + $0x400] ss:$8 sps:$4 sm:$0xff]   ;;  %v2697_v5 = vld [vmem:[%s4082_s1 + $0x414] ss:$8 sps:$4 sm:$0xff]  }
   0x3   :  { %1957 = vmatprep.subr.bf16.mxu0 %v2691_v1  ;;  %1746 = vmatpush1.bf16.msra.mxu1 %v2693_v2  ;;  %v2699_v6 = vld [vmem:[%s4082_s1 + $0x10] ss:$8 sps:$4 sm:$0xff]   ;;  %v2701_v8 = vld [vmem:[%s4082_s1 + $0x24] ss:$8 sps:$4 sm:$0xff]   ;;  %v2705_v10 = vld [vmem:[%s4082_s1 + $0x20] ss:$8 sps:$4 sm:$0xff]  }
   0x4   :  { %1958 = vmatpush1.bf16.msra.mxu0 %v2694_v3  ;;  %1747 = vmatprep.subr.bf16.mxu1 %v2695_v4  ;;  %v2700_v7 = vld [vmem:[%s4082_s1 + $0x410] ss:$8 sps:$4 sm:$0xff]   ;;  %v2703_v9 = vld [vmem:[%s4082_s1 + $0x424] ss:$8 sps:$4 sm:$0xff]   ;;  %v2706_v11 = vld [vmem:[%s4082_s1 + $0x420] ss:$8 sps:$4 sm:$0xff]  }
   0x5   :  { %1959 = vmatprep.subr.bf16.mxu0 %v2697_v5  ;;  %v2707_v12 = vld [vmem:[%s4082_s1 + $0x34] ss:$8 sps:$4 sm:$0xff]   ;;  %v2711_v14 = vld [vmem:[%s4082_s1 + $0x30] ss:$8 sps:$4 sm:$0xff]   ;;  %v2713_v16 = vld [vmem:[%s4082_s1 + $0x44] ss:$8 sps:$4 sm:$0xff]  }
   0x6   :  { %v2709_v13 = vld [vmem:[%s4082_s1 + $0x434] ss:$8 sps:$4 sm:$0xff]   ;;  %v2712_v15 = vld [vmem:[%s4082_s1 + $0x430] ss:$8 sps:$4 sm:$0xff]   ;;  %v2715_v17 = vld [vmem:[%s4082_s1 + $0x444] ss:$8 sps:$4 sm:$0xff]  }
   0x7   :  { %1748 = vmatpush1.bf16.msra.mxu1 %v2699_v6  ;;  %v2717_v18 = vld [vmem:[%s4082_s1 + $0x40] ss:$8 sps:$4 sm:$0xff]   ;;  %v2719_v20 = vld [vmem:[%s4082_s1 + $0x54] ss:$8 sps:$4 sm:$0xff]   ;;  %v2723_v22 = vld [vmem:[%s4082_s1 + $0x50] ss:$8 sps:$4 sm:$0xff]  }
   0x8   :  { %1960 = vmatpush1.bf16.msra.mxu0 %v2700_v7  ;;  %1749 = vmatprep.subr.bf16.mxu1 %v2701_v8  ;;  %v2718_v19 = vld [vmem:[%s4082_s1 + $0x440] ss:$8 sps:$4 sm:$0xff]   ;;  %v2721_v21 = vld [vmem:[%s4082_s1 + $0x454] ss:$8 sps:$4 sm:$0xff]   ;;  %v2724_v23 = vld [vmem:[%s4082_s1 + $0x450] ss:$8 sps:$4 sm:$0xff]  }
   0x9   :  { %1961 = vmatprep.subr.bf16.mxu0 %v2703_v9  ;;  %v2725_v24 = vld [vmem:[%s4082_s1 + $0x64] ss:$8 sps:$4 sm:$0xff]   ;;  %v2729_v26 = vld [vmem:[%s4082_s1 + $0x60] ss:$8 sps:$4 sm:$0xff]   ;;  %v2731_v28 = vld [vmem:[%s4082_s1 + $0x74] ss:$8 sps:$4 sm:$0xff]  }
   0xa   :  { %v2727_v25 = vld [vmem:[%s4082_s1 + $0x464] ss:$8 sps:$4 sm:$0xff]   ;;  %v2730_v27 = vld [vmem:[%s4082_s1 + $0x460] ss:$8 sps:$4 sm:$0xff]   ;;  %v2733_v29 = vld [vmem:[%s4082_s1 + $0x474] ss:$8 sps:$4 sm:$0xff]  }
   0xb   :  { %1750 = vmatpush1.bf16.msra.mxu1 %v2705_v10  ;;  %v2735_v30 = vld [vmem:[%s4082_s1 + $0x70] ss:$8 sps:$4 sm:$0xff]   ;;  %v2737_v32 = vld [vmem:[%s4082_s1 + $0x84] ss:$8 sps:$4 sm:$0xff]   ;;  %v2741_v34 = vld [vmem:[%s4082_s1 + $0x80] ss:$8 sps:$4 sm:$0xff]  }
   0xc   :  { %1962 = vmatpush1.bf16.msra.mxu0 %v2706_v11  ;;  %1751 = vmatprep.subr.bf16.mxu1 %v2707_v12  ;;  %v2736_v31 = vld [vmem:[%s4082_s1 + $0x470] ss:$8 sps:$4 sm:$0xff]   ;;  %v2739_v33 = vld [vmem:[%s4082_s1 + $0x484] ss:$8 sps:$4 sm:$0xff]   ;;  %v2742_v35 = vld [vmem:[%s4082_s1 + $0x480] ss:$8 sps:$4 sm:$0xff]  }
   0xd   :  { %1963 = vmatprep.subr.bf16.mxu0 %v2709_v13  ;;  %v2743_v36 = vld [vmem:[%s4082_s1 + $0x94] ss:$8 sps:$4 sm:$0xff]   ;;  %v2747_v38 = vld [vmem:[%s4082_s1 + $0x90] ss:$8 sps:$4 sm:$0xff]   ;;  %v2749_v40 = vld [vmem:[%s4082_s1 + $0xa4] ss:$8 sps:$4 sm:$0xff]  }
   0xe   :  { %v2745_v37 = vld [vmem:[%s4082_s1 + $0x494] ss:$8 sps:$4 sm:$0xff]   ;;  %v2748_v39 = vld [vmem:[%s4082_s1 + $0x490] ss:$8 sps:$4 sm:$0xff]   ;;  %v2751_v41 = vld [vmem:[%s4082_s1 + $0x4a4] ss:$8 sps:$4 sm:$0xff]  }
   0xf   :  { %1752 = vmatpush1.bf16.msra.mxu1 %v2711_v14  ;;  %v2753_v42 = vld [vmem:[%s4082_s1 + $0xa0] ss:$8 sps:$4 sm:$0xff]   ;;  %v2755_v44 = vld [vmem:[%s4082_s1 + $0xb4] ss:$8 sps:$4 sm:$0xff]   ;;  %v2759_v46 = vld [vmem:[%s4082_s1 + $0xb0] ss:$8 sps:$4 sm:$0xff]  }
  0x10   :  { %1964 = vmatpush1.bf16.msra.mxu0 %v2712_v15  ;;  %1753 = vmatprep.subr.bf16.mxu1 %v2713_v16  ;;  %v2754_v43 = vld [vmem:[%s4082_s1 + $0x4a0] ss:$8 sps:$4 sm:$0xff]   ;;  %v2757_v45 = vld [vmem:[%s4082_s1 + $0x4b4] ss:$8 sps:$4 sm:$0xff]   ;;  %v2760_v47 = vld [vmem:[%s4082_s1 + $0x4b0] ss:$8 sps:$4 sm:$0xff]  }
  0x11   :  { %1965 = vmatprep.subr.bf16.mxu0 %v2715_v17  ;;  %v17_v48 = vld [vmem:[%s4083_s0] sm:$0xff]  ;;  %v2767_v58 = vld [vmem:[%s4082_s1 + $0xd4] ss:$8 sps:$4 sm:$0xff]   ;;  %v2771_v60 = vld [vmem:[%s4082_s1 + $0xd0] ss:$8 sps:$4 sm:$0xff]  }
  0x12   :  { %v25_v49 = vld [vmem:[%s4083_s0 + $0x40] sm:$0xff]  ;;  %v2769_v59 = vld [vmem:[%s4082_s1 + $0x4d4] ss:$8 sps:$4 sm:$0xff]   ;;  %v2772_v61 = vld [vmem:[%s4082_s1 + $0x4d0] ss:$8 sps:$4 sm:$0xff]  }
  0x13   :  { %1754 = vmatpush1.bf16.msra.mxu1 %v2717_v18  ;;  %v2761_v50 = vld [vmem:[%s4082_s1 + $0xc4] ss:$8 sps:$4 sm:$0xff]   ;;  %v2338_v52 = vcombine.high %v17_v48, %v25_v49  ;;  %v2765_v56 = vld [vmem:[%s4082_s1 + $0xc0] ss:$8 sps:$4 sm:$0xff]   ;;  %v2779_v2 = vld [vmem:[%s4082_s1 + $0xf4] ss:$8 sps:$4 sm:$0xff]   ;;  %v2337_v8 = vcombine.low %v17_v48, %v25_v49 }
  0x14   :  { %1966 = vmatpush1.bf16.msra.mxu0 %v2718_v19  ;;  %1755 = vmatprep.subr.bf16.mxu1 %v2719_v20  ;;  %v2763_v51 = vld [vmem:[%s4082_s1 + $0x4c4] ss:$8 sps:$4 sm:$0xff]   ;;  %v2766_v57 = vld [vmem:[%s4082_s1 + $0x4c0] ss:$8 sps:$4 sm:$0xff]   ;;  %v2781_v3 = vld [vmem:[%s4082_s1 + $0x4f4] ss:$8 sps:$4 sm:$0xff]  }
  0x15   :  { %1967 = vmatprep.subr.bf16.mxu0 %v2721_v21  ;;  %v21_v53 = vld [vmem:[%s4083_s0 + $0x20] sm:$0xff]  ;;  %1777 = vmatprep.mubr.bf16.mxu1 %v2338_v52  ;;  %v2783_v4 = vld [vmem:[%s4082_s1 + $0xf0] ss:$8 sps:$4 sm:$0xff]   ;;  %v2793_v12 = vld [vmem:[%s4082_s1 + $0x114] ss:$8 sps:$4 sm:$0xff]  }
  0x16   :  { %v29_v54 = vld [vmem:[%s4083_s0 + $0x60] sm:$0xff]  ;;  %v2784_v5 = vld [vmem:[%s4082_s1 + $0x4f0] ss:$8 sps:$4 sm:$0xff]   ;;  %v2796_v13 = vld [vmem:[%s4082_s1 + $0x514] ss:$8 sps:$4 sm:$0xff]  }
  0x17   :  { %1756 = vmatpush1.bf16.msra.mxu1 %v2723_v22  ;;  %v2346_v55 = vcombine.high %v21_v53, %v29_v54  ;;  %v2773_v62 = vld [vmem:[%s4082_s1 + $0xe4] ss:$8 sps:$4 sm:$0xff]   ;;  %v2777_v0 = vld [vmem:[%s4082_s1 + $0xe0] ss:$8 sps:$4 sm:$0xff]   ;;  %v2345_v10 = vcombine.low %v21_v53, %v29_v54  ;;  %v2791_v14 = vld [vmem:[%s4082_s1 + $0x110] ss:$8 sps:$4 sm:$0xff]  }
  0x18   :  { %1968 = vmatpush1.bf16.msra.mxu0 %v2724_v23  ;;  %1757 = vmatprep.subr.bf16.mxu1 %v2725_v24  ;;  %v2775_v63 = vld [vmem:[%s4082_s1 + $0x4e4] ss:$8 sps:$4 sm:$0xff]   ;;  %v2778_v1 = vld [vmem:[%s4082_s1 + $0x4e0] ss:$8 sps:$4 sm:$0xff]   ;;  %v2794_v15 = vld [vmem:[%s4082_s1 + $0x510] ss:$8 sps:$4 sm:$0xff]  }
  0x19   :  { %1969 = vmatprep.subr.bf16.mxu0 %v2727_v25  ;;  %1989 = vmatprep.mubr.bf16.mxu0 %v2346_v55  ;;  %v2787_v6 = vld [vmem:[%s4082_s1 + $0x104] ss:$8 sps:$4 sm:$0xff]   ;;  %v2785_v9 = vld [vmem:[%s4082_s1 + $0x100] ss:$8 sps:$4 sm:$0xff]   ;;  %v2805_v20 = vld [vmem:[%s4082_s1 + $0x134] ss:$8 sps:$4 sm:$0xff]  }
  0x1a   :  { %v2790_v7 = vld [vmem:[%s4082_s1 + $0x504] ss:$8 sps:$4 sm:$0xff]   ;;  %v2788_v11 = vld [vmem:[%s4082_s1 + $0x500] ss:$8 sps:$4 sm:$0xff]   ;;  %v2808_v21 = vld [vmem:[%s4082_s1 + $0x534] ss:$8 sps:$4 sm:$0xff]  }
  0x1b   :  { %1758 = vmatpush1.bf16.msra.mxu1 %v2729_v26  ;;  %v2799_v16 = vld [vmem:[%s4082_s1 + $0x124] ss:$8 sps:$4 sm:$0xff]   ;;  %v2797_v18 = vld [vmem:[%s4082_s1 + $0x120] ss:$8 sps:$4 sm:$0xff]   ;;  %v2803_v22 = vld [vmem:[%s4082_s1 + $0x130] ss:$8 sps:$4 sm:$0xff]  }
  0x1c   :  { %1970 = vmatpush1.bf16.msra.mxu0 %v2730_v27  ;;  %1759 = vmatprep.subr.bf16.mxu1 %v2731_v28  ;;  %v2802_v17 = vld [vmem:[%s4082_s1 + $0x524] ss:$8 sps:$4 sm:$0xff]   ;;  %v2800_v19 = vld [vmem:[%s4082_s1 + $0x520] ss:$8 sps:$4 sm:$0xff]   ;;  %v2806_v23 = vld [vmem:[%s4082_s1 + $0x530] ss:$8 sps:$4 sm:$0xff]  }
  0x1d   :  { %1971 = vmatprep.subr.bf16.mxu0 %v2733_v29  ;;  %v2811_v24 = vld [vmem:[%s4082_s1 + $0x144] ss:$8 sps:$4 sm:$0xff]   ;;  %v2809_v26 = vld [vmem:[%s4082_s1 + $0x140] ss:$8 sps:$4 sm:$0xff]   ;;  %v2817_v28 = vld [vmem:[%s4082_s1 + $0x154] ss:$8 sps:$4 sm:$0xff]  }
  0x1e   :  { %v2814_v25 = vld [vmem:[%s4082_s1 + $0x544] ss:$8 sps:$4 sm:$0xff]   ;;  %v2812_v27 = vld [vmem:[%s4082_s1 + $0x540] ss:$8 sps:$4 sm:$0xff]   ;;  %v2820_v29 = vld [vmem:[%s4082_s1 + $0x554] ss:$8 sps:$4 sm:$0xff]  }
  0x1f   :  { %1760 = vmatpush1.bf16.msra.mxu1 %v2735_v30  ;;  %v33_v30 = vld [vmem:[%s4083_s0 + $0x80] sm:$0xff]  ;;  %v3423_v49 = vld [vmem:[%s4083_s0 + $0x28] sm:$0xff]  ;;  %v2830_v52 = vld [vmem:[%s4082_s1 + $0x570] ss:$8 sps:$4 sm:$0xff]  }
  0x20   :  { %1972 = vmatpush1.bf16.msra.mxu0 %v2736_v31  ;;  %1761 = vmatprep.subr.bf16.mxu1 %v2737_v32  ;;  %v41_v31 = vld [vmem:[%s4083_s0 + $0xc0] sm:$0xff]  ;;  %v2815_v32 = vld [vmem:[%s4082_s1 + $0x150] ss:$8 sps:$4 sm:$0xff]  }
  0x21   :  { %1973 = vmatprep.subr.bf16.mxu0 %v2739_v33  ;;  %v2354_v33 = vcombine.high %v33_v30, %v41_v31  ;;  %v2835_v54 = vld [vmem:[%s4082_s1 + $0x184] ss:$8 sps:$4 sm:$0xff]  }
  0x22   :  { %v2838_v55 = vld [vmem:[%s4082_s1 + $0x584] ss:$8 sps:$4 sm:$0xff]  }
  0x23   :  { %1762 = vmatpush1.bf16.msra.mxu1 %v2741_v34  ;;  %v2818_v34 = vld [vmem:[%s4082_s1 + $0x550] ss:$8 sps:$4 sm:$0xff]  }
  0x24   :  { %1974 = vmatpush1.bf16.msra.mxu0 %v2742_v35  ;;  %1763 = vmatprep.subr.bf16.mxu1 %v2743_v36  ;;  %v37_v35 = vld [vmem:[%s4083_s0 + $0xa0] sm:$0xff] }
  0x25   :  { %1975 = vmatprep.subr.bf16.mxu0 %v2745_v37  ;;  %v45_v36 = vld [vmem:[%s4083_s0 + $0xe0] sm:$0xff]  ;;  %v2353_v37 = vcombine.low %v33_v30, %v41_v31  ;;  %v2889_v30 = vld [vmem:[%s4082_s1 + $0x214] ss:$8 sps:$4 sm:$0xff]  }
  0x26   :  { %v2892_v31 = vld [vmem:[%s4082_s1 + $0x614] ss:$8 sps:$4 sm:$0xff]  }
  0x27   :  { %1764 = vmatpush1.bf16.msra.mxu1 %v2747_v38  ;;  %v2823_v38 = vld [vmem:[%s4082_s1 + $0x164] ss:$8 sps:$4 sm:$0xff]  }
  0x28   :  { %1976 = vmatpush1.bf16.msra.mxu0 %v2748_v39  ;;  %1765 = vmatprep.subr.bf16.mxu1 %v2749_v40  ;;  %v2362_v39 = vcombine.high %v37_v35, %v45_v36  ;;  %v2361_v40 = vcombine.low %v37_v35, %v45_v36  ;;  %v2887_v36 = vld [vmem:[%s4082_s1 + $0x210] ss:$8 sps:$4 sm:$0xff]  }
  0x29   :  { %1977 = vmatprep.subr.bf16.mxu0 %v2751_v41  ;;  %v2826_v41 = vld [vmem:[%s4082_s1 + $0x564] ss:$8 sps:$4 sm:$0xff]  }
  0x2b   :  { %1766 = vmatpush1.bf16.msra.mxu1 %v2753_v42  ;;  %v2821_v42 = vld [vmem:[%s4082_s1 + $0x160] ss:$8 sps:$4 sm:$0xff]  }
  0x2c   :  { %1978 = vmatpush1.bf16.msra.mxu0 %v2754_v43  ;;  %1767 = vmatprep.subr.bf16.mxu1 %v2755_v44  ;;  %v2824_v43 = vld [vmem:[%s4082_s1 + $0x560] ss:$8 sps:$4 sm:$0xff]  }
  0x2d   :  { %1979 = vmatprep.subr.bf16.mxu0 %v2757_v45  ;;  %v3405_v44 = vld [vmem:[%s4083_s0 + $0x8] sm:$0xff] }
  0x2e   :  { %v3410_v45 = vld [vmem:[%s4083_s0 + $0x48] sm:$0xff] }
  0x2f   :  { %1768 = vmatpush1.bf16.msra.mxu1 %v2759_v46  ;;  %v2829_v46 = vld [vmem:[%s4082_s1 + $0x174] ss:$8 sps:$4 sm:$0xff]   ;;  %v2340_v48 = vcombine.high %v3405_v44, %v3410_v45 }
  0x30   :  { %1980 = vmatpush1.bf16.msra.mxu0 %v2760_v47  ;;  %1769 = vmatprep.subr.bf16.mxu1 %v2761_v50  ;;  %v2832_v47 = vld [vmem:[%s4082_s1 + $0x574] ss:$8 sps:$4 sm:$0xff]   ;;  %v3428_v50 = vld [vmem:[%s4083_s0 + $0x68] sm:$0xff] }
  0x31   :  { %1981 = vmatprep.subr.bf16.mxu0 %v2763_v51  ;;  %v2827_v51 = vld [vmem:[%s4082_s1 + $0x170] ss:$8 sps:$4 sm:$0xff]   ;;  %v2348_v53 = vcombine.high %v3423_v49, %v3428_v50 }
  0x33   :  { %1770 = vmatpush1.bf16.msra.mxu1 %v2765_v56  ;;  %v2833_v56 = vld [vmem:[%s4082_s1 + $0x180] ss:$8 sps:$4 sm:$0xff]  }
  0x34   :  { %1982 = vmatpush1.bf16.msra.mxu0 %v2766_v57  ;;  %1771 = vmatprep.subr.bf16.mxu1 %v2767_v58  ;;  %v2836_v57 = vld [vmem:[%s4082_s1 + $0x580] ss:$8 sps:$4 sm:$0xff]   ;;  %v2841_v58 = vld [vmem:[%s4082_s1 + $0x194] ss:$8 sps:$4 sm:$0xff]  }
  0x35   :  { %1983 = vmatprep.subr.bf16.mxu0 %v2769_v59  ;;  %v2844_v59 = vld [vmem:[%s4082_s1 + $0x594] ss:$8 sps:$4 sm:$0xff]  }
  0x37   :  { %1772 = vmatpush1.bf16.msra.mxu1 %v2771_v60  ;;  %v2839_v60 = vld [vmem:[%s4082_s1 + $0x190] ss:$8 sps:$4 sm:$0xff]  }
  0x38   :  { %1984 = vmatpush1.bf16.msra.mxu0 %v2772_v61  ;;  %1773 = vmatprep.subr.bf16.mxu1 %v2773_v62  ;;  %v2842_v61 = vld [vmem:[%s4082_s1 + $0x590] ss:$8 sps:$4 sm:$0xff]   ;;  %v2847_v62 = vld [vmem:[%s4082_s1 + $0x1a4] ss:$8 sps:$4 sm:$0xff]  }
  0x39   :  { %1985 = vmatprep.subr.bf16.mxu0 %v2775_v63  ;;  %v2850_v63 = vld [vmem:[%s4082_s1 + $0x5a4] ss:$8 sps:$4 sm:$0xff]  }
  0x3b   :  { %1774 = vmatpush1.bf16.msra.mxu1 %v2777_v0  ;;  %v2845_v0 = vld [vmem:[%s4082_s1 + $0x1a0] ss:$8 sps:$4 sm:$0xff]  }
  0x3c   :  { %1986 = vmatpush1.bf16.msra.mxu0 %v2778_v1  ;;  %1775 = vmatprep.subr.bf16.mxu1 %v2779_v2  ;;  %v2848_v1 = vld [vmem:[%s4082_s1 + $0x5a0] ss:$8 sps:$4 sm:$0xff]   ;;  %v2853_v2 = vld [vmem:[%s4082_s1 + $0x1b4] ss:$8 sps:$4 sm:$0xff]  }
  0x3d   :  { %1987 = vmatprep.subr.bf16.mxu0 %v2781_v3  ;;  %v2856_v3 = vld [vmem:[%s4082_s1 + $0x5b4] ss:$8 sps:$4 sm:$0xff]  }
  0x3f   :  { %1776 = vmatpush1.bf16.msra.mxu1 %v2783_v4  ;;  %v2851_v4 = vld [vmem:[%s4082_s1 + $0x1b0] ss:$8 sps:$4 sm:$0xff]  }
  0x40   :  { %1988 = vmatpush1.bf16.msra.mxu0 %v2784_v5  ;;  %1798 = vmatprep.subr.bf16.mxu1 %v2787_v6  ;;  %v2854_v5 = vld [vmem:[%s4082_s1 + $0x5b0] ss:$8 sps:$4 sm:$0xff]   ;;  %v2859_v6 = vld [vmem:[%s4082_s1 + $0x1c4] ss:$8 sps:$4 sm:$0xff]  }
  0x41   :  { %2010 = vmatprep.subr.bf16.mxu0 %v2790_v7  ;;  %v2862_v7 = vld [vmem:[%s4082_s1 + $0x5c4] ss:$8 sps:$4 sm:$0xff]  }
  0x42   :  { %1778 = vmatmul.mubr.bf16.vlgmr.msra.gmra.mrb[0].mxu1 %v2337_v8  ;;  %v2857_v8 = vld [vmem:[%s4082_s1 + $0x1c0] ss:$8 sps:$4 sm:$0xff]  }
  0x43   :  { %1990 = vmatmul.mubr.bf16.vlgmr.msra.gmra.mrb[0].mxu0 %v2345_v10  ;;  %1799 = vmatpush1.bf16.msra.mxu1 %v2785_v9  ;;  %v2860_v9 = vld [vmem:[%s4082_s1 + $0x5c0] ss:$8 sps:$4 sm:$0xff]   ;;  %v2865_v10 = vld [vmem:[%s4082_s1 + $0x1d4] ss:$8 sps:$4 sm:$0xff]  }
  0x44   :  { %2011 = vmatpush1.bf16.msra.mxu0 %v2788_v11  ;;  %1800 = vmatprep.subr.bf16.mxu1 %v2793_v12  ;;  %v2868_v11 = vld [vmem:[%s4082_s1 + $0x5d4] ss:$8 sps:$4 sm:$0xff]   ;;  %v2863_v12 = vld [vmem:[%s4082_s1 + $0x1d0] ss:$8 sps:$4 sm:$0xff]  }
  0x45   :  { %2012 = vmatprep.subr.bf16.mxu0 %v2796_v13  ;;  %1787 = vmatprep.mubr.bf16.mxu1 %v2354_v33  ;;  %v2866_v13 = vld [vmem:[%s4082_s1 + $0x5d0] ss:$8 sps:$4 sm:$0xff]   ;;  %v46_v33 = vld [vmem:[%s4083_s0 + $0xe8] sm:$0xff] }
  0x46   :  { %1999 = vmatprep.mubr.bf16.mxu0 %v2362_v39  ;;  %v2898_v39 = vld [vmem:[%s4082_s1 + $0x624] ss:$8 sps:$4 sm:$0xff]  }
  0x47   :  { %1801 = vmatpush1.bf16.msra.mxu1 %v2791_v14  ;;  %v2871_v14 = vld [vmem:[%s4082_s1 + $0x1e4] ss:$8 sps:$4 sm:$0xff]  }
  0x48   :  { %2013 = vmatpush1.bf16.msra.mxu0 %v2794_v15  ;;  %1802 = vmatprep.subr.bf16.mxu1 %v2799_v16  ;;  %v2874_v15 = vld [vmem:[%s4082_s1 + $0x5e4] ss:$8 sps:$4 sm:$0xff]   ;;  %v2869_v16 = vld [vmem:[%s4082_s1 + $0x1e0] ss:$8 sps:$4 sm:$0xff]  }
  0x49   :  { %2014 = vmatprep.subr.bf16.mxu0 %v2802_v17  ;;  %v2872_v17 = vld [vmem:[%s4082_s1 + $0x5e0] ss:$8 sps:$4 sm:$0xff]  }
  0x4a   :  { %1788 = vmatmul.mubr.bf16.gmra.mrb[4].mxu1 %v2353_v37  ;;  %v2890_v37 = vld [vmem:[%s4082_s1 + $0x610] ss:$8 sps:$4 sm:$0xff]  }
  0x4b   :  { %1803 = vmatpush1.bf16.msra.mxu1 %v2797_v18  ;;  %2000 = vmatmul.mubr.bf16.gmra.mrb[4].mxu0 %v2361_v40  ;;  %v2877_v18 = vld [vmem:[%s4082_s1 + $0x1f4] ss:$8 sps:$4 sm:$0xff]   ;;  %v2893_v40 = vld [vmem:[%s4082_s1 + $0x220] ss:$8 sps:$4 sm:$0xff]  }
  0x4c   :  { %2015 = vmatpush1.bf16.msra.mxu0 %v2800_v19  ;;  %1804 = vmatprep.subr.bf16.mxu1 %v2805_v20  ;;  %v2880_v19 = vld [vmem:[%s4082_s1 + $0x5f4] ss:$8 sps:$4 sm:$0xff]   ;;  %v2875_v20 = vld [vmem:[%s4082_s1 + $0x1f0] ss:$8 sps:$4 sm:$0xff]  }
  0x4d   :  { %2016 = vmatprep.subr.bf16.mxu0 %v2808_v21  ;;  %1830 = vmatprep.mubr.bf16.mxu1 %v2340_v48  ;;  %v2878_v21 = vld [vmem:[%s4082_s1 + $0x5f0] ss:$8 sps:$4 sm:$0xff]   ;;  %v2901_v48 = vld [vmem:[%s4082_s1 + $0x234] ss:$8 sps:$4 sm:$0xff]  }
  0x4e   :  { %2042 = vmatprep.mubr.bf16.mxu0 %v2348_v53  ;;  %v2902_v53 = vld [vmem:[%s4082_s1 + $0x630] ss:$8 sps:$4 sm:$0xff]  }
  0x4f   :  { %1805 = vmatpush1.bf16.msra.mxu1 %v2803_v22  ;;  %v2883_v22 = vld [vmem:[%s4082_s1 + $0x204] ss:$8 sps:$4 sm:$0xff]  }
  0x50   :  { %2017 = vmatpush1.bf16.msra.mxu0 %v2806_v23  ;;  %1806 = vmatprep.subr.bf16.mxu1 %v2811_v24  ;;  %v2886_v23 = vld [vmem:[%s4082_s1 + $0x604] ss:$8 sps:$4 sm:$0xff]   ;;  %v2881_v24 = vld [vmem:[%s4082_s1 + $0x200] ss:$8 sps:$4 sm:$0xff]  }
  0x51   :  { %2018 = vmatprep.subr.bf16.mxu0 %v2814_v25  ;;  %v2884_v25 = vld [vmem:[%s4082_s1 + $0x600] ss:$8 sps:$4 sm:$0xff]  }
  0x53   :  { %1807 = vmatpush1.bf16.msra.mxu1 %v2809_v26  ;;  %v34_v26 = vld [vmem:[%s4083_s0 + $0x88] sm:$0xff] }
  0x54   :  { %2019 = vmatpush1.bf16.msra.mxu0 %v2812_v27  ;;  %1808 = vmatprep.subr.bf16.mxu1 %v2817_v28  ;;  %v2339_v27 = vcombine.low %v3405_v44, %v3410_v45  ;;  %v2347_v28 = vcombine.low %v3423_v49, %v3428_v50  ;;  %v3594_v45 = vld [vmem:[%s4083_s0 + $0x50] sm:$0xff] }
  0x55   :  { %2020 = vmatprep.subr.bf16.mxu0 %v2820_v29  ;;  %v42_v29 = vld [vmem:[%s4083_s0 + $0xc8] sm:$0xff]  ;;  %v2904_v49 = vld [vmem:[%s4082_s1 + $0x634] ss:$8 sps:$4 sm:$0xff]  }
  0x57   :  { %1809 = vmatpush1.bf16.msra.mxu1 %v2815_v32  ;;  %v38_v32 = vld [vmem:[%s4083_s0 + $0xa8] sm:$0xff] }
  0x58   :  { %2021 = vmatpush1.bf16.msra.mxu0 %v2818_v34  ;;  %1810 = vmatprep.subr.bf16.mxu1 %v2823_v38  ;;  %v2356_v34 = vcombine.high %v34_v26, %v42_v29  ;;  %v2364_v35 = vcombine.high %v38_v32, %v46_v33  ;;  %v2895_v38 = vld [vmem:[%s4082_s1 + $0x224] ss:$8 sps:$4 sm:$0xff]   ;;  %v2363_v44 = vcombine.low %v38_v32, %v46_v33  ;;  %v2965_v32 = vld [vmem:[%s4082_s1 + $0x2e0] ss:$8 sps:$4 sm:$0xff]  }
  0x59   :  { %2022 = vmatprep.subr.bf16.mxu0 %v2826_v41  ;;  %v2896_v41 = vld [vmem:[%s4082_s1 + $0x620] ss:$8 sps:$4 sm:$0xff]  }
  0x5a   :  { %v2968_v33 = vld [vmem:[%s4082_s1 + $0x6e0] ss:$8 sps:$4 sm:$0xff]  }
  0x5b   :  { %1811 = vmatpush1.bf16.msra.mxu1 %v2821_v42  ;;  %v3589_v42 = vld [vmem:[%s4083_s0 + $0x10] sm:$0xff] }
  0x5c   :  { %2023 = vmatpush1.bf16.msra.mxu0 %v2824_v43  ;;  %1812 = vmatprep.subr.bf16.mxu1 %v2829_v46  ;;  %v2355_v43 = vcombine.low %v34_v26, %v42_v29  ;;  %v3599_v46 = vld [vmem:[%s4083_s0 + $0x30] sm:$0xff]  ;;  %v2342_v50 = vcombine.high %v3589_v42, %v3594_v45 }
  0x5d   :  { %2024 = vmatprep.subr.bf16.mxu0 %v2832_v47  ;;  %v3604_v47 = vld [vmem:[%s4083_s0 + $0x70] sm:$0xff] }
  0x5e   :  { %v2961_v26 = vld [vmem:[%s4082_s1 + $0x2d4] ss:$8 sps:$4 sm:$0xff]   ;;  %v2962_v29 = vld [vmem:[%s4082_s1 + $0x6d0] ss:$8 sps:$4 sm:$0xff]  }
  0x5f   :  { %1813 = vmatpush1.bf16.msra.mxu1 %v2827_v51  ;;  %v2350_v51 = vcombine.high %v3599_v46, %v3604_v47 }
  0x60   :  { %2025 = vmatpush1.bf16.msra.mxu0 %v2830_v52  ;;  %1814 = vmatprep.subr.bf16.mxu1 %v2835_v54  ;;  %v2899_v52 = vld [vmem:[%s4082_s1 + $0x230] ss:$8 sps:$4 sm:$0xff]   ;;  %v2907_v54 = vld [vmem:[%s4082_s1 + $0x244] ss:$8 sps:$4 sm:$0xff]  }
  0x61   :  { %2026 = vmatprep.subr.bf16.mxu0 %v2838_v55  ;;  %v2910_v55 = vld [vmem:[%s4082_s1 + $0x644] ss:$8 sps:$4 sm:$0xff]  }
  0x63   :  { %1815 = vmatpush1.bf16.msra.mxu1 %v2833_v56  ;;  %v2905_v56 = vld [vmem:[%s4082_s1 + $0x240] ss:$8 sps:$4 sm:$0xff]  }
  0x64   :  { %2027 = vmatpush1.bf16.msra.mxu0 %v2836_v57  ;;  %1816 = vmatprep.subr.bf16.mxu1 %v2841_v58  ;;  %v2908_v57 = vld [vmem:[%s4082_s1 + $0x640] ss:$8 sps:$4 sm:$0xff]   ;;  %v2913_v58 = vld [vmem:[%s4082_s1 + $0x254] ss:$8 sps:$4 sm:$0xff]  }
  0x65   :  { %2028 = vmatprep.subr.bf16.mxu0 %v2844_v59  ;;  %v2916_v59 = vld [vmem:[%s4082_s1 + $0x654] ss:$8 sps:$4 sm:$0xff]  }
  0x67   :  { %1817 = vmatpush1.bf16.msra.mxu1 %v2839_v60  ;;  %v2911_v60 = vld [vmem:[%s4082_s1 + $0x250] ss:$8 sps:$4 sm:$0xff]  }
  0x68   :  { %2029 = vmatpush1.bf16.msra.mxu0 %v2842_v61  ;;  %1818 = vmatprep.subr.bf16.mxu1 %v2847_v62  ;;  %v2914_v61 = vld [vmem:[%s4082_s1 + $0x650] ss:$8 sps:$4 sm:$0xff]   ;;  %v2919_v62 = vld [vmem:[%s4082_s1 + $0x264] ss:$8 sps:$4 sm:$0xff]  }
  0x69   :  { %2030 = vmatprep.subr.bf16.mxu0 %v2850_v63  ;;  %v2922_v63 = vld [vmem:[%s4082_s1 + $0x664] ss:$8 sps:$4 sm:$0xff]  }
  0x6b   :  { %1819 = vmatpush1.bf16.msra.mxu1 %v2845_v0  ;;  %v2917_v0 = vld [vmem:[%s4082_s1 + $0x260] ss:$8 sps:$4 sm:$0xff]  }
  0x6c   :  { %2031 = vmatpush1.bf16.msra.mxu0 %v2848_v1  ;;  %1820 = vmatprep.subr.bf16.mxu1 %v2853_v2  ;;  %v2920_v1 = vld [vmem:[%s4082_s1 + $0x660] ss:$8 sps:$4 sm:$0xff]   ;;  %v2925_v2 = vld [vmem:[%s4082_s1 + $0x274] ss:$8 sps:$4 sm:$0xff]  }
  0x6d   :  { %2032 = vmatprep.subr.bf16.mxu0 %v2856_v3  ;;  %v2928_v3 = vld [vmem:[%s4082_s1 + $0x674] ss:$8 sps:$4 sm:$0xff]  }
  0x6f   :  { %1821 = vmatpush1.bf16.msra.mxu1 %v2851_v4  ;;  %v2923_v4 = vld [vmem:[%s4082_s1 + $0x270] ss:$8 sps:$4 sm:$0xff]  }
  0x70   :  { %2033 = vmatpush1.bf16.msra.mxu0 %v2854_v5  ;;  %1822 = vmatprep.subr.bf16.mxu1 %v2859_v6  ;;  %v2926_v5 = vld [vmem:[%s4082_s1 + $0x670] ss:$8 sps:$4 sm:$0xff]   ;;  %v2931_v6 = vld [vmem:[%s4082_s1 + $0x284] ss:$8 sps:$4 sm:$0xff]  }
  0x71   :  { %2034 = vmatprep.subr.bf16.mxu0 %v2862_v7  ;;  %v2934_v7 = vld [vmem:[%s4082_s1 + $0x684] ss:$8 sps:$4 sm:$0xff]  }
  0x73   :  { %1823 = vmatpush1.bf16.msra.mxu1 %v2857_v8  ;;  %v2929_v8 = vld [vmem:[%s4082_s1 + $0x280] ss:$8 sps:$4 sm:$0xff]  }
  0x74   :  { %2035 = vmatpush1.bf16.msra.mxu0 %v2860_v9  ;;  %1824 = vmatprep.subr.bf16.mxu1 %v2865_v10  ;;  %v2932_v9 = vld [vmem:[%s4082_s1 + $0x680] ss:$8 sps:$4 sm:$0xff]   ;;  %v2937_v10 = vld [vmem:[%s4082_s1 + $0x294] ss:$8 sps:$4 sm:$0xff]  }
  0x75   :  { %2036 = vmatprep.subr.bf16.mxu0 %v2868_v11  ;;  %v2940_v11 = vld [vmem:[%s4082_s1 + $0x694] ss:$8 sps:$4 sm:$0xff]  }
  0x77   :  { %1825 = vmatpush1.bf16.msra.mxu1 %v2863_v12  ;;  %v2935_v12 = vld [vmem:[%s4082_s1 + $0x290] ss:$8 sps:$4 sm:$0xff]  }
  0x78   :  { %2037 = vmatpush1.bf16.msra.mxu0 %v2866_v13  ;;  %1826 = vmatprep.subr.bf16.mxu1 %v2871_v14  ;;  %v2938_v13 = vld [vmem:[%s4082_s1 + $0x690] ss:$8 sps:$4 sm:$0xff]   ;;  %v2943_v14 = vld [vmem:[%s4082_s1 + $0x2a4] ss:$8 sps:$4 sm:$0xff]  }
  0x79   :  { %2038 = vmatprep.subr.bf16.mxu0 %v2874_v15  ;;  %v2946_v15 = vld [vmem:[%s4082_s1 + $0x6a4] ss:$8 sps:$4 sm:$0xff]  }
  0x7b   :  { %1827 = vmatpush1.bf16.msra.mxu1 %v2869_v16  ;;  %v2941_v16 = vld [vmem:[%s4082_s1 + $0x2a0] ss:$8 sps:$4 sm:$0xff]  }
  0x7c   :  { %2039 = vmatpush1.bf16.msra.mxu0 %v2872_v17  ;;  %1828 = vmatprep.subr.bf16.mxu1 %v2877_v18  ;;  %v2944_v17 = vld [vmem:[%s4082_s1 + $0x6a0] ss:$8 sps:$4 sm:$0xff]   ;;  %v2949_v18 = vld [vmem:[%s4082_s1 + $0x2b4] ss:$8 sps:$4 sm:$0xff]  }
  0x7d   :  { %2040 = vmatprep.subr.bf16.mxu0 %v2880_v19  ;;  %v2952_v19 = vld [vmem:[%s4082_s1 + $0x6b4] ss:$8 sps:$4 sm:$0xff]  }
  0x7f   :  { %1829 = vmatpush1.bf16.msra.mxu1 %v2875_v20  ;;  %v2947_v20 = vld [vmem:[%s4082_s1 + $0x2b0] ss:$8 sps:$4 sm:$0xff]  }
  0x80   :  { %2041 = vmatpush1.bf16.msra.mxu0 %v2878_v21  ;;  %1851 = vmatprep.subr.bf16.mxu1 %v2883_v22  ;;  %v2950_v21 = vld [vmem:[%s4082_s1 + $0x6b0] ss:$8 sps:$4 sm:$0xff]   ;;  %v2955_v22 = vld [vmem:[%s4082_s1 + $0x2c4] ss:$8 sps:$4 sm:$0xff]  }
  0x81   :  { %2063 = vmatprep.subr.bf16.mxu0 %v2886_v23  ;;  %v2958_v23 = vld [vmem:[%s4082_s1 + $0x6c4] ss:$8 sps:$4 sm:$0xff]  }
  0x82   :  { %1831 = vmatmul.mubr.bf16.vlgmr.msra.gmra.mrb[0].mxu1 %v2339_v27  ;;  %v2964_v27 = vld [vmem:[%s4082_s1 + $0x6d4] ss:$8 sps:$4 sm:$0xff]  }
  0x83   :  { %2043 = vmatmul.mubr.bf16.vlgmr.msra.gmra.mrb[0].mxu0 %v2347_v28  ;;  %1852 = vmatpush1.bf16.msra.mxu1 %v2881_v24  ;;  %v2953_v24 = vld [vmem:[%s4082_s1 + $0x2c0] ss:$8 sps:$4 sm:$0xff]   ;;  %v2959_v28 = vld [vmem:[%s4082_s1 + $0x2d0] ss:$8 sps:$4 sm:$0xff]  }
  0x84   :  { %2064 = vmatpush1.bf16.msra.mxu0 %v2884_v25  ;;  %1853 = vmatprep.subr.bf16.mxu1 %v2889_v30  ;;  %v2956_v25 = vld [vmem:[%s4082_s1 + $0x6c0] ss:$8 sps:$4 sm:$0xff]   ;;  %v2967_v30 = vld [vmem:[%s4082_s1 + $0x2e4] ss:$8 sps:$4 sm:$0xff]  }
  0x85   :  { %2065 = vmatprep.subr.bf16.mxu0 %v2892_v31  ;;  %1840 = vmatprep.mubr.bf16.mxu1 %v2356_v34  ;;  %v2970_v31 = vld [vmem:[%s4082_s1 + $0x6e4] ss:$8 sps:$4 sm:$0xff]   ;;  %v2973_v34 = vld [vmem:[%s4082_s1 + $0x2f4] ss:$8 sps:$4 sm:$0xff]  }
  0x86   :  { %2052 = vmatprep.mubr.bf16.mxu0 %v2364_v35  ;;  %v2976_v35 = vld [vmem:[%s4082_s1 + $0x6f4] ss:$8 sps:$4 sm:$0xff]  }
  0x87   :  { %1854 = vmatpush1.bf16.msra.mxu1 %v2887_v36  ;;  %v2971_v36 = vld [vmem:[%s4082_s1 + $0x2f0] ss:$8 sps:$4 sm:$0xff]  }
  0x88   :  { %2066 = vmatpush1.bf16.msra.mxu0 %v2890_v37  ;;  %1855 = vmatprep.subr.bf16.mxu1 %v2895_v38  ;;  %v2974_v37 = vld [vmem:[%s4082_s1 + $0x6f0] ss:$8 sps:$4 sm:$0xff]   ;;  %v2979_v38 = vld [vmem:[%s4082_s1 + $0x304] ss:$8 sps:$4 sm:$0xff]  }
  0x89   :  { %2067 = vmatprep.subr.bf16.mxu0 %v2898_v39  ;;  %v2982_v39 = vld [vmem:[%s4082_s1 + $0x704] ss:$8 sps:$4 sm:$0xff]  }
  0x8a   :  { %1841 = vmatmul.mubr.bf16.gmra.mrb[4].mxu1 %v2355_v43  ;;  %v2349_v43 = vcombine.low %v3599_v46, %v3604_v47  ;;  %v2985_v46 = vld [vmem:[%s4082_s1 + $0x314] ss:$8 sps:$4 sm:$0xff]  }
  0x8b   :  { %2053 = vmatmul.mubr.bf16.gmra.mrb[4].mxu0 %v2363_v44  ;;  %1856 = vmatpush1.bf16.msra.mxu1 %v2893_v40  ;;  %v35_v40 = vld [vmem:[%s4083_s0 + $0x90] sm:$0xff] }
  0x8c   :  { %2068 = vmatpush1.bf16.msra.mxu0 %v2896_v41  ;;  %1857 = vmatprep.subr.bf16.mxu1 %v2901_v48  ;;  %v2341_v41 = vcombine.low %v3589_v42, %v3594_v45  ;;  %v43_v44 = vld [vmem:[%s4083_s0 + $0xd0] sm:$0xff]  ;;  %v2977_v42 = vld [vmem:[%s4082_s1 + $0x300] ss:$8 sps:$4 sm:$0xff]  }
  0x8d   :  { %2069 = vmatprep.subr.bf16.mxu0 %v2904_v49  ;;  %1883 = vmatprep.mubr.bf16.mxu1 %v2342_v50  ;;  %v39_v48 = vld [vmem:[%s4083_s0 + $0xb0] sm:$0xff]  ;;  %v2980_v45 = vld [vmem:[%s4082_s1 + $0x700] ss:$8 sps:$4 sm:$0xff]   ;;  %v2358_v50 = vcombine.high %v35_v40, %v43_v44 }
  0x8e   :  { %2095 = vmatprep.mubr.bf16.mxu0 %v2350_v51  ;;  %v47_v49 = vld [vmem:[%s4083_s0 + $0xf0] sm:$0xff] }
  0x8f   :  { %1858 = vmatpush1.bf16.msra.mxu1 %v2899_v52  ;;  %v2988_v47 = vld [vmem:[%s4082_s1 + $0x714] ss:$8 sps:$4 sm:$0xff]   ;;  %v2366_v51 = vcombine.high %v39_v48, %v47_v49  ;;  %v2983_v52 = vld [vmem:[%s4082_s1 + $0x310] ss:$8 sps:$4 sm:$0xff]  }
  0x90   :  { %2070 = vmatpush1.bf16.msra.mxu0 %v2902_v53  ;;  %1859 = vmatprep.subr.bf16.mxu1 %v2907_v54  ;;  %v2986_v53 = vld [vmem:[%s4082_s1 + $0x710] ss:$8 sps:$4 sm:$0xff]   ;;  %v2991_v54 = vld [vmem:[%s4082_s1 + $0x324] ss:$8 sps:$4 sm:$0xff]  }
  0x91   :  { %2071 = vmatprep.subr.bf16.mxu0 %v2910_v55  ;;  %v2994_v55 = vld [vmem:[%s4082_s1 + $0x724] ss:$8 sps:$4 sm:$0xff]  }
  0x93   :  { %1860 = vmatpush1.bf16.msra.mxu1 %v2905_v56  ;;  %v3815_v56 = vld [vmem:[%s4083_s0 + $0x18] sm:$0xff] }
  0x94   :  { %2072 = vmatpush1.bf16.msra.mxu0 %v2908_v57  ;;  %1861 = vmatprep.subr.bf16.mxu1 %v2913_v58  ;;  %v2357_v57 = vcombine.low %v35_v40, %v43_v44  ;;  %v2365_v58 = vcombine.low %v39_v48, %v47_v49  ;;  %v3049_v40 = vld [vmem:[%s4082_s1 + $0x3c0] ss:$8 sps:$4 sm:$0xff]   ;;  %v3060_v44 = vld [vmem:[%s4082_s1 + $0x7d4] ss:$8 sps:$4 sm:$0xff]   ;;  %v3055_v48 = vld [vmem:[%s4082_s1 + $0x3d0] ss:$8 sps:$4 sm:$0xff]  }
  0x95   :  { %2073 = vmatprep.subr.bf16.mxu0 %v2916_v59  ;;  %v3820_v59 = vld [vmem:[%s4083_s0 + $0x58] sm:$0xff] }
  0x96   :  { %v3058_v49 = vld [vmem:[%s4082_s1 + $0x7d0] ss:$8 sps:$4 sm:$0xff]  }
  0x97   :  { %1862 = vmatpush1.bf16.msra.mxu1 %v2911_v60  ;;  %v3825_v60 = vld [vmem:[%s4083_s0 + $0x38] sm:$0xff] }
  0x98   :  { %2074 = vmatpush1.bf16.msra.mxu0 %v2914_v61  ;;  %1863 = vmatprep.subr.bf16.mxu1 %v2919_v62  ;;  %v3830_v61 = vld [vmem:[%s4083_s0 + $0x78] sm:$0xff]  ;;  %v2989_v62 = vld [vmem:[%s4082_s1 + $0x320] ss:$8 sps:$4 sm:$0xff]  }
  0x99   :  { %2075 = vmatprep.subr.bf16.mxu0 %v2922_v63  ;;  %v2992_v63 = vld [vmem:[%s4082_s1 + $0x720] ss:$8 sps:$4 sm:$0xff]  }
  0x9b   :  { %1864 = vmatpush1.bf16.msra.mxu1 %v2917_v0  ;;  %v2997_v0 = vld [vmem:[%s4082_s1 + $0x334] ss:$8 sps:$4 sm:$0xff]  }
  0x9c   :  { %2076 = vmatpush1.bf16.msra.mxu0 %v2920_v1  ;;  %1865 = vmatprep.subr.bf16.mxu1 %v2925_v2  ;;  %v3000_v1 = vld [vmem:[%s4082_s1 + $0x734] ss:$8 sps:$4 sm:$0xff]   ;;  %v2344_v2 = vcombine.high %v3815_v56, %v3820_v59 }
  0x9d   :  { %2077 = vmatprep.subr.bf16.mxu0 %v2928_v3  ;;  %v2352_v3 = vcombine.high %v3825_v60, %v3830_v61 }
  0x9f   :  { %1866 = vmatpush1.bf16.msra.mxu1 %v2923_v4  ;;  %v2995_v4 = vld [vmem:[%s4082_s1 + $0x330] ss:$8 sps:$4 sm:$0xff]  }
  0xa0   :  { %2078 = vmatpush1.bf16.msra.mxu0 %v2926_v5  ;;  %1867 = vmatprep.subr.bf16.mxu1 %v2931_v6  ;;  %v2998_v5 = vld [vmem:[%s4082_s1 + $0x730] ss:$8 sps:$4 sm:$0xff]   ;;  %v3003_v6 = vld [vmem:[%s4082_s1 + $0x344] ss:$8 sps:$4 sm:$0xff]  }
  0xa1   :  { %2079 = vmatprep.subr.bf16.mxu0 %v2934_v7  ;;  %v3006_v7 = vld [vmem:[%s4082_s1 + $0x744] ss:$8 sps:$4 sm:$0xff]  }
  0xa3   :  { %1868 = vmatpush1.bf16.msra.mxu1 %v2929_v8  ;;  %v3001_v8 = vld [vmem:[%s4082_s1 + $0x340] ss:$8 sps:$4 sm:$0xff]  }
  0xa4   :  { %2080 = vmatpush1.bf16.msra.mxu0 %v2932_v9  ;;  %1869 = vmatprep.subr.bf16.mxu1 %v2937_v10  ;;  %v3004_v9 = vld [vmem:[%s4082_s1 + $0x740] ss:$8 sps:$4 sm:$0xff]   ;;  %v3009_v10 = vld [vmem:[%s4082_s1 + $0x354] ss:$8 sps:$4 sm:$0xff]  }
  0xa5   :  { %2081 = vmatprep.subr.bf16.mxu0 %v2940_v11  ;;  %v3012_v11 = vld [vmem:[%s4082_s1 + $0x754] ss:$8 sps:$4 sm:$0xff]  }
  0xa7   :  { %1870 = vmatpush1.bf16.msra.mxu1 %v2935_v12  ;;  %v3007_v12 = vld [vmem:[%s4082_s1 + $0x350] ss:$8 sps:$4 sm:$0xff]  }
  0xa8   :  { %2082 = vmatpush1.bf16.msra.mxu0 %v2938_v13  ;;  %1871 = vmatprep.subr.bf16.mxu1 %v2943_v14  ;;  %v3010_v13 = vld [vmem:[%s4082_s1 + $0x750] ss:$8 sps:$4 sm:$0xff]   ;;  %v3015_v14 = vld [vmem:[%s4082_s1 + $0x364] ss:$8 sps:$4 sm:$0xff]  }
  0xa9   :  { %2083 = vmatprep.subr.bf16.mxu0 %v2946_v15  ;;  %v3018_v15 = vld [vmem:[%s4082_s1 + $0x764] ss:$8 sps:$4 sm:$0xff]  }
  0xab   :  { %1872 = vmatpush1.bf16.msra.mxu1 %v2941_v16  ;;  %v3013_v16 = vld [vmem:[%s4082_s1 + $0x360] ss:$8 sps:$4 sm:$0xff]  }
  0xac   :  { %2084 = vmatpush1.bf16.msra.mxu0 %v2944_v17  ;;  %1873 = vmatprep.subr.bf16.mxu1 %v2949_v18  ;;  %v3016_v17 = vld [vmem:[%s4082_s1 + $0x760] ss:$8 sps:$4 sm:$0xff]   ;;  %v3021_v18 = vld [vmem:[%s4082_s1 + $0x374] ss:$8 sps:$4 sm:$0xff]  }
  0xad   :  { %2085 = vmatprep.subr.bf16.mxu0 %v2952_v19  ;;  %v3024_v19 = vld [vmem:[%s4082_s1 + $0x774] ss:$8 sps:$4 sm:$0xff]  }
  0xaf   :  { %1874 = vmatpush1.bf16.msra.mxu1 %v2947_v20  ;;  %v3019_v20 = vld [vmem:[%s4082_s1 + $0x370] ss:$8 sps:$4 sm:$0xff]  }
  0xb0   :  { %2086 = vmatpush1.bf16.msra.mxu0 %v2950_v21  ;;  %1875 = vmatprep.subr.bf16.mxu1 %v2955_v22  ;;  %v3022_v21 = vld [vmem:[%s4082_s1 + $0x770] ss:$8 sps:$4 sm:$0xff]   ;;  %v3027_v22 = vld [vmem:[%s4082_s1 + $0x384] ss:$8 sps:$4 sm:$0xff]  }
  0xb1   :  { %2087 = vmatprep.subr.bf16.mxu0 %v2958_v23  ;;  %v3030_v23 = vld [vmem:[%s4082_s1 + $0x784] ss:$8 sps:$4 sm:$0xff]  }
  0xb3   :  { %1876 = vmatpush1.bf16.msra.mxu1 %v2953_v24  ;;  %v3025_v24 = vld [vmem:[%s4082_s1 + $0x380] ss:$8 sps:$4 sm:$0xff]  }
  0xb4   :  { %2088 = vmatpush1.bf16.msra.mxu0 %v2956_v25  ;;  %1877 = vmatprep.subr.bf16.mxu1 %v2961_v26  ;;  %v3028_v25 = vld [vmem:[%s4082_s1 + $0x780] ss:$8 sps:$4 sm:$0xff]   ;;  %v3033_v26 = vld [vmem:[%s4082_s1 + $0x394] ss:$8 sps:$4 sm:$0xff]  }
  0xb5   :  { %2089 = vmatprep.subr.bf16.mxu0 %v2964_v27  ;;  %v3036_v27 = vld [vmem:[%s4082_s1 + $0x794] ss:$8 sps:$4 sm:$0xff]  }
  0xb7   :  { %1878 = vmatpush1.bf16.msra.mxu1 %v2959_v28  ;;  %v3031_v28 = vld [vmem:[%s4082_s1 + $0x390] ss:$8 sps:$4 sm:$0xff]  }
  0xb8   :  { %2090 = vmatpush1.bf16.msra.mxu0 %v2962_v29  ;;  %1879 = vmatprep.subr.bf16.mxu1 %v2967_v30  ;;  %v3034_v29 = vld [vmem:[%s4082_s1 + $0x790] ss:$8 sps:$4 sm:$0xff]   ;;  %v3039_v30 = vld [vmem:[%s4082_s1 + $0x3a4] ss:$8 sps:$4 sm:$0xff]  }
  0xb9   :  { %2091 = vmatprep.subr.bf16.mxu0 %v2970_v31  ;;  %v3042_v31 = vld [vmem:[%s4082_s1 + $0x7a4] ss:$8 sps:$4 sm:$0xff]  }
  0xbb   :  { %1880 = vmatpush1.bf16.msra.mxu1 %v2965_v32  ;;  %v3037_v32 = vld [vmem:[%s4082_s1 + $0x3a0] ss:$8 sps:$4 sm:$0xff]  }
  0xbc   :  { %2092 = vmatpush1.bf16.msra.mxu0 %v2968_v33  ;;  %1881 = vmatprep.subr.bf16.mxu1 %v2973_v34  ;;  %v3040_v33 = vld [vmem:[%s4082_s1 + $0x7a0] ss:$8 sps:$4 sm:$0xff]   ;;  %v3045_v34 = vld [vmem:[%s4082_s1 + $0x3b4] ss:$8 sps:$4 sm:$0xff]  }
  0xbd   :  { %2093 = vmatprep.subr.bf16.mxu0 %v2976_v35  ;;  %v3048_v35 = vld [vmem:[%s4082_s1 + $0x7b4] ss:$8 sps:$4 sm:$0xff]  }
  0xbf   :  { %1882 = vmatpush1.bf16.msra.mxu1 %v2971_v36  ;;  %v3043_v36 = vld [vmem:[%s4082_s1 + $0x3b0] ss:$8 sps:$4 sm:$0xff]  }
  0xc0   :  { %2094 = vmatpush1.bf16.msra.mxu0 %v2974_v37  ;;  %1904 = vmatprep.subr.bf16.mxu1 %v2979_v38  ;;  %v3046_v37 = vld [vmem:[%s4082_s1 + $0x7b0] ss:$8 sps:$4 sm:$0xff]   ;;  %v3051_v38 = vld [vmem:[%s4082_s1 + $0x3c4] ss:$8 sps:$4 sm:$0xff]  }
  0xc1   :  { %2116 = vmatprep.subr.bf16.mxu0 %v2982_v39  ;;  %v3054_v39 = vld [vmem:[%s4082_s1 + $0x7c4] ss:$8 sps:$4 sm:$0xff]  }
  0xc2   :  { %1884 = vmatmul.mubr.bf16.vlgmr.msra.gmra.mrb[0].mxu1 %v2341_v41  ;;  %v3052_v41 = vld [vmem:[%s4082_s1 + $0x7c0] ss:$8 sps:$4 sm:$0xff]  }
  0xc3   :  { %2096 = vmatmul.mubr.bf16.vlgmr.msra.gmra.mrb[0].mxu0 %v2349_v43  ;;  %1905 = vmatpush1.bf16.msra.mxu1 %v2977_v42  ;;  %v3057_v43 = vld [vmem:[%s4082_s1 + $0x3d4] ss:$8 sps:$4 sm:$0xff]   ;;  %v3063_v42 = vld [vmem:[%s4082_s1 + $0x3e4] ss:$8 sps:$4 sm:$0xff]  }
  0xc4   :  { %2117 = vmatpush1.bf16.msra.mxu0 %v2980_v45  ;;  %1906 = vmatprep.subr.bf16.mxu1 %v2985_v46  ;;  %v3066_v45 = vld [vmem:[%s4082_s1 + $0x7e4] ss:$8 sps:$4 sm:$0xff]   ;;  %v3061_v46 = vld [vmem:[%s4082_s1 + $0x3e0] ss:$8 sps:$4 sm:$0xff]  }
  0xc5   :  { %2118 = vmatprep.subr.bf16.mxu0 %v2988_v47  ;;  %1893 = vmatprep.mubr.bf16.mxu1 %v2358_v50  ;;  %v3064_v47 = vld [vmem:[%s4082_s1 + $0x7e0] ss:$8 sps:$4 sm:$0xff]   ;;  %v3069_v50 = vld [vmem:[%s4082_s1 + $0x3f4] ss:$8 sps:$4 sm:$0xff]  }
  0xc6   :  { %2105 = vmatprep.mubr.bf16.mxu0 %v2366_v51  ;;  %v3072_v51 = vld [vmem:[%s4082_s1 + $0x7f4] ss:$8 sps:$4 sm:$0xff]  }
  0xc7   :  { %1907 = vmatpush1.bf16.msra.mxu1 %v2983_v52  ;;  %v3067_v52 = vld [vmem:[%s4082_s1 + $0x3f0] ss:$8 sps:$4 sm:$0xff]  }
  0xc8   :  { %2119 = vmatpush1.bf16.msra.mxu0 %v2986_v53  ;;  %1908 = vmatprep.subr.bf16.mxu1 %v2991_v54  ;;  %v3070_v53 = vld [vmem:[%s4082_s1 + $0x7f0] ss:$8 sps:$4 sm:$0xff]  }
  0xc9   :  { %2120 = vmatprep.subr.bf16.mxu0 %v2994_v55  ;;  %v36_v54 = vld [vmem:[%s4083_s0 + $0x98] sm:$0xff] }
  0xca   :  { %1894 = vmatmul.mubr.bf16.gmra.mrb[4].mxu1 %v2357_v57  ;;  %v44_v55 = vld [vmem:[%s4083_s0 + $0xd8] sm:$0xff] }
  0xcb   :  { %2106 = vmatmul.mubr.bf16.gmra.mrb[4].mxu0 %v2365_v58  ;;  %1909 = vmatpush1.bf16.msra.mxu1 %v2989_v62  ;;  %v40_v57 = vld [vmem:[%s4083_s0 + $0xb8] sm:$0xff]  ;;  %v2343_v62 = vcombine.low %v3815_v56, %v3820_v59 }
  0xcc   :  { %2121 = vmatpush1.bf16.msra.mxu0 %v2992_v63  ;;  %1910 = vmatprep.subr.bf16.mxu1 %v2997_v0  ;;  %v48_v58 = vld [vmem:[%s4083_s0 + $0xf8] sm:$0xff]  ;;  %v2351_v63 = vcombine.low %v3825_v60, %v3830_v61  ;;  %v2360_v0 = vcombine.high %v36_v54, %v44_v55 }
  0xcd   :  { %2122 = vmatprep.subr.bf16.mxu0 %v3000_v1  ;;  %1936 = vmatprep.mubr.bf16.mxu1 %v2344_v2  ;;  %v2368_v1 = vcombine.high %v40_v57, %v48_v58  ;;  %v2359_v2 = vcombine.low %v36_v54, %v44_v55 }
  0xce   :  { %2148 = vmatprep.mubr.bf16.mxu0 %v2352_v3  ;;  %v2367_v3 = vcombine.low %v40_v57, %v48_v58 }
  0xcf   :  { %1911 = vmatpush1.bf16.msra.mxu1 %v2995_v4 }
  0xd0   :  { %2123 = vmatpush1.bf16.msra.mxu0 %v2998_v5  ;;  %1912 = vmatprep.subr.bf16.mxu1 %v3003_v6 }
  0xd1   :  { %2124 = vmatprep.subr.bf16.mxu0 %v3006_v7 }
  0xd3   :  { %1913 = vmatpush1.bf16.msra.mxu1 %v3001_v8 }
  0xd4   :  { %2125 = vmatpush1.bf16.msra.mxu0 %v3004_v9  ;;  %1914 = vmatprep.subr.bf16.mxu1 %v3009_v10 }
  0xd5   :  { %2126 = vmatprep.subr.bf16.mxu0 %v3012_v11 }
  0xd7   :  { %1915 = vmatpush1.bf16.msra.mxu1 %v3007_v12 }
  0xd8   :  { %2127 = vmatpush1.bf16.msra.mxu0 %v3010_v13  ;;  %1916 = vmatprep.subr.bf16.mxu1 %v3015_v14 }
  0xd9   :  { %2128 = vmatprep.subr.bf16.mxu0 %v3018_v15 }
  0xdb   :  { %1917 = vmatpush1.bf16.msra.mxu1 %v3013_v16 }
  0xdc   :  { %2129 = vmatpush1.bf16.msra.mxu0 %v3016_v17  ;;  %1918 = vmatprep.subr.bf16.mxu1 %v3021_v18 }
  0xdd   :  { %2130 = vmatprep.subr.bf16.mxu0 %v3024_v19 }
  0xdf   :  { %1919 = vmatpush1.bf16.msra.mxu1 %v3019_v20 }
  0xe0   :  { %2131 = vmatpush1.bf16.msra.mxu0 %v3022_v21  ;;  %1920 = vmatprep.subr.bf16.mxu1 %v3027_v22 }
  0xe1   :  { %2132 = vmatprep.subr.bf16.mxu0 %v3030_v23 }
  0xe3   :  { %1921 = vmatpush1.bf16.msra.mxu1 %v3025_v24 }
  0xe4   :  { %2133 = vmatpush1.bf16.msra.mxu0 %v3028_v25  ;;  %1922 = vmatprep.subr.bf16.mxu1 %v3033_v26 }
  0xe5   :  { %2134 = vmatprep.subr.bf16.mxu0 %v3036_v27 }
  0xe7   :  { %1923 = vmatpush1.bf16.msra.mxu1 %v3031_v28 }
  0xe8   :  { %2135 = vmatpush1.bf16.msra.mxu0 %v3034_v29  ;;  %1924 = vmatprep.subr.bf16.mxu1 %v3039_v30 }
  0xe9   :  { %2136 = vmatprep.subr.bf16.mxu0 %v3042_v31 }
  0xeb   :  { %1925 = vmatpush1.bf16.msra.mxu1 %v3037_v32 }
  0xec   :  { %2137 = vmatpush1.bf16.msra.mxu0 %v3040_v33  ;;  %1926 = vmatprep.subr.bf16.mxu1 %v3045_v34 }
  0xed   :  { %2138 = vmatprep.subr.bf16.mxu0 %v3048_v35 }
  0xef   :  { %1927 = vmatpush1.bf16.msra.mxu1 %v3043_v36 }
  0xf0   :  { %2139 = vmatpush1.bf16.msra.mxu0 %v3046_v37  ;;  %1928 = vmatprep.subr.bf16.mxu1 %v3051_v38 }
  0xf1   :  { %2140 = vmatprep.subr.bf16.mxu0 %v3054_v39 }
  0xf3   :  { %1929 = vmatpush1.bf16.msra.mxu1 %v3049_v40 }
  0xf4   :  { %2141 = vmatpush1.bf16.msra.mxu0 %v3052_v41  ;;  %1930 = vmatprep.subr.bf16.mxu1 %v3057_v43 }
  0xf5   :  { %2142 = vmatprep.subr.bf16.mxu0 %v3060_v44 }
  0xf7   :  { %1931 = vmatpush1.bf16.msra.mxu1 %v3055_v48 }
  0xf8   :  { %2143 = vmatpush1.bf16.msra.mxu0 %v3058_v49  ;;  %1932 = vmatprep.subr.bf16.mxu1 %v3063_v42 }
  0xf9   :  { %2144 = vmatprep.subr.bf16.mxu0 %v3066_v45 }
  0xfb   :  { %1933 = vmatpush1.bf16.msra.mxu1 %v3061_v46 }
  0xfc   :  { %2145 = vmatpush1.bf16.msra.mxu0 %v3064_v47  ;;  %1934 = vmatprep.subr.bf16.mxu1 %v3069_v50 }
  0xfd   :  { %2146 = vmatprep.subr.bf16.mxu0 %v3072_v51 }
  0xff   :  { %1935 = vmatpush1.bf16.msra.mxu1 %v3067_v52 }
 0x100   :  { %2147 = vmatpush1.bf16.msra.mxu0 %v3070_v53 }
 0x102   :  { %1937 = vmatmul.mubr.bf16.vlgmr.msra.gmra.mrb[0].mxu1 %v2343_v62 }
 0x103   :  { %2149 = vmatmul.mubr.bf16.vlgmr.msra.gmra.mrb[0].mxu0 %v2351_v63  ;;  %1946 = vmatprep.mubr.bf16.mxu1 %v2360_v0 }
 0x104   :  { %2158 = vmatprep.mubr.bf16.mxu0 %v2368_v1 }
 0x10a   :  { %1947 = vmatmul.mubr.bf16.gmra.mrb[4].mxu1 %v2359_v2 }
 0x10b   :  { %2159 = vmatmul.mubr.bf16.gmra.mrb[4].mxu0 %v2367_v3 }
 0x1d5   :  { %v1938_v4 = vpop.f32.mrb[0].mxu1 }
 0x1d6   :  { %v2150_v5 = vpop.f32.mrb[0].mxu0  ;;  %v1940_v56 = vpop.f32.mrb[1].mxu1 }
 0x1d7   :  { %v4014_v6 = vadd.f32 %v2150_v5, %v1938_v4  ;;  %v2152_v59 = vpop.f32.mrb[1].mxu0  ;;  %v1942_v60 = vpop.f32.mrb[2].mxu1 }
 0x1d8   :  { %v4016_v7 = vadd.f32 %v2152_v59, %v1940_v56  ;;  %v2154_v61 = vpop.f32.mrb[2].mxu0  ;;  %v1944_v9 = vpop.f32.mrb[3].mxu1 }
 0x1d9   :  { %v4018_v8 = vadd.f32 %v2154_v61, %v1942_v60  ;;  %v2156_v10 = vpop.f32.mrb[3].mxu0  ;;  %v2189_v12 = vmul.f32 %v4014_v6, %v4014_v6 }
 0x1da   :  { %v4020_v11 = vadd.f32 %v2156_v10, %v1944_v9  ;;  %v2190_v15 = vmul.f32 %v4016_v7, %v4016_v7 }
 0x1db   :  { %v2169_v13 = vadd.f32 %v4018_v8, %v4014_v6  ;;  %v2191_v14 = vmul.f32 %v4018_v8, %v4018_v8 }
 0x1dc   :  { %v2178_v16 = vadd.f32 %v4020_v11, %v4016_v7  ;;  %v2192_v17 = vmul.f32 %v4020_v11, %v4020_v11 }
 0x1dd   :  { %v2197_v18 = vadd.f32 %v2191_v14, %v2189_v12  ;;  %v1948_v20 = vpop.f32.mrb[4].mxu1 }
 0x1de   :  { %v2206_v19 = vadd.f32 %v2192_v17, %v2190_v15  ;;  %v2160_v21 = vpop.f32.mrb[4].mxu0  ;;  %v1950_v23 = vpop.f32.mrb[5].mxu1 }
 0x1df   :  { %v4034_v22 = vadd.f32 %v2160_v21, %v1948_v20  ;;  %v2162_v24 = vpop.f32.mrb[5].mxu0  ;;  %v1952_v26 = vpop.f32.mrb[6].mxu1 }
 0x1e0   :  { %v4036_v25 = vadd.f32 %v2162_v24, %v1950_v23  ;;  %v2164_v27 = vpop.f32.mrb[6].mxu0  ;;  %v1954_v31 = vpop.f32.mrb[7].mxu1  ;;  %v2243_v23 = vlaneseq }
 0x1e1   :  { %v2170_v28 = vadd.f32 %v4034_v22, %v2169_v13  ;;  %v2193_v29 = vmul.f32 %v4034_v22, %v4034_v22  ;;  %v4041_v30 = vadd.f32 %v2164_v27, %v1952_v26  ;;  %v2166_v32 = vpop.f32.mrb[7].mxu0 }
 0x1e2   :  { %v2179_v33 = vadd.f32 %v4036_v25, %v2178_v16  ;;  %v2194_v34 = vmul.f32 %v4036_v25, %v4036_v25  ;;  %v4046_v35 = vadd.f32 %v2166_v32, %v1954_v31 }
 0x1e3   :  { %v2198_v36 = vadd.f32 %v2197_v18, %v2193_v29  ;;  %v2171_v37 = vadd.f32 %v4041_v30, %v2170_v28  ;;  %v2195_v38 = vmul.f32 %v4041_v30, %v4041_v30  ;;  %v2241_v28 = vld [vmem:[%s4084_s2] sm:$0x3] }
 0x1e4   :  { %v2207_v39 = vadd.f32 %v2206_v19, %v2194_v34  ;;  %v2180_v40 = vadd.f32 %v4046_v35, %v2179_v33  ;;  %v2196_v41 = vmul.f32 %v4046_v35, %v4046_v35 }
 0x1e5   :  { %v2172_v43 = vrot.slane %v2171_v37, 4  ;;  %v2199_v44 = vadd.f32 %v2198_v36, %v2195_v38 }
 0x1e6   :  { %v2181_v48 = vrot.slane %v2180_v40, 4  ;;  %v2208_v49 = vadd.f32 %v2207_v39, %v2196_v41 }
 0x1e7   :  { %v2173_v42 = vadd.f32 %v2172_v43, %v2171_v37  ;;  %v2200_v45 = vrot.slane %v2199_v44, 4 }
 0x1e8   :  { %v2182_v46 = vadd.f32 %v2181_v48, %v2180_v40  ;;  %v2209_v47 = vrot.slane %v2208_v49, 4 }
 0x1e9   :  { %v2174_v50 = vrot.slane %v2173_v42, 2  ;;  %v2201_v51 = vadd.f32 %v2200_v45, %v2199_v44 }
 0x1ea   :  { %v2183_v52 = vrot.slane %v2182_v46, 2  ;;  %v2210_v53 = vadd.f32 %v2209_v47, %v2208_v49 }
 0x1eb   :  { %v2175_v54 = vadd.f32 %v2174_v50, %v2173_v42  ;;  %v2202_v55 = vrot.slane %v2201_v51, 2 }
 0x1ec   :  { %v2184_v57 = vadd.f32 %v2183_v52, %v2182_v46  ;;  %v2211_v58 = vrot.slane %v2210_v53, 2 }
 0x1ed   :  { %v2176_v62 = vrot.slane %v2175_v54, 1  ;;  %v2203_v63 = vadd.f32 %v2202_v55, %v2201_v51 }
 0x1ee   :  { %v2185_v0 = vrot.slane %v2184_v57, 1  ;;  %v2212_v1 = vadd.f32 %v2211_v58, %v2210_v53 }
 0x1ef   :  { %v2177_v2 = vadd.f32 %v2176_v62, %v2175_v54  ;;  %v2204_v3 = vrot.slane %v2203_v63, 1 }
 0x1f0   :  { %v2186_v4 = vadd.f32 %v2185_v0, %v2184_v57  ;;  %v2213_v5 = vrot.slane %v2212_v1, 1 }
 0x1f1   :  { %v2187_v56 = vmul.f32 0.03125, %v2177_v2  ;;  %v2205_v59 = vadd.f32 %v2204_v3, %v2203_v63 }
 0x1f2   :  { %v2188_v60 = vmul.f32 0.03125, %v2186_v4  ;;  %v2214_v61 = vadd.f32 %v2213_v5, %v2212_v1 }
 0x1f3   :  { %v2215_v9 = vmul.f32 0.03125, %v2205_v59  ;;  %v2217_v10 = vmul.f32 %v2187_v56, %v2187_v56  ;;  %v2221_v12 = vsub.f32 %v4014_v6, %v2187_v56  ;;  %v2223_v13 = vsub.f32 %v4018_v8, %v2187_v56 }
 0x1f4   :  { %v2225_v14 = vsub.f32 %v4034_v22, %v2187_v56  ;;  %v2227_v15 = vsub.f32 %v4041_v30, %v2187_v56  ;;  %v2216_v16 = vmul.f32 0.03125, %v2214_v61  ;;  %v2218_v17 = vmul.f32 %v2188_v60, %v2188_v60 }
 0x1f5   :  { %v2219_v18 = vsub.f32 %v2215_v9, %v2217_v10  ;;  %v2222_v19 = vsub.f32 %v4016_v7, %v2188_v60  ;;  %v2224_v20 = vsub.f32 %v4020_v11, %v2188_v60  ;;  %v2226_v21 = vsub.f32 %v4036_v25, %v2188_v60  ;;  %v2261_v7 = vld [vmem:[%s4085_s3] sm:$0x3] }
 0x1f6   :  { %v2220_v24 = vsub.f32 %v2216_v16, %v2218_v17  ;;  %v2228_v26 = vsub.f32 %v4046_v35, %v2188_v60  ;;  %v2244_v8 = vshrl.u32 %v2243_v23, 7 }
 0x1f7   :  { %v2229_v6 = vadd.f32 1e-05, %v2219_v18 }
 0x1f8   :  { %v2230_v27 = vadd.f32 1e-05, %v2220_v24  ;;  %v2245_v22 = vsub.s32 0, %v2244_v8  ;;  %v2249_v29 = vsub.s32 1, %v2244_v8 }
 0x1f9   :  { %3073 = vrsqrt.f32 %v2229_v6 }
 0x1fa   :  { %3075 = vrsqrt.f32 %v2230_v27  ;;  %v2246_v11 = vrot.slane %v2241_v28, %v2245_v22  ;;  %v2266_v30 = vrot.slane %v2261_v7, %v2245_v22  ;;  %v2250_v31 = vrot.slane %v2241_v28, %v2249_v29 }
 0x1fb   :  { %v2270_v32 = vrot.slane %v2261_v7, %v2249_v29 }
 0x203   :  { %v3074_v25 = vpop.eup %3073 }
 0x204   :  { %v3076_v33 = vpop.eup %3075  ;;  %v2233_v34 = vmul.f32 %v3074_v25, %v2221_v12  ;;  %v2235_v35 = vmul.f32 %v3074_v25, %v2223_v13  ;;  %v2237_v36 = vmul.f32 %v3074_v25, %v2225_v14  ;;  %v2239_v37 = vmul.f32 %v3074_v25, %v2227_v15 }
 0x205   :  { %v2234_v38 = vmul.f32 %v3076_v33, %v2222_v19  ;;  %v2236_v39 = vmul.f32 %v3076_v33, %v2224_v20  ;;  %v2238_v40 = vmul.f32 %v3076_v33, %v2226_v21  ;;  %v2240_v41 = vmul.f32 %v3076_v33, %v2228_v26 }
 0x206   :  { %v2253_v43 = vmul.f32 %v2246_v11, %v2233_v34  ;;  %v2255_v44 = vmul.f32 %v2246_v11, %v2235_v35  ;;  %v2257_v48 = vmul.f32 %v2246_v11, %v2237_v36  ;;  %v2259_v49 = vmul.f32 %v2246_v11, %v2239_v37 }
 0x207   :  { %v2254_v42 = vmul.f32 %v2250_v31, %v2234_v38  ;;  %v2256_v45 = vmul.f32 %v2250_v31, %v2236_v39  ;;  %v2258_v46 = vmul.f32 %v2250_v31, %v2238_v40  ;;  %v2260_v47 = vmul.f32 %v2250_v31, %v2240_v41 }
 0x208   :  { %v2273_v50 = vadd.f32 %v2266_v30, %v2253_v43  ;;  %v2275_v51 = vadd.f32 %v2266_v30, %v2255_v44  ;;  %v2277_v52 = vadd.f32 %v2266_v30, %v2257_v48  ;;  %v2279_v53 = vadd.f32 %v2266_v30, %v2259_v49 }
 0x209   :  { %v2274_v54 = vadd.f32 %v2270_v32, %v2254_v42  ;;  %v2276_v55 = vadd.f32 %v2270_v32, %v2256_v45  ;;  %v2278_v57 = vadd.f32 %v2270_v32, %v2258_v46  ;;  %v2280_v58 = vadd.f32 %v2270_v32, %v2260_v47 }
 0x20a   :  { %vm2281_vm0 = vcmp.ge.f32.partialorder %v2273_v50, 0.0  ;;  %vm2283_vm1 = vcmp.ge.f32.partialorder %v2275_v51, 0.0  ;;  %vm2285_vm2 = vcmp.ge.f32.partialorder %v2277_v52, 0.0  ;;  %vm2287_vm3 = vcmp.ge.f32.partialorder %v2279_v53, 0.0 }
 0x20b   :  { %v2289_v62 = vmul.f32 0.2, %v2273_v50  ;;  %v2291_v63 = vmul.f32 0.2, %v2275_v51  ;;  %v2293_v0 = vmul.f32 0.2, %v2277_v52 }
 0x20c   :  { %v2295_v1 = vmul.f32 0.2, %v2279_v53  ;;  %vm2282_vm4 = vcmp.ge.f32.partialorder %v2274_v54, 0.0  ;;  %vm2284_vm5 = vcmp.ge.f32.partialorder %v2276_v55, 0.0  ;;  %vm2286_vm6 = vcmp.ge.f32.partialorder %v2278_v57, 0.0 }
 0x20d   :  { %vm2288_vm7 = vcmp.ge.f32.partialorder %v2280_v58, 0.0  ;;  %v2290_v2 = vmul.f32 0.2, %v2274_v54  ;;  %v2292_v3 = vmul.f32 0.2, %v2276_v55  ;;  %v2297_v4 = vsel %vm2281_vm0, %v2273_v50, %v2289_v62 }
 0x20e   :  { %v2303_v5 = vsel %vm2287_vm3, %v2279_v53, %v2295_v1  ;;  %v2294_v56 = vmul.f32 0.2, %v2278_v57  ;;  %v2296_v59 = vmul.f32 0.2, %v2280_v58  ;;  %v2299_v60 = vsel %vm2283_vm1, %v2275_v51, %v2291_v63 }
 0x20f   :  { %v2298_v61 = vsel %vm2282_vm4, %v2274_v54, %v2290_v2  ;;  %v2300_v9 = vsel %vm2284_vm5, %v2276_v55, %v2292_v3  ;;  %v2301_v10 = vsel %vm2285_vm2, %v2277_v52, %v2293_v0 }
 0x210   :  { %v2302_v12 = vsel %vm2286_vm6, %v2278_v57, %v2294_v56  ;;  %v2304_v13 = vsel %vm2288_vm7, %v2280_v58, %v2296_v59  ;;  %v2629_v14 = vpack.c.bf16 %v2298_v61, %v2297_v4  ;;  %v2630_v15 = vpack.c.bf16 %v2300_v9, %v2299_v60 }
 0x211   :  { %v2631_v16 = vpack.c.bf16 %v2302_v12, %v2301_v10  ;;  %v2632_v17 = vpack.c.bf16 %v2304_v13, %v2303_v5 }
 0x212   :  { %2329 = vst [vmem:[%s4086_s4] sm:$0xff] %v2629_v14  ;;  %2330 = vst [vmem:[%s4086_s4 + $0x8] sm:$0xff] %v2630_v15 }
 0x213   :  { %2331 = vst [vmem:[%s4086_s4 + $0x10] sm:$0xff] %v2631_v16  ;;  %2332 = vst [vmem:[%s4086_s4 + $0x18] sm:$0xff] %v2632_v17 }

// kernel: d_net_forward.9
= control target key start
LH: loop header
LB: loop body
LE: loop exit
PB: predicated region body
PF: predicated region fallthrough
CT: control target
= control target key end

     0   :  { %s13802_s1 = inlined_call_operand.vmem [shape: bf16[4096,512], index: 1, kind: input, shape index: {}]   ;;  %s13803_s0 = inlined_call_operand.vmem [shape: bf16[8,4096], index: 0, kind: input, shape index: {}]   ;;  %s13804_s2 = inlined_call_operand.vmem [shape: f32[1,512], index: 2, kind: input, shape index: {}]   ;;  %s13805_s3 = inlined_call_operand.vmem [shape: f32[1,512], index: 3, kind: input, shape index: {}]   ;;  %s13806_s4 = inlined_call_operand.vmem [shape: bf16[8,512], index: 4, kind: output, shape index: {}]  }
   0x1   :  { %v8951_v0 = vld [vmem:[%s13802_s1 + $0x4] ss:$16 sps:$4 sm:$0xff]   ;;  %v8953_v1 = vld [vmem:[%s13802_s1 + $0xc] ss:$16 sps:$4 sm:$0xff]   ;;  %v8955_v2 = vld [vmem:[%s13802_s1] ss:$16 sps:$4 sm:$0xff]  }
   0x2   :  { %6289 = vmatprep.subr.bf16.mxu0 %v8951_v0  ;;  %v8956_v3 = vld [vmem:[%s13802_s1 + $0x8] ss:$16 sps:$4 sm:$0xff]   ;;  %6945 = vmatprep.subr.bf16.mxu1 %v8953_v1  ;;  %v8957_v4 = vld [vmem:[%s13802_s1 + $0x24] ss:$16 sps:$4 sm:$0xff]   ;;  %v8959_v5 = vld [vmem:[%s13802_s1 + $0x2c] ss:$16 sps:$4 sm:$0xff]  }
   0x3   :  { %6290 = vmatpush1.bf16.msra.mxu0 %v8955_v2  ;;  %6946 = vmatpush1.bf16.msra.mxu1 %v8956_v3  ;;  %v8961_v6 = vld [vmem:[%s13802_s1 + $0x20] ss:$16 sps:$4 sm:$0xff]   ;;  %v8962_v7 = vld [vmem:[%s13802_s1 + $0x28] ss:$16 sps:$4 sm:$0xff]   ;;  %v8963_v8 = vld [vmem:[%s13802_s1 + $0x44] ss:$16 sps:$4 sm:$0xff]  }
   0x4   :  { %6291 = vmatprep.subr.bf16.mxu0 %v8957_v4  ;;  %6947 = vmatprep.subr.bf16.mxu1 %v8959_v5  ;;  %v8965_v9 = vld [vmem:[%s13802_s1 + $0x4c] ss:$16 sps:$4 sm:$0xff]   ;;  %v8967_v10 = vld [vmem:[%s13802_s1 + $0x40] ss:$16 sps:$4 sm:$0xff]   ;;  %v8968_v11 = vld [vmem:[%s13802_s1 + $0x48] ss:$16 sps:$4 sm:$0xff]  }
   0x5   :  { %v8969_v12 = vld [vmem:[%s13802_s1 + $0x64] ss:$16 sps:$4 sm:$0xff]   ;;  %v8971_v13 = vld [vmem:[%s13802_s1 + $0x6c] ss:$16 sps:$4 sm:$0xff]   ;;  %v8973_v14 = vld [vmem:[%s13802_s1 + $0x60] ss:$16 sps:$4 sm:$0xff]  }
   0x6   :  { %v8974_v15 = vld [vmem:[%s13802_s1 + $0x68] ss:$16 sps:$4 sm:$0xff]   ;;  %v8975_v16 = vld [vmem:[%s13802_s1 + $0x84] ss:$16 sps:$4 sm:$0xff]   ;;  %v8977_v17 = vld [vmem:[%s13802_s1 + $0x8c] ss:$16 sps:$4 sm:$0xff]  }
   0x7   :  { %6292 = vmatpush1.bf16.msra.mxu0 %v8961_v6  ;;  %6948 = vmatpush1.bf16.msra.mxu1 %v8962_v7  ;;  %v8979_v18 = vld [vmem:[%s13802_s1 + $0x80] ss:$16 sps:$4 sm:$0xff]   ;;  %v8980_v19 = vld [vmem:[%s13802_s1 + $0x88] ss:$16 sps:$4 sm:$0xff]   ;;  %v8981_v20 = vld [vmem:[%s13802_s1 + $0xa4] ss:$16 sps:$4 sm:$0xff]  }
   0x8   :  { %6293 = vmatprep.subr.bf16.mxu0 %v8963_v8  ;;  %6949 = vmatprep.subr.bf16.mxu1 %v8965_v9  ;;  %v8983_v21 = vld [vmem:[%s13802_s1 + $0xac] ss:$16 sps:$4 sm:$0xff]   ;;  %v8985_v22 = vld [vmem:[%s13802_s1 + $0xa0] ss:$16 sps:$4 sm:$0xff]   ;;  %v8986_v23 = vld [vmem:[%s13802_s1 + $0xa8] ss:$16 sps:$4 sm:$0xff]  }
   0x9   :  { %v8987_v24 = vld [vmem:[%s13802_s1 + $0xc4] ss:$16 sps:$4 sm:$0xff]   ;;  %v8989_v25 = vld [vmem:[%s13802_s1 + $0xcc] ss:$16 sps:$4 sm:$0xff]   ;;  %v8991_v26 = vld [vmem:[%s13802_s1 + $0xc0] ss:$16 sps:$4 sm:$0xff]  }
   0xa   :  { %v8992_v27 = vld [vmem:[%s13802_s1 + $0xc8] ss:$16 sps:$4 sm:$0xff]   ;;  %v8993_v28 = vld [vmem:[%s13802_s1 + $0xe4] ss:$16 sps:$4 sm:$0xff]   ;;  %v8995_v29 = vld [vmem:[%s13802_s1 + $0xec] ss:$16 sps:$4 sm:$0xff]  }
   0xb   :  { %6294 = vmatpush1.bf16.msra.mxu0 %v8967_v10  ;;  %6950 = vmatpush1.bf16.msra.mxu1 %v8968_v11  ;;  %v8997_v30 = vld [vmem:[%s13802_s1 + $0xe0] ss:$16 sps:$4 sm:$0xff]   ;;  %v8998_v31 = vld [vmem:[%s13802_s1 + $0xe8] ss:$16 sps:$4 sm:$0xff]   ;;  %v8999_v32 = vld [vmem:[%s13802_s1 + $0x104] ss:$16 sps:$4 sm:$0xff]  }
   0xc   :  { %6295 = vmatprep.subr.bf16.mxu0 %v8969_v12  ;;  %6951 = vmatprep.subr.bf16.mxu1 %v8971_v13  ;;  %v9001_v33 = vld [vmem:[%s13802_s1 + $0x10c] ss:$16 sps:$4 sm:$0xff]   ;;  %v9003_v34 = vld [vmem:[%s13802_s1 + $0x100] ss:$16 sps:$4 sm:$0xff]   ;;  %v9004_v35 = vld [vmem:[%s13802_s1 + $0x108] ss:$16 sps:$4 sm:$0xff]  }
   0xd   :  { %v9005_v36 = vld [vmem:[%s13802_s1 + $0x124] ss:$16 sps:$4 sm:$0xff]   ;;  %v9007_v37 = vld [vmem:[%s13802_s1 + $0x12c] ss:$16 sps:$4 sm:$0xff]   ;;  %v9009_v38 = vld [vmem:[%s13802_s1 + $0x120] ss:$16 sps:$4 sm:$0xff]  }
   0xe   :  { %v9010_v39 = vld [vmem:[%s13802_s1 + $0x128] ss:$16 sps:$4 sm:$0xff]   ;;  %v9011_v40 = vld [vmem:[%s13802_s1 + $0x144] ss:$16 sps:$4 sm:$0xff]   ;;  %v9013_v41 = vld [vmem:[%s13802_s1 + $0x14c] ss:$16 sps:$4 sm:$0xff]  }
   0xf   :  { %6296 = vmatpush1.bf16.msra.mxu0 %v8973_v14  ;;  %6952 = vmatpush1.bf16.msra.mxu1 %v8974_v15  ;;  %v9015_v42 = vld [vmem:[%s13802_s1 + $0x140] ss:$16 sps:$4 sm:$0xff]   ;;  %v9016_v43 = vld [vmem:[%s13802_s1 + $0x148] ss:$16 sps:$4 sm:$0xff]   ;;  %v9017_v44 = vld [vmem:[%s13802_s1 + $0x164] ss:$16 sps:$4 sm:$0xff]  }
  0x10   :  { %6297 = vmatprep.subr.bf16.mxu0 %v8975_v16  ;;  %6953 = vmatprep.subr.bf16.mxu1 %v8977_v17  ;;  %v9019_v45 = vld [vmem:[%s13802_s1 + $0x16c] ss:$16 sps:$4 sm:$0xff]   ;;  %v17_v46 = vld [vmem:[%s13803_s0] sm:$0xff]  ;;  %v9022_v49 = vld [vmem:[%s13802_s1 + $0x168] ss:$16 sps:$4 sm:$0xff]  }
  0x11   :  { %v9021_v47 = vld [vmem:[%s13802_s1 + $0x160] ss:$16 sps:$4 sm:$0xff]   ;;  %v7772_v48 = vcombine.high %v17_v46, %v17_v46  ;;  %v9023_v50 = vld [vmem:[%s13802_s1 + $0x184] ss:$16 sps:$4 sm:$0xff]   ;;  %v9025_v51 = vld [vmem:[%s13802_s1 + $0x18c] ss:$16 sps:$4 sm:$0xff]   ;;  %v7771_v4 = vcombine.low %v17_v46, %v17_v46 }
  0x12   :  { %v9027_v52 = vld [vmem:[%s13802_s1 + $0x180] ss:$16 sps:$4 sm:$0xff]   ;;  %v9028_v53 = vld [vmem:[%s13802_s1 + $0x188] ss:$16 sps:$4 sm:$0xff]   ;;  %v9029_v54 = vld [vmem:[%s13802_s1 + $0x1a4] ss:$16 sps:$4 sm:$0xff]  }
  0x13   :  { %6298 = vmatpush1.bf16.msra.mxu0 %v8979_v18  ;;  %6954 = vmatpush1.bf16.msra.mxu1 %v8980_v19  ;;  %v9031_v55 = vld [vmem:[%s13802_s1 + $0x1ac] ss:$16 sps:$4 sm:$0xff]   ;;  %v9033_v56 = vld [vmem:[%s13802_s1 + $0x1a0] ss:$16 sps:$4 sm:$0xff]   ;;  %v9034_v57 = vld [vmem:[%s13802_s1 + $0x1a8] ss:$16 sps:$4 sm:$0xff]  }
  0x14   :  { %6299 = vmatprep.subr.bf16.mxu0 %v8981_v20  ;;  %6955 = vmatprep.subr.bf16.mxu1 %v8983_v21  ;;  %v9035_v58 = vld [vmem:[%s13802_s1 + $0x1c4] ss:$16 sps:$4 sm:$0xff]   ;;  %v9037_v59 = vld [vmem:[%s13802_s1 + $0x1cc] ss:$16 sps:$4 sm:$0xff]   ;;  %v9039_v60 = vld [vmem:[%s13802_s1 + $0x1c0] ss:$16 sps:$4 sm:$0xff]  }
  0x15   :  { %6321 = vmatprep.mubr.bf16.mxu0 %v7772_v48  ;;  %6977 = vmatprep.mubr.bf16.mxu1 %v7772_v48  ;;  %v9040_v61 = vld [vmem:[%s13802_s1 + $0x1c8] ss:$16 sps:$4 sm:$0xff]   ;;  %v9041_v62 = vld [vmem:[%s13802_s1 + $0x1e4] ss:$16 sps:$4 sm:$0xff]   ;;  %v9043_v63 = vld [vmem:[%s13802_s1 + $0x1ec] ss:$16 sps:$4 sm:$0xff]  }
  0x16   :  { %v9045_v0 = vld [vmem:[%s13802_s1 + $0x1e0] ss:$16 sps:$4 sm:$0xff]   ;;  %v9046_v1 = vld [vmem:[%s13802_s1 + $0x1e8] ss:$16 sps:$4 sm:$0xff]   ;;  %v9051_v2 = vld [vmem:[%s13802_s1 + $0x204] ss:$16 sps:$4 sm:$0xff]  }
  0x17   :  { %6300 = vmatpush1.bf16.msra.mxu0 %v8985_v22  ;;  %6956 = vmatpush1.bf16.msra.mxu1 %v8986_v23  ;;  %v9054_v3 = vld [vmem:[%s13802_s1 + $0x20c] ss:$16 sps:$4 sm:$0xff]   ;;  %v9049_v5 = vld [vmem:[%s13802_s1 + $0x200] ss:$16 sps:$4 sm:$0xff]   ;;  %v9052_v6 = vld [vmem:[%s13802_s1 + $0x208] ss:$16 sps:$4 sm:$0xff]  }
  0x18   :  { %6301 = vmatprep.subr.bf16.mxu0 %v8987_v24  ;;  %6957 = vmatprep.subr.bf16.mxu1 %v8989_v25  ;;  %v9057_v7 = vld [vmem:[%s13802_s1 + $0x224] ss:$16 sps:$4 sm:$0xff]   ;;  %v9060_v8 = vld [vmem:[%s13802_s1 + $0x22c] ss:$16 sps:$4 sm:$0xff]   ;;  %v9055_v9 = vld [vmem:[%s13802_s1 + $0x220] ss:$16 sps:$4 sm:$0xff]  }
  0x19   :  { %v9058_v10 = vld [vmem:[%s13802_s1 + $0x228] ss:$16 sps:$4 sm:$0xff]   ;;  %v9063_v11 = vld [vmem:[%s13802_s1 + $0x244] ss:$16 sps:$4 sm:$0xff]   ;;  %v9066_v12 = vld [vmem:[%s13802_s1 + $0x24c] ss:$16 sps:$4 sm:$0xff]  }
  0x1a   :  { %v9061_v13 = vld [vmem:[%s13802_s1 + $0x240] ss:$16 sps:$4 sm:$0xff]   ;;  %v9064_v14 = vld [vmem:[%s13802_s1 + $0x248] ss:$16 sps:$4 sm:$0xff]   ;;  %v9069_v15 = vld [vmem:[%s13802_s1 + $0x264] ss:$16 sps:$4 sm:$0xff]  }
  0x1b   :  { %6302 = vmatpush1.bf16.msra.mxu0 %v8991_v26  ;;  %6958 = vmatpush1.bf16.msra.mxu1 %v8992_v27  ;;  %v9072_v16 = vld [vmem:[%s13802_s1 + $0x26c] ss:$16 sps:$4 sm:$0xff]   ;;  %v9067_v17 = vld [vmem:[%s13802_s1 + $0x260] ss:$16 sps:$4 sm:$0xff]   ;;  %v9070_v18 = vld [vmem:[%s13802_s1 + $0x268] ss:$16 sps:$4 sm:$0xff]  }
  0x1c   :  { %6303 = vmatprep.subr.bf16.mxu0 %v8993_v28  ;;  %6959 = vmatprep.subr.bf16.mxu1 %v8995_v29  ;;  %v9075_v19 = vld [vmem:[%s13802_s1 + $0x284] ss:$16 sps:$4 sm:$0xff]   ;;  %v9078_v20 = vld [vmem:[%s13802_s1 + $0x28c] ss:$16 sps:$4 sm:$0xff]   ;;  %v9073_v21 = vld [vmem:[%s13802_s1 + $0x280] ss:$16 sps:$4 sm:$0xff]  }
  0x1d   :  { %v9076_v22 = vld [vmem:[%s13802_s1 + $0x288] ss:$16 sps:$4 sm:$0xff]   ;;  %v9081_v23 = vld [vmem:[%s13802_s1 + $0x2a4] ss:$16 sps:$4 sm:$0xff]   ;;  %v9084_v24 = vld [vmem:[%s13802_s1 + $0x2ac] ss:$16 sps:$4 sm:$0xff]  }
  0x1e   :  { %v9079_v25 = vld [vmem:[%s13802_s1 + $0x2a0] ss:$16 sps:$4 sm:$0xff]   ;;  %v9082_v26 = vld [vmem:[%s13802_s1 + $0x2a8] ss:$16 sps:$4 sm:$0xff]   ;;  %v9087_v27 = vld [vmem:[%s13802_s1 + $0x2c4] ss:$16 sps:$4 sm:$0xff]  }
  0x1f   :  { %6304 = vmatpush1.bf16.msra.mxu0 %v8997_v30  ;;  %6960 = vmatpush1.bf16.msra.mxu1 %v8998_v31  ;;  %v9090_v28 = vld [vmem:[%s13802_s1 + $0x2cc] ss:$16 sps:$4 sm:$0xff]   ;;  %v9085_v31 = vld [vmem:[%s13802_s1 + $0x2c0] ss:$16 sps:$4 sm:$0xff]   ;;  %v9112_v48 = vld [vmem:[%s13802_s1 + $0x348] ss:$16 sps:$4 sm:$0xff]  }
  0x20   :  { %6305 = vmatprep.subr.bf16.mxu0 %v8999_v32  ;;  %6961 = vmatprep.subr.bf16.mxu1 %v9001_v33  ;;  %v10828_v29 = vld [vmem:[%s13803_s0 + $0x8] sm:$0xff]  ;;  %v9093_v33 = vld [vmem:[%s13802_s1 + $0x2e4] ss:$16 sps:$4 sm:$0xff]  }
  0x21   :  { %v7774_v30 = vcombine.high %v10828_v29, %v10828_v29  ;;  %v9088_v32 = vld [vmem:[%s13802_s1 + $0x2c8] ss:$16 sps:$4 sm:$0xff]   ;;  %v9114_v46 = vld [vmem:[%s13802_s1 + $0x34c] ss:$16 sps:$4 sm:$0xff]  }
  0x23   :  { %6306 = vmatpush1.bf16.msra.mxu0 %v9003_v34  ;;  %6962 = vmatpush1.bf16.msra.mxu1 %v9004_v35  ;;  %v9096_v34 = vld [vmem:[%s13802_s1 + $0x2ec] ss:$16 sps:$4 sm:$0xff]   ;;  %v9091_v35 = vld [vmem:[%s13802_s1 + $0x2e0] ss:$16 sps:$4 sm:$0xff]  }
  0x24   :  { %6307 = vmatprep.subr.bf16.mxu0 %v9005_v36  ;;  %6963 = vmatprep.subr.bf16.mxu1 %v9007_v37  ;;  %v9094_v36 = vld [vmem:[%s13802_s1 + $0x2e8] ss:$16 sps:$4 sm:$0xff]   ;;  %v9099_v37 = vld [vmem:[%s13802_s1 + $0x304] ss:$16 sps:$4 sm:$0xff]  }
  0x27   :  { %6308 = vmatpush1.bf16.msra.mxu0 %v9009_v38  ;;  %6964 = vmatpush1.bf16.msra.mxu1 %v9010_v39  ;;  %v9102_v38 = vld [vmem:[%s13802_s1 + $0x30c] ss:$16 sps:$4 sm:$0xff]   ;;  %v9097_v39 = vld [vmem:[%s13802_s1 + $0x300] ss:$16 sps:$4 sm:$0xff]  }
  0x28   :  { %6309 = vmatprep.subr.bf16.mxu0 %v9011_v40  ;;  %6965 = vmatprep.subr.bf16.mxu1 %v9013_v41  ;;  %v9100_v40 = vld [vmem:[%s13802_s1 + $0x308] ss:$16 sps:$4 sm:$0xff]   ;;  %v9105_v41 = vld [vmem:[%s13802_s1 + $0x324] ss:$16 sps:$4 sm:$0xff]  }
  0x2b   :  { %6310 = vmatpush1.bf16.msra.mxu0 %v9015_v42  ;;  %6966 = vmatpush1.bf16.msra.mxu1 %v9016_v43  ;;  %v9108_v42 = vld [vmem:[%s13802_s1 + $0x32c] ss:$16 sps:$4 sm:$0xff]   ;;  %v9103_v43 = vld [vmem:[%s13802_s1 + $0x320] ss:$16 sps:$4 sm:$0xff]  }
  0x2c   :  { %6311 = vmatprep.subr.bf16.mxu0 %v9017_v44  ;;  %6967 = vmatprep.subr.bf16.mxu1 %v9019_v45  ;;  %v9106_v44 = vld [vmem:[%s13802_s1 + $0x328] ss:$16 sps:$4 sm:$0xff]   ;;  %v9111_v45 = vld [vmem:[%s13802_s1 + $0x344] ss:$16 sps:$4 sm:$0xff]  }
  0x2f   :  { %6312 = vmatpush1.bf16.msra.mxu0 %v9021_v47  ;;  %6968 = vmatpush1.bf16.msra.mxu1 %v9022_v49  ;;  %v9109_v47 = vld [vmem:[%s13802_s1 + $0x340] ss:$16 sps:$4 sm:$0xff]   ;;  %v9117_v49 = vld [vmem:[%s13802_s1 + $0x364] ss:$16 sps:$4 sm:$0xff]  }
  0x30   :  { %6313 = vmatprep.subr.bf16.mxu0 %v9023_v50  ;;  %6969 = vmatprep.subr.bf16.mxu1 %v9025_v51  ;;  %v9120_v50 = vld [vmem:[%s13802_s1 + $0x36c] ss:$16 sps:$4 sm:$0xff]   ;;  %v9115_v51 = vld [vmem:[%s13802_s1 + $0x360] ss:$16 sps:$4 sm:$0xff]  }
  0x33   :  { %6314 = vmatpush1.bf16.msra.mxu0 %v9027_v52  ;;  %6970 = vmatpush1.bf16.msra.mxu1 %v9028_v53  ;;  %v9118_v52 = vld [vmem:[%s13802_s1 + $0x368] ss:$16 sps:$4 sm:$0xff]   ;;  %v9123_v53 = vld [vmem:[%s13802_s1 + $0x384] ss:$16 sps:$4 sm:$0xff]  }
  0x34   :  { %6315 = vmatprep.subr.bf16.mxu0 %v9029_v54  ;;  %6971 = vmatprep.subr.bf16.mxu1 %v9031_v55  ;;  %v9126_v54 = vld [vmem:[%s13802_s1 + $0x38c] ss:$16 sps:$4 sm:$0xff]   ;;  %v9121_v55 = vld [vmem:[%s13802_s1 + $0x380] ss:$16 sps:$4 sm:$0xff]  }
  0x37   :  { %6316 = vmatpush1.bf16.msra.mxu0 %v9033_v56  ;;  %6972 = vmatpush1.bf16.msra.mxu1 %v9034_v57  ;;  %v9124_v56 = vld [vmem:[%s13802_s1 + $0x388] ss:$16 sps:$4 sm:$0xff]   ;;  %v9129_v57 = vld [vmem:[%s13802_s1 + $0x3a4] ss:$16 sps:$4 sm:$0xff]  }
  0x38   :  { %6317 = vmatprep.subr.bf16.mxu0 %v9035_v58  ;;  %6973 = vmatprep.subr.bf16.mxu1 %v9037_v59  ;;  %v9132_v58 = vld [vmem:[%s13802_s1 + $0x3ac] ss:$16 sps:$4 sm:$0xff]   ;;  %v9127_v59 = vld [vmem:[%s13802_s1 + $0x3a0] ss:$16 sps:$4 sm:$0xff]  }
  0x3b   :  { %6318 = vmatpush1.bf16.msra.mxu0 %v9039_v60  ;;  %6974 = vmatpush1.bf16.msra.mxu1 %v9040_v61  ;;  %v9130_v60 = vld [vmem:[%s13802_s1 + $0x3a8] ss:$16 sps:$4 sm:$0xff]   ;;  %v9135_v61 = vld [vmem:[%s13802_s1 + $0x3c4] ss:$16 sps:$4 sm:$0xff]  }
  0x3c   :  { %6319 = vmatprep.subr.bf16.mxu0 %v9041_v62  ;;  %6975 = vmatprep.subr.bf16.mxu1 %v9043_v63  ;;  %v9138_v62 = vld [vmem:[%s13802_s1 + $0x3cc] ss:$16 sps:$4 sm:$0xff]   ;;  %v9133_v63 = vld [vmem:[%s13802_s1 + $0x3c0] ss:$16 sps:$4 sm:$0xff]  }
  0x3f   :  { %6320 = vmatpush1.bf16.msra.mxu0 %v9045_v0  ;;  %6976 = vmatpush1.bf16.msra.mxu1 %v9046_v1  ;;  %v9136_v0 = vld [vmem:[%s13802_s1 + $0x3c8] ss:$16 sps:$4 sm:$0xff]   ;;  %v9141_v1 = vld [vmem:[%s13802_s1 + $0x3e4] ss:$16 sps:$4 sm:$0xff]  }
  0x40   :  { %6330 = vmatprep.subr.bf16.mxu0 %v9051_v2  ;;  %6986 = vmatprep.subr.bf16.mxu1 %v9054_v3  ;;  %v9144_v2 = vld [vmem:[%s13802_s1 + $0x3ec] ss:$16 sps:$4 sm:$0xff]   ;;  %v9139_v3 = vld [vmem:[%s13802_s1 + $0x3e0] ss:$16 sps:$4 sm:$0xff]  }
  0x42   :  { %6322 = vmatmul.mubr.bf16.vlgmr.msra.gmra.mrb[0].mxu0 %v7771_v4  ;;  %6978 = vmatmul.mubr.bf16.vlgmr.msra.gmra.mrb[0].mxu1 %v7771_v4  ;;  %v9142_v4 = vld [vmem:[%s13802_s1 + $0x3e8] ss:$16 sps:$4 sm:$0xff]  }
  0x43   :  { %6331 = vmatpush1.bf16.msra.mxu0 %v9049_v5  ;;  %6987 = vmatpush1.bf16.msra.mxu1 %v9052_v6  ;;  %v9149_v5 = vld [vmem:[%s13802_s1 + $0x404] ss:$16 sps:$4 sm:$0xff]   ;;  %v9152_v6 = vld [vmem:[%s13802_s1 + $0x40c] ss:$16 sps:$4 sm:$0xff]  }
  0x44   :  { %6332 = vmatprep.subr.bf16.mxu0 %v9057_v7  ;;  %6988 = vmatprep.subr.bf16.mxu1 %v9060_v8  ;;  %v7773_v7 = vcombine.low %v10828_v29, %v10828_v29  ;;  %v9147_v8 = vld [vmem:[%s13802_s1 + $0x400] ss:$16 sps:$4 sm:$0xff]   ;;  %v9182_v29 = vld [vmem:[%s13802_s1 + $0x4ac] ss:$16 sps:$4 sm:$0xff]  }
  0x45   :  { %6362 = vmatprep.mubr.bf16.mxu0 %v7774_v30  ;;  %7018 = vmatprep.mubr.bf16.mxu1 %v7774_v30  ;;  %v9177_v30 = vld [vmem:[%s13802_s1 + $0x4a0] ss:$16 sps:$4 sm:$0xff]  }
  0x47   :  { %6333 = vmatpush1.bf16.msra.mxu0 %v9055_v9  ;;  %6989 = vmatpush1.bf16.msra.mxu1 %v9058_v10  ;;  %v9150_v9 = vld [vmem:[%s13802_s1 + $0x408] ss:$16 sps:$4 sm:$0xff]   ;;  %v9155_v10 = vld [vmem:[%s13802_s1 + $0x424] ss:$16 sps:$4 sm:$0xff]  }
  0x48   :  { %6334 = vmatprep.subr.bf16.mxu0 %v9063_v11  ;;  %6990 = vmatprep.subr.bf16.mxu1 %v9066_v12  ;;  %v10966_v11 = vld [vmem:[%s13803_s0 + $0x10] sm:$0xff]  ;;  %v9158_v12 = vld [vmem:[%s13802_s1 + $0x42c] ss:$16 sps:$4 sm:$0xff]  }
  0x4b   :  { %6335 = vmatpush1.bf16.msra.mxu0 %v9061_v13  ;;  %6991 = vmatpush1.bf16.msra.mxu1 %v9064_v14  ;;  %v7776_v13 = vcombine.high %v10966_v11, %v10966_v11  ;;  %v9153_v14 = vld [vmem:[%s13802_s1 + $0x420] ss:$16 sps:$4 sm:$0xff]  }
  0x4c   :  { %6336 = vmatprep.subr.bf16.mxu0 %v9069_v15  ;;  %6992 = vmatprep.subr.bf16.mxu1 %v9072_v16  ;;  %v9156_v15 = vld [vmem:[%s13802_s1 + $0x428] ss:$16 sps:$4 sm:$0xff]   ;;  %v9161_v16 = vld [vmem:[%s13802_s1 + $0x444] ss:$16 sps:$4 sm:$0xff]  }
  0x4f   :  { %6337 = vmatpush1.bf16.msra.mxu0 %v9067_v17  ;;  %6993 = vmatpush1.bf16.msra.mxu1 %v9070_v18  ;;  %v9164_v17 = vld [vmem:[%s13802_s1 + $0x44c] ss:$16 sps:$4 sm:$0xff]   ;;  %v9159_v18 = vld [vmem:[%s13802_s1 + $0x440] ss:$16 sps:$4 sm:$0xff]  }
  0x50   :  { %6338 = vmatprep.subr.bf16.mxu0 %v9075_v19  ;;  %6994 = vmatprep.subr.bf16.mxu1 %v9078_v20  ;;  %v9162_v19 = vld [vmem:[%s13802_s1 + $0x448] ss:$16 sps:$4 sm:$0xff]   ;;  %v9167_v20 = vld [vmem:[%s13802_s1 + $0x464] ss:$16 sps:$4 sm:$0xff]  }
  0x53   :  { %6339 = vmatpush1.bf16.msra.mxu0 %v9073_v21  ;;  %6995 = vmatpush1.bf16.msra.mxu1 %v9076_v22  ;;  %v9170_v21 = vld [vmem:[%s13802_s1 + $0x46c] ss:$16 sps:$4 sm:$0xff]   ;;  %v9165_v22 = vld [vmem:[%s13802_s1 + $0x460] ss:$16 sps:$4 sm:$0xff]  }
  0x54   :  { %6340 = vmatprep.subr.bf16.mxu0 %v9081_v23  ;;  %6996 = vmatprep.subr.bf16.mxu1 %v9084_v24  ;;  %v9168_v23 = vld [vmem:[%s13802_s1 + $0x468] ss:$16 sps:$4 sm:$0xff]   ;;  %v9173_v24 = vld [vmem:[%s13802_s1 + $0x484] ss:$16 sps:$4 sm:$0xff]  }
  0x57   :  { %6341 = vmatpush1.bf16.msra.mxu0 %v9079_v25  ;;  %6997 = vmatpush1.bf16.msra.mxu1 %v9082_v26  ;;  %v9176_v25 = vld [vmem:[%s13802_s1 + $0x48c] ss:$16 sps:$4 sm:$0xff]   ;;  %v9171_v26 = vld [vmem:[%s13802_s1 + $0x480] ss:$16 sps:$4 sm:$0xff]  }
  0x58   :  { %6342 = vmatprep.subr.bf16.mxu0 %v9087_v27  ;;  %6998 = vmatprep.subr.bf16.mxu1 %v9090_v28  ;;  %v9174_v27 = vld [vmem:[%s13802_s1 + $0x488] ss:$16 sps:$4 sm:$0xff]   ;;  %v9179_v28 = vld [vmem:[%s13802_s1 + $0x4a4] ss:$16 sps:$4 sm:$0xff]  }
  0x5b   :  { %6343 = vmatpush1.bf16.msra.mxu0 %v9085_v31  ;;  %6999 = vmatpush1.bf16.msra.mxu1 %v9088_v32  ;;  %v9180_v31 = vld [vmem:[%s13802_s1 + $0x4a8] ss:$16 sps:$4 sm:$0xff]   ;;  %v9185_v32 = vld [vmem:[%s13802_s1 + $0x4c4] ss:$16 sps:$4 sm:$0xff]  }
  0x5c   :  { %6344 = vmatprep.subr.bf16.mxu0 %v9093_v33  ;;  %7000 = vmatprep.subr.bf16.mxu1 %v9096_v34  ;;  %v9188_v33 = vld [vmem:[%s13802_s1 + $0x4cc] ss:$16 sps:$4 sm:$0xff]   ;;  %v9183_v34 = vld [vmem:[%s13802_s1 + $0x4c0] ss:$16 sps:$4 sm:$0xff]  }
  0x5f   :  { %6345 = vmatpush1.bf16.msra.mxu0 %v9091_v35  ;;  %7001 = vmatpush1.bf16.msra.mxu1 %v9094_v36  ;;  %v9186_v35 = vld [vmem:[%s13802_s1 + $0x4c8] ss:$16 sps:$4 sm:$0xff]   ;;  %v9191_v36 = vld [vmem:[%s13802_s1 + $0x4e4] ss:$16 sps:$4 sm:$0xff]  }
  0x60   :  { %6346 = vmatprep.subr.bf16.mxu0 %v9099_v37  ;;  %7002 = vmatprep.subr.bf16.mxu1 %v9102_v38  ;;  %v9194_v37 = vld [vmem:[%s13802_s1 + $0x4ec] ss:$16 sps:$4 sm:$0xff]   ;;  %v9189_v38 = vld [vmem:[%s13802_s1 + $0x4e0] ss:$16 sps:$4 sm:$0xff]  }
  0x63   :  { %6347 = vmatpush1.bf16.msra.mxu0 %v9097_v39  ;;  %7003 = vmatpush1.bf16.msra.mxu1 %v9100_v40  ;;  %v9192_v39 = vld [vmem:[%s13802_s1 + $0x4e8] ss:$16 sps:$4 sm:$0xff]   ;;  %v9197_v40 = vld [vmem:[%s13802_s1 + $0x504] ss:$16 sps:$4 sm:$0xff]  }
  0x64   :  { %6348 = vmatprep.subr.bf16.mxu0 %v9105_v41  ;;  %7004 = vmatprep.subr.bf16.mxu1 %v9108_v42  ;;  %v9200_v41 = vld [vmem:[%s13802_s1 + $0x50c] ss:$16 sps:$4 sm:$0xff]   ;;  %v9195_v42 = vld [vmem:[%s13802_s1 + $0x500] ss:$16 sps:$4 sm:$0xff]  }
  0x67   :  { %6349 = vmatpush1.bf16.msra.mxu0 %v9103_v43  ;;  %7005 = vmatpush1.bf16.msra.mxu1 %v9106_v44  ;;  %v9198_v43 = vld [vmem:[%s13802_s1 + $0x508] ss:$16 sps:$4 sm:$0xff]   ;;  %v9203_v44 = vld [vmem:[%s13802_s1 + $0x524] ss:$16 sps:$4 sm:$0xff]  }
  0x68   :  { %6350 = vmatprep.subr.bf16.mxu0 %v9111_v45  ;;  %7006 = vmatprep.subr.bf16.mxu1 %v9114_v46  ;;  %v9206_v45 = vld [vmem:[%s13802_s1 + $0x52c] ss:$16 sps:$4 sm:$0xff]   ;;  %v9201_v46 = vld [vmem:[%s13802_s1 + $0x520] ss:$16 sps:$4 sm:$0xff]  }
  0x6b   :  { %6351 = vmatpush1.bf16.msra.mxu0 %v9109_v47  ;;  %7007 = vmatpush1.bf16.msra.mxu1 %v9112_v48  ;;  %v9204_v47 = vld [vmem:[%s13802_s1 + $0x528] ss:$16 sps:$4 sm:$0xff]   ;;  %v9209_v48 = vld [vmem:[%s13802_s1 + $0x544] ss:$16 sps:$4 sm:$0xff]  }
  0x6c   :  { %6352 = vmatprep.subr.bf16.mxu0 %v9117_v49  ;;  %7008 = vmatprep.subr.bf16.mxu1 %v9120_v50  ;;  %v9212_v49 = vld [vmem:[%s13802_s1 + $0x54c] ss:$16 sps:$4 sm:$0xff]   ;;  %v9207_v50 = vld [vmem:[%s13802_s1 + $0x540] ss:$16 sps:$4 sm:$0xff]  }
  0x6f   :  { %6353 = vmatpush1.bf16.msra.mxu0 %v9115_v51  ;;  %7009 = vmatpush1.bf16.msra.mxu1 %v9118_v52  ;;  %v9210_v51 = vld [vmem:[%s13802_s1 + $0x548] ss:$16 sps:$4 sm:$0xff]   ;;  %v9215_v52 = vld [vmem:[%s13802_s1 + $0x564] ss:$16 sps:$4 sm:$0xff]  }
  0x70   :  { %6354 = vmatprep.subr.bf16.mxu0 %v9123_v53  ;;  %7010 = vmatprep.subr.bf16.mxu1 %v9126_v54  ;;  %v9218_v53 = vld [vmem:[%s13802_s1 + $0x56c] ss:$16 sps:$4 sm:$0xff]   ;;  %v9213_v54 = vld [vmem:[%s13802_s1 + $0x560] ss:$16 sps:$4 sm:$0xff]  }
  0x73   :  { %6355 = vmatpush1.bf16.msra.mxu0 %v9121_v55  ;;  %7011 = vmatpush1.bf16.msra.mxu1 %v9124_v56  ;;  %v9216_v55 = vld [vmem:[%s13802_s1 + $0x568] ss:$16 sps:$4 sm:$0xff]   ;;  %v9221_v56 = vld [vmem:[%s13802_s1 + $0x584] ss:$16 sps:$4 sm:$0xff]  }
  0x74   :  { %6356 = vmatprep.subr.bf16.mxu0 %v9129_v57  ;;  %7012 = vmatprep.subr.bf16.mxu1 %v9132_v58  ;;  %v9224_v57 = vld [vmem:[%s13802_s1 + $0x58c] ss:$16 sps:$4 sm:$0xff]   ;;  %v9219_v58 = vld [vmem:[%s13802_s1 + $0x580] ss:$16 sps:$4 sm:$0xff]  }
  0x77   :  { %6357 = vmatpush1.bf16.msra.mxu0 %v9127_v59  ;;  %7013 = vmatpush1.bf16.msra.mxu1 %v9130_v60  ;;  %v9222_v59 = vld [vmem:[%s13802_s1 + $0x588] ss:$16 sps:$4 sm:$0xff]   ;;  %v9227_v60 = vld [vmem:[%s13802_s1 + $0x5a4] ss:$16 sps:$4 sm:$0xff]  }
  0x78   :  { %6358 = vmatprep.subr.bf16.mxu0 %v9135_v61  ;;  %7014 = vmatprep.subr.bf16.mxu1 %v9138_v62  ;;  %v9230_v61 = vld [vmem:[%s13802_s1 + $0x5ac] ss:$16 sps:$4 sm:$0xff]   ;;  %v9225_v62 = vld [vmem:[%s13802_s1 + $0x5a0] ss:$16 sps:$4 sm:$0xff]  }
  0x7b   :  { %6359 = vmatpush1.bf16.msra.mxu0 %v9133_v63  ;;  %7015 = vmatpush1.bf16.msra.mxu1 %v9136_v0  ;;  %v9228_v63 = vld [vmem:[%s13802_s1 + $0x5a8] ss:$16 sps:$4 sm:$0xff]   ;;  %v9233_v0 = vld [vmem:[%s13802_s1 + $0x5c4] ss:$16 sps:$4 sm:$0xff]  }
  0x7c   :  { %6360 = vmatprep.subr.bf16.mxu0 %v9141_v1  ;;  %7016 = vmatprep.subr.bf16.mxu1 %v9144_v2  ;;  %v9236_v1 = vld [vmem:[%s13802_s1 + $0x5cc] ss:$16 sps:$4 sm:$0xff]   ;;  %v9231_v2 = vld [vmem:[%s13802_s1 + $0x5c0] ss:$16 sps:$4 sm:$0xff]  }
  0x7f   :  { %6361 = vmatpush1.bf16.msra.mxu0 %v9139_v3  ;;  %7017 = vmatpush1.bf16.msra.mxu1 %v9142_v4  ;;  %v9234_v3 = vld [vmem:[%s13802_s1 + $0x5c8] ss:$16 sps:$4 sm:$0xff]   ;;  %v9239_v4 = vld [vmem:[%s13802_s1 + $0x5e4] ss:$16 sps:$4 sm:$0xff]  }
  0x80   :  { %6371 = vmatprep.subr.bf16.mxu0 %v9149_v5  ;;  %7027 = vmatprep.subr.bf16.mxu1 %v9152_v6  ;;  %v9242_v5 = vld [vmem:[%s13802_s1 + $0x5ec] ss:$16 sps:$4 sm:$0xff]   ;;  %v9237_v6 = vld [vmem:[%s13802_s1 + $0x5e0] ss:$16 sps:$4 sm:$0xff]  }
  0x82   :  { %6363 = vmatmul.mubr.bf16.vlgmr.msra.gmra.mrb[0].mxu0 %v7773_v7  ;;  %7019 = vmatmul.mubr.bf16.vlgmr.msra.gmra.mrb[0].mxu1 %v7773_v7  ;;  %v9240_v7 = vld [vmem:[%s13802_s1 + $0x5e8] ss:$16 sps:$4 sm:$0xff]  }
  0x83   :  { %6372 = vmatpush1.bf16.msra.mxu0 %v9147_v8  ;;  %7028 = vmatpush1.bf16.msra.mxu1 %v9150_v9  ;;  %v9247_v8 = vld [vmem:[%s13802_s1 + $0x604] ss:$16 sps:$4 sm:$0xff]   ;;  %v9250_v9 = vld [vmem:[%s13802_s1 + $0x60c] ss:$16 sps:$4 sm:$0xff]  }
  0x84   :  { %6373 = vmatprep.subr.bf16.mxu0 %v9155_v10  ;;  %7029 = vmatprep.subr.bf16.mxu1 %v9158_v12  ;;  %v9245_v10 = vld [vmem:[%s13802_s1 + $0x600] ss:$16 sps:$4 sm:$0xff]   ;;  %v7775_v12 = vcombine.low %v10966_v11, %v10966_v11  ;;  %v9256_v11 = vld [vmem:[%s13802_s1 + $0x62c] ss:$16 sps:$4 sm:$0xff]  }
  0x85   :  { %6403 = vmatprep.mubr.bf16.mxu0 %v7776_v13  ;;  %7059 = vmatprep.mubr.bf16.mxu1 %v7776_v13  ;;  %v9248_v13 = vld [vmem:[%s13802_s1 + $0x608] ss:$16 sps:$4 sm:$0xff]  }
  0x87   :  { %6374 = vmatpush1.bf16.msra.mxu0 %v9153_v14  ;;  %7030 = vmatpush1.bf16.msra.mxu1 %v9156_v15  ;;  %v11164_v14 = vld [vmem:[%s13803_s0 + $0x18] sm:$0xff]  ;;  %v9253_v15 = vld [vmem:[%s13802_s1 + $0x624] ss:$16 sps:$4 sm:$0xff]  }
  0x88   :  { %6375 = vmatprep.subr.bf16.mxu0 %v9161_v16  ;;  %7031 = vmatprep.subr.bf16.mxu1 %v9164_v17  ;;  %v7778_v16 = vcombine.high %v11164_v14, %v11164_v14  ;;  %v9251_v17 = vld [vmem:[%s13802_s1 + $0x620] ss:$16 sps:$4 sm:$0xff]  }
  0x8b   :  { %6376 = vmatpush1.bf16.msra.mxu0 %v9159_v18  ;;  %7032 = vmatpush1.bf16.msra.mxu1 %v9162_v19  ;;  %v9254_v18 = vld [vmem:[%s13802_s1 + $0x628] ss:$16 sps:$4 sm:$0xff]   ;;  %v9259_v19 = vld [vmem:[%s13802_s1 + $0x644] ss:$16 sps:$4 sm:$0xff]  }
  0x8c   :  { %6377 = vmatprep.subr.bf16.mxu0 %v9167_v20  ;;  %7033 = vmatprep.subr.bf16.mxu1 %v9170_v21  ;;  %v9262_v20 = vld [vmem:[%s13802_s1 + $0x64c] ss:$16 sps:$4 sm:$0xff]   ;;  %v9257_v21 = vld [vmem:[%s13802_s1 + $0x640] ss:$16 sps:$4 sm:$0xff]  }
  0x8f   :  { %6378 = vmatpush1.bf16.msra.mxu0 %v9165_v22  ;;  %7034 = vmatpush1.bf16.msra.mxu1 %v9168_v23  ;;  %v9260_v22 = vld [vmem:[%s13802_s1 + $0x648] ss:$16 sps:$4 sm:$0xff]   ;;  %v9265_v23 = vld [vmem:[%s13802_s1 + $0x664] ss:$16 sps:$4 sm:$0xff]  }
  0x90   :  { %6379 = vmatprep.subr.bf16.mxu0 %v9173_v24  ;;  %7035 = vmatprep.subr.bf16.mxu1 %v9176_v25  ;;  %v9268_v24 = vld [vmem:[%s13802_s1 + $0x66c] ss:$16 sps:$4 sm:$0xff]   ;;  %v9263_v25 = vld [vmem:[%s13802_s1 + $0x660] ss:$16 sps:$4 sm:$0xff]  }
  0x93   :  { %6380 = vmatpush1.bf16.msra.mxu0 %v9171_v26  ;;  %7036 = vmatpush1.bf16.msra.mxu1 %v9174_v27  ;;  %v9266_v26 = vld [vmem:[%s13802_s1 + $0x668] ss:$16 sps:$4 sm:$0xff]   ;;  %v9271_v27 = vld [vmem:[%s13802_s1 + $0x684] ss:$16 sps:$4 sm:$0xff]  }
  0x94   :  { %6381 = vmatprep.subr.bf16.mxu0 %v9179_v28  ;;  %7037 = vmatprep.subr.bf16.mxu1 %v9182_v29  ;;  %v9274_v28 = vld [vmem:[%s13802_s1 + $0x68c] ss:$16 sps:$4 sm:$0xff]   ;;  %v9269_v29 = vld [vmem:[%s13802_s1 + $0x680] ss:$16 sps:$4 sm:$0xff]  }
  0x97   :  { %6382 = vmatpush1.bf16.msra.mxu0 %v9177_v30  ;;  %7038 = vmatpush1.bf16.msra.mxu1 %v9180_v31  ;;  %v9272_v30 = vld [vmem:[%s13802_s1 + $0x688] ss:$16 sps:$4 sm:$0xff]   ;;  %v9277_v31 = vld [vmem:[%s13802_s1 + $0x6a4] ss:$16 sps:$4 sm:$0xff]  }
  0x98   :  { %6383 = vmatprep.subr.bf16.mxu0 %v9185_v32  ;;  %7039 = vmatprep.subr.bf16.mxu1 %v9188_v33  ;;  %v9280_v32 = vld [vmem:[%s13802_s1 + $0x6ac] ss:$16 sps:$4 sm:$0xff]   ;;  %v9275_v33 = vld [vmem:[%s13802_s1 + $0x6a0] ss:$16 sps:$4 sm:$0xff]  }
  0x9b   :  { %6384 = vmatpush1.bf16.msra.mxu0 %v9183_v34  ;;  %7040 = vmatpush1.bf16.msra.mxu1 %v9186_v35  ;;  %v9278_v34 = vld [vmem:[%s13802_s1 + $0x6a8] ss:$16 sps:$4 sm:$0xff]   ;;  %v9283_v35 = vld [vmem:[%s13802_s1 + $0x6c4] ss:$16 sps:$4 sm:$0xff]  }
  0x9c   :  { %6385 = vmatprep.subr.bf16.mxu0 %v9191_v36  ;;  %7041 = vmatprep.subr.bf16.mxu1 %v9194_v37  ;;  %v9286_v36 = vld [vmem:[%s13802_s1 + $0x6cc] ss:$16 sps:$4 sm:$0xff]   ;;  %v9281_v37 = vld [vmem:[%s13802_s1 + $0x6c0] ss:$16 sps:$4 sm:$0xff]  }
  0x9f   :  { %6386 = vmatpush1.bf16.msra.mxu0 %v9189_v38  ;;  %7042 = vmatpush1.bf16.msra.mxu1 %v9192_v39  ;;  %v9284_v38 = vld [vmem:[%s13802_s1 + $0x6c8] ss:$16 sps:$4 sm:$0xff]   ;;  %v9289_v39 = vld [vmem:[%s13802_s1 + $0x6e4] ss:$16 sps:$4 sm:$0xff]  }
  0xa0   :  { %6387 = vmatprep.subr.bf16.mxu0 %v9197_v40  ;;  %7043 = vmatprep.subr.bf16.mxu1 %v9200_v41  ;;  %v9292_v40 = vld [vmem:[%s13802_s1 + $0x6ec] ss:$16 sps:$4 sm:$0xff]   ;;  %v9287_v41 = vld [vmem:[%s13802_s1 + $0x6e0] ss:$16 sps:$4 sm:$0xff]  }
  0xa3   :  { %6388 = vmatpush1.bf16.msra.mxu0 %v9195_v42  ;;  %7044 = vmatpush1.bf16.msra.mxu1 %v9198_v43  ;;  %v9290_v42 = vld [vmem:[%s13802_s1 + $0x6e8] ss:$16 sps:$4 sm:$0xff]   ;;  %v9295_v43 = vld [vmem:[%s13802_s1 + $0x704] ss:$16 sps:$4 sm:$0xff]  }
  0xa4   :  { %6389 = vmatprep.subr.bf16.mxu0 %v9203_v44  ;;  %7045 = vmatprep.subr.bf16.mxu1 %v9206_v45  ;;  %v9298_v44 = vld [vmem:[%s13802_s1 + $0x70c] ss:$16 sps:$4 sm:$0xff]   ;;  %v9293_v45 = vld [vmem:[%s13802_s1 + $0x700] ss:$16 sps:$4 sm:$0xff]  }
  0xa7   :  { %6390 = vmatpush1.bf16.msra.mxu0 %v9201_v46  ;;  %7046 = vmatpush1.bf16.msra.mxu1 %v9204_v47  ;;  %v9296_v46 = vld [vmem:[%s13802_s1 + $0x708] ss:$16 sps:$4 sm:$0xff]   ;;  %v9301_v47 = vld [vmem:[%s13802_s1 + $0x724] ss:$16 sps:$4 sm:$0xff]  }
  0xa8   :  { %6391 = vmatprep.subr.bf16.mxu0 %v9209_v48  ;;  %7047 = vmatprep.subr.bf16.mxu1 %v9212_v49  ;;  %v9304_v48 = vld [vmem:[%s13802_s1 + $0x72c] ss:$16 sps:$4 sm:$0xff]   ;;  %v9299_v49 = vld [vmem:[%s13802_s1 + $0x720] ss:$16 sps:$4 sm:$0xff]  }
  0xab   :  { %6392 = vmatpush1.bf16.msra.mxu0 %v9207_v50  ;;  %7048 = vmatpush1.bf16.msra.mxu1 %v9210_v51  ;;  %v9302_v50 = vld [vmem:[%s13802_s1 + $0x728] ss:$16 sps:$4 sm:$0xff]   ;;  %v9307_v51 = vld [vmem:[%s13802_s1 + $0x744] ss:$16 sps:$4 sm:$0xff]  }
  0xac   :  { %6393 = vmatprep.subr.bf16.mxu0 %v9215_v52  ;;  %7049 = vmatprep.subr.bf16.mxu1 %v9218_v53  ;;  %v9310_v52 = vld [vmem:[%s13802_s1 + $0x74c] ss:$16 sps:$4 sm:$0xff]   ;;  %v9305_v53 = vld [vmem:[%s13802_s1 + $0x740] ss:$16 sps:$4 sm:$0xff]  }
  0xaf   :  { %6394 = vmatpush1.bf16.msra.mxu0 %v9213_v54  ;;  %7050 = vmatpush1.bf16.msra.mxu1 %v9216_v55  ;;  %v9308_v54 = vld [vmem:[%s13802_s1 + $0x748] ss:$16 sps:$4 sm:$0xff]   ;;  %v9313_v55 = vld [vmem:[%s13802_s1 + $0x764] ss:$16 sps:$4 sm:$0xff]  }
  0xb0   :  { %6395 = vmatprep.subr.bf16.mxu0 %v9221_v56  ;;  %7051 = vmatprep.subr.bf16.mxu1 %v9224_v57  ;;  %v9316_v56 = vld [vmem:[%s13802_s1 + $0x76c] ss:$16 sps:$4 sm:$0xff]   ;;  %v9311_v57 = vld [vmem:[%s13802_s1 + $0x760] ss:$16 sps:$4 sm:$0xff]  }
  0xb3   :  { %6396 = vmatpush1.bf16.msra.mxu0 %v9219_v58  ;;  %7052 = vmatpush1.bf16.msra.mxu1 %v9222_v59  ;;  %v9314_v58 = vld [vmem:[%s13802_s1 + $0x768] ss:$16 sps:$4 sm:$0xff]   ;;  %v9319_v59 = vld [vmem:[%s13802_s1 + $0x784] ss:$16 sps:$4 sm:$0xff]  }
  0xb4   :  { %6397 = vmatprep.subr.bf16.mxu0 %v9227_v60  ;;  %7053 = vmatprep.subr.bf16.mxu1 %v9230_v61  ;;  %v9322_v60 = vld [vmem:[%s13802_s1 + $0x78c] ss:$16 sps:$4 sm:$0xff]   ;;  %v9317_v61 = vld [vmem:[%s13802_s1 + $0x780] ss:$16 sps:$4 sm:$0xff]  }
  0xb7   :  { %6398 = vmatpush1.bf16.msra.mxu0 %v9225_v62  ;;  %7054 = vmatpush1.bf16.msra.mxu1 %v9228_v63  ;;  %v9320_v62 = vld [vmem:[%s13802_s1 + $0x788] ss:$16 sps:$4 sm:$0xff]   ;;  %v9325_v63 = vld [vmem:[%s13802_s1 + $0x7a4] ss:$16 sps:$4 sm:$0xff]  }
  0xb8   :  { %6399 = vmatprep.subr.bf16.mxu0 %v9233_v0  ;;  %7055 = vmatprep.subr.bf16.mxu1 %v9236_v1  ;;  %v9328_v0 = vld [vmem:[%s13802_s1 + $0x7ac] ss:$16 sps:$4 sm:$0xff]   ;;  %v9323_v1 = vld [vmem:[%s13802_s1 + $0x7a0] ss:$16 sps:$4 sm:$0xff]  }
  0xbb   :  { %6400 = vmatpush1.bf16.msra.mxu0 %v9231_v2  ;;  %7056 = vmatpush1.bf16.msra.mxu1 %v9234_v3  ;;  %v9326_v2 = vld [vmem:[%s13802_s1 + $0x7a8] ss:$16 sps:$4 sm:$0xff]   ;;  %v9331_v3 = vld [vmem:[%s13802_s1 + $0x7c4] ss:$16 sps:$4 sm:$0xff]  }
  0xbc   :  { %6401 = vmatprep.subr.bf16.mxu0 %v9239_v4  ;;  %7057 = vmatprep.subr.bf16.mxu1 %v9242_v5  ;;  %v9334_v4 = vld [vmem:[%s13802_s1 + $0x7cc] ss:$16 sps:$4 sm:$0xff]   ;;  %v9329_v5 = vld [vmem:[%s13802_s1 + $0x7c0] ss:$16 sps:$4 sm:$0xff]  }
  0xbf   :  { %6402 = vmatpush1.bf16.msra.mxu0 %v9237_v6  ;;  %7058 = vmatpush1.bf16.msra.mxu1 %v9240_v7  ;;  %v9332_v6 = vld [vmem:[%s13802_s1 + $0x7c8] ss:$16 sps:$4 sm:$0xff]   ;;  %v9337_v7 = vld [vmem:[%s13802_s1 + $0x7e4] ss:$16 sps:$4 sm:$0xff]  }
  0xc0   :  { %6412 = vmatprep.subr.bf16.mxu0 %v9247_v8  ;;  %7068 = vmatprep.subr.bf16.mxu1 %v9250_v9  ;;  %v9340_v8 = vld [vmem:[%s13802_s1 + $0x7ec] ss:$16 sps:$4 sm:$0xff]   ;;  %v9335_v9 = vld [vmem:[%s13802_s1 + $0x7e0] ss:$16 sps:$4 sm:$0xff]  }
  0xc2   :  { %6404 = vmatmul.mubr.bf16.vlgmr.msra.gmra.mrb[0].mxu0 %v7775_v12  ;;  %7060 = vmatmul.mubr.bf16.vlgmr.msra.gmra.mrb[0].mxu1 %v7775_v12  ;;  %v9345_v12 = vld [vmem:[%s13802_s1 + $0x804] ss:$16 sps:$4 sm:$0xff]  }
  0xc3   :  { %6413 = vmatpush1.bf16.msra.mxu0 %v9245_v10  ;;  %7069 = vmatpush1.bf16.msra.mxu1 %v9248_v13  ;;  %v9338_v10 = vld [vmem:[%s13802_s1 + $0x7e8] ss:$16 sps:$4 sm:$0xff]   ;;  %v9348_v13 = vld [vmem:[%s13802_s1 + $0x80c] ss:$16 sps:$4 sm:$0xff]  }
  0xc4   :  { %6414 = vmatprep.subr.bf16.mxu0 %v9253_v15  ;;  %7070 = vmatprep.subr.bf16.mxu1 %v9256_v11  ;;  %v9343_v15 = vld [vmem:[%s13802_s1 + $0x800] ss:$16 sps:$4 sm:$0xff]   ;;  %v7777_v11 = vcombine.low %v11164_v14, %v11164_v14  ;;  %v9354_v14 = vld [vmem:[%s13802_s1 + $0x82c] ss:$16 sps:$4 sm:$0xff]  }
  0xc5   :  { %6444 = vmatprep.mubr.bf16.mxu0 %v7778_v16  ;;  %7100 = vmatprep.mubr.bf16.mxu1 %v7778_v16  ;;  %v11362_v16 = vld [vmem:[%s13803_s0 + $0x20] sm:$0xff] }
  0xc7   :  { %6415 = vmatpush1.bf16.msra.mxu0 %v9251_v17  ;;  %7071 = vmatpush1.bf16.msra.mxu1 %v9254_v18  ;;  %v9346_v17 = vld [vmem:[%s13802_s1 + $0x808] ss:$16 sps:$4 sm:$0xff]   ;;  %v9351_v18 = vld [vmem:[%s13802_s1 + $0x824] ss:$16 sps:$4 sm:$0xff]  }
  0xc8   :  { %6416 = vmatprep.subr.bf16.mxu0 %v9259_v19  ;;  %7072 = vmatprep.subr.bf16.mxu1 %v9262_v20  ;;  %v7780_v19 = vcombine.high %v11362_v16, %v11362_v16  ;;  %v9349_v20 = vld [vmem:[%s13802_s1 + $0x820] ss:$16 sps:$4 sm:$0xff]  }
  0xcb   :  { %6417 = vmatpush1.bf16.msra.mxu0 %v9257_v21  ;;  %7073 = vmatpush1.bf16.msra.mxu1 %v9260_v22  ;;  %v9352_v21 = vld [vmem:[%s13802_s1 + $0x828] ss:$16 sps:$4 sm:$0xff]   ;;  %v9357_v22 = vld [vmem:[%s13802_s1 + $0x844] ss:$16 sps:$4 sm:$0xff]  }
  0xcc   :  { %6418 = vmatprep.subr.bf16.mxu0 %v9265_v23  ;;  %7074 = vmatprep.subr.bf16.mxu1 %v9268_v24  ;;  %v9360_v23 = vld [vmem:[%s13802_s1 + $0x84c] ss:$16 sps:$4 sm:$0xff]   ;;  %v9355_v24 = vld [vmem:[%s13802_s1 + $0x840] ss:$16 sps:$4 sm:$0xff]  }
  0xcf   :  { %6419 = vmatpush1.bf16.msra.mxu0 %v9263_v25  ;;  %7075 = vmatpush1.bf16.msra.mxu1 %v9266_v26  ;;  %v9358_v25 = vld [vmem:[%s13802_s1 + $0x848] ss:$16 sps:$4 sm:$0xff]   ;;  %v9363_v26 = vld [vmem:[%s13802_s1 + $0x864] ss:$16 sps:$4 sm:$0xff]  }
  0xd0   :  { %6420 = vmatprep.subr.bf16.mxu0 %v9271_v27  ;;  %7076 = vmatprep.subr.bf16.mxu1 %v9274_v28  ;;  %v9366_v27 = vld [vmem:[%s13802_s1 + $0x86c] ss:$16 sps:$4 sm:$0xff]   ;;  %v9361_v28 = vld [vmem:[%s13802_s1 + $0x860] ss:$16 sps:$4 sm:$0xff]  }
  0xd3   :  { %6421 = vmatpush1.bf16.msra.mxu0 %v9269_v29  ;;  %7077 = vmatpush1.bf16.msra.mxu1 %v9272_v30  ;;  %v9364_v29 = vld [vmem:[%s13802_s1 + $0x868] ss:$16 sps:$4 sm:$0xff]   ;;  %v9369_v30 = vld [vmem:[%s13802_s1 + $0x884] ss:$16 sps:$4 sm:$0xff]  }
  0xd4   :  { %6422 = vmatprep.subr.bf16.mxu0 %v9277_v31  ;;  %7078 = vmatprep.subr.bf16.mxu1 %v9280_v32  ;;  %v9372_v31 = vld [vmem:[%s13802_s1 + $0x88c] ss:$16 sps:$4 sm:$0xff]   ;;  %v9367_v32 = vld [vmem:[%s13802_s1 + $0x880] ss:$16 sps:$4 sm:$0xff]  }
  0xd7   :  { %6423 = vmatpush1.bf16.msra.mxu0 %v9275_v33  ;;  %7079 = vmatpush1.bf16.msra.mxu1 %v9278_v34  ;;  %v9370_v33 = vld [vmem:[%s13802_s1 + $0x888] ss:$16 sps:$4 sm:$0xff]   ;;  %v9375_v34 = vld [vmem:[%s13802_s1 + $0x8a4] ss:$16 sps:$4 sm:$0xff]  }
  0xd8   :  { %6424 = vmatprep.subr.bf16.mxu0 %v9283_v35  ;;  %7080 = vmatprep.subr.bf16.mxu1 %v9286_v36  ;;  %v9378_v35 = vld [vmem:[%s13802_s1 + $0x8ac] ss:$16 sps:$4 sm:$0xff]   ;;  %v9373_v36 = vld [vmem:[%s13802_s1 + $0x8a0] ss:$16 sps:$4 sm:$0xff]  }
  0xdb   :  { %6425 = vmatpush1.bf16.msra.mxu0 %v9281_v37  ;;  %7081 = vmatpush1.bf16.msra.mxu1 %v9284_v38  ;;  %v9376_v37 = vld [vmem:[%s13802_s1 + $0x8a8] ss:$16 sps:$4 sm:$0xff]   ;;  %v9381_v38 = vld [vmem:[%s13802_s1 + $0x8c4] ss:$16 sps:$4 sm:$0xff]  }
  0xdc   :  { %6426 = vmatprep.subr.bf16.mxu0 %v9289_v39  ;;  %7082 = vmatprep.subr.bf16.mxu1 %v9292_v40  ;;  %v9384_v39 = vld [vmem:[%s13802_s1 + $0x8cc] ss:$16 sps:$4 sm:$0xff]   ;;  %v9379_v40 = vld [vmem:[%s13802_s1 + $0x8c0] ss:$16 sps:$4 sm:$0xff]  }
  0xdf   :  { %6427 = vmatpush1.bf16.msra.mxu0 %v9287_v41  ;;  %7083 = vmatpush1.bf16.msra.mxu1 %v9290_v42  ;;  %v9382_v41 = vld [vmem:[%s13802_s1 + $0x8c8] ss:$16 sps:$4 sm:$0xff]   ;;  %v9387_v42 = vld [vmem:[%s13802_s1 + $0x8e4] ss:$16 sps:$4 sm:$0xff]  }
  0xe0   :  { %6428 = vmatprep.subr.bf16.mxu0 %v9295_v43  ;;  %7084 = vmatprep.subr.bf16.mxu1 %v9298_v44  ;;  %v9390_v43 = vld [vmem:[%s13802_s1 + $0x8ec] ss:$16 sps:$4 sm:$0xff]   ;;  %v9385_v44 = vld [vmem:[%s13802_s1 + $0x8e0] ss:$16 sps:$4 sm:$0xff]  }
  0xe3   :  { %6429 = vmatpush1.bf16.msra.mxu0 %v9293_v45  ;;  %7085 = vmatpush1.bf16.msra.mxu1 %v9296_v46  ;;  %v9388_v45 = vld [vmem:[%s13802_s1 + $0x8e8] ss:$16 sps:$4 sm:$0xff]   ;;  %v9393_v46 = vld [vmem:[%s13802_s1 + $0x904] ss:$16 sps:$4 sm:$0xff]  }
  0xe4   :  { %6430 = vmatprep.subr.bf16.mxu0 %v9301_v47  ;;  %7086 = vmatprep.subr.bf16.mxu1 %v9304_v48  ;;  %v9396_v47 = vld [vmem:[%s13802_s1 + $0x90c] ss:$16 sps:$4 sm:$0xff]   ;;  %v9391_v48 = vld [vmem:[%s13802_s1 + $0x900] ss:$16 sps:$4 sm:$0xff]  }
  0xe7   :  { %6431 = vmatpush1.bf16.msra.mxu0 %v9299_v49  ;;  %7087 = vmatpush1.bf16.msra.mxu1 %v9302_v50  ;;  %v9394_v49 = vld [vmem:[%s13802_s1 + $0x908] ss:$16 sps:$4 sm:$0xff]   ;;  %v9399_v50 = vld [vmem:[%s13802_s1 + $0x924] ss:$16 sps:$4 sm:$0xff]  }
  0xe8   :  { %6432 = vmatprep.subr.bf16.mxu0 %v9307_v51  ;;  %7088 = vmatprep.subr.bf16.mxu1 %v9310_v52  ;;  %v9402_v51 = vld [vmem:[%s13802_s1 + $0x92c] ss:$16 sps:$4 sm:$0xff]   ;;  %v9397_v52 = vld [vmem:[%s13802_s1 + $0x920] ss:$16 sps:$4 sm:$0xff]  }
  0xeb   :  { %6433 = vmatpush1.bf16.msra.mxu0 %v9305_v53  ;;  %7089 = vmatpush1.bf16.msra.mxu1 %v9308_v54  ;;  %v9400_v53 = vld [vmem:[%s13802_s1 + $0x928] ss:$16 sps:$4 sm:$0xff]   ;;  %v9405_v54 = vld [vmem:[%s13802_s1 + $0x944] ss:$16 sps:$4 sm:$0xff]  }
  0xec   :  { %6434 = vmatprep.subr.bf16.mxu0 %v9313_v55  ;;  %7090 = vmatprep.subr.bf16.mxu1 %v9316_v56  ;;  %v9408_v55 = vld [vmem:[%s13802_s1 + $0x94c] ss:$16 sps:$4 sm:$0xff]   ;;  %v9403_v56 = vld [vmem:[%s13802_s1 + $0x940] ss:$16 sps:$4 sm:$0xff]  }
  0xef   :  { %6435 = vmatpush1.bf16.msra.mxu0 %v9311_v57  ;;  %7091 = vmatpush1.bf16.msra.mxu1 %v9314_v58  ;;  %v9406_v57 = vld [vmem:[%s13802_s1 + $0x948] ss:$16 sps:$4 sm:$0xff]   ;;  %v9411_v58 = vld [vmem:[%s13802_s1 + $0x964] ss:$16 sps:$4 sm:$0xff]  }
  0xf0   :  { %6436 = vmatprep.subr.bf16.mxu0 %v9319_v59  ;;  %7092 = vmatprep.subr.bf16.mxu1 %v9322_v60  ;;  %v9414_v59 = vld [vmem:[%s13802_s1 + $0x96c] ss:$16 sps:$4 sm:$0xff]   ;;  %v9409_v60 = vld [vmem:[%s13802_s1 + $0x960] ss:$16 sps:$4 sm:$0xff]  }
  0xf3   :  { %6437 = vmatpush1.bf16.msra.mxu0 %v9317_v61  ;;  %7093 = vmatpush1.bf16.msra.mxu1 %v9320_v62  ;;  %v9412_v61 = vld [vmem:[%s13802_s1 + $0x968] ss:$16 sps:$4 sm:$0xff]   ;;  %v9417_v62 = vld [vmem:[%s13802_s1 + $0x984] ss:$16 sps:$4 sm:$0xff]  }
  0xf4   :  { %6438 = vmatprep.subr.bf16.mxu0 %v9325_v63  ;;  %7094 = vmatprep.subr.bf16.mxu1 %v9328_v0  ;;  %v9420_v63 = vld [vmem:[%s13802_s1 + $0x98c] ss:$16 sps:$4 sm:$0xff]   ;;  %v9415_v0 = vld [vmem:[%s13802_s1 + $0x980] ss:$16 sps:$4 sm:$0xff]  }
  0xf7   :  { %6439 = vmatpush1.bf16.msra.mxu0 %v9323_v1  ;;  %7095 = vmatpush1.bf16.msra.mxu1 %v9326_v2  ;;  %v9418_v1 = vld [vmem:[%s13802_s1 + $0x988] ss:$16 sps:$4 sm:$0xff]   ;;  %v9423_v2 = vld [vmem:[%s13802_s1 + $0x9a4] ss:$16 sps:$4 sm:$0xff]  }
  0xf8   :  { %6440 = vmatprep.subr.bf16.mxu0 %v9331_v3  ;;  %7096 = vmatprep.subr.bf16.mxu1 %v9334_v4  ;;  %v9426_v3 = vld [vmem:[%s13802_s1 + $0x9ac] ss:$16 sps:$4 sm:$0xff]   ;;  %v9421_v4 = vld [vmem:[%s13802_s1 + $0x9a0] ss:$16 sps:$4 sm:$0xff]  }
  0xfb   :  { %6441 = vmatpush1.bf16.msra.mxu0 %v9329_v5  ;;  %7097 = vmatpush1.bf16.msra.mxu1 %v9332_v6  ;;  %v9424_v5 = vld [vmem:[%s13802_s1 + $0x9a8] ss:$16 sps:$4 sm:$0xff]   ;;  %v9429_v6 = vld [vmem:[%s13802_s1 + $0x9c4] ss:$16 sps:$4 sm:$0xff]  }
  0xfc   :  { %6442 = vmatprep.subr.bf16.mxu0 %v9337_v7  ;;  %7098 = vmatprep.subr.bf16.mxu1 %v9340_v8  ;;  %v9432_v7 = vld [vmem:[%s13802_s1 + $0x9cc] ss:$16 sps:$4 sm:$0xff]   ;;  %v9427_v8 = vld [vmem:[%s13802_s1 + $0x9c0] ss:$16 sps:$4 sm:$0xff]  }
  0xff   :  { %6443 = vmatpush1.bf16.msra.mxu0 %v9335_v9  ;;  %7099 = vmatpush1.bf16.msra.mxu1 %v9338_v10  ;;  %v9430_v9 = vld [vmem:[%s13802_s1 + $0x9c8] ss:$16 sps:$4 sm:$0xff]   ;;  %v9435_v10 = vld [vmem:[%s13802_s1 + $0x9e4] ss:$16 sps:$4 sm:$0xff]  }
 0x100   :  { %6453 = vmatprep.subr.bf16.mxu0 %v9345_v12  ;;  %7109 = vmatprep.subr.bf16.mxu1 %v9348_v13  ;;  %v9438_v12 = vld [vmem:[%s13802_s1 + $0x9ec] ss:$16 sps:$4 sm:$0xff]   ;;  %v9433_v13 = vld [vmem:[%s13802_s1 + $0x9e0] ss:$16 sps:$4 sm:$0xff]  }
 0x102   :  { %6445 = vmatmul.mubr.bf16.vlgmr.msra.gmra.mrb[0].mxu0 %v7777_v11  ;;  %7101 = vmatmul.mubr.bf16.vlgmr.msra.gmra.mrb[0].mxu1 %v7777_v11  ;;  %v9443_v11 = vld [vmem:[%s13802_s1 + $0xa04] ss:$16 sps:$4 sm:$0xff]  }
 0x103   :  { %6454 = vmatpush1.bf16.msra.mxu0 %v9343_v15  ;;  %7110 = vmatpush1.bf16.msra.mxu1 %v9346_v17  ;;  %v9436_v15 = vld [vmem:[%s13802_s1 + $0x9e8] ss:$16 sps:$4 sm:$0xff]   ;;  %v9446_v17 = vld [vmem:[%s13802_s1 + $0xa0c] ss:$16 sps:$4 sm:$0xff]  }
 0x104   :  { %6455 = vmatprep.subr.bf16.mxu0 %v9351_v18  ;;  %7111 = vmatprep.subr.bf16.mxu1 %v9354_v14  ;;  %v11558_v18 = vld [vmem:[%s13803_s0 + $0x28] sm:$0xff]  ;;  %v7779_v14 = vcombine.low %v11362_v16, %v11362_v16 }
 0x105   :  { %6485 = vmatprep.mubr.bf16.mxu0 %v7780_v19  ;;  %7141 = vmatprep.mubr.bf16.mxu1 %v7780_v19  ;;  %v9441_v19 = vld [vmem:[%s13802_s1 + $0xa00] ss:$16 sps:$4 sm:$0xff]   ;;  %v9452_v16 = vld [vmem:[%s13802_s1 + $0xa2c] ss:$16 sps:$4 sm:$0xff]  }
 0x107   :  { %6456 = vmatpush1.bf16.msra.mxu0 %v9349_v20  ;;  %7112 = vmatpush1.bf16.msra.mxu1 %v9352_v21  ;;  %v9444_v20 = vld [vmem:[%s13802_s1 + $0xa08] ss:$16 sps:$4 sm:$0xff]   ;;  %v9449_v21 = vld [vmem:[%s13802_s1 + $0xa24] ss:$16 sps:$4 sm:$0xff]  }
 0x108   :  { %6457 = vmatprep.subr.bf16.mxu0 %v9357_v22  ;;  %7113 = vmatprep.subr.bf16.mxu1 %v9360_v23  ;;  %v7782_v22 = vcombine.high %v11558_v18, %v11558_v18  ;;  %v9447_v23 = vld [vmem:[%s13802_s1 + $0xa20] ss:$16 sps:$4 sm:$0xff]  }
 0x10b   :  { %6458 = vmatpush1.bf16.msra.mxu0 %v9355_v24  ;;  %7114 = vmatpush1.bf16.msra.mxu1 %v9358_v25  ;;  %v9450_v24 = vld [vmem:[%s13802_s1 + $0xa28] ss:$16 sps:$4 sm:$0xff]   ;;  %v9455_v25 = vld [vmem:[%s13802_s1 + $0xa44] ss:$16 sps:$4 sm:$0xff]  }
 0x10c   :  { %6459 = vmatprep.subr.bf16.mxu0 %v9363_v26  ;;  %7115 = vmatprep.subr.bf16.mxu1 %v9366_v27  ;;  %v9458_v26 = vld [vmem:[%s13802_s1 + $0xa4c] ss:$16 sps:$4 sm:$0xff]   ;;  %v9453_v27 = vld [vmem:[%s13802_s1 + $0xa40] ss:$16 sps:$4 sm:$0xff]  }
 0x10f   :  { %6460 = vmatpush1.bf16.msra.mxu0 %v9361_v28  ;;  %7116 = vmatpush1.bf16.msra.mxu1 %v9364_v29  ;;  %v9456_v28 = vld [vmem:[%s13802_s1 + $0xa48] ss:$16 sps:$4 sm:$0xff]   ;;  %v9461_v29 = vld [vmem:[%s13802_s1 + $0xa64] ss:$16 sps:$4 sm:$0xff]  }
 0x110   :  { %6461 = vmatprep.subr.bf16.mxu0 %v9369_v30  ;;  %7117 = vmatprep.subr.bf16.mxu1 %v9372_v31  ;;  %v9464_v30 = vld [vmem:[%s13802_s1 + $0xa6c] ss:$16 sps:$4 sm:$0xff]   ;;  %v9459_v31 = vld [vmem:[%s13802_s1 + $0xa60] ss:$16 sps:$4 sm:$0xff]  }
 0x113   :  { %6462 = vmatpush1.bf16.msra.mxu0 %v9367_v32  ;;  %7118 = vmatpush1.bf16.msra.mxu1 %v9370_v33  ;;  %v9462_v32 = vld [vmem:[%s13802_s1 + $0xa68] ss:$16 sps:$4 sm:$0xff]   ;;  %v9467_v33 = vld [vmem:[%s13802_s1 + $0xa84] ss:$16 sps:$4 sm:$0xff]  }
 0x114   :  { %6463 = vmatprep.subr.bf16.mxu0 %v9375_v34  ;;  %7119 = vmatprep.subr.bf16.mxu1 %v9378_v35  ;;  %v9470_v34 = vld [vmem:[%s13802_s1 + $0xa8c] ss:$16 sps:$4 sm:$0xff]   ;;  %v9465_v35 = vld [vmem:[%s13802_s1 + $0xa80] ss:$16 sps:$4 sm:$0xff]  }
 0x117   :  { %6464 = vmatpush1.bf16.msra.mxu0 %v9373_v36  ;;  %7120 = vmatpush1.bf16.msra.mxu1 %v9376_v37  ;;  %v9468_v36 = vld [vmem:[%s13802_s1 + $0xa88] ss:$16 sps:$4 sm:$0xff]   ;;  %v9473_v37 = vld [vmem:[%s13802_s1 + $0xaa4] ss:$16 sps:$4 sm:$0xff]  }
 0x118   :  { %6465 = vmatprep.subr.bf16.mxu0 %v9381_v38  ;;  %7121 = vmatprep.subr.bf16.mxu1 %v9384_v39  ;;  %v9476_v38 = vld [vmem:[%s13802_s1 + $0xaac] ss:$16 sps:$4 sm:$0xff]   ;;  %v9471_v39 = vld [vmem:[%s13802_s1 + $0xaa0] ss:$16 sps:$4 sm:$0xff]  }
 0x11b   :  { %6466 = vmatpush1.bf16.msra.mxu0 %v9379_v40  ;;  %7122 = vmatpush1.bf16.msra.mxu1 %v9382_v41  ;;  %v9474_v40 = vld [vmem:[%s13802_s1 + $0xaa8] ss:$16 sps:$4 sm:$0xff]   ;;  %v9479_v41 = vld [vmem:[%s13802_s1 + $0xac4] ss:$16 sps:$4 sm:$0xff]  }
 0x11c   :  { %6467 = vmatprep.subr.bf16.mxu0 %v9387_v42  ;;  %7123 = vmatprep.subr.bf16.mxu1 %v9390_v43  ;;  %v9482_v42 = vld [vmem:[%s13802_s1 + $0xacc] ss:$16 sps:$4 sm:$0xff]   ;;  %v9477_v43 = vld [vmem:[%s13802_s1 + $0xac0] ss:$16 sps:$4 sm:$0xff]  }
 0x11f   :  { %6468 = vmatpush1.bf16.msra.mxu0 %v9385_v44  ;;  %7124 = vmatpush1.bf16.msra.mxu1 %v9388_v45  ;;  %v9480_v44 = vld [vmem:[%s13802_s1 + $0xac8] ss:$16 sps:$4 sm:$0xff]   ;;  %v9485_v45 = vld [vmem:[%s13802_s1 + $0xae4] ss:$16 sps:$4 sm:$0xff]  }
 0x120   :  { %6469 = vmatprep.subr.bf16.mxu0 %v9393_v46  ;;  %7125 = vmatprep.subr.bf16.mxu1 %v9396_v47  ;;  %v9488_v46 = vld [vmem:[%s13802_s1 + $0xaec] ss:$16 sps:$4 sm:$0xff]   ;;  %v9483_v47 = vld [vmem:[%s13802_s1 + $0xae0] ss:$16 sps:$4 sm:$0xff]  }
 0x123   :  { %6470 = vmatpush1.bf16.msra.mxu0 %v9391_v48  ;;  %7126 = vmatpush1.bf16.msra.mxu1 %v9394_v49  ;;  %v9486_v48 = vld [vmem:[%s13802_s1 + $0xae8] ss:$16 sps:$4 sm:$0xff]   ;;  %v9491_v49 = vld [vmem:[%s13802_s1 + $0xb04] ss:$16 sps:$4 sm:$0xff]  }
 0x124   :  { %6471 = vmatprep.subr.bf16.mxu0 %v9399_v50  ;;  %7127 = vmatprep.subr.bf16.mxu1 %v9402_v51  ;;  %v9494_v50 = vld [vmem:[%s13802_s1 + $0xb0c] ss:$16 sps:$4 sm:$0xff]   ;;  %v9489_v51 = vld [vmem:[%s13802_s1 + $0xb00] ss:$16 sps:$4 sm:$0xff]  }
 0x127   :  { %6472 = vmatpush1.bf16.msra.mxu0 %v9397_v52  ;;  %7128 = vmatpush1.bf16.msra.mxu1 %v9400_v53  ;;  %v9492_v52 = vld [vmem:[%s13802_s1 + $0xb08] ss:$16 sps:$4 sm:$0xff]   ;;  %v9497_v53 = vld [vmem:[%s13802_s1 + $0xb24] ss:$16 sps:$4 sm:$0xff]  }
 0x128   :  { %6473 = vmatprep.subr.bf16.mxu0 %v9405_v54  ;;  %7129 = vmatprep.subr.bf16.mxu1 %v9408_v55  ;;  %v9500_v54 = vld [vmem:[%s13802_s1 + $0xb2c] ss:$16 sps:$4 sm:$0xff]   ;;  %v9495_v55 = vld [vmem:[%s13802_s1 + $0xb20] ss:$16 sps:$4 sm:$0xff]  }
 0x12b   :  { %6474 = vmatpush1.bf16.msra.mxu0 %v9403_v56  ;;  %7130 = vmatpush1.bf16.msra.mxu1 %v9406_v57  ;;  %v9498_v56 = vld [vmem:[%s13802_s1 + $0xb28] ss:$16 sps:$4 sm:$0xff]   ;;  %v9503_v57 = vld [vmem:[%s13802_s1 + $0xb44] ss:$16 sps:$4 sm:$0xff]  }
 0x12c   :  { %6475 = vmatprep.subr.bf16.mxu0 %v9411_v58  ;;  %7131 = vmatprep.subr.bf16.mxu1 %v9414_v59  ;;  %v9506_v58 = vld [vmem:[%s13802_s1 + $0xb4c] ss:$16 sps:$4 sm:$0xff]   ;;  %v9501_v59 = vld [vmem:[%s13802_s1 + $0xb40] ss:$16 sps:$4 sm:$0xff]  }
 0x12f   :  { %6476 = vmatpush1.bf16.msra.mxu0 %v9409_v60  ;;  %7132 = vmatpush1.bf16.msra.mxu1 %v9412_v61  ;;  %v9504_v60 = vld [vmem:[%s13802_s1 + $0xb48] ss:$16 sps:$4 sm:$0xff]   ;;  %v9509_v61 = vld [vmem:[%s13802_s1 + $0xb64] ss:$16 sps:$4 sm:$0xff]  }
 0x130   :  { %6477 = vmatprep.subr.bf16.mxu0 %v9417_v62  ;;  %7133 = vmatprep.subr.bf16.mxu1 %v9420_v63  ;;  %v9512_v62 = vld [vmem:[%s13802_s1 + $0xb6c] ss:$16 sps:$4 sm:$0xff]   ;;  %v9507_v63 = vld [vmem:[%s13802_s1 + $0xb60] ss:$16 sps:$4 sm:$0xff]  }
 0x133   :  { %6478 = vmatpush1.bf16.msra.mxu0 %v9415_v0  ;;  %7134 = vmatpush1.bf16.msra.mxu1 %v9418_v1  ;;  %v9510_v0 = vld [vmem:[%s13802_s1 + $0xb68] ss:$16 sps:$4 sm:$0xff]   ;;  %v9515_v1 = vld [vmem:[%s13802_s1 + $0xb84] ss:$16 sps:$4 sm:$0xff]  }
 0x134   :  { %6479 = vmatprep.subr.bf16.mxu0 %v9423_v2  ;;  %7135 = vmatprep.subr.bf16.mxu1 %v9426_v3  ;;  %v9518_v2 = vld [vmem:[%s13802_s1 + $0xb8c] ss:$16 sps:$4 sm:$0xff]   ;;  %v9513_v3 = vld [vmem:[%s13802_s1 + $0xb80] ss:$16 sps:$4 sm:$0xff]  }
 0x137   :  { %6480 = vmatpush1.bf16.msra.mxu0 %v9421_v4  ;;  %7136 = vmatpush1.bf16.msra.mxu1 %v9424_v5  ;;  %v9516_v4 = vld [vmem:[%s13802_s1 + $0xb88] ss:$16 sps:$4 sm:$0xff]   ;;  %v9521_v5 = vld [vmem:[%s13802_s1 + $0xba4] ss:$16 sps:$4 sm:$0xff]  }
 0x138   :  { %6481 = vmatprep.subr.bf16.mxu0 %v9429_v6  ;;  %7137 = vmatprep.subr.bf16.mxu1 %v9432_v7  ;;  %v9524_v6 = vld [vmem:[%s13802_s1 + $0xbac] ss:$16 sps:$4 sm:$0xff]   ;;  %v9519_v7 = vld [vmem:[%s13802_s1 + $0xba0] ss:$16 sps:$4 sm:$0xff]  }
 0x13b   :  { %6482 = vmatpush1.bf16.msra.mxu0 %v9427_v8  ;;  %7138 = vmatpush1.bf16.msra.mxu1 %v9430_v9  ;;  %v9522_v8 = vld [vmem:[%s13802_s1 + $0xba8] ss:$16 sps:$4 sm:$0xff]   ;;  %v9527_v9 = vld [vmem:[%s13802_s1 + $0xbc4] ss:$16 sps:$4 sm:$0xff]  }
 0x13c   :  { %6483 = vmatprep.subr.bf16.mxu0 %v9435_v10  ;;  %7139 = vmatprep.subr.bf16.mxu1 %v9438_v12  ;;  %v9530_v10 = vld [vmem:[%s13802_s1 + $0xbcc] ss:$16 sps:$4 sm:$0xff]   ;;  %v9525_v12 = vld [vmem:[%s13802_s1 + $0xbc0] ss:$16 sps:$4 sm:$0xff]  }
 0x13f   :  { %6484 = vmatpush1.bf16.msra.mxu0 %v9433_v13  ;;  %7140 = vmatpush1.bf16.msra.mxu1 %v9436_v15  ;;  %v9528_v13 = vld [vmem:[%s13802_s1 + $0xbc8] ss:$16 sps:$4 sm:$0xff]   ;;  %v9533_v15 = vld [vmem:[%s13802_s1 + $0xbe4] ss:$16 sps:$4 sm:$0xff]  }
 0x140   :  { %6494 = vmatprep.subr.bf16.mxu0 %v9443_v11  ;;  %7150 = vmatprep.subr.bf16.mxu1 %v9446_v17  ;;  %v9536_v11 = vld [vmem:[%s13802_s1 + $0xbec] ss:$16 sps:$4 sm:$0xff]   ;;  %v9531_v17 = vld [vmem:[%s13802_s1 + $0xbe0] ss:$16 sps:$4 sm:$0xff]  }
 0x142   :  { %6486 = vmatmul.mubr.bf16.vlgmr.msra.gmra.mrb[0].mxu0 %v7779_v14  ;;  %7142 = vmatmul.mubr.bf16.vlgmr.msra.gmra.mrb[0].mxu1 %v7779_v14  ;;  %v9534_v14 = vld [vmem:[%s13802_s1 + $0xbe8] ss:$16 sps:$4 sm:$0xff]  }
 0x143   :  { %6495 = vmatpush1.bf16.msra.mxu0 %v9441_v19  ;;  %7151 = vmatpush1.bf16.msra.mxu1 %v9444_v20  ;;  %v9541_v19 = vld [vmem:[%s13802_s1 + $0xc04] ss:$16 sps:$4 sm:$0xff]   ;;  %v9544_v20 = vld [vmem:[%s13802_s1 + $0xc0c] ss:$16 sps:$4 sm:$0xff]  }
 0x144   :  { %6496 = vmatprep.subr.bf16.mxu0 %v9449_v21  ;;  %7152 = vmatprep.subr.bf16.mxu1 %v9452_v16  ;;  %v11759_v21 = vld [vmem:[%s13803_s0 + $0x30] sm:$0xff]  ;;  %v7781_v16 = vcombine.low %v11558_v18, %v11558_v18  ;;  %v9550_v18 = vld [vmem:[%s13802_s1 + $0xc2c] ss:$16 sps:$4 sm:$0xff]  }
 0x145   :  { %6526 = vmatprep.mubr.bf16.mxu0 %v7782_v22  ;;  %7182 = vmatprep.mubr.bf16.mxu1 %v7782_v22  ;;  %v9539_v22 = vld [vmem:[%s13802_s1 + $0xc00] ss:$16 sps:$4 sm:$0xff]  }
 0x147   :  { %6497 = vmatpush1.bf16.msra.mxu0 %v9447_v23  ;;  %7153 = vmatpush1.bf16.msra.mxu1 %v9450_v24  ;;  %v9542_v23 = vld [vmem:[%s13802_s1 + $0xc08] ss:$16 sps:$4 sm:$0xff]   ;;  %v9547_v24 = vld [vmem:[%s13802_s1 + $0xc24] ss:$16 sps:$4 sm:$0xff]  }
 0x148   :  { %6498 = vmatprep.subr.bf16.mxu0 %v9455_v25  ;;  %7154 = vmatprep.subr.bf16.mxu1 %v9458_v26  ;;  %v7784_v25 = vcombine.high %v11759_v21, %v11759_v21  ;;  %v9545_v26 = vld [vmem:[%s13802_s1 + $0xc20] ss:$16 sps:$4 sm:$0xff]  }
 0x14b   :  { %6499 = vmatpush1.bf16.msra.mxu0 %v9453_v27  ;;  %7155 = vmatpush1.bf16.msra.mxu1 %v9456_v28  ;;  %v9548_v27 = vld [vmem:[%s13802_s1 + $0xc28] ss:$16 sps:$4 sm:$0xff]   ;;  %v9553_v28 = vld [vmem:[%s13802_s1 + $0xc44] ss:$16 sps:$4 sm:$0xff]  }
 0x14c   :  { %6500 = vmatprep.subr.bf16.mxu0 %v9461_v29  ;;  %7156 = vmatprep.subr.bf16.mxu1 %v9464_v30  ;;  %v9556_v29 = vld [vmem:[%s13802_s1 + $0xc4c] ss:$16 sps:$4 sm:$0xff]   ;;  %v9551_v30 = vld [vmem:[%s13802_s1 + $0xc40] ss:$16 sps:$4 sm:$0xff]  }
 0x14f   :  { %6501 = vmatpush1.bf16.msra.mxu0 %v9459_v31  ;;  %7157 = vmatpush1.bf16.msra.mxu1 %v9462_v32  ;;  %v9554_v31 = vld [vmem:[%s13802_s1 + $0xc48] ss:$16 sps:$4 sm:$0xff]   ;;  %v9559_v32 = vld [vmem:[%s13802_s1 + $0xc64] ss:$16 sps:$4 sm:$0xff]  }
 0x150   :  { %6502 = vmatprep.subr.bf16.mxu0 %v9467_v33  ;;  %7158 = vmatprep.subr.bf16.mxu1 %v9470_v34  ;;  %v9562_v33 = vld [vmem:[%s13802_s1 + $0xc6c] ss:$16 sps:$4 sm:$0xff]   ;;  %v9557_v34 = vld [vmem:[%s13802_s1 + $0xc60] ss:$16 sps:$4 sm:$0xff]  }
 0x153   :  { %6503 = vmatpush1.bf16.msra.mxu0 %v9465_v35  ;;  %7159 = vmatpush1.bf16.msra.mxu1 %v9468_v36  ;;  %v9560_v35 = vld [vmem:[%s13802_s1 + $0xc68] ss:$16 sps:$4 sm:$0xff]   ;;  %v9565_v36 = vld [vmem:[%s13802_s1 + $0xc84] ss:$16 sps:$4 sm:$0xff]  }
 0x154   :  { %6504 = vmatprep.subr.bf16.mxu0 %v9473_v37  ;;  %7160 = vmatprep.subr.bf16.mxu1 %v9476_v38  ;;  %v9568_v37 = vld [vmem:[%s13802_s1 + $0xc8c] ss:$16 sps:$4 sm:$0xff]   ;;  %v9563_v38 = vld [vmem:[%s13802_s1 + $0xc80] ss:$16 sps:$4 sm:$0xff]  }
 0x157   :  { %6505 = vmatpush1.bf16.msra.mxu0 %v9471_v39  ;;  %7161 = vmatpush1.bf16.msra.mxu1 %v9474_v40  ;;  %v9566_v39 = vld [vmem:[%s13802_s1 + $0xc88] ss:$16 sps:$4 sm:$0xff]   ;;  %v9571_v40 = vld [vmem:[%s13802_s1 + $0xca4] ss:$16 sps:$4 sm:$0xff]  }
 0x158   :  { %6506 = vmatprep.subr.bf16.mxu0 %v9479_v41  ;;  %7162 = vmatprep.subr.bf16.mxu1 %v9482_v42  ;;  %v9574_v41 = vld [vmem:[%s13802_s1 + $0xcac] ss:$16 sps:$4 sm:$0xff]   ;;  %v9569_v42 = vld [vmem:[%s13802_s1 + $0xca0] ss:$16 sps:$4 sm:$0xff]  }
 0x15b   :  { %6507 = vmatpush1.bf16.msra.mxu0 %v9477_v43  ;;  %7163 = vmatpush1.bf16.msra.mxu1 %v9480_v44  ;;  %v9572_v43 = vld [vmem:[%s13802_s1 + $0xca8] ss:$16 sps:$4 sm:$0xff]   ;;  %v9577_v44 = vld [vmem:[%s13802_s1 + $0xcc4] ss:$16 sps:$4 sm:$0xff]  }
 0x15c   :  { %6508 = vmatprep.subr.bf16.mxu0 %v9485_v45  ;;  %7164 = vmatprep.subr.bf16.mxu1 %v9488_v46  ;;  %v9580_v45 = vld [vmem:[%s13802_s1 + $0xccc] ss:$16 sps:$4 sm:$0xff]   ;;  %v9575_v46 = vld [vmem:[%s13802_s1 + $0xcc0] ss:$16 sps:$4 sm:$0xff]  }
 0x15f   :  { %6509 = vmatpush1.bf16.msra.mxu0 %v9483_v47  ;;  %7165 = vmatpush1.bf16.msra.mxu1 %v9486_v48  ;;  %v9578_v47 = vld [vmem:[%s13802_s1 + $0xcc8] ss:$16 sps:$4 sm:$0xff]   ;;  %v9583_v48 = vld [vmem:[%s13802_s1 + $0xce4] ss:$16 sps:$4 sm:$0xff]  }
 0x160   :  { %6510 = vmatprep.subr.bf16.mxu0 %v9491_v49  ;;  %7166 = vmatprep.subr.bf16.mxu1 %v9494_v50  ;;  %v9586_v49 = vld [vmem:[%s13802_s1 + $0xcec] ss:$16 sps:$4 sm:$0xff]   ;;  %v9581_v50 = vld [vmem:[%s13802_s1 + $0xce0] ss:$16 sps:$4 sm:$0xff]  }
 0x163   :  { %6511 = vmatpush1.bf16.msra.mxu0 %v9489_v51  ;;  %7167 = vmatpush1.bf16.msra.mxu1 %v9492_v52  ;;  %v9584_v51 = vld [vmem:[%s13802_s1 + $0xce8] ss:$16 sps:$4 sm:$0xff]   ;;  %v9589_v52 = vld [vmem:[%s13802_s1 + $0xd04] ss:$16 sps:$4 sm:$0xff]  }
 0x164   :  { %6512 = vmatprep.subr.bf16.mxu0 %v9497_v53  ;;  %7168 = vmatprep.subr.bf16.mxu1 %v9500_v54  ;;  %v9592_v53 = vld [vmem:[%s13802_s1 + $0xd0c] ss:$16 sps:$4 sm:$0xff]   ;;  %v9587_v54 = vld [vmem:[%s13802_s1 + $0xd00] ss:$16 sps:$4 sm:$0xff]  }
 0x167   :  { %6513 = vmatpush1.bf16.msra.mxu0 %v9495_v55  ;;  %7169 = vmatpush1.bf16.msra.mxu1 %v9498_v56  ;;  %v9590_v55 = vld [vmem:[%s13802_s1 + $0xd08] ss:$16 sps:$4 sm:$0xff]   ;;  %v9595_v56 = vld [vmem:[%s13802_s1 + $0xd24] ss:$16 sps:$4 sm:$0xff]  }
 0x168   :  { %6514 = vmatprep.subr.bf16.mxu0 %v9503_v57  ;;  %7170 = vmatprep.subr.bf16.mxu1 %v9506_v58  ;;  %v9598_v57 = vld [vmem:[%s13802_s1 + $0xd2c] ss:$16 sps:$4 sm:$0xff]   ;;  %v9593_v58 = vld [vmem:[%s13802_s1 + $0xd20] ss:$16 sps:$4 sm:$0xff]  }
 0x16b   :  { %6515 = vmatpush1.bf16.msra.mxu0 %v9501_v59  ;;  %7171 = vmatpush1.bf16.msra.mxu1 %v9504_v60  ;;  %v9596_v59 = vld [vmem:[%s13802_s1 + $0xd28] ss:$16 sps:$4 sm:$0xff]   ;;  %v9601_v60 = vld [vmem:[%s13802_s1 + $0xd44] ss:$16 sps:$4 sm:$0xff]  }
 0x16c   :  { %6516 = vmatprep.subr.bf16.mxu0 %v9509_v61  ;;  %7172 = vmatprep.subr.bf16.mxu1 %v9512_v62  ;;  %v9604_v61 = vld [vmem:[%s13802_s1 + $0xd4c] ss:$16 sps:$4 sm:$0xff]   ;;  %v9599_v62 = vld [vmem:[%s13802_s1 + $0xd40] ss:$16 sps:$4 sm:$0xff]  }
 0x16f   :  { %6517 = vmatpush1.bf16.msra.mxu0 %v9507_v63  ;;  %7173 = vmatpush1.bf16.msra.mxu1 %v9510_v0  ;;  %v9602_v63 = vld [vmem:[%s13802_s1 + $0xd48] ss:$16 sps:$4 sm:$0xff]   ;;  %v9607_v0 = vld [vmem:[%s13802_s1 + $0xd64] ss:$16 sps:$4 sm:$0xff]  }
 0x170   :  { %6518 = vmatprep.subr.bf16.mxu0 %v9515_v1  ;;  %7174 = vmatprep.subr.bf16.mxu1 %v9518_v2  ;;  %v9610_v1 = vld [vmem:[%s13802_s1 + $0xd6c] ss:$16 sps:$4 sm:$0xff]   ;;  %v9605_v2 = vld [vmem:[%s13802_s1 + $0xd60] ss:$16 sps:$4 sm:$0xff]  }
 0x173   :  { %6519 = vmatpush1.bf16.msra.mxu0 %v9513_v3  ;;  %7175 = vmatpush1.bf16.msra.mxu1 %v9516_v4  ;;  %v9608_v3 = vld [vmem:[%s13802_s1 + $0xd68] ss:$16 sps:$4 sm:$0xff]   ;;  %v9613_v4 = vld [vmem:[%s13802_s1 + $0xd84] ss:$16 sps:$4 sm:$0xff]  }
 0x174   :  { %6520 = vmatprep.subr.bf16.mxu0 %v9521_v5  ;;  %7176 = vmatprep.subr.bf16.mxu1 %v9524_v6  ;;  %v9616_v5 = vld [vmem:[%s13802_s1 + $0xd8c] ss:$16 sps:$4 sm:$0xff]   ;;  %v9611_v6 = vld [vmem:[%s13802_s1 + $0xd80] ss:$16 sps:$4 sm:$0xff]  }
 0x177   :  { %6521 = vmatpush1.bf16.msra.mxu0 %v9519_v7  ;;  %7177 = vmatpush1.bf16.msra.mxu1 %v9522_v8  ;;  %v9614_v7 = vld [vmem:[%s13802_s1 + $0xd88] ss:$16 sps:$4 sm:$0xff]   ;;  %v9619_v8 = vld [vmem:[%s13802_s1 + $0xda4] ss:$16 sps:$4 sm:$0xff]  }
 0x178   :  { %6522 = vmatprep.subr.bf16.mxu0 %v9527_v9  ;;  %7178 = vmatprep.subr.bf16.mxu1 %v9530_v10  ;;  %v9622_v9 = vld [vmem:[%s13802_s1 + $0xdac] ss:$16 sps:$4 sm:$0xff]   ;;  %v9617_v10 = vld [vmem:[%s13802_s1 + $0xda0] ss:$16 sps:$4 sm:$0xff]  }
 0x17b   :  { %6523 = vmatpush1.bf16.msra.mxu0 %v9525_v12  ;;  %7179 = vmatpush1.bf16.msra.mxu1 %v9528_v13  ;;  %v9620_v12 = vld [vmem:[%s13802_s1 + $0xda8] ss:$16 sps:$4 sm:$0xff]   ;;  %v9625_v13 = vld [vmem:[%s13802_s1 + $0xdc4] ss:$16 sps:$4 sm:$0xff]  }
 0x17c   :  { %6524 = vmatprep.subr.bf16.mxu0 %v9533_v15  ;;  %7180 = vmatprep.subr.bf16.mxu1 %v9536_v11  ;;  %v9628_v15 = vld [vmem:[%s13802_s1 + $0xdcc] ss:$16 sps:$4 sm:$0xff]   ;;  %v9623_v11 = vld [vmem:[%s13802_s1 + $0xdc0] ss:$16 sps:$4 sm:$0xff]  }
 0x17f   :  { %6525 = vmatpush1.bf16.msra.mxu0 %v9531_v17  ;;  %7181 = vmatpush1.bf16.msra.mxu1 %v9534_v14  ;;  %v9626_v17 = vld [vmem:[%s13802_s1 + $0xdc8] ss:$16 sps:$4 sm:$0xff]   ;;  %v9631_v14 = vld [vmem:[%s13802_s1 + $0xde4] ss:$16 sps:$4 sm:$0xff]  }
 0x180   :  { %6535 = vmatprep.subr.bf16.mxu0 %v9541_v19  ;;  %7191 = vmatprep.subr.bf16.mxu1 %v9544_v20  ;;  %v9634_v19 = vld [vmem:[%s13802_s1 + $0xdec] ss:$16 sps:$4 sm:$0xff]   ;;  %v9629_v20 = vld [vmem:[%s13802_s1 + $0xde0] ss:$16 sps:$4 sm:$0xff]  }
 0x182   :  { %6527 = vmatmul.mubr.bf16.vlgmr.msra.gmra.mrb[0].mxu0 %v7781_v16  ;;  %7183 = vmatmul.mubr.bf16.vlgmr.msra.gmra.mrb[0].mxu1 %v7781_v16  ;;  %v9632_v16 = vld [vmem:[%s13802_s1 + $0xde8] ss:$16 sps:$4 sm:$0xff]  }
 0x183   :  { %6536 = vmatpush1.bf16.msra.mxu0 %v9539_v22  ;;  %7192 = vmatpush1.bf16.msra.mxu1 %v9542_v23  ;;  %v9639_v22 = vld [vmem:[%s13802_s1 + $0xe04] ss:$16 sps:$4 sm:$0xff]   ;;  %v9642_v23 = vld [vmem:[%s13802_s1 + $0xe0c] ss:$16 sps:$4 sm:$0xff]  }
 0x184   :  { %6537 = vmatprep.subr.bf16.mxu0 %v9547_v24  ;;  %7193 = vmatprep.subr.bf16.mxu1 %v9550_v18  ;;  %v11960_v24 = vld [vmem:[%s13803_s0 + $0x38] sm:$0xff]  ;;  %v7783_v18 = vcombine.low %v11759_v21, %v11759_v21 }
 0x185   :  { %6567 = vmatprep.mubr.bf16.mxu0 %v7784_v25  ;;  %7223 = vmatprep.mubr.bf16.mxu1 %v7784_v25  ;;  %v9637_v25 = vld [vmem:[%s13802_s1 + $0xe00] ss:$16 sps:$4 sm:$0xff]   ;;  %v9648_v21 = vld [vmem:[%s13802_s1 + $0xe2c] ss:$16 sps:$4 sm:$0xff]  }
 0x187   :  { %6538 = vmatpush1.bf16.msra.mxu0 %v9545_v26  ;;  %7194 = vmatpush1.bf16.msra.mxu1 %v9548_v27  ;;  %v9640_v26 = vld [vmem:[%s13802_s1 + $0xe08] ss:$16 sps:$4 sm:$0xff]   ;;  %v9645_v27 = vld [vmem:[%s13802_s1 + $0xe24] ss:$16 sps:$4 sm:$0xff]  }
 0x188   :  { %6539 = vmatprep.subr.bf16.mxu0 %v9553_v28  ;;  %7195 = vmatprep.subr.bf16.mxu1 %v9556_v29  ;;  %v7786_v28 = vcombine.high %v11960_v24, %v11960_v24  ;;  %v9643_v29 = vld [vmem:[%s13802_s1 + $0xe20] ss:$16 sps:$4 sm:$0xff]  }
 0x18b   :  { %6540 = vmatpush1.bf16.msra.mxu0 %v9551_v30  ;;  %7196 = vmatpush1.bf16.msra.mxu1 %v9554_v31  ;;  %v9646_v30 = vld [vmem:[%s13802_s1 + $0xe28] ss:$16 sps:$4 sm:$0xff]   ;;  %v9651_v31 = vld [vmem:[%s13802_s1 + $0xe44] ss:$16 sps:$4 sm:$0xff]  }
 0x18c   :  { %6541 = vmatprep.subr.bf16.mxu0 %v9559_v32  ;;  %7197 = vmatprep.subr.bf16.mxu1 %v9562_v33  ;;  %v9654_v32 = vld [vmem:[%s13802_s1 + $0xe4c] ss:$16 sps:$4 sm:$0xff]   ;;  %v9649_v33 = vld [vmem:[%s13802_s1 + $0xe40] ss:$16 sps:$4 sm:$0xff]  }
 0x18f   :  { %6542 = vmatpush1.bf16.msra.mxu0 %v9557_v34  ;;  %7198 = vmatpush1.bf16.msra.mxu1 %v9560_v35  ;;  %v9652_v34 = vld [vmem:[%s13802_s1 + $0xe48] ss:$16 sps:$4 sm:$0xff]   ;;  %v9657_v35 = vld [vmem:[%s13802_s1 + $0xe64] ss:$16 sps:$4 sm:$0xff]  }
 0x190   :  { %6543 = vmatprep.subr.bf16.mxu0 %v9565_v36  ;;  %7199 = vmatprep.subr.bf16.mxu1 %v9568_v37  ;;  %v9660_v36 = vld [vmem:[%s13802_s1 + $0xe6c] ss:$16 sps:$4 sm:$0xff]   ;;  %v9655_v37 = vld [vmem:[%s13802_s1 + $0xe60] ss:$16 sps:$4 sm:$0xff]  }
 0x193   :  { %6544 = vmatpush1.bf16.msra.mxu0 %v9563_v38  ;;  %7200 = vmatpush1.bf16.msra.mxu1 %v9566_v39  ;;  %v9658_v38 = vld [vmem:[%s13802_s1 + $0xe68] ss:$16 sps:$4 sm:$0xff]   ;;  %v9663_v39 = vld [vmem:[%s13802_s1 + $0xe84] ss:$16 sps:$4 sm:$0xff]  }
 0x194   :  { %6545 = vmatprep.subr.bf16.mxu0 %v9571_v40  ;;  %7201 = vmatprep.subr.bf16.mxu1 %v9574_v41  ;;  %v9666_v40 = vld [vmem:[%s13802_s1 + $0xe8c] ss:$16 sps:$4 sm:$0xff]   ;;  %v9661_v41 = vld [vmem:[%s13802_s1 + $0xe80] ss:$16 sps:$4 sm:$0xff]  }
 0x197   :  { %6546 = vmatpush1.bf16.msra.mxu0 %v9569_v42  ;;  %7202 = vmatpush1.bf16.msra.mxu1 %v9572_v43  ;;  %v9664_v42 = vld [vmem:[%s13802_s1 + $0xe88] ss:$16 sps:$4 sm:$0xff]   ;;  %v9669_v43 = vld [vmem:[%s13802_s1 + $0xea4] ss:$16 sps:$4 sm:$0xff]  }
 0x198   :  { %6547 = vmatprep.subr.bf16.mxu0 %v9577_v44  ;;  %7203 = vmatprep.subr.bf16.mxu1 %v9580_v45  ;;  %v9672_v44 = vld [vmem:[%s13802_s1 + $0xeac] ss:$16 sps:$4 sm:$0xff]   ;;  %v9667_v45 = vld [vmem:[%s13802_s1 + $0xea0] ss:$16 sps:$4 sm:$0xff]  }
 0x19b   :  { %6548 = vmatpush1.bf16.msra.mxu0 %v9575_v46  ;;  %7204 = vmatpush1.bf16.msra.mxu1 %v9578_v47  ;;  %v9670_v46 = vld [vmem:[%s13802_s1 + $0xea8] ss:$16 sps:$4 sm:$0xff]   ;;  %v9675_v47 = vld [vmem:[%s13802_s1 + $0xec4] ss:$16 sps:$4 sm:$0xff]  }
 0x19c   :  { %6549 = vmatprep.subr.bf16.mxu0 %v9583_v48  ;;  %7205 = vmatprep.subr.bf16.mxu1 %v9586_v49  ;;  %v9678_v48 = vld [vmem:[%s13802_s1 + $0xecc] ss:$16 sps:$4 sm:$0xff]   ;;  %v9673_v49 = vld [vmem:[%s13802_s1 + $0xec0] ss:$16 sps:$4 sm:$0xff]  }
 0x19f   :  { %6550 = vmatpush1.bf16.msra.mxu0 %v9581_v50  ;;  %7206 = vmatpush1.bf16.msra.mxu1 %v9584_v51  ;;  %v9676_v50 = vld [vmem:[%s13802_s1 + $0xec8] ss:$16 sps:$4 sm:$0xff]   ;;  %v9681_v51 = vld [vmem:[%s13802_s1 + $0xee4] ss:$16 sps:$4 sm:$0xff]  }
 0x1a0   :  { %6551 = vmatprep.subr.bf16.mxu0 %v9589_v52  ;;  %7207 = vmatprep.subr.bf16.mxu1 %v9592_v53  ;;  %v9684_v52 = vld [vmem:[%s13802_s1 + $0xeec] ss:$16 sps:$4 sm:$0xff]   ;;  %v9679_v53 = vld [vmem:[%s13802_s1 + $0xee0] ss:$16 sps:$4 sm:$0xff]  }
 0x1a3   :  { %6552 = vmatpush1.bf16.msra.mxu0 %v9587_v54  ;;  %7208 = vmatpush1.bf16.msra.mxu1 %v9590_v55  ;;  %v9682_v54 = vld [vmem:[%s13802_s1 + $0xee8] ss:$16 sps:$4 sm:$0xff]   ;;  %v9687_v55 = vld [vmem:[%s13802_s1 + $0xf04] ss:$16 sps:$4 sm:$0xff]  }
 0x1a4   :  { %6553 = vmatprep.subr.bf16.mxu0 %v9595_v56  ;;  %7209 = vmatprep.subr.bf16.mxu1 %v9598_v57  ;;  %v9690_v56 = vld [vmem:[%s13802_s1 + $0xf0c] ss:$16 sps:$4 sm:$0xff]   ;;  %v9685_v57 = vld [vmem:[%s13802_s1 + $0xf00] ss:$16 sps:$4 sm:$0xff]  }
 0x1a7   :  { %6554 = vmatpush1.bf16.msra.mxu0 %v9593_v58  ;;  %7210 = vmatpush1.bf16.msra.mxu1 %v9596_v59  ;;  %v9688_v58 = vld [vmem:[%s13802_s1 + $0xf08] ss:$16 sps:$4 sm:$0xff]   ;;  %v9693_v59 = vld [vmem:[%s13802_s1 + $0xf24] ss:$16 sps:$4 sm:$0xff]  }
 0x1a8   :  { %6555 = vmatprep.subr.bf16.mxu0 %v9601_v60  ;;  %7211 = vmatprep.subr.bf16.mxu1 %v9604_v61  ;;  %v9696_v60 = vld [vmem:[%s13802_s1 + $0xf2c] ss:$16 sps:$4 sm:$0xff]   ;;  %v9691_v61 = vld [vmem:[%s13802_s1 + $0xf20] ss:$16 sps:$4 sm:$0xff]  }
 0x1ab   :  { %6556 = vmatpush1.bf16.msra.mxu0 %v9599_v62  ;;  %7212 = vmatpush1.bf16.msra.mxu1 %v9602_v63  ;;  %v9694_v62 = vld [vmem:[%s13802_s1 + $0xf28] ss:$16 sps:$4 sm:$0xff]   ;;  %v9699_v63 = vld [vmem:[%s13802_s1 + $0xf44] ss:$16 sps:$4 sm:$0xff]  }
 0x1ac   :  { %6557 = vmatprep.subr.bf16.mxu0 %v9607_v0  ;;  %7213 = vmatprep.subr.bf16.mxu1 %v9610_v1  ;;  %v9702_v0 = vld [vmem:[%s13802_s1 + $0xf4c] ss:$16 sps:$4 sm:$0xff]   ;;  %v9697_v1 = vld [vmem:[%s13802_s1 + $0xf40] ss:$16 sps:$4 sm:$0xff]  }
 0x1af   :  { %6558 = vmatpush1.bf16.msra.mxu0 %v9605_v2  ;;  %7214 = vmatpush1.bf16.msra.mxu1 %v9608_v3  ;;  %v9700_v2 = vld [vmem:[%s13802_s1 + $0xf48] ss:$16 sps:$4 sm:$0xff]   ;;  %v9705_v3 = vld [vmem:[%s13802_s1 + $0xf64] ss:$16 sps:$4 sm:$0xff]  }
 0x1b0   :  { %6559 = vmatprep.subr.bf16.mxu0 %v9613_v4  ;;  %7215 = vmatprep.subr.bf16.mxu1 %v9616_v5  ;;  %v9708_v4 = vld [vmem:[%s13802_s1 + $0xf6c] ss:$16 sps:$4 sm:$0xff]   ;;  %v9703_v5 = vld [vmem:[%s13802_s1 + $0xf60] ss:$16 sps:$4 sm:$0xff]  }
 0x1b3   :  { %6560 = vmatpush1.bf16.msra.mxu0 %v9611_v6  ;;  %7216 = vmatpush1.bf16.msra.mxu1 %v9614_v7  ;;  %v9706_v6 = vld [vmem:[%s13802_s1 + $0xf68] ss:$16 sps:$4 sm:$0xff]   ;;  %v9711_v7 = vld [vmem:[%s13802_s1 + $0xf84] ss:$16 sps:$4 sm:$0xff]  }
 0x1b4   :  { %6561 = vmatprep.subr.bf16.mxu0 %v9619_v8  ;;  %7217 = vmatprep.subr.bf16.mxu1 %v9622_v9  ;;  %v9714_v8 = vld [vmem:[%s13802_s1 + $0xf8c] ss:$16 sps:$4 sm:$0xff]   ;;  %v9709_v9 = vld [vmem:[%s13802_s1 + $0xf80] ss:$16 sps:$4 sm:$0xff]  }
 0x1b7   :  { %6562 = vmatpush1.bf16.msra.mxu0 %v9617_v10  ;;  %7218 = vmatpush1.bf16.msra.mxu1 %v9620_v12  ;;  %v9712_v10 = vld [vmem:[%s13802_s1 + $0xf88] ss:$16 sps:$4 sm:$0xff]   ;;  %v9717_v12 = vld [vmem:[%s13802_s1 + $0xfa4] ss:$16 sps:$4 sm:$0xff]  }
 0x1b8   :  { %6563 = vmatprep.subr.bf16.mxu0 %v9625_v13  ;;  %7219 = vmatprep.subr.bf16.mxu1 %v9628_v15  ;;  %v9720_v13 = vld [vmem:[%s13802_s1 + $0xfac] ss:$16 sps:$4 sm:$0xff]   ;;  %v9715_v15 = vld [vmem:[%s13802_s1 + $0xfa0] ss:$16 sps:$4 sm:$0xff]  }
 0x1bb   :  { %6564 = vmatpush1.bf16.msra.mxu0 %v9623_v11  ;;  %7220 = vmatpush1.bf16.msra.mxu1 %v9626_v17  ;;  %v9718_v11 = vld [vmem:[%s13802_s1 + $0xfa8] ss:$16 sps:$4 sm:$0xff]   ;;  %v9723_v17 = vld [vmem:[%s13802_s1 + $0xfc4] ss:$16 sps:$4 sm:$0xff]  }
 0x1bc   :  { %6565 = vmatprep.subr.bf16.mxu0 %v9631_v14  ;;  %7221 = vmatprep.subr.bf16.mxu1 %v9634_v19  ;;  %v9726_v14 = vld [vmem:[%s13802_s1 + $0xfcc] ss:$16 sps:$4 sm:$0xff]   ;;  %v9721_v19 = vld [vmem:[%s13802_s1 + $0xfc0] ss:$16 sps:$4 sm:$0xff]  }
 0x1bf   :  { %6566 = vmatpush1.bf16.msra.mxu0 %v9629_v20  ;;  %7222 = vmatpush1.bf16.msra.mxu1 %v9632_v16  ;;  %v9724_v20 = vld [vmem:[%s13802_s1 + $0xfc8] ss:$16 sps:$4 sm:$0xff]   ;;  %v9729_v16 = vld [vmem:[%s13802_s1 + $0xfe4] ss:$16 sps:$4 sm:$0xff]  }
 0x1c0   :  { %6576 = vmatprep.subr.bf16.mxu0 %v9639_v22  ;;  %7232 = vmatprep.subr.bf16.mxu1 %v9642_v23  ;;  %v9732_v22 = vld [vmem:[%s13802_s1 + $0xfec] ss:$16 sps:$4 sm:$0xff]   ;;  %v9727_v23 = vld [vmem:[%s13802_s1 + $0xfe0] ss:$16 sps:$4 sm:$0xff]  }
 0x1c2   :  { %6568 = vmatmul.mubr.bf16.vlgmr.msra.gmra.mrb[0].mxu0 %v7783_v18  ;;  %7224 = vmatmul.mubr.bf16.vlgmr.msra.gmra.mrb[0].mxu1 %v7783_v18  ;;  %v9730_v18 = vld [vmem:[%s13802_s1 + $0xfe8] ss:$16 sps:$4 sm:$0xff]  }
 0x1c3   :  { %6577 = vmatpush1.bf16.msra.mxu0 %v9637_v25  ;;  %7233 = vmatpush1.bf16.msra.mxu1 %v9640_v26  ;;  %v9737_v25 = vld [vmem:[%s13802_s1 + $0x1004] ss:$16 sps:$4 sm:$0xff]   ;;  %v9740_v26 = vld [vmem:[%s13802_s1 + $0x100c] ss:$16 sps:$4 sm:$0xff]  }
 0x1c4   :  { %6578 = vmatprep.subr.bf16.mxu0 %v9645_v27  ;;  %7234 = vmatprep.subr.bf16.mxu1 %v9648_v21  ;;  %v12161_v27 = vld [vmem:[%s13803_s0 + $0x40] sm:$0xff]  ;;  %v7785_v21 = vcombine.low %v11960_v24, %v11960_v24  ;;  %v9746_v24 = vld [vmem:[%s13802_s1 + $0x102c] ss:$16 sps:$4 sm:$0xff]  }
 0x1c5   :  { %6608 = vmatprep.mubr.bf16.mxu0 %v7786_v28  ;;  %7264 = vmatprep.mubr.bf16.mxu1 %v7786_v28  ;;  %v9735_v28 = vld [vmem:[%s13802_s1 + $0x1000] ss:$16 sps:$4 sm:$0xff]  }
 0x1c7   :  { %6579 = vmatpush1.bf16.msra.mxu0 %v9643_v29  ;;  %7235 = vmatpush1.bf16.msra.mxu1 %v9646_v30  ;;  %v9738_v29 = vld [vmem:[%s13802_s1 + $0x1008] ss:$16 sps:$4 sm:$0xff]   ;;  %v9743_v30 = vld [vmem:[%s13802_s1 + $0x1024] ss:$16 sps:$4 sm:$0xff]  }
 0x1c8   :  { %6580 = vmatprep.subr.bf16.mxu0 %v9651_v31  ;;  %7236 = vmatprep.subr.bf16.mxu1 %v9654_v32  ;;  %v7788_v31 = vcombine.high %v12161_v27, %v12161_v27  ;;  %v9741_v32 = vld [vmem:[%s13802_s1 + $0x1020] ss:$16 sps:$4 sm:$0xff]  }
 0x1cb   :  { %6581 = vmatpush1.bf16.msra.mxu0 %v9649_v33  ;;  %7237 = vmatpush1.bf16.msra.mxu1 %v9652_v34  ;;  %v9744_v33 = vld [vmem:[%s13802_s1 + $0x1028] ss:$16 sps:$4 sm:$0xff]   ;;  %v9749_v34 = vld [vmem:[%s13802_s1 + $0x1044] ss:$16 sps:$4 sm:$0xff]  }
 0x1cc   :  { %6582 = vmatprep.subr.bf16.mxu0 %v9657_v35  ;;  %7238 = vmatprep.subr.bf16.mxu1 %v9660_v36  ;;  %v9752_v35 = vld [vmem:[%s13802_s1 + $0x104c] ss:$16 sps:$4 sm:$0xff]   ;;  %v9747_v36 = vld [vmem:[%s13802_s1 + $0x1040] ss:$16 sps:$4 sm:$0xff]  }
 0x1cf   :  { %6583 = vmatpush1.bf16.msra.mxu0 %v9655_v37  ;;  %7239 = vmatpush1.bf16.msra.mxu1 %v9658_v38  ;;  %v9750_v37 = vld [vmem:[%s13802_s1 + $0x1048] ss:$16 sps:$4 sm:$0xff]   ;;  %v9755_v38 = vld [vmem:[%s13802_s1 + $0x1064] ss:$16 sps:$4 sm:$0xff]  }
 0x1d0   :  { %6584 = vmatprep.subr.bf16.mxu0 %v9663_v39  ;;  %7240 = vmatprep.subr.bf16.mxu1 %v9666_v40  ;;  %v9758_v39 = vld [vmem:[%s13802_s1 + $0x106c] ss:$16 sps:$4 sm:$0xff]   ;;  %v9753_v40 = vld [vmem:[%s13802_s1 + $0x1060] ss:$16 sps:$4 sm:$0xff]  }
 0x1d3   :  { %6585 = vmatpush1.bf16.msra.mxu0 %v9661_v41  ;;  %7241 = vmatpush1.bf16.msra.mxu1 %v9664_v42  ;;  %v9756_v41 = vld [vmem:[%s13802_s1 + $0x1068] ss:$16 sps:$4 sm:$0xff]   ;;  %v9761_v42 = vld [vmem:[%s13802_s1 + $0x1084] ss:$16 sps:$4 sm:$0xff]  }
 0x1d4   :  { %6586 = vmatprep.subr.bf16.mxu0 %v9669_v43  ;;  %7242 = vmatprep.subr.bf16.mxu1 %v9672_v44  ;;  %v9764_v43 = vld [vmem:[%s13802_s1 + $0x108c] ss:$16 sps:$4 sm:$0xff]   ;;  %v9759_v44 = vld [vmem:[%s13802_s1 + $0x1080] ss:$16 sps:$4 sm:$0xff]  }
 0x1d7   :  { %6587 = vmatpush1.bf16.msra.mxu0 %v9667_v45  ;;  %7243 = vmatpush1.bf16.msra.mxu1 %v9670_v46  ;;  %v9762_v45 = vld [vmem:[%s13802_s1 + $0x1088] ss:$16 sps:$4 sm:$0xff]   ;;  %v9767_v46 = vld [vmem:[%s13802_s1 + $0x10a4] ss:$16 sps:$4 sm:$0xff]  }
 0x1d8   :  { %6588 = vmatprep.subr.bf16.mxu0 %v9675_v47  ;;  %7244 = vmatprep.subr.bf16.mxu1 %v9678_v48  ;;  %v9770_v47 = vld [vmem:[%s13802_s1 + $0x10ac] ss:$16 sps:$4 sm:$0xff]   ;;  %v9765_v48 = vld [vmem:[%s13802_s1 + $0x10a0] ss:$16 sps:$4 sm:$0xff]  }
 0x1db   :  { %6589 = vmatpush1.bf16.msra.mxu0 %v9673_v49  ;;  %7245 = vmatpush1.bf16.msra.mxu1 %v9676_v50  ;;  %v9768_v49 = vld [vmem:[%s13802_s1 + $0x10a8] ss:$16 sps:$4 sm:$0xff]   ;;  %v9773_v50 = vld [vmem:[%s13802_s1 + $0x10c4] ss:$16 sps:$4 sm:$0xff]  }
 0x1dc   :  { %6590 = vmatprep.subr.bf16.mxu0 %v9681_v51  ;;  %7246 = vmatprep.subr.bf16.mxu1 %v9684_v52  ;;  %v9776_v51 = vld [vmem:[%s13802_s1 + $0x10cc] ss:$16 sps:$4 sm:$0xff]   ;;  %v9771_v52 = vld [vmem:[%s13802_s1 + $0x10c0] ss:$16 sps:$4 sm:$0xff]  }
 0x1df   :  { %6591 = vmatpush1.bf16.msra.mxu0 %v9679_v53  ;;  %7247 = vmatpush1.bf16.msra.mxu1 %v9682_v54  ;;  %v9774_v53 = vld [vmem:[%s13802_s1 + $0x10c8] ss:$16 sps:$4 sm:$0xff]   ;;  %v9779_v54 = vld [vmem:[%s13802_s1 + $0x10e4] ss:$16 sps:$4 sm:$0xff]  }
 0x1e0   :  { %6592 = vmatprep.subr.bf16.mxu0 %v9687_v55  ;;  %7248 = vmatprep.subr.bf16.mxu1 %v9690_v56  ;;  %v9782_v55 = vld [vmem:[%s13802_s1 + $0x10ec] ss:$16 sps:$4 sm:$0xff]   ;;  %v9777_v56 = vld [vmem:[%s13802_s1 + $0x10e0] ss:$16 sps:$4 sm:$0xff]  }
 0x1e3   :  { %6593 = vmatpush1.bf16.msra.mxu0 %v9685_v57  ;;  %7249 = vmatpush1.bf16.msra.mxu1 %v9688_v58  ;;  %v9780_v57 = vld [vmem:[%s13802_s1 + $0x10e8] ss:$16 sps:$4 sm:$0xff]   ;;  %v9785_v58 = vld [vmem:[%s13802_s1 + $0x1104] ss:$16 sps:$4 sm:$0xff]  }
 0x1e4   :  { %6594 = vmatprep.subr.bf16.mxu0 %v9693_v59  ;;  %7250 = vmatprep.subr.bf16.mxu1 %v9696_v60  ;;  %v9788_v59 = vld [vmem:[%s13802_s1 + $0x110c] ss:$16 sps:$4 sm:$0xff]   ;;  %v9783_v60 = vld [vmem:[%s13802_s1 + $0x1100] ss:$16 sps:$4 sm:$0xff]  }
 0x1e7   :  { %6595 = vmatpush1.bf16.msra.mxu0 %v9691_v61  ;;  %7251 = vmatpush1.bf16.msra.mxu1 %v9694_v62  ;;  %v9786_v61 = vld [vmem:[%s13802_s1 + $0x1108] ss:$16 sps:$4 sm:$0xff]   ;;  %v9791_v62 = vld [vmem:[%s13802_s1 + $0x1124] ss:$16 sps:$4 sm:$0xff]  }
 0x1e8   :  { %6596 = vmatprep.subr.bf16.mxu0 %v9699_v63  ;;  %7252 = vmatprep.subr.bf16.mxu1 %v9702_v0  ;;  %v9794_v63 = vld [vmem:[%s13802_s1 + $0x112c] ss:$16 sps:$4 sm:$0xff]   ;;  %v9789_v0 = vld [vmem:[%s13802_s1 + $0x1120] ss:$16 sps:$4 sm:$0xff]  }
 0x1eb   :  { %6597 = vmatpush1.bf16.msra.mxu0 %v9697_v1  ;;  %7253 = vmatpush1.bf16.msra.mxu1 %v9700_v2  ;;  %v9792_v1 = vld [vmem:[%s13802_s1 + $0x1128] ss:$16 sps:$4 sm:$0xff]   ;;  %v9797_v2 = vld [vmem:[%s13802_s1 + $0x1144] ss:$16 sps:$4 sm:$0xff]  }
 0x1ec   :  { %6598 = vmatprep.subr.bf16.mxu0 %v9705_v3  ;;  %7254 = vmatprep.subr.bf16.mxu1 %v9708_v4  ;;  %v9800_v3 = vld [vmem:[%s13802_s1 + $0x114c] ss:$16 sps:$4 sm:$0xff]   ;;  %v9795_v4 = vld [vmem:[%s13802_s1 + $0x1140] ss:$16 sps:$4 sm:$0xff]  }
 0x1ef   :  { %6599 = vmatpush1.bf16.msra.mxu0 %v9703_v5  ;;  %7255 = vmatpush1.bf16.msra.mxu1 %v9706_v6  ;;  %v9798_v5 = vld [vmem:[%s13802_s1 + $0x1148] ss:$16 sps:$4 sm:$0xff]   ;;  %v9803_v6 = vld [vmem:[%s13802_s1 + $0x1164] ss:$16 sps:$4 sm:$0xff]  }
 0x1f0   :  { %6600 = vmatprep.subr.bf16.mxu0 %v9711_v7  ;;  %7256 = vmatprep.subr.bf16.mxu1 %v9714_v8  ;;  %v9806_v7 = vld [vmem:[%s13802_s1 + $0x116c] ss:$16 sps:$4 sm:$0xff]   ;;  %v9801_v8 = vld [vmem:[%s13802_s1 + $0x1160] ss:$16 sps:$4 sm:$0xff]  }
 0x1f3   :  { %6601 = vmatpush1.bf16.msra.mxu0 %v9709_v9  ;;  %7257 = vmatpush1.bf16.msra.mxu1 %v9712_v10  ;;  %v9804_v9 = vld [vmem:[%s13802_s1 + $0x1168] ss:$16 sps:$4 sm:$0xff]   ;;  %v9809_v10 = vld [vmem:[%s13802_s1 + $0x1184] ss:$16 sps:$4 sm:$0xff]  }
 0x1f4   :  { %6602 = vmatprep.subr.bf16.mxu0 %v9717_v12  ;;  %7258 = vmatprep.subr.bf16.mxu1 %v9720_v13  ;;  %v9812_v12 = vld [vmem:[%s13802_s1 + $0x118c] ss:$16 sps:$4 sm:$0xff]   ;;  %v9807_v13 = vld [vmem:[%s13802_s1 + $0x1180] ss:$16 sps:$4 sm:$0xff]  }
 0x1f7   :  { %6603 = vmatpush1.bf16.msra.mxu0 %v9715_v15  ;;  %7259 = vmatpush1.bf16.msra.mxu1 %v9718_v11  ;;  %v9810_v15 = vld [vmem:[%s13802_s1 + $0x1188] ss:$16 sps:$4 sm:$0xff]   ;;  %v9815_v11 = vld [vmem:[%s13802_s1 + $0x11a4] ss:$16 sps:$4 sm:$0xff]  }
 0x1f8   :  { %6604 = vmatprep.subr.bf16.mxu0 %v9723_v17  ;;  %7260 = vmatprep.subr.bf16.mxu1 %v9726_v14  ;;  %v9818_v17 = vld [vmem:[%s13802_s1 + $0x11ac] ss:$16 sps:$4 sm:$0xff]   ;;  %v9813_v14 = vld [vmem:[%s13802_s1 + $0x11a0] ss:$16 sps:$4 sm:$0xff]  }
 0x1fb   :  { %6605 = vmatpush1.bf16.msra.mxu0 %v9721_v19  ;;  %7261 = vmatpush1.bf16.msra.mxu1 %v9724_v20  ;;  %v9816_v19 = vld [vmem:[%s13802_s1 + $0x11a8] ss:$16 sps:$4 sm:$0xff]   ;;  %v9821_v20 = vld [vmem:[%s13802_s1 + $0x11c4] ss:$16 sps:$4 sm:$0xff]  }
 0x1fc   :  { %6606 = vmatprep.subr.bf16.mxu0 %v9729_v16  ;;  %7262 = vmatprep.subr.bf16.mxu1 %v9732_v22  ;;  %v9824_v16 = vld [vmem:[%s13802_s1 + $0x11cc] ss:$16 sps:$4 sm:$0xff]   ;;  %v9819_v22 = vld [vmem:[%s13802_s1 + $0x11c0] ss:$16 sps:$4 sm:$0xff]  }
 0x1ff   :  { %6607 = vmatpush1.bf16.msra.mxu0 %v9727_v23  ;;  %7263 = vmatpush1.bf16.msra.mxu1 %v9730_v18  ;;  %v9822_v23 = vld [vmem:[%s13802_s1 + $0x11c8] ss:$16 sps:$4 sm:$0xff]   ;;  %v9827_v18 = vld [vmem:[%s13802_s1 + $0x11e4] ss:$16 sps:$4 sm:$0xff]  }
 0x200   :  { %6617 = vmatprep.subr.bf16.mxu0 %v9737_v25  ;;  %7273 = vmatprep.subr.bf16.mxu1 %v9740_v26  ;;  %v9830_v25 = vld [vmem:[%s13802_s1 + $0x11ec] ss:$16 sps:$4 sm:$0xff]   ;;  %v9825_v26 = vld [vmem:[%s13802_s1 + $0x11e0] ss:$16 sps:$4 sm:$0xff]  }
 0x202   :  { %6609 = vmatmul.mubr.bf16.vlgmr.msra.gmra.mrb[0].mxu0 %v7785_v21  ;;  %7265 = vmatmul.mubr.bf16.vlgmr.msra.gmra.mrb[0].mxu1 %v7785_v21  ;;  %v9828_v21 = vld [vmem:[%s13802_s1 + $0x11e8] ss:$16 sps:$4 sm:$0xff]  }
 0x203   :  { %6618 = vmatpush1.bf16.msra.mxu0 %v9735_v28  ;;  %7274 = vmatpush1.bf16.msra.mxu1 %v9738_v29  ;;  %v9835_v28 = vld [vmem:[%s13802_s1 + $0x1204] ss:$16 sps:$4 sm:$0xff]   ;;  %v9838_v29 = vld [vmem:[%s13802_s1 + $0x120c] ss:$16 sps:$4 sm:$0xff]  }
 0x204   :  { %6619 = vmatprep.subr.bf16.mxu0 %v9743_v30  ;;  %7275 = vmatprep.subr.bf16.mxu1 %v9746_v24  ;;  %v12362_v30 = vld [vmem:[%s13803_s0 + $0x48] sm:$0xff]  ;;  %v7787_v24 = vcombine.low %v12161_v27, %v12161_v27 }
 0x205   :  { %6649 = vmatprep.mubr.bf16.mxu0 %v7788_v31  ;;  %7305 = vmatprep.mubr.bf16.mxu1 %v7788_v31  ;;  %v9833_v31 = vld [vmem:[%s13802_s1 + $0x1200] ss:$16 sps:$4 sm:$0xff]   ;;  %v9844_v27 = vld [vmem:[%s13802_s1 + $0x122c] ss:$16 sps:$4 sm:$0xff]  }
 0x207   :  { %6620 = vmatpush1.bf16.msra.mxu0 %v9741_v32  ;;  %7276 = vmatpush1.bf16.msra.mxu1 %v9744_v33  ;;  %v9836_v32 = vld [vmem:[%s13802_s1 + $0x1208] ss:$16 sps:$4 sm:$0xff]   ;;  %v9841_v33 = vld [vmem:[%s13802_s1 + $0x1224] ss:$16 sps:$4 sm:$0xff]  }
 0x208   :  { %6621 = vmatprep.subr.bf16.mxu0 %v9749_v34  ;;  %7277 = vmatprep.subr.bf16.mxu1 %v9752_v35  ;;  %v7790_v34 = vcombine.high %v12362_v30, %v12362_v30  ;;  %v9839_v35 = vld [vmem:[%s13802_s1 + $0x1220] ss:$16 sps:$4 sm:$0xff]  }
 0x20b   :  { %6622 = vmatpush1.bf16.msra.mxu0 %v9747_v36  ;;  %7278 = vmatpush1.bf16.msra.mxu1 %v9750_v37  ;;  %v9842_v36 = vld [vmem:[%s13802_s1 + $0x1228] ss:$16 sps:$4 sm:$0xff]   ;;  %v9847_v37 = vld [vmem:[%s13802_s1 + $0x1244] ss:$16 sps:$4 sm:$0xff]  }
 0x20c   :  { %6623 = vmatprep.subr.bf16.mxu0 %v9755_v38  ;;  %7279 = vmatprep.subr.bf16.mxu1 %v9758_v39  ;;  %v9850_v38 = vld [vmem:[%s13802_s1 + $0x124c] ss:$16 sps:$4 sm:$0xff]   ;;  %v9845_v39 = vld [vmem:[%s13802_s1 + $0x1240] ss:$16 sps:$4 sm:$0xff]  }
 0x20f   :  { %6624 = vmatpush1.bf16.msra.mxu0 %v9753_v40  ;;  %7280 = vmatpush1.bf16.msra.mxu1 %v9756_v41  ;;  %v9848_v40 = vld [vmem:[%s13802_s1 + $0x1248] ss:$16 sps:$4 sm:$0xff]   ;;  %v9853_v41 = vld [vmem:[%s13802_s1 + $0x1264] ss:$16 sps:$4 sm:$0xff]  }
 0x210   :  { %6625 = vmatprep.subr.bf16.mxu0 %v9761_v42  ;;  %7281 = vmatprep.subr.bf16.mxu1 %v9764_v43  ;;  %v9856_v42 = vld [vmem:[%s13802_s1 + $0x126c] ss:$16 sps:$4 sm:$0xff]   ;;  %v9851_v43 = vld [vmem:[%s13802_s1 + $0x1260] ss:$16 sps:$4 sm:$0xff]  }
 0x213   :  { %6626 = vmatpush1.bf16.msra.mxu0 %v9759_v44  ;;  %7282 = vmatpush1.bf16.msra.mxu1 %v9762_v45  ;;  %v9854_v44 = vld [vmem:[%s13802_s1 + $0x1268] ss:$16 sps:$4 sm:$0xff]   ;;  %v9859_v45 = vld [vmem:[%s13802_s1 + $0x1284] ss:$16 sps:$4 sm:$0xff]  }
 0x214   :  { %6627 = vmatprep.subr.bf16.mxu0 %v9767_v46  ;;  %7283 = vmatprep.subr.bf16.mxu1 %v9770_v47  ;;  %v9862_v46 = vld [vmem:[%s13802_s1 + $0x128c] ss:$16 sps:$4 sm:$0xff]   ;;  %v9857_v47 = vld [vmem:[%s13802_s1 + $0x1280] ss:$16 sps:$4 sm:$0xff]  }
 0x217   :  { %6628 = vmatpush1.bf16.msra.mxu0 %v9765_v48  ;;  %7284 = vmatpush1.bf16.msra.mxu1 %v9768_v49  ;;  %v9860_v48 = vld [vmem:[%s13802_s1 + $0x1288] ss:$16 sps:$4 sm:$0xff]   ;;  %v9865_v49 = vld [vmem:[%s13802_s1 + $0x12a4] ss:$16 sps:$4 sm:$0xff]  }
 0x218   :  { %6629 = vmatprep.subr.bf16.mxu0 %v9773_v50  ;;  %7285 = vmatprep.subr.bf16.mxu1 %v9776_v51  ;;  %v9868_v50 = vld [vmem:[%s13802_s1 + $0x12ac] ss:$16 sps:$4 sm:$0xff]   ;;  %v9863_v51 = vld [vmem:[%s13802_s1 + $0x12a0] ss:$16 sps:$4 sm:$0xff]  }
 0x21b   :  { %6630 = vmatpush1.bf16.msra.mxu0 %v9771_v52  ;;  %7286 = vmatpush1.bf16.msra.mxu1 %v9774_v53  ;;  %v9866_v52 = vld [vmem:[%s13802_s1 + $0x12a8] ss:$16 sps:$4 sm:$0xff]   ;;  %v9871_v53 = vld [vmem:[%s13802_s1 + $0x12c4] ss:$16 sps:$4 sm:$0xff]  }
 0x21c   :  { %6631 = vmatprep.subr.bf16.mxu0 %v9779_v54  ;;  %7287 = vmatprep.subr.bf16.mxu1 %v9782_v55  ;;  %v9874_v54 = vld [vmem:[%s13802_s1 + $0x12cc] ss:$16 sps:$4 sm:$0xff]   ;;  %v9869_v55 = vld [vmem:[%s13802_s1 + $0x12c0] ss:$16 sps:$4 sm:$0xff]  }
 0x21f   :  { %6632 = vmatpush1.bf16.msra.mxu0 %v9777_v56  ;;  %7288 = vmatpush1.bf16.msra.mxu1 %v9780_v57  ;;  %v9872_v56 = vld [vmem:[%s13802_s1 + $0x12c8] ss:$16 sps:$4 sm:$0xff]   ;;  %v9877_v57 = vld [vmem:[%s13802_s1 + $0x12e4] ss:$16 sps:$4 sm:$0xff]  }
 0x220   :  { %6633 = vmatprep.subr.bf16.mxu0 %v9785_v58  ;;  %7289 = vmatprep.subr.bf16.mxu1 %v9788_v59  ;;  %v9880_v58 = vld [vmem:[%s13802_s1 + $0x12ec] ss:$16 sps:$4 sm:$0xff]   ;;  %v9875_v59 = vld [vmem:[%s13802_s1 + $0x12e0] ss:$16 sps:$4 sm:$0xff]  }
 0x223   :  { %6634 = vmatpush1.bf16.msra.mxu0 %v9783_v60  ;;  %7290 = vmatpush1.bf16.msra.mxu1 %v9786_v61  ;;  %v9878_v60 = vld [vmem:[%s13802_s1 + $0x12e8] ss:$16 sps:$4 sm:$0xff]   ;;  %v9883_v61 = vld [vmem:[%s13802_s1 + $0x1304] ss:$16 sps:$4 sm:$0xff]  }
 0x224   :  { %6635 = vmatprep.subr.bf16.mxu0 %v9791_v62  ;;  %7291 = vmatprep.subr.bf16.mxu1 %v9794_v63  ;;  %v9886_v62 = vld [vmem:[%s13802_s1 + $0x130c] ss:$16 sps:$4 sm:$0xff]   ;;  %v9881_v63 = vld [vmem:[%s13802_s1 + $0x1300] ss:$16 sps:$4 sm:$0xff]  }
 0x227   :  { %6636 = vmatpush1.bf16.msra.mxu0 %v9789_v0  ;;  %7292 = vmatpush1.bf16.msra.mxu1 %v9792_v1  ;;  %v9884_v0 = vld [vmem:[%s13802_s1 + $0x1308] ss:$16 sps:$4 sm:$0xff]   ;;  %v9889_v1 = vld [vmem:[%s13802_s1 + $0x1324] ss:$16 sps:$4 sm:$0xff]  }
 0x228   :  { %6637 = vmatprep.subr.bf16.mxu0 %v9797_v2  ;;  %7293 = vmatprep.subr.bf16.mxu1 %v9800_v3  ;;  %v9892_v2 = vld [vmem:[%s13802_s1 + $0x132c] ss:$16 sps:$4 sm:$0xff]   ;;  %v9887_v3 = vld [vmem:[%s13802_s1 + $0x1320] ss:$16 sps:$4 sm:$0xff]  }
 0x22b   :  { %6638 = vmatpush1.bf16.msra.mxu0 %v9795_v4  ;;  %7294 = vmatpush1.bf16.msra.mxu1 %v9798_v5  ;;  %v9890_v4 = vld [vmem:[%s13802_s1 + $0x1328] ss:$16 sps:$4 sm:$0xff]   ;;  %v9895_v5 = vld [vmem:[%s13802_s1 + $0x1344] ss:$16 sps:$4 sm:$0xff]  }
 0x22c   :  { %6639 = vmatprep.subr.bf16.mxu0 %v9803_v6  ;;  %7295 = vmatprep.subr.bf16.mxu1 %v9806_v7  ;;  %v9898_v6 = vld [vmem:[%s13802_s1 + $0x134c] ss:$16 sps:$4 sm:$0xff]   ;;  %v9893_v7 = vld [vmem:[%s13802_s1 + $0x1340] ss:$16 sps:$4 sm:$0xff]  }
 0x22f   :  { %6640 = vmatpush1.bf16.msra.mxu0 %v9801_v8  ;;  %7296 = vmatpush1.bf16.msra.mxu1 %v9804_v9  ;;  %v9896_v8 = vld [vmem:[%s13802_s1 + $0x1348] ss:$16 sps:$4 sm:$0xff]   ;;  %v9901_v9 = vld [vmem:[%s13802_s1 + $0x1364] ss:$16 sps:$4 sm:$0xff]  }
 0x230   :  { %6641 = vmatprep.subr.bf16.mxu0 %v9809_v10  ;;  %7297 = vmatprep.subr.bf16.mxu1 %v9812_v12  ;;  %v9904_v10 = vld [vmem:[%s13802_s1 + $0x136c] ss:$16 sps:$4 sm:$0xff]   ;;  %v9899_v12 = vld [vmem:[%s13802_s1 + $0x1360] ss:$16 sps:$4 sm:$0xff]  }
 0x233   :  { %6642 = vmatpush1.bf16.msra.mxu0 %v9807_v13  ;;  %7298 = vmatpush1.bf16.msra.mxu1 %v9810_v15  ;;  %v9902_v13 = vld [vmem:[%s13802_s1 + $0x1368] ss:$16 sps:$4 sm:$0xff]   ;;  %v9907_v15 = vld [vmem:[%s13802_s1 + $0x1384] ss:$16 sps:$4 sm:$0xff]  }
 0x234   :  { %6643 = vmatprep.subr.bf16.mxu0 %v9815_v11  ;;  %7299 = vmatprep.subr.bf16.mxu1 %v9818_v17  ;;  %v9910_v11 = vld [vmem:[%s13802_s1 + $0x138c] ss:$16 sps:$4 sm:$0xff]   ;;  %v9905_v17 = vld [vmem:[%s13802_s1 + $0x1380] ss:$16 sps:$4 sm:$0xff]  }
 0x237   :  { %6644 = vmatpush1.bf16.msra.mxu0 %v9813_v14  ;;  %7300 = vmatpush1.bf16.msra.mxu1 %v9816_v19  ;;  %v9908_v14 = vld [vmem:[%s13802_s1 + $0x1388] ss:$16 sps:$4 sm:$0xff]   ;;  %v9913_v19 = vld [vmem:[%s13802_s1 + $0x13a4] ss:$16 sps:$4 sm:$0xff]  }
 0x238   :  { %6645 = vmatprep.subr.bf16.mxu0 %v9821_v20  ;;  %7301 = vmatprep.subr.bf16.mxu1 %v9824_v16  ;;  %v9916_v20 = vld [vmem:[%s13802_s1 + $0x13ac] ss:$16 sps:$4 sm:$0xff]   ;;  %v9911_v16 = vld [vmem:[%s13802_s1 + $0x13a0] ss:$16 sps:$4 sm:$0xff]  }
 0x23b   :  { %6646 = vmatpush1.bf16.msra.mxu0 %v9819_v22  ;;  %7302 = vmatpush1.bf16.msra.mxu1 %v9822_v23  ;;  %v9914_v22 = vld [vmem:[%s13802_s1 + $0x13a8] ss:$16 sps:$4 sm:$0xff]   ;;  %v9919_v23 = vld [vmem:[%s13802_s1 + $0x13c4] ss:$16 sps:$4 sm:$0xff]  }
 0x23c   :  { %6647 = vmatprep.subr.bf16.mxu0 %v9827_v18  ;;  %7303 = vmatprep.subr.bf16.mxu1 %v9830_v25  ;;  %v9922_v18 = vld [vmem:[%s13802_s1 + $0x13cc] ss:$16 sps:$4 sm:$0xff]   ;;  %v9917_v25 = vld [vmem:[%s13802_s1 + $0x13c0] ss:$16 sps:$4 sm:$0xff]  }
 0x23f   :  { %6648 = vmatpush1.bf16.msra.mxu0 %v9825_v26  ;;  %7304 = vmatpush1.bf16.msra.mxu1 %v9828_v21  ;;  %v9920_v26 = vld [vmem:[%s13802_s1 + $0x13c8] ss:$16 sps:$4 sm:$0xff]   ;;  %v9925_v21 = vld [vmem:[%s13802_s1 + $0x13e4] ss:$16 sps:$4 sm:$0xff]  }
 0x240   :  { %6658 = vmatprep.subr.bf16.mxu0 %v9835_v28  ;;  %7314 = vmatprep.subr.bf16.mxu1 %v9838_v29  ;;  %v9928_v28 = vld [vmem:[%s13802_s1 + $0x13ec] ss:$16 sps:$4 sm:$0xff]   ;;  %v9923_v29 = vld [vmem:[%s13802_s1 + $0x13e0] ss:$16 sps:$4 sm:$0xff]  }
 0x242   :  { %6650 = vmatmul.mubr.bf16.vlgmr.msra.gmra.mrb[0].mxu0 %v7787_v24  ;;  %7306 = vmatmul.mubr.bf16.vlgmr.msra.gmra.mrb[0].mxu1 %v7787_v24  ;;  %v9926_v24 = vld [vmem:[%s13802_s1 + $0x13e8] ss:$16 sps:$4 sm:$0xff]  }
 0x243   :  { %6659 = vmatpush1.bf16.msra.mxu0 %v9833_v31  ;;  %7315 = vmatpush1.bf16.msra.mxu1 %v9836_v32  ;;  %v9933_v31 = vld [vmem:[%s13802_s1 + $0x1404] ss:$16 sps:$4 sm:$0xff]   ;;  %v9936_v32 = vld [vmem:[%s13802_s1 + $0x140c] ss:$16 sps:$4 sm:$0xff]  }
 0x244   :  { %6660 = vmatprep.subr.bf16.mxu0 %v9841_v33  ;;  %7316 = vmatprep.subr.bf16.mxu1 %v9844_v27  ;;  %v7789_v33 = vcombine.low %v12362_v30, %v12362_v30  ;;  %v12565_v27 = vld [vmem:[%s13803_s0 + $0x50] sm:$0xff] }
 0x245   :  { %6690 = vmatprep.mubr.bf16.mxu0 %v7790_v34  ;;  %7346 = vmatprep.mubr.bf16.mxu1 %v7790_v34  ;;  %v9931_v34 = vld [vmem:[%s13802_s1 + $0x1400] ss:$16 sps:$4 sm:$0xff]   ;;  %v9939_v30 = vld [vmem:[%s13802_s1 + $0x1424] ss:$16 sps:$4 sm:$0xff]  }
 0x247   :  { %6661 = vmatpush1.bf16.msra.mxu0 %v9839_v35  ;;  %7317 = vmatpush1.bf16.msra.mxu1 %v9842_v36  ;;  %v9934_v35 = vld [vmem:[%s13802_s1 + $0x1408] ss:$16 sps:$4 sm:$0xff]   ;;  %v9942_v36 = vld [vmem:[%s13802_s1 + $0x142c] ss:$16 sps:$4 sm:$0xff]  }
 0x248   :  { %6662 = vmatprep.subr.bf16.mxu0 %v9847_v37  ;;  %7318 = vmatprep.subr.bf16.mxu1 %v9850_v38  ;;  %v7792_v37 = vcombine.high %v12565_v27, %v12565_v27  ;;  %v9937_v38 = vld [vmem:[%s13802_s1 + $0x1420] ss:$16 sps:$4 sm:$0xff]  }
 0x24b   :  { %6663 = vmatpush1.bf16.msra.mxu0 %v9845_v39  ;;  %7319 = vmatpush1.bf16.msra.mxu1 %v9848_v40  ;;  %v9940_v39 = vld [vmem:[%s13802_s1 + $0x1428] ss:$16 sps:$4 sm:$0xff]   ;;  %v9945_v40 = vld [vmem:[%s13802_s1 + $0x1444] ss:$16 sps:$4 sm:$0xff]  }
 0x24c   :  { %6664 = vmatprep.subr.bf16.mxu0 %v9853_v41  ;;  %7320 = vmatprep.subr.bf16.mxu1 %v9856_v42  ;;  %v9948_v41 = vld [vmem:[%s13802_s1 + $0x144c] ss:$16 sps:$4 sm:$0xff]   ;;  %v9943_v42 = vld [vmem:[%s13802_s1 + $0x1440] ss:$16 sps:$4 sm:$0xff]  }
 0x24f   :  { %6665 = vmatpush1.bf16.msra.mxu0 %v9851_v43  ;;  %7321 = vmatpush1.bf16.msra.mxu1 %v9854_v44  ;;  %v9946_v43 = vld [vmem:[%s13802_s1 + $0x1448] ss:$16 sps:$4 sm:$0xff]   ;;  %v9951_v44 = vld [vmem:[%s13802_s1 + $0x1464] ss:$16 sps:$4 sm:$0xff]  }
 0x250   :  { %6666 = vmatprep.subr.bf16.mxu0 %v9859_v45  ;;  %7322 = vmatprep.subr.bf16.mxu1 %v9862_v46  ;;  %v9954_v45 = vld [vmem:[%s13802_s1 + $0x146c] ss:$16 sps:$4 sm:$0xff]   ;;  %v9949_v46 = vld [vmem:[%s13802_s1 + $0x1460] ss:$16 sps:$4 sm:$0xff]  }
 0x253   :  { %6667 = vmatpush1.bf16.msra.mxu0 %v9857_v47  ;;  %7323 = vmatpush1.bf16.msra.mxu1 %v9860_v48  ;;  %v9952_v47 = vld [vmem:[%s13802_s1 + $0x1468] ss:$16 sps:$4 sm:$0xff]   ;;  %v9957_v48 = vld [vmem:[%s13802_s1 + $0x1484] ss:$16 sps:$4 sm:$0xff]  }
 0x254   :  { %6668 = vmatprep.subr.bf16.mxu0 %v9865_v49  ;;  %7324 = vmatprep.subr.bf16.mxu1 %v9868_v50  ;;  %v9960_v49 = vld [vmem:[%s13802_s1 + $0x148c] ss:$16 sps:$4 sm:$0xff]   ;;  %v9955_v50 = vld [vmem:[%s13802_s1 + $0x1480] ss:$16 sps:$4 sm:$0xff]  }
 0x257   :  { %6669 = vmatpush1.bf16.msra.mxu0 %v9863_v51  ;;  %7325 = vmatpush1.bf16.msra.mxu1 %v9866_v52  ;;  %v9958_v51 = vld [vmem:[%s13802_s1 + $0x1488] ss:$16 sps:$4 sm:$0xff]   ;;  %v9963_v52 = vld [vmem:[%s13802_s1 + $0x14a4] ss:$16 sps:$4 sm:$0xff]  }
 0x258   :  { %6670 = vmatprep.subr.bf16.mxu0 %v9871_v53  ;;  %7326 = vmatprep.subr.bf16.mxu1 %v9874_v54  ;;  %v9966_v53 = vld [vmem:[%s13802_s1 + $0x14ac] ss:$16 sps:$4 sm:$0xff]   ;;  %v9961_v54 = vld [vmem:[%s13802_s1 + $0x14a0] ss:$16 sps:$4 sm:$0xff]  }
 0x25b   :  { %6671 = vmatpush1.bf16.msra.mxu0 %v9869_v55  ;;  %7327 = vmatpush1.bf16.msra.mxu1 %v9872_v56  ;;  %v9964_v55 = vld [vmem:[%s13802_s1 + $0x14a8] ss:$16 sps:$4 sm:$0xff]   ;;  %v9969_v56 = vld [vmem:[%s13802_s1 + $0x14c4] ss:$16 sps:$4 sm:$0xff]  }
 0x25c   :  { %6672 = vmatprep.subr.bf16.mxu0 %v9877_v57  ;;  %7328 = vmatprep.subr.bf16.mxu1 %v9880_v58  ;;  %v9972_v57 = vld [vmem:[%s13802_s1 + $0x14cc] ss:$16 sps:$4 sm:$0xff]   ;;  %v9967_v58 = vld [vmem:[%s13802_s1 + $0x14c0] ss:$16 sps:$4 sm:$0xff]  }
 0x25f   :  { %6673 = vmatpush1.bf16.msra.mxu0 %v9875_v59  ;;  %7329 = vmatpush1.bf16.msra.mxu1 %v9878_v60  ;;  %v9970_v59 = vld [vmem:[%s13802_s1 + $0x14c8] ss:$16 sps:$4 sm:$0xff]   ;;  %v9975_v60 = vld [vmem:[%s13802_s1 + $0x14e4] ss:$16 sps:$4 sm:$0xff]  }
 0x260   :  { %6674 = vmatprep.subr.bf16.mxu0 %v9883_v61  ;;  %7330 = vmatprep.subr.bf16.mxu1 %v9886_v62  ;;  %v9978_v61 = vld [vmem:[%s13802_s1 + $0x14ec] ss:$16 sps:$4 sm:$0xff]   ;;  %v9973_v62 = vld [vmem:[%s13802_s1 + $0x14e0] ss:$16 sps:$4 sm:$0xff]  }
 0x263   :  { %6675 = vmatpush1.bf16.msra.mxu0 %v9881_v63  ;;  %7331 = vmatpush1.bf16.msra.mxu1 %v9884_v0  ;;  %v9976_v63 = vld [vmem:[%s13802_s1 + $0x14e8] ss:$16 sps:$4 sm:$0xff]   ;;  %v9981_v0 = vld [vmem:[%s13802_s1 + $0x1504] ss:$16 sps:$4 sm:$0xff]  }
 0x264   :  { %6676 = vmatprep.subr.bf16.mxu0 %v9889_v1  ;;  %7332 = vmatprep.subr.bf16.mxu1 %v9892_v2  ;;  %v9984_v1 = vld [vmem:[%s13802_s1 + $0x150c] ss:$16 sps:$4 sm:$0xff]   ;;  %v9979_v2 = vld [vmem:[%s13802_s1 + $0x1500] ss:$16 sps:$4 sm:$0xff]  }
 0x267   :  { %6677 = vmatpush1.bf16.msra.mxu0 %v9887_v3  ;;  %7333 = vmatpush1.bf16.msra.mxu1 %v9890_v4  ;;  %v9982_v3 = vld [vmem:[%s13802_s1 + $0x1508] ss:$16 sps:$4 sm:$0xff]   ;;  %v9987_v4 = vld [vmem:[%s13802_s1 + $0x1524] ss:$16 sps:$4 sm:$0xff]  }
 0x268   :  { %6678 = vmatprep.subr.bf16.mxu0 %v9895_v5  ;;  %7334 = vmatprep.subr.bf16.mxu1 %v9898_v6  ;;  %v9990_v5 = vld [vmem:[%s13802_s1 + $0x152c] ss:$16 sps:$4 sm:$0xff]   ;;  %v9985_v6 = vld [vmem:[%s13802_s1 + $0x1520] ss:$16 sps:$4 sm:$0xff]  }
 0x26b   :  { %6679 = vmatpush1.bf16.msra.mxu0 %v9893_v7  ;;  %7335 = vmatpush1.bf16.msra.mxu1 %v9896_v8  ;;  %v9988_v7 = vld [vmem:[%s13802_s1 + $0x1528] ss:$16 sps:$4 sm:$0xff]   ;;  %v9993_v8 = vld [vmem:[%s13802_s1 + $0x1544] ss:$16 sps:$4 sm:$0xff]  }
 0x26c   :  { %6680 = vmatprep.subr.bf16.mxu0 %v9901_v9  ;;  %7336 = vmatprep.subr.bf16.mxu1 %v9904_v10  ;;  %v9996_v9 = vld [vmem:[%s13802_s1 + $0x154c] ss:$16 sps:$4 sm:$0xff]   ;;  %v9991_v10 = vld [vmem:[%s13802_s1 + $0x1540] ss:$16 sps:$4 sm:$0xff]  }
 0x26f   :  { %6681 = vmatpush1.bf16.msra.mxu0 %v9899_v12  ;;  %7337 = vmatpush1.bf16.msra.mxu1 %v9902_v13  ;;  %v9994_v12 = vld [vmem:[%s13802_s1 + $0x1548] ss:$16 sps:$4 sm:$0xff]   ;;  %v9999_v13 = vld [vmem:[%s13802_s1 + $0x1564] ss:$16 sps:$4 sm:$0xff]  }
 0x270   :  { %6682 = vmatprep.subr.bf16.mxu0 %v9907_v15  ;;  %7338 = vmatprep.subr.bf16.mxu1 %v9910_v11  ;;  %v10002_v15 = vld [vmem:[%s13802_s1 + $0x156c] ss:$16 sps:$4 sm:$0xff]   ;;  %v9997_v11 = vld [vmem:[%s13802_s1 + $0x1560] ss:$16 sps:$4 sm:$0xff]  }
 0x273   :  { %6683 = vmatpush1.bf16.msra.mxu0 %v9905_v17  ;;  %7339 = vmatpush1.bf16.msra.mxu1 %v9908_v14  ;;  %v10000_v17 = vld [vmem:[%s13802_s1 + $0x1568] ss:$16 sps:$4 sm:$0xff]   ;;  %v10005_v14 = vld [vmem:[%s13802_s1 + $0x1584] ss:$16 sps:$4 sm:$0xff]  }
 0x274   :  { %6684 = vmatprep.subr.bf16.mxu0 %v9913_v19  ;;  %7340 = vmatprep.subr.bf16.mxu1 %v9916_v20  ;;  %v10008_v19 = vld [vmem:[%s13802_s1 + $0x158c] ss:$16 sps:$4 sm:$0xff]   ;;  %v10003_v20 = vld [vmem:[%s13802_s1 + $0x1580] ss:$16 sps:$4 sm:$0xff]  }
 0x277   :  { %6685 = vmatpush1.bf16.msra.mxu0 %v9911_v16  ;;  %7341 = vmatpush1.bf16.msra.mxu1 %v9914_v22  ;;  %v10006_v16 = vld [vmem:[%s13802_s1 + $0x1588] ss:$16 sps:$4 sm:$0xff]   ;;  %v10011_v22 = vld [vmem:[%s13802_s1 + $0x15a4] ss:$16 sps:$4 sm:$0xff]  }
 0x278   :  { %6686 = vmatprep.subr.bf16.mxu0 %v9919_v23  ;;  %7342 = vmatprep.subr.bf16.mxu1 %v9922_v18  ;;  %v10014_v23 = vld [vmem:[%s13802_s1 + $0x15ac] ss:$16 sps:$4 sm:$0xff]   ;;  %v10009_v18 = vld [vmem:[%s13802_s1 + $0x15a0] ss:$16 sps:$4 sm:$0xff]  }
 0x27b   :  { %6687 = vmatpush1.bf16.msra.mxu0 %v9917_v25  ;;  %7343 = vmatpush1.bf16.msra.mxu1 %v9920_v26  ;;  %v10012_v25 = vld [vmem:[%s13802_s1 + $0x15a8] ss:$16 sps:$4 sm:$0xff]   ;;  %v10017_v26 = vld [vmem:[%s13802_s1 + $0x15c4] ss:$16 sps:$4 sm:$0xff]  }
 0x27c   :  { %6688 = vmatprep.subr.bf16.mxu0 %v9925_v21  ;;  %7344 = vmatprep.subr.bf16.mxu1 %v9928_v28  ;;  %v10020_v21 = vld [vmem:[%s13802_s1 + $0x15cc] ss:$16 sps:$4 sm:$0xff]   ;;  %v10015_v28 = vld [vmem:[%s13802_s1 + $0x15c0] ss:$16 sps:$4 sm:$0xff]  }
 0x27f   :  { %6689 = vmatpush1.bf16.msra.mxu0 %v9923_v29  ;;  %7345 = vmatpush1.bf16.msra.mxu1 %v9926_v24  ;;  %v10018_v29 = vld [vmem:[%s13802_s1 + $0x15c8] ss:$16 sps:$4 sm:$0xff]   ;;  %v10023_v24 = vld [vmem:[%s13802_s1 + $0x15e4] ss:$16 sps:$4 sm:$0xff]  }
 0x280   :  { %6699 = vmatprep.subr.bf16.mxu0 %v9933_v31  ;;  %7355 = vmatprep.subr.bf16.mxu1 %v9936_v32  ;;  %v10026_v31 = vld [vmem:[%s13802_s1 + $0x15ec] ss:$16 sps:$4 sm:$0xff]   ;;  %v10021_v32 = vld [vmem:[%s13802_s1 + $0x15e0] ss:$16 sps:$4 sm:$0xff]  }
 0x282   :  { %6691 = vmatmul.mubr.bf16.vlgmr.msra.gmra.mrb[0].mxu0 %v7789_v33  ;;  %7347 = vmatmul.mubr.bf16.vlgmr.msra.gmra.mrb[0].mxu1 %v7789_v33  ;;  %v10024_v33 = vld [vmem:[%s13802_s1 + $0x15e8] ss:$16 sps:$4 sm:$0xff]  }
 0x283   :  { %6700 = vmatpush1.bf16.msra.mxu0 %v9931_v34  ;;  %7356 = vmatpush1.bf16.msra.mxu1 %v9934_v35  ;;  %v10031_v34 = vld [vmem:[%s13802_s1 + $0x1604] ss:$16 sps:$4 sm:$0xff]   ;;  %v10034_v35 = vld [vmem:[%s13802_s1 + $0x160c] ss:$16 sps:$4 sm:$0xff]  }
 0x284   :  { %6701 = vmatprep.subr.bf16.mxu0 %v9939_v30  ;;  %7357 = vmatprep.subr.bf16.mxu1 %v9942_v36  ;;  %v7791_v30 = vcombine.low %v12565_v27, %v12565_v27  ;;  %v12766_v36 = vld [vmem:[%s13803_s0 + $0x58] sm:$0xff]  ;;  %v10037_v27 = vld [vmem:[%s13802_s1 + $0x1624] ss:$16 sps:$4 sm:$0xff]  }
 0x285   :  { %6731 = vmatprep.mubr.bf16.mxu0 %v7792_v37  ;;  %7387 = vmatprep.mubr.bf16.mxu1 %v7792_v37  ;;  %v10029_v37 = vld [vmem:[%s13802_s1 + $0x1600] ss:$16 sps:$4 sm:$0xff]  }
 0x287   :  { %6702 = vmatpush1.bf16.msra.mxu0 %v9937_v38  ;;  %7358 = vmatpush1.bf16.msra.mxu1 %v9940_v39  ;;  %v10032_v38 = vld [vmem:[%s13802_s1 + $0x1608] ss:$16 sps:$4 sm:$0xff]   ;;  %v10040_v39 = vld [vmem:[%s13802_s1 + $0x162c] ss:$16 sps:$4 sm:$0xff]  }
 0x288   :  { %6703 = vmatprep.subr.bf16.mxu0 %v9945_v40  ;;  %7359 = vmatprep.subr.bf16.mxu1 %v9948_v41  ;;  %v7794_v40 = vcombine.high %v12766_v36, %v12766_v36  ;;  %v10035_v41 = vld [vmem:[%s13802_s1 + $0x1620] ss:$16 sps:$4 sm:$0xff]  }
 0x28b   :  { %6704 = vmatpush1.bf16.msra.mxu0 %v9943_v42  ;;  %7360 = vmatpush1.bf16.msra.mxu1 %v9946_v43  ;;  %v10038_v42 = vld [vmem:[%s13802_s1 + $0x1628] ss:$16 sps:$4 sm:$0xff]   ;;  %v10043_v43 = vld [vmem:[%s13802_s1 + $0x1644] ss:$16 sps:$4 sm:$0xff]  }
 0x28c   :  { %6705 = vmatprep.subr.bf16.mxu0 %v9951_v44  ;;  %7361 = vmatprep.subr.bf16.mxu1 %v9954_v45  ;;  %v10046_v44 = vld [vmem:[%s13802_s1 + $0x164c] ss:$16 sps:$4 sm:$0xff]   ;;  %v10041_v45 = vld [vmem:[%s13802_s1 + $0x1640] ss:$16 sps:$4 sm:$0xff]  }
 0x28f   :  { %6706 = vmatpush1.bf16.msra.mxu0 %v9949_v46  ;;  %7362 = vmatpush1.bf16.msra.mxu1 %v9952_v47  ;;  %v10044_v46 = vld [vmem:[%s13802_s1 + $0x1648] ss:$16 sps:$4 sm:$0xff]   ;;  %v10049_v47 = vld [vmem:[%s13802_s1 + $0x1664] ss:$16 sps:$4 sm:$0xff]  }
 0x290   :  { %6707 = vmatprep.subr.bf16.mxu0 %v9957_v48  ;;  %7363 = vmatprep.subr.bf16.mxu1 %v9960_v49  ;;  %v10052_v48 = vld [vmem:[%s13802_s1 + $0x166c] ss:$16 sps:$4 sm:$0xff]   ;;  %v10047_v49 = vld [vmem:[%s13802_s1 + $0x1660] ss:$16 sps:$4 sm:$0xff]  }
 0x293   :  { %6708 = vmatpush1.bf16.msra.mxu0 %v9955_v50  ;;  %7364 = vmatpush1.bf16.msra.mxu1 %v9958_v51  ;;  %v10050_v50 = vld [vmem:[%s13802_s1 + $0x1668] ss:$16 sps:$4 sm:$0xff]   ;;  %v10055_v51 = vld [vmem:[%s13802_s1 + $0x1684] ss:$16 sps:$4 sm:$0xff]  }
 0x294   :  { %6709 = vmatprep.subr.bf16.mxu0 %v9963_v52  ;;  %7365 = vmatprep.subr.bf16.mxu1 %v9966_v53  ;;  %v10058_v52 = vld [vmem:[%s13802_s1 + $0x168c] ss:$16 sps:$4 sm:$0xff]   ;;  %v10053_v53 = vld [vmem:[%s13802_s1 + $0x1680] ss:$16 sps:$4 sm:$0xff]  }
 0x297   :  { %6710 = vmatpush1.bf16.msra.mxu0 %v9961_v54  ;;  %7366 = vmatpush1.bf16.msra.mxu1 %v9964_v55  ;;  %v10056_v54 = vld [vmem:[%s13802_s1 + $0x1688] ss:$16 sps:$4 sm:$0xff]   ;;  %v10061_v55 = vld [vmem:[%s13802_s1 + $0x16a4] ss:$16 sps:$4 sm:$0xff]  }
 0x298   :  { %6711 = vmatprep.subr.bf16.mxu0 %v9969_v56  ;;  %7367 = vmatprep.subr.bf16.mxu1 %v9972_v57  ;;  %v10064_v56 = vld [vmem:[%s13802_s1 + $0x16ac] ss:$16 sps:$4 sm:$0xff]   ;;  %v10059_v57 = vld [vmem:[%s13802_s1 + $0x16a0] ss:$16 sps:$4 sm:$0xff]  }
 0x29b   :  { %6712 = vmatpush1.bf16.msra.mxu0 %v9967_v58  ;;  %7368 = vmatpush1.bf16.msra.mxu1 %v9970_v59  ;;  %v10062_v58 = vld [vmem:[%s13802_s1 + $0x16a8] ss:$16 sps:$4 sm:$0xff]   ;;  %v10067_v59 = vld [vmem:[%s13802_s1 + $0x16c4] ss:$16 sps:$4 sm:$0xff]  }
 0x29c   :  { %6713 = vmatprep.subr.bf16.mxu0 %v9975_v60  ;;  %7369 = vmatprep.subr.bf16.mxu1 %v9978_v61  ;;  %v10070_v60 = vld [vmem:[%s13802_s1 + $0x16cc] ss:$16 sps:$4 sm:$0xff]   ;;  %v10065_v61 = vld [vmem:[%s13802_s1 + $0x16c0] ss:$16 sps:$4 sm:$0xff]  }
 0x29f   :  { %6714 = vmatpush1.bf16.msra.mxu0 %v9973_v62  ;;  %7370 = vmatpush1.bf16.msra.mxu1 %v9976_v63  ;;  %v10068_v62 = vld [vmem:[%s13802_s1 + $0x16c8] ss:$16 sps:$4 sm:$0xff]   ;;  %v10073_v63 = vld [vmem:[%s13802_s1 + $0x16e4] ss:$16 sps:$4 sm:$0xff]  }
 0x2a0   :  { %6715 = vmatprep.subr.bf16.mxu0 %v9981_v0  ;;  %7371 = vmatprep.subr.bf16.mxu1 %v9984_v1  ;;  %v10076_v0 = vld [vmem:[%s13802_s1 + $0x16ec] ss:$16 sps:$4 sm:$0xff]   ;;  %v10071_v1 = vld [vmem:[%s13802_s1 + $0x16e0] ss:$16 sps:$4 sm:$0xff]  }
 0x2a3   :  { %6716 = vmatpush1.bf16.msra.mxu0 %v9979_v2  ;;  %7372 = vmatpush1.bf16.msra.mxu1 %v9982_v3  ;;  %v10074_v2 = vld [vmem:[%s13802_s1 + $0x16e8] ss:$16 sps:$4 sm:$0xff]   ;;  %v10079_v3 = vld [vmem:[%s13802_s1 + $0x1704] ss:$16 sps:$4 sm:$0xff]  }
 0x2a4   :  { %6717 = vmatprep.subr.bf16.mxu0 %v9987_v4  ;;  %7373 = vmatprep.subr.bf16.mxu1 %v9990_v5  ;;  %v10082_v4 = vld [vmem:[%s13802_s1 + $0x170c] ss:$16 sps:$4 sm:$0xff]   ;;  %v10077_v5 = vld [vmem:[%s13802_s1 + $0x1700] ss:$16 sps:$4 sm:$0xff]  }
 0x2a7   :  { %6718 = vmatpush1.bf16.msra.mxu0 %v9985_v6  ;;  %7374 = vmatpush1.bf16.msra.mxu1 %v9988_v7  ;;  %v10080_v6 = vld [vmem:[%s13802_s1 + $0x1708] ss:$16 sps:$4 sm:$0xff]   ;;  %v10085_v7 = vld [vmem:[%s13802_s1 + $0x1724] ss:$16 sps:$4 sm:$0xff]  }
 0x2a8   :  { %6719 = vmatprep.subr.bf16.mxu0 %v9993_v8  ;;  %7375 = vmatprep.subr.bf16.mxu1 %v9996_v9  ;;  %v10088_v8 = vld [vmem:[%s13802_s1 + $0x172c] ss:$16 sps:$4 sm:$0xff]   ;;  %v10083_v9 = vld [vmem:[%s13802_s1 + $0x1720] ss:$16 sps:$4 sm:$0xff]  }
 0x2ab   :  { %6720 = vmatpush1.bf16.msra.mxu0 %v9991_v10  ;;  %7376 = vmatpush1.bf16.msra.mxu1 %v9994_v12  ;;  %v10086_v10 = vld [vmem:[%s13802_s1 + $0x1728] ss:$16 sps:$4 sm:$0xff]   ;;  %v10091_v12 = vld [vmem:[%s13802_s1 + $0x1744] ss:$16 sps:$4 sm:$0xff]  }
 0x2ac   :  { %6721 = vmatprep.subr.bf16.mxu0 %v9999_v13  ;;  %7377 = vmatprep.subr.bf16.mxu1 %v10002_v15  ;;  %v10094_v13 = vld [vmem:[%s13802_s1 + $0x174c] ss:$16 sps:$4 sm:$0xff]   ;;  %v10089_v15 = vld [vmem:[%s13802_s1 + $0x1740] ss:$16 sps:$4 sm:$0xff]  }
 0x2af   :  { %6722 = vmatpush1.bf16.msra.mxu0 %v9997_v11  ;;  %7378 = vmatpush1.bf16.msra.mxu1 %v10000_v17  ;;  %v10092_v11 = vld [vmem:[%s13802_s1 + $0x1748] ss:$16 sps:$4 sm:$0xff]   ;;  %v10097_v17 = vld [vmem:[%s13802_s1 + $0x1764] ss:$16 sps:$4 sm:$0xff]  }
 0x2b0   :  { %6723 = vmatprep.subr.bf16.mxu0 %v10005_v14  ;;  %7379 = vmatprep.subr.bf16.mxu1 %v10008_v19  ;;  %v10100_v14 = vld [vmem:[%s13802_s1 + $0x176c] ss:$16 sps:$4 sm:$0xff]   ;;  %v10095_v19 = vld [vmem:[%s13802_s1 + $0x1760] ss:$16 sps:$4 sm:$0xff]  }
 0x2b3   :  { %6724 = vmatpush1.bf16.msra.mxu0 %v10003_v20  ;;  %7380 = vmatpush1.bf16.msra.mxu1 %v10006_v16  ;;  %v10098_v20 = vld [vmem:[%s13802_s1 + $0x1768] ss:$16 sps:$4 sm:$0xff]   ;;  %v10103_v16 = vld [vmem:[%s13802_s1 + $0x1784] ss:$16 sps:$4 sm:$0xff]  }
 0x2b4   :  { %6725 = vmatprep.subr.bf16.mxu0 %v10011_v22  ;;  %7381 = vmatprep.subr.bf16.mxu1 %v10014_v23  ;;  %v10106_v22 = vld [vmem:[%s13802_s1 + $0x178c] ss:$16 sps:$4 sm:$0xff]   ;;  %v10101_v23 = vld [vmem:[%s13802_s1 + $0x1780] ss:$16 sps:$4 sm:$0xff]  }
 0x2b7   :  { %6726 = vmatpush1.bf16.msra.mxu0 %v10009_v18  ;;  %7382 = vmatpush1.bf16.msra.mxu1 %v10012_v25  ;;  %v10104_v18 = vld [vmem:[%s13802_s1 + $0x1788] ss:$16 sps:$4 sm:$0xff]   ;;  %v10109_v25 = vld [vmem:[%s13802_s1 + $0x17a4] ss:$16 sps:$4 sm:$0xff]  }
 0x2b8   :  { %6727 = vmatprep.subr.bf16.mxu0 %v10017_v26  ;;  %7383 = vmatprep.subr.bf16.mxu1 %v10020_v21  ;;  %v10112_v26 = vld [vmem:[%s13802_s1 + $0x17ac] ss:$16 sps:$4 sm:$0xff]   ;;  %v10107_v21 = vld [vmem:[%s13802_s1 + $0x17a0] ss:$16 sps:$4 sm:$0xff]  }
 0x2bb   :  { %6728 = vmatpush1.bf16.msra.mxu0 %v10015_v28  ;;  %7384 = vmatpush1.bf16.msra.mxu1 %v10018_v29  ;;  %v10110_v28 = vld [vmem:[%s13802_s1 + $0x17a8] ss:$16 sps:$4 sm:$0xff]   ;;  %v10115_v29 = vld [vmem:[%s13802_s1 + $0x17c4] ss:$16 sps:$4 sm:$0xff]  }
 0x2bc   :  { %6729 = vmatprep.subr.bf16.mxu0 %v10023_v24  ;;  %7385 = vmatprep.subr.bf16.mxu1 %v10026_v31  ;;  %v10118_v24 = vld [vmem:[%s13802_s1 + $0x17cc] ss:$16 sps:$4 sm:$0xff]   ;;  %v10113_v31 = vld [vmem:[%s13802_s1 + $0x17c0] ss:$16 sps:$4 sm:$0xff]  }
 0x2bf   :  { %6730 = vmatpush1.bf16.msra.mxu0 %v10021_v32  ;;  %7386 = vmatpush1.bf16.msra.mxu1 %v10024_v33  ;;  %v10116_v32 = vld [vmem:[%s13802_s1 + $0x17c8] ss:$16 sps:$4 sm:$0xff]   ;;  %v10121_v33 = vld [vmem:[%s13802_s1 + $0x17e4] ss:$16 sps:$4 sm:$0xff]  }
 0x2c0   :  { %6740 = vmatprep.subr.bf16.mxu0 %v10031_v34  ;;  %7396 = vmatprep.subr.bf16.mxu1 %v10034_v35  ;;  %v10124_v34 = vld [vmem:[%s13802_s1 + $0x17ec] ss:$16 sps:$4 sm:$0xff]   ;;  %v10119_v35 = vld [vmem:[%s13802_s1 + $0x17e0] ss:$16 sps:$4 sm:$0xff]  }
 0x2c2   :  { %6732 = vmatmul.mubr.bf16.vlgmr.msra.gmra.mrb[0].mxu0 %v7791_v30  ;;  %7388 = vmatmul.mubr.bf16.vlgmr.msra.gmra.mrb[0].mxu1 %v7791_v30  ;;  %v10122_v30 = vld [vmem:[%s13802_s1 + $0x17e8] ss:$16 sps:$4 sm:$0xff]  }
 0x2c3   :  { %6741 = vmatpush1.bf16.msra.mxu0 %v10029_v37  ;;  %7397 = vmatpush1.bf16.msra.mxu1 %v10032_v38  ;;  %v10129_v37 = vld [vmem:[%s13802_s1 + $0x1804] ss:$16 sps:$4 sm:$0xff]   ;;  %v10132_v38 = vld [vmem:[%s13802_s1 + $0x180c] ss:$16 sps:$4 sm:$0xff]  }
 0x2c4   :  { %6742 = vmatprep.subr.bf16.mxu0 %v10037_v27  ;;  %7398 = vmatprep.subr.bf16.mxu1 %v10040_v39  ;;  %v7793_v27 = vcombine.low %v12766_v36, %v12766_v36  ;;  %v12967_v39 = vld [vmem:[%s13803_s0 + $0x60] sm:$0xff] }
 0x2c5   :  { %6772 = vmatprep.mubr.bf16.mxu0 %v7794_v40  ;;  %7428 = vmatprep.mubr.bf16.mxu1 %v7794_v40  ;;  %v10127_v40 = vld [vmem:[%s13802_s1 + $0x1800] ss:$16 sps:$4 sm:$0xff]   ;;  %v10135_v36 = vld [vmem:[%s13802_s1 + $0x1824] ss:$16 sps:$4 sm:$0xff]  }
 0x2c7   :  { %6743 = vmatpush1.bf16.msra.mxu0 %v10035_v41  ;;  %7399 = vmatpush1.bf16.msra.mxu1 %v10038_v42  ;;  %v10130_v41 = vld [vmem:[%s13802_s1 + $0x1808] ss:$16 sps:$4 sm:$0xff]   ;;  %v10138_v42 = vld [vmem:[%s13802_s1 + $0x182c] ss:$16 sps:$4 sm:$0xff]  }
 0x2c8   :  { %6744 = vmatprep.subr.bf16.mxu0 %v10043_v43  ;;  %7400 = vmatprep.subr.bf16.mxu1 %v10046_v44  ;;  %v7796_v43 = vcombine.high %v12967_v39, %v12967_v39  ;;  %v10133_v44 = vld [vmem:[%s13802_s1 + $0x1820] ss:$16 sps:$4 sm:$0xff]  }
 0x2cb   :  { %6745 = vmatpush1.bf16.msra.mxu0 %v10041_v45  ;;  %7401 = vmatpush1.bf16.msra.mxu1 %v10044_v46  ;;  %v10136_v45 = vld [vmem:[%s13802_s1 + $0x1828] ss:$16 sps:$4 sm:$0xff]   ;;  %v10141_v46 = vld [vmem:[%s13802_s1 + $0x1844] ss:$16 sps:$4 sm:$0xff]  }
 0x2cc   :  { %6746 = vmatprep.subr.bf16.mxu0 %v10049_v47  ;;  %7402 = vmatprep.subr.bf16.mxu1 %v10052_v48  ;;  %v10144_v47 = vld [vmem:[%s13802_s1 + $0x184c] ss:$16 sps:$4 sm:$0xff]   ;;  %v10139_v48 = vld [vmem:[%s13802_s1 + $0x1840] ss:$16 sps:$4 sm:$0xff]  }
 0x2cf   :  { %6747 = vmatpush1.bf16.msra.mxu0 %v10047_v49  ;;  %7403 = vmatpush1.bf16.msra.mxu1 %v10050_v50  ;;  %v10142_v49 = vld [vmem:[%s13802_s1 + $0x1848] ss:$16 sps:$4 sm:$0xff]   ;;  %v10147_v50 = vld [vmem:[%s13802_s1 + $0x1864] ss:$16 sps:$4 sm:$0xff]  }
 0x2d0   :  { %6748 = vmatprep.subr.bf16.mxu0 %v10055_v51  ;;  %7404 = vmatprep.subr.bf16.mxu1 %v10058_v52  ;;  %v10150_v51 = vld [vmem:[%s13802_s1 + $0x186c] ss:$16 sps:$4 sm:$0xff]   ;;  %v10145_v52 = vld [vmem:[%s13802_s1 + $0x1860] ss:$16 sps:$4 sm:$0xff]  }
 0x2d3   :  { %6749 = vmatpush1.bf16.msra.mxu0 %v10053_v53  ;;  %7405 = vmatpush1.bf16.msra.mxu1 %v10056_v54  ;;  %v10148_v53 = vld [vmem:[%s13802_s1 + $0x1868] ss:$16 sps:$4 sm:$0xff]   ;;  %v10153_v54 = vld [vmem:[%s13802_s1 + $0x1884] ss:$16 sps:$4 sm:$0xff]  }
 0x2d4   :  { %6750 = vmatprep.subr.bf16.mxu0 %v10061_v55  ;;  %7406 = vmatprep.subr.bf16.mxu1 %v10064_v56  ;;  %v10156_v55 = vld [vmem:[%s13802_s1 + $0x188c] ss:$16 sps:$4 sm:$0xff]   ;;  %v10151_v56 = vld [vmem:[%s13802_s1 + $0x1880] ss:$16 sps:$4 sm:$0xff]  }
 0x2d7   :  { %6751 = vmatpush1.bf16.msra.mxu0 %v10059_v57  ;;  %7407 = vmatpush1.bf16.msra.mxu1 %v10062_v58  ;;  %v10154_v57 = vld [vmem:[%s13802_s1 + $0x1888] ss:$16 sps:$4 sm:$0xff]   ;;  %v10159_v58 = vld [vmem:[%s13802_s1 + $0x18a4] ss:$16 sps:$4 sm:$0xff]  }
 0x2d8   :  { %6752 = vmatprep.subr.bf16.mxu0 %v10067_v59  ;;  %7408 = vmatprep.subr.bf16.mxu1 %v10070_v60  ;;  %v10162_v59 = vld [vmem:[%s13802_s1 + $0x18ac] ss:$16 sps:$4 sm:$0xff]   ;;  %v10157_v60 = vld [vmem:[%s13802_s1 + $0x18a0] ss:$16 sps:$4 sm:$0xff]  }
 0x2db   :  { %6753 = vmatpush1.bf16.msra.mxu0 %v10065_v61  ;;  %7409 = vmatpush1.bf16.msra.mxu1 %v10068_v62  ;;  %v10160_v61 = vld [vmem:[%s13802_s1 + $0x18a8] ss:$16 sps:$4 sm:$0xff]   ;;  %v10165_v62 = vld [vmem:[%s13802_s1 + $0x18c4] ss:$16 sps:$4 sm:$0xff]  }
 0x2dc   :  { %6754 = vmatprep.subr.bf16.mxu0 %v10073_v63  ;;  %7410 = vmatprep.subr.bf16.mxu1 %v10076_v0  ;;  %v10168_v63 = vld [vmem:[%s13802_s1 + $0x18cc] ss:$16 sps:$4 sm:$0xff]   ;;  %v10163_v0 = vld [vmem:[%s13802_s1 + $0x18c0] ss:$16 sps:$4 sm:$0xff]  }
 0x2df   :  { %6755 = vmatpush1.bf16.msra.mxu0 %v10071_v1  ;;  %7411 = vmatpush1.bf16.msra.mxu1 %v10074_v2  ;;  %v10166_v1 = vld [vmem:[%s13802_s1 + $0x18c8] ss:$16 sps:$4 sm:$0xff]   ;;  %v10171_v2 = vld [vmem:[%s13802_s1 + $0x18e4] ss:$16 sps:$4 sm:$0xff]  }
 0x2e0   :  { %6756 = vmatprep.subr.bf16.mxu0 %v10079_v3  ;;  %7412 = vmatprep.subr.bf16.mxu1 %v10082_v4  ;;  %v10174_v3 = vld [vmem:[%s13802_s1 + $0x18ec] ss:$16 sps:$4 sm:$0xff]   ;;  %v10169_v4 = vld [vmem:[%s13802_s1 + $0x18e0] ss:$16 sps:$4 sm:$0xff]  }
 0x2e3   :  { %6757 = vmatpush1.bf16.msra.mxu0 %v10077_v5  ;;  %7413 = vmatpush1.bf16.msra.mxu1 %v10080_v6  ;;  %v10172_v5 = vld [vmem:[%s13802_s1 + $0x18e8] ss:$16 sps:$4 sm:$0xff]   ;;  %v10177_v6 = vld [vmem:[%s13802_s1 + $0x1904] ss:$16 sps:$4 sm:$0xff]  }
 0x2e4   :  { %6758 = vmatprep.subr.bf16.mxu0 %v10085_v7  ;;  %7414 = vmatprep.subr.bf16.mxu1 %v10088_v8  ;;  %v10180_v7 = vld [vmem:[%s13802_s1 + $0x190c] ss:$16 sps:$4 sm:$0xff]   ;;  %v10175_v8 = vld [vmem:[%s13802_s1 + $0x1900] ss:$16 sps:$4 sm:$0xff]  }
 0x2e7   :  { %6759 = vmatpush1.bf16.msra.mxu0 %v10083_v9  ;;  %7415 = vmatpush1.bf16.msra.mxu1 %v10086_v10  ;;  %v10178_v9 = vld [vmem:[%s13802_s1 + $0x1908] ss:$16 sps:$4 sm:$0xff]   ;;  %v10183_v10 = vld [vmem:[%s13802_s1 + $0x1924] ss:$16 sps:$4 sm:$0xff]  }
 0x2e8   :  { %6760 = vmatprep.subr.bf16.mxu0 %v10091_v12  ;;  %7416 = vmatprep.subr.bf16.mxu1 %v10094_v13  ;;  %v10186_v12 = vld [vmem:[%s13802_s1 + $0x192c] ss:$16 sps:$4 sm:$0xff]   ;;  %v10181_v13 = vld [vmem:[%s13802_s1 + $0x1920] ss:$16 sps:$4 sm:$0xff]  }
 0x2eb   :  { %6761 = vmatpush1.bf16.msra.mxu0 %v10089_v15  ;;  %7417 = vmatpush1.bf16.msra.mxu1 %v10092_v11  ;;  %v10184_v15 = vld [vmem:[%s13802_s1 + $0x1928] ss:$16 sps:$4 sm:$0xff]   ;;  %v10189_v11 = vld [vmem:[%s13802_s1 + $0x1944] ss:$16 sps:$4 sm:$0xff]  }
 0x2ec   :  { %6762 = vmatprep.subr.bf16.mxu0 %v10097_v17  ;;  %7418 = vmatprep.subr.bf16.mxu1 %v10100_v14  ;;  %v10192_v17 = vld [vmem:[%s13802_s1 + $0x194c] ss:$16 sps:$4 sm:$0xff]   ;;  %v10187_v14 = vld [vmem:[%s13802_s1 + $0x1940] ss:$16 sps:$4 sm:$0xff]  }
 0x2ef   :  { %6763 = vmatpush1.bf16.msra.mxu0 %v10095_v19  ;;  %7419 = vmatpush1.bf16.msra.mxu1 %v10098_v20  ;;  %v10190_v19 = vld [vmem:[%s13802_s1 + $0x1948] ss:$16 sps:$4 sm:$0xff]   ;;  %v10195_v20 = vld [vmem:[%s13802_s1 + $0x1964] ss:$16 sps:$4 sm:$0xff]  }
 0x2f0   :  { %6764 = vmatprep.subr.bf16.mxu0 %v10103_v16  ;;  %7420 = vmatprep.subr.bf16.mxu1 %v10106_v22  ;;  %v10198_v16 = vld [vmem:[%s13802_s1 + $0x196c] ss:$16 sps:$4 sm:$0xff]   ;;  %v10193_v22 = vld [vmem:[%s13802_s1 + $0x1960] ss:$16 sps:$4 sm:$0xff]  }
 0x2f3   :  { %6765 = vmatpush1.bf16.msra.mxu0 %v10101_v23  ;;  %7421 = vmatpush1.bf16.msra.mxu1 %v10104_v18  ;;  %v10196_v23 = vld [vmem:[%s13802_s1 + $0x1968] ss:$16 sps:$4 sm:$0xff]   ;;  %v10201_v18 = vld [vmem:[%s13802_s1 + $0x1984] ss:$16 sps:$4 sm:$0xff]  }
 0x2f4   :  { %6766 = vmatprep.subr.bf16.mxu0 %v10109_v25  ;;  %7422 = vmatprep.subr.bf16.mxu1 %v10112_v26  ;;  %v10204_v25 = vld [vmem:[%s13802_s1 + $0x198c] ss:$16 sps:$4 sm:$0xff]   ;;  %v10199_v26 = vld [vmem:[%s13802_s1 + $0x1980] ss:$16 sps:$4 sm:$0xff]  }
 0x2f7   :  { %6767 = vmatpush1.bf16.msra.mxu0 %v10107_v21  ;;  %7423 = vmatpush1.bf16.msra.mxu1 %v10110_v28  ;;  %v10202_v21 = vld [vmem:[%s13802_s1 + $0x1988] ss:$16 sps:$4 sm:$0xff]   ;;  %v10207_v28 = vld [vmem:[%s13802_s1 + $0x19a4] ss:$16 sps:$4 sm:$0xff]  }
 0x2f8   :  { %6768 = vmatprep.subr.bf16.mxu0 %v10115_v29  ;;  %7424 = vmatprep.subr.bf16.mxu1 %v10118_v24  ;;  %v10210_v29 = vld [vmem:[%s13802_s1 + $0x19ac] ss:$16 sps:$4 sm:$0xff]   ;;  %v10205_v24 = vld [vmem:[%s13802_s1 + $0x19a0] ss:$16 sps:$4 sm:$0xff]  }
 0x2fb   :  { %6769 = vmatpush1.bf16.msra.mxu0 %v10113_v31  ;;  %7425 = vmatpush1.bf16.msra.mxu1 %v10116_v32  ;;  %v10208_v31 = vld [vmem:[%s13802_s1 + $0x19a8] ss:$16 sps:$4 sm:$0xff]   ;;  %v10213_v32 = vld [vmem:[%s13802_s1 + $0x19c4] ss:$16 sps:$4 sm:$0xff]  }
 0x2fc   :  { %6770 = vmatprep.subr.bf16.mxu0 %v10121_v33  ;;  %7426 = vmatprep.subr.bf16.mxu1 %v10124_v34  ;;  %v10216_v33 = vld [vmem:[%s13802_s1 + $0x19cc] ss:$16 sps:$4 sm:$0xff]   ;;  %v10211_v34 = vld [vmem:[%s13802_s1 + $0x19c0] ss:$16 sps:$4 sm:$0xff]  }
 0x2ff   :  { %6771 = vmatpush1.bf16.msra.mxu0 %v10119_v35  ;;  %7427 = vmatpush1.bf16.msra.mxu1 %v10122_v30  ;;  %v10214_v35 = vld [vmem:[%s13802_s1 + $0x19c8] ss:$16 sps:$4 sm:$0xff]   ;;  %v10219_v30 = vld [vmem:[%s13802_s1 + $0x19e4] ss:$16 sps:$4 sm:$0xff]  }
 0x300   :  { %6781 = vmatprep.subr.bf16.mxu0 %v10129_v37  ;;  %7437 = vmatprep.subr.bf16.mxu1 %v10132_v38  ;;  %v10222_v37 = vld [vmem:[%s13802_s1 + $0x19ec] ss:$16 sps:$4 sm:$0xff]   ;;  %v10217_v38 = vld [vmem:[%s13802_s1 + $0x19e0] ss:$16 sps:$4 sm:$0xff]  }
 0x302   :  { %6773 = vmatmul.mubr.bf16.vlgmr.msra.gmra.mrb[0].mxu0 %v7793_v27  ;;  %7429 = vmatmul.mubr.bf16.vlgmr.msra.gmra.mrb[0].mxu1 %v7793_v27  ;;  %v10220_v27 = vld [vmem:[%s13802_s1 + $0x19e8] ss:$16 sps:$4 sm:$0xff]  }
 0x303   :  { %6782 = vmatpush1.bf16.msra.mxu0 %v10127_v40  ;;  %7438 = vmatpush1.bf16.msra.mxu1 %v10130_v41  ;;  %v10227_v40 = vld [vmem:[%s13802_s1 + $0x1a04] ss:$16 sps:$4 sm:$0xff]   ;;  %v10230_v41 = vld [vmem:[%s13802_s1 + $0x1a0c] ss:$16 sps:$4 sm:$0xff]  }
 0x304   :  { %6783 = vmatprep.subr.bf16.mxu0 %v10135_v36  ;;  %7439 = vmatprep.subr.bf16.mxu1 %v10138_v42  ;;  %v7795_v36 = vcombine.low %v12967_v39, %v12967_v39  ;;  %v13168_v42 = vld [vmem:[%s13803_s0 + $0x68] sm:$0xff]  ;;  %v10233_v39 = vld [vmem:[%s13802_s1 + $0x1a24] ss:$16 sps:$4 sm:$0xff]  }
 0x305   :  { %6813 = vmatprep.mubr.bf16.mxu0 %v7796_v43  ;;  %7469 = vmatprep.mubr.bf16.mxu1 %v7796_v43  ;;  %v10225_v43 = vld [vmem:[%s13802_s1 + $0x1a00] ss:$16 sps:$4 sm:$0xff]  }
 0x307   :  { %6784 = vmatpush1.bf16.msra.mxu0 %v10133_v44  ;;  %7440 = vmatpush1.bf16.msra.mxu1 %v10136_v45  ;;  %v10228_v44 = vld [vmem:[%s13802_s1 + $0x1a08] ss:$16 sps:$4 sm:$0xff]   ;;  %v10236_v45 = vld [vmem:[%s13802_s1 + $0x1a2c] ss:$16 sps:$4 sm:$0xff]  }
 0x308   :  { %6785 = vmatprep.subr.bf16.mxu0 %v10141_v46  ;;  %7441 = vmatprep.subr.bf16.mxu1 %v10144_v47  ;;  %v7798_v46 = vcombine.high %v13168_v42, %v13168_v42  ;;  %v10231_v47 = vld [vmem:[%s13802_s1 + $0x1a20] ss:$16 sps:$4 sm:$0xff]  }
 0x30b   :  { %6786 = vmatpush1.bf16.msra.mxu0 %v10139_v48  ;;  %7442 = vmatpush1.bf16.msra.mxu1 %v10142_v49  ;;  %v10234_v48 = vld [vmem:[%s13802_s1 + $0x1a28] ss:$16 sps:$4 sm:$0xff]   ;;  %v10239_v49 = vld [vmem:[%s13802_s1 + $0x1a44] ss:$16 sps:$4 sm:$0xff]  }
 0x30c   :  { %6787 = vmatprep.subr.bf16.mxu0 %v10147_v50  ;;  %7443 = vmatprep.subr.bf16.mxu1 %v10150_v51  ;;  %v10242_v50 = vld [vmem:[%s13802_s1 + $0x1a4c] ss:$16 sps:$4 sm:$0xff]   ;;  %v10237_v51 = vld [vmem:[%s13802_s1 + $0x1a40] ss:$16 sps:$4 sm:$0xff]  }
 0x30f   :  { %6788 = vmatpush1.bf16.msra.mxu0 %v10145_v52  ;;  %7444 = vmatpush1.bf16.msra.mxu1 %v10148_v53  ;;  %v10240_v52 = vld [vmem:[%s13802_s1 + $0x1a48] ss:$16 sps:$4 sm:$0xff]   ;;  %v10245_v53 = vld [vmem:[%s13802_s1 + $0x1a64] ss:$16 sps:$4 sm:$0xff]  }
 0x310   :  { %6789 = vmatprep.subr.bf16.mxu0 %v10153_v54  ;;  %7445 = vmatprep.subr.bf16.mxu1 %v10156_v55  ;;  %v10248_v54 = vld [vmem:[%s13802_s1 + $0x1a6c] ss:$16 sps:$4 sm:$0xff]   ;;  %v10243_v55 = vld [vmem:[%s13802_s1 + $0x1a60] ss:$16 sps:$4 sm:$0xff]  }
 0x313   :  { %6790 = vmatpush1.bf16.msra.mxu0 %v10151_v56  ;;  %7446 = vmatpush1.bf16.msra.mxu1 %v10154_v57  ;;  %v10246_v56 = vld [vmem:[%s13802_s1 + $0x1a68] ss:$16 sps:$4 sm:$0xff]   ;;  %v10251_v57 = vld [vmem:[%s13802_s1 + $0x1a84] ss:$16 sps:$4 sm:$0xff]  }
 0x314   :  { %6791 = vmatprep.subr.bf16.mxu0 %v10159_v58  ;;  %7447 = vmatprep.subr.bf16.mxu1 %v10162_v59  ;;  %v10254_v58 = vld [vmem:[%s13802_s1 + $0x1a8c] ss:$16 sps:$4 sm:$0xff]   ;;  %v10249_v59 = vld [vmem:[%s13802_s1 + $0x1a80] ss:$16 sps:$4 sm:$0xff]  }
 0x317   :  { %6792 = vmatpush1.bf16.msra.mxu0 %v10157_v60  ;;  %7448 = vmatpush1.bf16.msra.mxu1 %v10160_v61  ;;  %v10252_v60 = vld [vmem:[%s13802_s1 + $0x1a88] ss:$16 sps:$4 sm:$0xff]   ;;  %v10257_v61 = vld [vmem:[%s13802_s1 + $0x1aa4] ss:$16 sps:$4 sm:$0xff]  }
 0x318   :  { %6793 = vmatprep.subr.bf16.mxu0 %v10165_v62  ;;  %7449 = vmatprep.subr.bf16.mxu1 %v10168_v63  ;;  %v10260_v62 = vld [vmem:[%s13802_s1 + $0x1aac] ss:$16 sps:$4 sm:$0xff]   ;;  %v10255_v63 = vld [vmem:[%s13802_s1 + $0x1aa0] ss:$16 sps:$4 sm:$0xff]  }
 0x31b   :  { %6794 = vmatpush1.bf16.msra.mxu0 %v10163_v0  ;;  %7450 = vmatpush1.bf16.msra.mxu1 %v10166_v1  ;;  %v10258_v0 = vld [vmem:[%s13802_s1 + $0x1aa8] ss:$16 sps:$4 sm:$0xff]   ;;  %v10263_v1 = vld [vmem:[%s13802_s1 + $0x1ac4] ss:$16 sps:$4 sm:$0xff]  }
 0x31c   :  { %6795 = vmatprep.subr.bf16.mxu0 %v10171_v2  ;;  %7451 = vmatprep.subr.bf16.mxu1 %v10174_v3  ;;  %v10266_v2 = vld [vmem:[%s13802_s1 + $0x1acc] ss:$16 sps:$4 sm:$0xff]   ;;  %v10261_v3 = vld [vmem:[%s13802_s1 + $0x1ac0] ss:$16 sps:$4 sm:$0xff]  }
 0x31f   :  { %6796 = vmatpush1.bf16.msra.mxu0 %v10169_v4  ;;  %7452 = vmatpush1.bf16.msra.mxu1 %v10172_v5  ;;  %v10264_v4 = vld [vmem:[%s13802_s1 + $0x1ac8] ss:$16 sps:$4 sm:$0xff]   ;;  %v10269_v5 = vld [vmem:[%s13802_s1 + $0x1ae4] ss:$16 sps:$4 sm:$0xff]  }
 0x320   :  { %6797 = vmatprep.subr.bf16.mxu0 %v10177_v6  ;;  %7453 = vmatprep.subr.bf16.mxu1 %v10180_v7  ;;  %v10272_v6 = vld [vmem:[%s13802_s1 + $0x1aec] ss:$16 sps:$4 sm:$0xff]   ;;  %v10267_v7 = vld [vmem:[%s13802_s1 + $0x1ae0] ss:$16 sps:$4 sm:$0xff]  }
 0x323   :  { %6798 = vmatpush1.bf16.msra.mxu0 %v10175_v8  ;;  %7454 = vmatpush1.bf16.msra.mxu1 %v10178_v9  ;;  %v10270_v8 = vld [vmem:[%s13802_s1 + $0x1ae8] ss:$16 sps:$4 sm:$0xff]   ;;  %v10275_v9 = vld [vmem:[%s13802_s1 + $0x1b04] ss:$16 sps:$4 sm:$0xff]  }
 0x324   :  { %6799 = vmatprep.subr.bf16.mxu0 %v10183_v10  ;;  %7455 = vmatprep.subr.bf16.mxu1 %v10186_v12  ;;  %v10278_v10 = vld [vmem:[%s13802_s1 + $0x1b0c] ss:$16 sps:$4 sm:$0xff]   ;;  %v10273_v12 = vld [vmem:[%s13802_s1 + $0x1b00] ss:$16 sps:$4 sm:$0xff]  }
 0x327   :  { %6800 = vmatpush1.bf16.msra.mxu0 %v10181_v13  ;;  %7456 = vmatpush1.bf16.msra.mxu1 %v10184_v15  ;;  %v10276_v13 = vld [vmem:[%s13802_s1 + $0x1b08] ss:$16 sps:$4 sm:$0xff]   ;;  %v10281_v15 = vld [vmem:[%s13802_s1 + $0x1b24] ss:$16 sps:$4 sm:$0xff]  }
 0x328   :  { %6801 = vmatprep.subr.bf16.mxu0 %v10189_v11  ;;  %7457 = vmatprep.subr.bf16.mxu1 %v10192_v17  ;;  %v10284_v11 = vld [vmem:[%s13802_s1 + $0x1b2c] ss:$16 sps:$4 sm:$0xff]   ;;  %v10279_v17 = vld [vmem:[%s13802_s1 + $0x1b20] ss:$16 sps:$4 sm:$0xff]  }
 0x32b   :  { %6802 = vmatpush1.bf16.msra.mxu0 %v10187_v14  ;;  %7458 = vmatpush1.bf16.msra.mxu1 %v10190_v19  ;;  %v10282_v14 = vld [vmem:[%s13802_s1 + $0x1b28] ss:$16 sps:$4 sm:$0xff]   ;;  %v10287_v19 = vld [vmem:[%s13802_s1 + $0x1b44] ss:$16 sps:$4 sm:$0xff]  }
 0x32c   :  { %6803 = vmatprep.subr.bf16.mxu0 %v10195_v20  ;;  %7459 = vmatprep.subr.bf16.mxu1 %v10198_v16  ;;  %v10290_v20 = vld [vmem:[%s13802_s1 + $0x1b4c] ss:$16 sps:$4 sm:$0xff]   ;;  %v10285_v16 = vld [vmem:[%s13802_s1 + $0x1b40] ss:$16 sps:$4 sm:$0xff]  }
 0x32f   :  { %6804 = vmatpush1.bf16.msra.mxu0 %v10193_v22  ;;  %7460 = vmatpush1.bf16.msra.mxu1 %v10196_v23  ;;  %v10288_v22 = vld [vmem:[%s13802_s1 + $0x1b48] ss:$16 sps:$4 sm:$0xff]   ;;  %v10293_v23 = vld [vmem:[%s13802_s1 + $0x1b64] ss:$16 sps:$4 sm:$0xff]  }
 0x330   :  { %6805 = vmatprep.subr.bf16.mxu0 %v10201_v18  ;;  %7461 = vmatprep.subr.bf16.mxu1 %v10204_v25  ;;  %v10296_v18 = vld [vmem:[%s13802_s1 + $0x1b6c] ss:$16 sps:$4 sm:$0xff]   ;;  %v10291_v25 = vld [vmem:[%s13802_s1 + $0x1b60] ss:$16 sps:$4 sm:$0xff]  }
 0x333   :  { %6806 = vmatpush1.bf16.msra.mxu0 %v10199_v26  ;;  %7462 = vmatpush1.bf16.msra.mxu1 %v10202_v21  ;;  %v10294_v26 = vld [vmem:[%s13802_s1 + $0x1b68] ss:$16 sps:$4 sm:$0xff]   ;;  %v10299_v21 = vld [vmem:[%s13802_s1 + $0x1b84] ss:$16 sps:$4 sm:$0xff]  }
 0x334   :  { %6807 = vmatprep.subr.bf16.mxu0 %v10207_v28  ;;  %7463 = vmatprep.subr.bf16.mxu1 %v10210_v29  ;;  %v10302_v28 = vld [vmem:[%s13802_s1 + $0x1b8c] ss:$16 sps:$4 sm:$0xff]   ;;  %v10297_v29 = vld [vmem:[%s13802_s1 + $0x1b80] ss:$16 sps:$4 sm:$0xff]  }
 0x337   :  { %6808 = vmatpush1.bf16.msra.mxu0 %v10205_v24  ;;  %7464 = vmatpush1.bf16.msra.mxu1 %v10208_v31  ;;  %v10300_v24 = vld [vmem:[%s13802_s1 + $0x1b88] ss:$16 sps:$4 sm:$0xff]   ;;  %v10305_v31 = vld [vmem:[%s13802_s1 + $0x1ba4] ss:$16 sps:$4 sm:$0xff]  }
 0x338   :  { %6809 = vmatprep.subr.bf16.mxu0 %v10213_v32  ;;  %7465 = vmatprep.subr.bf16.mxu1 %v10216_v33  ;;  %v10308_v32 = vld [vmem:[%s13802_s1 + $0x1bac] ss:$16 sps:$4 sm:$0xff]   ;;  %v10303_v33 = vld [vmem:[%s13802_s1 + $0x1ba0] ss:$16 sps:$4 sm:$0xff]  }
 0x33b   :  { %6810 = vmatpush1.bf16.msra.mxu0 %v10211_v34  ;;  %7466 = vmatpush1.bf16.msra.mxu1 %v10214_v35  ;;  %v10306_v34 = vld [vmem:[%s13802_s1 + $0x1ba8] ss:$16 sps:$4 sm:$0xff]   ;;  %v10311_v35 = vld [vmem:[%s13802_s1 + $0x1bc4] ss:$16 sps:$4 sm:$0xff]  }
 0x33c   :  { %6811 = vmatprep.subr.bf16.mxu0 %v10219_v30  ;;  %7467 = vmatprep.subr.bf16.mxu1 %v10222_v37  ;;  %v10314_v30 = vld [vmem:[%s13802_s1 + $0x1bcc] ss:$16 sps:$4 sm:$0xff]   ;;  %v10309_v37 = vld [vmem:[%s13802_s1 + $0x1bc0] ss:$16 sps:$4 sm:$0xff]  }
 0x33f   :  { %6812 = vmatpush1.bf16.msra.mxu0 %v10217_v38  ;;  %7468 = vmatpush1.bf16.msra.mxu1 %v10220_v27  ;;  %v10312_v38 = vld [vmem:[%s13802_s1 + $0x1bc8] ss:$16 sps:$4 sm:$0xff]   ;;  %v10317_v27 = vld [vmem:[%s13802_s1 + $0x1be4] ss:$16 sps:$4 sm:$0xff]  }
 0x340   :  { %6822 = vmatprep.subr.bf16.mxu0 %v10227_v40  ;;  %7478 = vmatprep.subr.bf16.mxu1 %v10230_v41  ;;  %v10320_v40 = vld [vmem:[%s13802_s1 + $0x1bec] ss:$16 sps:$4 sm:$0xff]   ;;  %v10315_v41 = vld [vmem:[%s13802_s1 + $0x1be0] ss:$16 sps:$4 sm:$0xff]  }
 0x342   :  { %6814 = vmatmul.mubr.bf16.vlgmr.msra.gmra.mrb[0].mxu0 %v7795_v36  ;;  %7470 = vmatmul.mubr.bf16.vlgmr.msra.gmra.mrb[0].mxu1 %v7795_v36  ;;  %v10318_v36 = vld [vmem:[%s13802_s1 + $0x1be8] ss:$16 sps:$4 sm:$0xff]  }
 0x343   :  { %6823 = vmatpush1.bf16.msra.mxu0 %v10225_v43  ;;  %7479 = vmatpush1.bf16.msra.mxu1 %v10228_v44  ;;  %v10325_v43 = vld [vmem:[%s13802_s1 + $0x1c04] ss:$16 sps:$4 sm:$0xff]   ;;  %v10328_v44 = vld [vmem:[%s13802_s1 + $0x1c0c] ss:$16 sps:$4 sm:$0xff]  }
 0x344   :  { %6824 = vmatprep.subr.bf16.mxu0 %v10233_v39  ;;  %7480 = vmatprep.subr.bf16.mxu1 %v10236_v45  ;;  %v7797_v39 = vcombine.low %v13168_v42, %v13168_v42  ;;  %v13369_v45 = vld [vmem:[%s13803_s0 + $0x70] sm:$0xff] }
 0x345   :  { %6854 = vmatprep.mubr.bf16.mxu0 %v7798_v46  ;;  %7510 = vmatprep.mubr.bf16.mxu1 %v7798_v46  ;;  %v10323_v46 = vld [vmem:[%s13802_s1 + $0x1c00] ss:$16 sps:$4 sm:$0xff]   ;;  %v10331_v42 = vld [vmem:[%s13802_s1 + $0x1c24] ss:$16 sps:$4 sm:$0xff]  }
 0x347   :  { %6825 = vmatpush1.bf16.msra.mxu0 %v10231_v47  ;;  %7481 = vmatpush1.bf16.msra.mxu1 %v10234_v48  ;;  %v10326_v47 = vld [vmem:[%s13802_s1 + $0x1c08] ss:$16 sps:$4 sm:$0xff]   ;;  %v10334_v48 = vld [vmem:[%s13802_s1 + $0x1c2c] ss:$16 sps:$4 sm:$0xff]  }
 0x348   :  { %6826 = vmatprep.subr.bf16.mxu0 %v10239_v49  ;;  %7482 = vmatprep.subr.bf16.mxu1 %v10242_v50  ;;  %v7800_v49 = vcombine.high %v13369_v45, %v13369_v45  ;;  %v10329_v50 = vld [vmem:[%s13802_s1 + $0x1c20] ss:$16 sps:$4 sm:$0xff]  }
 0x34b   :  { %6827 = vmatpush1.bf16.msra.mxu0 %v10237_v51  ;;  %7483 = vmatpush1.bf16.msra.mxu1 %v10240_v52  ;;  %v10332_v51 = vld [vmem:[%s13802_s1 + $0x1c28] ss:$16 sps:$4 sm:$0xff]   ;;  %v10337_v52 = vld [vmem:[%s13802_s1 + $0x1c44] ss:$16 sps:$4 sm:$0xff]  }
 0x34c   :  { %6828 = vmatprep.subr.bf16.mxu0 %v10245_v53  ;;  %7484 = vmatprep.subr.bf16.mxu1 %v10248_v54  ;;  %v10340_v53 = vld [vmem:[%s13802_s1 + $0x1c4c] ss:$16 sps:$4 sm:$0xff]   ;;  %v10335_v54 = vld [vmem:[%s13802_s1 + $0x1c40] ss:$16 sps:$4 sm:$0xff]  }
 0x34f   :  { %6829 = vmatpush1.bf16.msra.mxu0 %v10243_v55  ;;  %7485 = vmatpush1.bf16.msra.mxu1 %v10246_v56  ;;  %v10338_v55 = vld [vmem:[%s13802_s1 + $0x1c48] ss:$16 sps:$4 sm:$0xff]   ;;  %v10343_v56 = vld [vmem:[%s13802_s1 + $0x1c64] ss:$16 sps:$4 sm:$0xff]  }
 0x350   :  { %6830 = vmatprep.subr.bf16.mxu0 %v10251_v57  ;;  %7486 = vmatprep.subr.bf16.mxu1 %v10254_v58  ;;  %v10346_v57 = vld [vmem:[%s13802_s1 + $0x1c6c] ss:$16 sps:$4 sm:$0xff]   ;;  %v10341_v58 = vld [vmem:[%s13802_s1 + $0x1c60] ss:$16 sps:$4 sm:$0xff]  }
 0x353   :  { %6831 = vmatpush1.bf16.msra.mxu0 %v10249_v59  ;;  %7487 = vmatpush1.bf16.msra.mxu1 %v10252_v60  ;;  %v10344_v59 = vld [vmem:[%s13802_s1 + $0x1c68] ss:$16 sps:$4 sm:$0xff]   ;;  %v10349_v60 = vld [vmem:[%s13802_s1 + $0x1c84] ss:$16 sps:$4 sm:$0xff]  }
 0x354   :  { %6832 = vmatprep.subr.bf16.mxu0 %v10257_v61  ;;  %7488 = vmatprep.subr.bf16.mxu1 %v10260_v62  ;;  %v10352_v61 = vld [vmem:[%s13802_s1 + $0x1c8c] ss:$16 sps:$4 sm:$0xff]   ;;  %v10347_v62 = vld [vmem:[%s13802_s1 + $0x1c80] ss:$16 sps:$4 sm:$0xff]  }
 0x357   :  { %6833 = vmatpush1.bf16.msra.mxu0 %v10255_v63  ;;  %7489 = vmatpush1.bf16.msra.mxu1 %v10258_v0  ;;  %v10350_v63 = vld [vmem:[%s13802_s1 + $0x1c88] ss:$16 sps:$4 sm:$0xff]   ;;  %v10355_v0 = vld [vmem:[%s13802_s1 + $0x1ca4] ss:$16 sps:$4 sm:$0xff]  }
 0x358   :  { %6834 = vmatprep.subr.bf16.mxu0 %v10263_v1  ;;  %7490 = vmatprep.subr.bf16.mxu1 %v10266_v2  ;;  %v10358_v1 = vld [vmem:[%s13802_s1 + $0x1cac] ss:$16 sps:$4 sm:$0xff]   ;;  %v10353_v2 = vld [vmem:[%s13802_s1 + $0x1ca0] ss:$16 sps:$4 sm:$0xff]  }
 0x35b   :  { %6835 = vmatpush1.bf16.msra.mxu0 %v10261_v3  ;;  %7491 = vmatpush1.bf16.msra.mxu1 %v10264_v4  ;;  %v10356_v3 = vld [vmem:[%s13802_s1 + $0x1ca8] ss:$16 sps:$4 sm:$0xff]   ;;  %v10361_v4 = vld [vmem:[%s13802_s1 + $0x1cc4] ss:$16 sps:$4 sm:$0xff]  }
 0x35c   :  { %6836 = vmatprep.subr.bf16.mxu0 %v10269_v5  ;;  %7492 = vmatprep.subr.bf16.mxu1 %v10272_v6  ;;  %v10364_v5 = vld [vmem:[%s13802_s1 + $0x1ccc] ss:$16 sps:$4 sm:$0xff]   ;;  %v10359_v6 = vld [vmem:[%s13802_s1 + $0x1cc0] ss:$16 sps:$4 sm:$0xff]  }
 0x35f   :  { %6837 = vmatpush1.bf16.msra.mxu0 %v10267_v7  ;;  %7493 = vmatpush1.bf16.msra.mxu1 %v10270_v8  ;;  %v10362_v7 = vld [vmem:[%s13802_s1 + $0x1cc8] ss:$16 sps:$4 sm:$0xff]   ;;  %v10367_v8 = vld [vmem:[%s13802_s1 + $0x1ce4] ss:$16 sps:$4 sm:$0xff]  }
 0x360   :  { %6838 = vmatprep.subr.bf16.mxu0 %v10275_v9  ;;  %7494 = vmatprep.subr.bf16.mxu1 %v10278_v10  ;;  %v10370_v9 = vld [vmem:[%s13802_s1 + $0x1cec] ss:$16 sps:$4 sm:$0xff]   ;;  %v10365_v10 = vld [vmem:[%s13802_s1 + $0x1ce0] ss:$16 sps:$4 sm:$0xff]  }
 0x363   :  { %6839 = vmatpush1.bf16.msra.mxu0 %v10273_v12  ;;  %7495 = vmatpush1.bf16.msra.mxu1 %v10276_v13  ;;  %v10368_v12 = vld [vmem:[%s13802_s1 + $0x1ce8] ss:$16 sps:$4 sm:$0xff]   ;;  %v10373_v13 = vld [vmem:[%s13802_s1 + $0x1d04] ss:$16 sps:$4 sm:$0xff]  }
 0x364   :  { %6840 = vmatprep.subr.bf16.mxu0 %v10281_v15  ;;  %7496 = vmatprep.subr.bf16.mxu1 %v10284_v11  ;;  %v10376_v15 = vld [vmem:[%s13802_s1 + $0x1d0c] ss:$16 sps:$4 sm:$0xff]   ;;  %v10371_v11 = vld [vmem:[%s13802_s1 + $0x1d00] ss:$16 sps:$4 sm:$0xff]  }
 0x367   :  { %6841 = vmatpush1.bf16.msra.mxu0 %v10279_v17  ;;  %7497 = vmatpush1.bf16.msra.mxu1 %v10282_v14  ;;  %v10374_v17 = vld [vmem:[%s13802_s1 + $0x1d08] ss:$16 sps:$4 sm:$0xff]   ;;  %v10379_v14 = vld [vmem:[%s13802_s1 + $0x1d24] ss:$16 sps:$4 sm:$0xff]  }
 0x368   :  { %6842 = vmatprep.subr.bf16.mxu0 %v10287_v19  ;;  %7498 = vmatprep.subr.bf16.mxu1 %v10290_v20  ;;  %v10382_v19 = vld [vmem:[%s13802_s1 + $0x1d2c] ss:$16 sps:$4 sm:$0xff]   ;;  %v10377_v20 = vld [vmem:[%s13802_s1 + $0x1d20] ss:$16 sps:$4 sm:$0xff]  }
 0x36b   :  { %6843 = vmatpush1.bf16.msra.mxu0 %v10285_v16  ;;  %7499 = vmatpush1.bf16.msra.mxu1 %v10288_v22  ;;  %v10380_v16 = vld [vmem:[%s13802_s1 + $0x1d28] ss:$16 sps:$4 sm:$0xff]   ;;  %v10385_v22 = vld [vmem:[%s13802_s1 + $0x1d44] ss:$16 sps:$4 sm:$0xff]  }
 0x36c   :  { %6844 = vmatprep.subr.bf16.mxu0 %v10293_v23  ;;  %7500 = vmatprep.subr.bf16.mxu1 %v10296_v18  ;;  %v10388_v23 = vld [vmem:[%s13802_s1 + $0x1d4c] ss:$16 sps:$4 sm:$0xff]   ;;  %v10383_v18 = vld [vmem:[%s13802_s1 + $0x1d40] ss:$16 sps:$4 sm:$0xff]  }
 0x36f   :  { %6845 = vmatpush1.bf16.msra.mxu0 %v10291_v25  ;;  %7501 = vmatpush1.bf16.msra.mxu1 %v10294_v26  ;;  %v10386_v25 = vld [vmem:[%s13802_s1 + $0x1d48] ss:$16 sps:$4 sm:$0xff]   ;;  %v10391_v26 = vld [vmem:[%s13802_s1 + $0x1d64] ss:$16 sps:$4 sm:$0xff]  }
 0x370   :  { %6846 = vmatprep.subr.bf16.mxu0 %v10299_v21  ;;  %7502 = vmatprep.subr.bf16.mxu1 %v10302_v28  ;;  %v10394_v21 = vld [vmem:[%s13802_s1 + $0x1d6c] ss:$16 sps:$4 sm:$0xff]   ;;  %v10389_v28 = vld [vmem:[%s13802_s1 + $0x1d60] ss:$16 sps:$4 sm:$0xff]  }
 0x373   :  { %6847 = vmatpush1.bf16.msra.mxu0 %v10297_v29  ;;  %7503 = vmatpush1.bf16.msra.mxu1 %v10300_v24  ;;  %v10392_v29 = vld [vmem:[%s13802_s1 + $0x1d68] ss:$16 sps:$4 sm:$0xff]   ;;  %v10397_v24 = vld [vmem:[%s13802_s1 + $0x1d84] ss:$16 sps:$4 sm:$0xff]  }
 0x374   :  { %6848 = vmatprep.subr.bf16.mxu0 %v10305_v31  ;;  %7504 = vmatprep.subr.bf16.mxu1 %v10308_v32  ;;  %v10400_v31 = vld [vmem:[%s13802_s1 + $0x1d8c] ss:$16 sps:$4 sm:$0xff]   ;;  %v10395_v32 = vld [vmem:[%s13802_s1 + $0x1d80] ss:$16 sps:$4 sm:$0xff]  }
 0x377   :  { %6849 = vmatpush1.bf16.msra.mxu0 %v10303_v33  ;;  %7505 = vmatpush1.bf16.msra.mxu1 %v10306_v34  ;;  %v10398_v33 = vld [vmem:[%s13802_s1 + $0x1d88] ss:$16 sps:$4 sm:$0xff]   ;;  %v10403_v34 = vld [vmem:[%s13802_s1 + $0x1da4] ss:$16 sps:$4 sm:$0xff]  }
 0x378   :  { %6850 = vmatprep.subr.bf16.mxu0 %v10311_v35  ;;  %7506 = vmatprep.subr.bf16.mxu1 %v10314_v30  ;;  %v10406_v35 = vld [vmem:[%s13802_s1 + $0x1dac] ss:$16 sps:$4 sm:$0xff]   ;;  %v10401_v30 = vld [vmem:[%s13802_s1 + $0x1da0] ss:$16 sps:$4 sm:$0xff]  }
 0x37b   :  { %6851 = vmatpush1.bf16.msra.mxu0 %v10309_v37  ;;  %7507 = vmatpush1.bf16.msra.mxu1 %v10312_v38  ;;  %v10404_v37 = vld [vmem:[%s13802_s1 + $0x1da8] ss:$16 sps:$4 sm:$0xff]   ;;  %v10409_v38 = vld [vmem:[%s13802_s1 + $0x1dc4] ss:$16 sps:$4 sm:$0xff]  }
 0x37c   :  { %6852 = vmatprep.subr.bf16.mxu0 %v10317_v27  ;;  %7508 = vmatprep.subr.bf16.mxu1 %v10320_v40  ;;  %v10412_v27 = vld [vmem:[%s13802_s1 + $0x1dcc] ss:$16 sps:$4 sm:$0xff]   ;;  %v10407_v40 = vld [vmem:[%s13802_s1 + $0x1dc0] ss:$16 sps:$4 sm:$0xff]  }
 0x37f   :  { %6853 = vmatpush1.bf16.msra.mxu0 %v10315_v41  ;;  %7509 = vmatpush1.bf16.msra.mxu1 %v10318_v36  ;;  %v10410_v41 = vld [vmem:[%s13802_s1 + $0x1dc8] ss:$16 sps:$4 sm:$0xff]   ;;  %v10415_v36 = vld [vmem:[%s13802_s1 + $0x1de4] ss:$16 sps:$4 sm:$0xff]  }
 0x380   :  { %6863 = vmatprep.subr.bf16.mxu0 %v10325_v43  ;;  %7519 = vmatprep.subr.bf16.mxu1 %v10328_v44  ;;  %v10418_v43 = vld [vmem:[%s13802_s1 + $0x1dec] ss:$16 sps:$4 sm:$0xff]   ;;  %v10413_v44 = vld [vmem:[%s13802_s1 + $0x1de0] ss:$16 sps:$4 sm:$0xff]  }
 0x382   :  { %6855 = vmatmul.mubr.bf16.vlgmr.msra.gmra.mrb[0].mxu0 %v7797_v39  ;;  %7511 = vmatmul.mubr.bf16.vlgmr.msra.gmra.mrb[0].mxu1 %v7797_v39  ;;  %v10416_v39 = vld [vmem:[%s13802_s1 + $0x1de8] ss:$16 sps:$4 sm:$0xff]  }
 0x383   :  { %6864 = vmatpush1.bf16.msra.mxu0 %v10323_v46  ;;  %7520 = vmatpush1.bf16.msra.mxu1 %v10326_v47  ;;  %v10423_v46 = vld [vmem:[%s13802_s1 + $0x1e04] ss:$16 sps:$4 sm:$0xff]   ;;  %v10426_v47 = vld [vmem:[%s13802_s1 + $0x1e0c] ss:$16 sps:$4 sm:$0xff]  }
 0x384   :  { %6865 = vmatprep.subr.bf16.mxu0 %v10331_v42  ;;  %7521 = vmatprep.subr.bf16.mxu1 %v10334_v48  ;;  %v7799_v42 = vcombine.low %v13369_v45, %v13369_v45  ;;  %v13570_v48 = vld [vmem:[%s13803_s0 + $0x78] sm:$0xff]  ;;  %v10429_v45 = vld [vmem:[%s13802_s1 + $0x1e24] ss:$16 sps:$4 sm:$0xff]  }
 0x385   :  { %6895 = vmatprep.mubr.bf16.mxu0 %v7800_v49  ;;  %7551 = vmatprep.mubr.bf16.mxu1 %v7800_v49  ;;  %v10421_v49 = vld [vmem:[%s13802_s1 + $0x1e00] ss:$16 sps:$4 sm:$0xff]  }
 0x387   :  { %6866 = vmatpush1.bf16.msra.mxu0 %v10329_v50  ;;  %7522 = vmatpush1.bf16.msra.mxu1 %v10332_v51  ;;  %v10424_v50 = vld [vmem:[%s13802_s1 + $0x1e08] ss:$16 sps:$4 sm:$0xff]   ;;  %v10432_v51 = vld [vmem:[%s13802_s1 + $0x1e2c] ss:$16 sps:$4 sm:$0xff]  }
 0x388   :  { %6867 = vmatprep.subr.bf16.mxu0 %v10337_v52  ;;  %7523 = vmatprep.subr.bf16.mxu1 %v10340_v53  ;;  %v7802_v52 = vcombine.high %v13570_v48, %v13570_v48  ;;  %v10427_v53 = vld [vmem:[%s13802_s1 + $0x1e20] ss:$16 sps:$4 sm:$0xff]  }
 0x38b   :  { %6868 = vmatpush1.bf16.msra.mxu0 %v10335_v54  ;;  %7524 = vmatpush1.bf16.msra.mxu1 %v10338_v55  ;;  %v10430_v54 = vld [vmem:[%s13802_s1 + $0x1e28] ss:$16 sps:$4 sm:$0xff]   ;;  %v10435_v55 = vld [vmem:[%s13802_s1 + $0x1e44] ss:$16 sps:$4 sm:$0xff]  }
 0x38c   :  { %6869 = vmatprep.subr.bf16.mxu0 %v10343_v56  ;;  %7525 = vmatprep.subr.bf16.mxu1 %v10346_v57  ;;  %v10438_v56 = vld [vmem:[%s13802_s1 + $0x1e4c] ss:$16 sps:$4 sm:$0xff]   ;;  %v10433_v57 = vld [vmem:[%s13802_s1 + $0x1e40] ss:$16 sps:$4 sm:$0xff]  }
 0x38f   :  { %6870 = vmatpush1.bf16.msra.mxu0 %v10341_v58  ;;  %7526 = vmatpush1.bf16.msra.mxu1 %v10344_v59  ;;  %v10436_v58 = vld [vmem:[%s13802_s1 + $0x1e48] ss:$16 sps:$4 sm:$0xff]   ;;  %v10441_v59 = vld [vmem:[%s13802_s1 + $0x1e64] ss:$16 sps:$4 sm:$0xff]  }
 0x390   :  { %6871 = vmatprep.subr.bf16.mxu0 %v10349_v60  ;;  %7527 = vmatprep.subr.bf16.mxu1 %v10352_v61  ;;  %v10444_v60 = vld [vmem:[%s13802_s1 + $0x1e6c] ss:$16 sps:$4 sm:$0xff]   ;;  %v10439_v61 = vld [vmem:[%s13802_s1 + $0x1e60] ss:$16 sps:$4 sm:$0xff]  }
 0x393   :  { %6872 = vmatpush1.bf16.msra.mxu0 %v10347_v62  ;;  %7528 = vmatpush1.bf16.msra.mxu1 %v10350_v63  ;;  %v10442_v62 = vld [vmem:[%s13802_s1 + $0x1e68] ss:$16 sps:$4 sm:$0xff]   ;;  %v10447_v63 = vld [vmem:[%s13802_s1 + $0x1e84] ss:$16 sps:$4 sm:$0xff]  }
 0x394   :  { %6873 = vmatprep.subr.bf16.mxu0 %v10355_v0  ;;  %7529 = vmatprep.subr.bf16.mxu1 %v10358_v1  ;;  %v10450_v0 = vld [vmem:[%s13802_s1 + $0x1e8c] ss:$16 sps:$4 sm:$0xff]   ;;  %v10445_v1 = vld [vmem:[%s13802_s1 + $0x1e80] ss:$16 sps:$4 sm:$0xff]  }
 0x397   :  { %6874 = vmatpush1.bf16.msra.mxu0 %v10353_v2  ;;  %7530 = vmatpush1.bf16.msra.mxu1 %v10356_v3  ;;  %v10448_v2 = vld [vmem:[%s13802_s1 + $0x1e88] ss:$16 sps:$4 sm:$0xff]   ;;  %v10453_v3 = vld [vmem:[%s13802_s1 + $0x1ea4] ss:$16 sps:$4 sm:$0xff]  }
 0x398   :  { %6875 = vmatprep.subr.bf16.mxu0 %v10361_v4  ;;  %7531 = vmatprep.subr.bf16.mxu1 %v10364_v5  ;;  %v10456_v4 = vld [vmem:[%s13802_s1 + $0x1eac] ss:$16 sps:$4 sm:$0xff]   ;;  %v10451_v5 = vld [vmem:[%s13802_s1 + $0x1ea0] ss:$16 sps:$4 sm:$0xff]  }
 0x39b   :  { %6876 = vmatpush1.bf16.msra.mxu0 %v10359_v6  ;;  %7532 = vmatpush1.bf16.msra.mxu1 %v10362_v7  ;;  %v10454_v6 = vld [vmem:[%s13802_s1 + $0x1ea8] ss:$16 sps:$4 sm:$0xff]   ;;  %v10459_v7 = vld [vmem:[%s13802_s1 + $0x1ec4] ss:$16 sps:$4 sm:$0xff]  }
 0x39c   :  { %6877 = vmatprep.subr.bf16.mxu0 %v10367_v8  ;;  %7533 = vmatprep.subr.bf16.mxu1 %v10370_v9  ;;  %v10462_v8 = vld [vmem:[%s13802_s1 + $0x1ecc] ss:$16 sps:$4 sm:$0xff]   ;;  %v10457_v9 = vld [vmem:[%s13802_s1 + $0x1ec0] ss:$16 sps:$4 sm:$0xff]  }
 0x39f   :  { %6878 = vmatpush1.bf16.msra.mxu0 %v10365_v10  ;;  %7534 = vmatpush1.bf16.msra.mxu1 %v10368_v12  ;;  %v10460_v10 = vld [vmem:[%s13802_s1 + $0x1ec8] ss:$16 sps:$4 sm:$0xff]   ;;  %v10465_v12 = vld [vmem:[%s13802_s1 + $0x1ee4] ss:$16 sps:$4 sm:$0xff]  }
 0x3a0   :  { %6879 = vmatprep.subr.bf16.mxu0 %v10373_v13  ;;  %7535 = vmatprep.subr.bf16.mxu1 %v10376_v15  ;;  %v10468_v13 = vld [vmem:[%s13802_s1 + $0x1eec] ss:$16 sps:$4 sm:$0xff]   ;;  %v10463_v15 = vld [vmem:[%s13802_s1 + $0x1ee0] ss:$16 sps:$4 sm:$0xff]  }
 0x3a3   :  { %6880 = vmatpush1.bf16.msra.mxu0 %v10371_v11  ;;  %7536 = vmatpush1.bf16.msra.mxu1 %v10374_v17  ;;  %v10466_v11 = vld [vmem:[%s13802_s1 + $0x1ee8] ss:$16 sps:$4 sm:$0xff]   ;;  %v10471_v17 = vld [vmem:[%s13802_s1 + $0x1f04] ss:$16 sps:$4 sm:$0xff]  }
 0x3a4   :  { %6881 = vmatprep.subr.bf16.mxu0 %v10379_v14  ;;  %7537 = vmatprep.subr.bf16.mxu1 %v10382_v19  ;;  %v10474_v14 = vld [vmem:[%s13802_s1 + $0x1f0c] ss:$16 sps:$4 sm:$0xff]   ;;  %v10469_v19 = vld [vmem:[%s13802_s1 + $0x1f00] ss:$16 sps:$4 sm:$0xff]  }
 0x3a7   :  { %6882 = vmatpush1.bf16.msra.mxu0 %v10377_v20  ;;  %7538 = vmatpush1.bf16.msra.mxu1 %v10380_v16  ;;  %v10472_v20 = vld [vmem:[%s13802_s1 + $0x1f08] ss:$16 sps:$4 sm:$0xff]   ;;  %v10477_v16 = vld [vmem:[%s13802_s1 + $0x1f24] ss:$16 sps:$4 sm:$0xff]  }
 0x3a8   :  { %6883 = vmatprep.subr.bf16.mxu0 %v10385_v22  ;;  %7539 = vmatprep.subr.bf16.mxu1 %v10388_v23  ;;  %v10480_v22 = vld [vmem:[%s13802_s1 + $0x1f2c] ss:$16 sps:$4 sm:$0xff]   ;;  %v10475_v23 = vld [vmem:[%s13802_s1 + $0x1f20] ss:$16 sps:$4 sm:$0xff]  }
 0x3ab   :  { %6884 = vmatpush1.bf16.msra.mxu0 %v10383_v18  ;;  %7540 = vmatpush1.bf16.msra.mxu1 %v10386_v25  ;;  %v10478_v18 = vld [vmem:[%s13802_s1 + $0x1f28] ss:$16 sps:$4 sm:$0xff]   ;;  %v10483_v25 = vld [vmem:[%s13802_s1 + $0x1f44] ss:$16 sps:$4 sm:$0xff]  }
 0x3ac   :  { %6885 = vmatprep.subr.bf16.mxu0 %v10391_v26  ;;  %7541 = vmatprep.subr.bf16.mxu1 %v10394_v21  ;;  %v10486_v26 = vld [vmem:[%s13802_s1 + $0x1f4c] ss:$16 sps:$4 sm:$0xff]   ;;  %v10481_v21 = vld [vmem:[%s13802_s1 + $0x1f40] ss:$16 sps:$4 sm:$0xff]  }
 0x3af   :  { %6886 = vmatpush1.bf16.msra.mxu0 %v10389_v28  ;;  %7542 = vmatpush1.bf16.msra.mxu1 %v10392_v29  ;;  %v10484_v28 = vld [vmem:[%s13802_s1 + $0x1f48] ss:$16 sps:$4 sm:$0xff]   ;;  %v10489_v29 = vld [vmem:[%s13802_s1 + $0x1f64] ss:$16 sps:$4 sm:$0xff]  }
 0x3b0   :  { %6887 = vmatprep.subr.bf16.mxu0 %v10397_v24  ;;  %7543 = vmatprep.subr.bf16.mxu1 %v10400_v31  ;;  %v10492_v24 = vld [vmem:[%s13802_s1 + $0x1f6c] ss:$16 sps:$4 sm:$0xff]   ;;  %v10487_v31 = vld [vmem:[%s13802_s1 + $0x1f60] ss:$16 sps:$4 sm:$0xff]  }
 0x3b3   :  { %6888 = vmatpush1.bf16.msra.mxu0 %v10395_v32  ;;  %7544 = vmatpush1.bf16.msra.mxu1 %v10398_v33  ;;  %v10490_v32 = vld [vmem:[%s13802_s1 + $0x1f68] ss:$16 sps:$4 sm:$0xff]   ;;  %v10495_v33 = vld [vmem:[%s13802_s1 + $0x1f84] ss:$16 sps:$4 sm:$0xff]  }
 0x3b4   :  { %6889 = vmatprep.subr.bf16.mxu0 %v10403_v34  ;;  %7545 = vmatprep.subr.bf16.mxu1 %v10406_v35  ;;  %v10498_v34 = vld [vmem:[%s13802_s1 + $0x1f8c] ss:$16 sps:$4 sm:$0xff]   ;;  %v10493_v35 = vld [vmem:[%s13802_s1 + $0x1f80] ss:$16 sps:$4 sm:$0xff]  }
 0x3b7   :  { %6890 = vmatpush1.bf16.msra.mxu0 %v10401_v30  ;;  %7546 = vmatpush1.bf16.msra.mxu1 %v10404_v37  ;;  %v10496_v30 = vld [vmem:[%s13802_s1 + $0x1f88] ss:$16 sps:$4 sm:$0xff]   ;;  %v10501_v37 = vld [vmem:[%s13802_s1 + $0x1fa4] ss:$16 sps:$4 sm:$0xff]  }
 0x3b8   :  { %6891 = vmatprep.subr.bf16.mxu0 %v10409_v38  ;;  %7547 = vmatprep.subr.bf16.mxu1 %v10412_v27  ;;  %v10504_v38 = vld [vmem:[%s13802_s1 + $0x1fac] ss:$16 sps:$4 sm:$0xff]   ;;  %v10499_v27 = vld [vmem:[%s13802_s1 + $0x1fa0] ss:$16 sps:$4 sm:$0xff]  }
 0x3bb   :  { %6892 = vmatpush1.bf16.msra.mxu0 %v10407_v40  ;;  %7548 = vmatpush1.bf16.msra.mxu1 %v10410_v41  ;;  %v10502_v40 = vld [vmem:[%s13802_s1 + $0x1fa8] ss:$16 sps:$4 sm:$0xff]   ;;  %v10507_v41 = vld [vmem:[%s13802_s1 + $0x1fc4] ss:$16 sps:$4 sm:$0xff]  }
 0x3bc   :  { %6893 = vmatprep.subr.bf16.mxu0 %v10415_v36  ;;  %7549 = vmatprep.subr.bf16.mxu1 %v10418_v43  ;;  %v10510_v36 = vld [vmem:[%s13802_s1 + $0x1fcc] ss:$16 sps:$4 sm:$0xff]   ;;  %v10505_v43 = vld [vmem:[%s13802_s1 + $0x1fc0] ss:$16 sps:$4 sm:$0xff]  }
 0x3bf   :  { %6894 = vmatpush1.bf16.msra.mxu0 %v10413_v44  ;;  %7550 = vmatpush1.bf16.msra.mxu1 %v10416_v39  ;;  %v10508_v44 = vld [vmem:[%s13802_s1 + $0x1fc8] ss:$16 sps:$4 sm:$0xff]   ;;  %v10513_v39 = vld [vmem:[%s13802_s1 + $0x1fe4] ss:$16 sps:$4 sm:$0xff]  }
 0x3c0   :  { %6904 = vmatprep.subr.bf16.mxu0 %v10423_v46  ;;  %7560 = vmatprep.subr.bf16.mxu1 %v10426_v47  ;;  %v10516_v46 = vld [vmem:[%s13802_s1 + $0x1fec] ss:$16 sps:$4 sm:$0xff]   ;;  %v10511_v47 = vld [vmem:[%s13802_s1 + $0x1fe0] ss:$16 sps:$4 sm:$0xff]  }
 0x3c2   :  { %6896 = vmatmul.mubr.bf16.vlgmr.msra.gmra.mrb[0].mxu0 %v7799_v42  ;;  %7552 = vmatmul.mubr.bf16.vlgmr.msra.gmra.mrb[0].mxu1 %v7799_v42  ;;  %v10514_v42 = vld [vmem:[%s13802_s1 + $0x1fe8] ss:$16 sps:$4 sm:$0xff]  }
 0x3c3   :  { %6905 = vmatpush1.bf16.msra.mxu0 %v10421_v49  ;;  %7561 = vmatpush1.bf16.msra.mxu1 %v10424_v50  ;;  %v7801_v49 = vcombine.low %v13570_v48, %v13570_v48 }
 0x3c4   :  { %6906 = vmatprep.subr.bf16.mxu0 %v10429_v45  ;;  %7562 = vmatprep.subr.bf16.mxu1 %v10432_v51 }
 0x3c5   :  { %6936 = vmatprep.mubr.bf16.mxu0 %v7802_v52  ;;  %7592 = vmatprep.mubr.bf16.mxu1 %v7802_v52 }
 0x3c7   :  { %6907 = vmatpush1.bf16.msra.mxu0 %v10427_v53  ;;  %7563 = vmatpush1.bf16.msra.mxu1 %v10430_v54 }
 0x3c8   :  { %6908 = vmatprep.subr.bf16.mxu0 %v10435_v55  ;;  %7564 = vmatprep.subr.bf16.mxu1 %v10438_v56 }
 0x3cb   :  { %6909 = vmatpush1.bf16.msra.mxu0 %v10433_v57  ;;  %7565 = vmatpush1.bf16.msra.mxu1 %v10436_v58 }
 0x3cc   :  { %6910 = vmatprep.subr.bf16.mxu0 %v10441_v59  ;;  %7566 = vmatprep.subr.bf16.mxu1 %v10444_v60 }
 0x3cf   :  { %6911 = vmatpush1.bf16.msra.mxu0 %v10439_v61  ;;  %7567 = vmatpush1.bf16.msra.mxu1 %v10442_v62 }
 0x3d0   :  { %6912 = vmatprep.subr.bf16.mxu0 %v10447_v63  ;;  %7568 = vmatprep.subr.bf16.mxu1 %v10450_v0 }
 0x3d3   :  { %6913 = vmatpush1.bf16.msra.mxu0 %v10445_v1  ;;  %7569 = vmatpush1.bf16.msra.mxu1 %v10448_v2 }
 0x3d4   :  { %6914 = vmatprep.subr.bf16.mxu0 %v10453_v3  ;;  %7570 = vmatprep.subr.bf16.mxu1 %v10456_v4 }
 0x3d7   :  { %6915 = vmatpush1.bf16.msra.mxu0 %v10451_v5  ;;  %7571 = vmatpush1.bf16.msra.mxu1 %v10454_v6 }
 0x3d8   :  { %6916 = vmatprep.subr.bf16.mxu0 %v10459_v7  ;;  %7572 = vmatprep.subr.bf16.mxu1 %v10462_v8 }
 0x3db   :  { %6917 = vmatpush1.bf16.msra.mxu0 %v10457_v9  ;;  %7573 = vmatpush1.bf16.msra.mxu1 %v10460_v10 }
 0x3dc   :  { %6918 = vmatprep.subr.bf16.mxu0 %v10465_v12  ;;  %7574 = vmatprep.subr.bf16.mxu1 %v10468_v13 }
 0x3df   :  { %6919 = vmatpush1.bf16.msra.mxu0 %v10463_v15  ;;  %7575 = vmatpush1.bf16.msra.mxu1 %v10466_v11 }
 0x3e0   :  { %6920 = vmatprep.subr.bf16.mxu0 %v10471_v17  ;;  %7576 = vmatprep.subr.bf16.mxu1 %v10474_v14 }
 0x3e3   :  { %6921 = vmatpush1.bf16.msra.mxu0 %v10469_v19  ;;  %7577 = vmatpush1.bf16.msra.mxu1 %v10472_v20 }
 0x3e4   :  { %6922 = vmatprep.subr.bf16.mxu0 %v10477_v16  ;;  %7578 = vmatprep.subr.bf16.mxu1 %v10480_v22 }
 0x3e7   :  { %6923 = vmatpush1.bf16.msra.mxu0 %v10475_v23  ;;  %7579 = vmatpush1.bf16.msra.mxu1 %v10478_v18 }
 0x3e8   :  { %6924 = vmatprep.subr.bf16.mxu0 %v10483_v25  ;;  %7580 = vmatprep.subr.bf16.mxu1 %v10486_v26 }
 0x3eb   :  { %6925 = vmatpush1.bf16.msra.mxu0 %v10481_v21  ;;  %7581 = vmatpush1.bf16.msra.mxu1 %v10484_v28 }
 0x3ec   :  { %6926 = vmatprep.subr.bf16.mxu0 %v10489_v29  ;;  %7582 = vmatprep.subr.bf16.mxu1 %v10492_v24 }
 0x3ef   :  { %6927 = vmatpush1.bf16.msra.mxu0 %v10487_v31  ;;  %7583 = vmatpush1.bf16.msra.mxu1 %v10490_v32 }
 0x3f0   :  { %6928 = vmatprep.subr.bf16.mxu0 %v10495_v33  ;;  %7584 = vmatprep.subr.bf16.mxu1 %v10498_v34 }
 0x3f3   :  { %6929 = vmatpush1.bf16.msra.mxu0 %v10493_v35  ;;  %7585 = vmatpush1.bf16.msra.mxu1 %v10496_v30 }
 0x3f4   :  { %6930 = vmatprep.subr.bf16.mxu0 %v10501_v37  ;;  %7586 = vmatprep.subr.bf16.mxu1 %v10504_v38 }
 0x3f7   :  { %6931 = vmatpush1.bf16.msra.mxu0 %v10499_v27  ;;  %7587 = vmatpush1.bf16.msra.mxu1 %v10502_v40 }
 0x3f8   :  { %6932 = vmatprep.subr.bf16.mxu0 %v10507_v41  ;;  %7588 = vmatprep.subr.bf16.mxu1 %v10510_v36 }
 0x3fb   :  { %6933 = vmatpush1.bf16.msra.mxu0 %v10505_v43  ;;  %7589 = vmatpush1.bf16.msra.mxu1 %v10508_v44 }
 0x3fc   :  { %6934 = vmatprep.subr.bf16.mxu0 %v10513_v39  ;;  %7590 = vmatprep.subr.bf16.mxu1 %v10516_v46 }
 0x3ff   :  { %6935 = vmatpush1.bf16.msra.mxu0 %v10511_v47  ;;  %7591 = vmatpush1.bf16.msra.mxu1 %v10514_v42 }
 0x402   :  { %6937 = vmatmul.mubr.bf16.vlgmr.msra.gmra.mrb[0].mxu0 %v7801_v49  ;;  %7593 = vmatmul.mubr.bf16.vlgmr.msra.gmra.mrb[0].mxu1 %v7801_v49 }
 0x4d5   :  { %v13762_v50 = vpop.f32.mrb[0].mxu0  ;;  %v13764_v45 = vpop.f32.mrb[0].mxu1 }
 0x4d6   :  { %v7601_v51 = vrot.slane %v13762_v50, 4  ;;  %v7629_v52 = vmul.f32 %v13762_v50, %v13762_v50  ;;  %v7613_v53 = vrot.slane %v13764_v45, 4  ;;  %v7631_v54 = vmul.f32 %v13764_v45, %v13764_v45  ;;  %v13772_v55 = vpop.f32.mrb[1].mxu0  ;;  %v13774_v48 = vpop.f32.mrb[1].mxu1 }
 0x4d7   :  { %v7607_v56 = vrot.slane %v13772_v55, 4  ;;  %v7630_v57 = vmul.f32 %v13772_v55, %v13772_v55  ;;  %v7619_v58 = vrot.slane %v13774_v48, 4  ;;  %v7632_v59 = vmul.f32 %v13774_v48, %v13774_v48  ;;  %v6942_v60 = vpop.f32.mrb[2].mxu0  ;;  %v7598_v61 = vpop.f32.mrb[2].mxu1 }
 0x4d8   :  { %v7602_v62 = vadd.f32 %v7601_v51, %v13762_v50  ;;  %v7633_v63 = vrot.slane %v7629_v52, 4  ;;  %v7614_v0 = vadd.f32 %v7613_v53, %v13764_v45  ;;  %v7645_v1 = vrot.slane %v7631_v54, 4  ;;  %v6943_v2 = vpop.f32.mrb[3].mxu0  ;;  %v7599_v3 = vpop.f32.mrb[3].mxu1 }
 0x4d9   :  { %v7608_v4 = vadd.f32 %v7607_v56, %v13772_v55  ;;  %v7639_v5 = vrot.slane %v7630_v57, 4  ;;  %v7620_v6 = vadd.f32 %v7619_v58, %v13774_v48  ;;  %v7651_v7 = vrot.slane %v7632_v59, 4 }
 0x4da   :  { %v7603_v8 = vrot.slane %v7602_v62, 2  ;;  %v7634_v9 = vadd.f32 %v7633_v63, %v7629_v52  ;;  %v7615_v10 = vrot.slane %v7614_v0, 2  ;;  %v7646_v12 = vadd.f32 %v7645_v1, %v7631_v54 }
 0x4db   :  { %v7609_v13 = vrot.slane %v7608_v4, 2  ;;  %v7640_v15 = vadd.f32 %v7639_v5, %v7630_v57  ;;  %v7621_v11 = vrot.slane %v7620_v6, 2  ;;  %v7652_v17 = vadd.f32 %v7651_v7, %v7632_v59  ;;  %v7685_v7 = vld [vmem:[%s13804_s2] sm:$0xf] }
 0x4dc   :  { %v7604_v14 = vadd.f32 %v7603_v8, %v7602_v62  ;;  %v7635_v19 = vrot.slane %v7634_v9, 2  ;;  %v7616_v20 = vadd.f32 %v7615_v10, %v7614_v0  ;;  %v7647_v16 = vrot.slane %v7646_v12, 2  ;;  %v7711_v10 = vld [vmem:[%s13805_s3] sm:$0xf] }
 0x4dd   :  { %v7610_v22 = vadd.f32 %v7609_v13, %v7608_v4  ;;  %v7641_v23 = vrot.slane %v7640_v15, 2  ;;  %v7622_v18 = vadd.f32 %v7621_v11, %v7620_v6  ;;  %v7653_v25 = vrot.slane %v7652_v17, 2 }
 0x4de   :  { %v7605_v26 = vrot.slane %v7604_v14, 1  ;;  %v7636_v21 = vadd.f32 %v7635_v19, %v7634_v9  ;;  %v7617_v28 = vrot.slane %v7616_v20, 1  ;;  %v7648_v29 = vadd.f32 %v7647_v16, %v7646_v12 }
 0x4df   :  { %v7611_v24 = vrot.slane %v7610_v22, 1  ;;  %v7642_v31 = vadd.f32 %v7641_v23, %v7640_v15  ;;  %v7623_v32 = vrot.slane %v7622_v18, 1  ;;  %v7654_v33 = vadd.f32 %v7653_v25, %v7652_v17 }
 0x4e0   :  { %v7606_v34 = vadd.f32 %v7605_v26, %v7604_v14  ;;  %v7637_v35 = vrot.slane %v7636_v21, 1  ;;  %v7618_v30 = vadd.f32 %v7617_v28, %v7616_v20  ;;  %v7649_v37 = vrot.slane %v7648_v29, 1 }
 0x4e1   :  { %v7612_v38 = vadd.f32 %v7611_v24, %v7610_v22  ;;  %v7643_v27 = vrot.slane %v7642_v31, 1  ;;  %v7624_v40 = vadd.f32 %v7623_v32, %v7622_v18  ;;  %v7655_v41 = vrot.slane %v7654_v33, 1 }
 0x4e2   :  { %v7625_v36 = vmul.f32 0.125, %v7606_v34  ;;  %v7638_v43 = vadd.f32 %v7637_v35, %v7636_v21  ;;  %v7627_v44 = vmul.f32 0.125, %v7618_v30  ;;  %v7650_v39 = vadd.f32 %v7649_v37, %v7648_v29 }
 0x4e3   :  { %v7626_v46 = vmul.f32 0.125, %v7612_v38  ;;  %v7644_v47 = vadd.f32 %v7643_v27, %v7642_v31  ;;  %v7628_v42 = vmul.f32 0.125, %v7624_v40  ;;  %v7656_v49 = vadd.f32 %v7655_v41, %v7654_v33 }
 0x4e4   :  { %v7657_v51 = vmul.f32 0.125, %v7638_v43  ;;  %v7661_v52 = vmul.f32 %v7625_v36, %v7625_v36  ;;  %v7659_v53 = vmul.f32 0.125, %v7650_v39  ;;  %v7663_v54 = vmul.f32 %v7627_v44, %v7627_v44 }
 0x4e5   :  { %v7658_v56 = vmul.f32 0.125, %v7644_v47  ;;  %v7662_v57 = vmul.f32 %v7626_v46, %v7626_v46  ;;  %v7660_v59 = vmul.f32 0.125, %v7656_v49  ;;  %v7664_v60 = vmul.f32 %v7628_v42, %v7628_v42 }
 0x4e6   :  { %v7665_v58 = vsub.f32 %v7657_v51, %v7661_v52  ;;  %v7687_v61 = vlaneseq  ;;  %v7667_v62 = vsub.f32 %v7659_v53, %v7663_v54  ;;  %v7669_v13 = vsub.f32 %v13762_v50, %v7625_v36 }
 0x4e7   :  { %v7666_v63 = vsub.f32 %v7658_v56, %v7662_v57  ;;  %v7668_v1 = vsub.f32 %v7660_v59, %v7664_v60  ;;  %v7671_v17 = vsub.f32 %v13764_v45, %v7627_v44  ;;  %v7670_v22 = vsub.f32 %v13772_v55, %v7626_v46 }
 0x4e8   :  { %v7673_v0 = vadd.f32 1e-05, %v7665_v58  ;;  %v7675_v2 = vadd.f32 1e-05, %v7667_v62  ;;  %v7688_v5 = vshrl.u32 %v7687_v61, 7  ;;  %v7672_v21 = vsub.f32 %v13774_v48, %v7628_v42 }
 0x4e9   :  { %v7674_v3 = vadd.f32 1e-05, %v7666_v63  ;;  %v7676_v4 = vadd.f32 1e-05, %v7668_v1 }
 0x4ea   :  { %10519 = vrsqrt.f32 %v7673_v0  ;;  %v7689_v6 = vsub.s32 0, %v7688_v5  ;;  %v7697_v8 = vsub.s32 2, %v7688_v5  ;;  %v7693_v9 = vsub.s32 1, %v7688_v5 }
 0x4eb   :  { %10521 = vrsqrt.f32 %v7675_v2  ;;  %v7701_v12 = vsub.s32 3, %v7688_v5 }
 0x4ec   :  { %10523 = vrsqrt.f32 %v7674_v3  ;;  %v7690_v15 = vrot.slane %v7685_v7, %v7689_v6  ;;  %v7698_v14 = vrot.slane %v7685_v7, %v7697_v8  ;;  %v7716_v16 = vrot.slane %v7711_v10, %v7689_v6 }
 0x4ed   :  { %10525 = vrsqrt.f32 %v7676_v4  ;;  %v7694_v23 = vrot.slane %v7685_v7, %v7693_v9  ;;  %v7724_v26 = vrot.slane %v7711_v10, %v7697_v8  ;;  %v7702_v28 = vrot.slane %v7685_v7, %v7701_v12 }
 0x4ee   :  { %v7720_v31 = vrot.slane %v7711_v10, %v7693_v9  ;;  %v7728_v45 = vrot.slane %v7711_v10, %v7701_v12 }
 0x4f4   :  { %v10520_v11 = vpop.eup %10519 }
 0x4f5   :  { %v10522_v19 = vpop.eup %10521  ;;  %v7681_v20 = vmul.f32 %v10520_v11, %v7669_v13 }
 0x4f6   :  { %v10524_v18 = vpop.eup %10523  ;;  %v7683_v25 = vmul.f32 %v10522_v19, %v7671_v17 }
 0x4f7   :  { %v10526_v29 = vpop.eup %10525  ;;  %v7707_v24 = vmul.f32 %v7690_v15, %v7681_v20  ;;  %v7682_v50 = vmul.f32 %v10524_v18, %v7670_v22 }
 0x4f8   :  { %v7709_v32 = vmul.f32 %v7698_v14, %v7683_v25  ;;  %v7684_v33 = vmul.f32 %v10526_v29, %v7672_v21 }
 0x4f9   :  { %v7733_v34 = vadd.f32 %v7716_v16, %v7707_v24  ;;  %v7708_v35 = vmul.f32 %v7694_v23, %v7682_v50 }
 0x4fa   :  { %v7735_v30 = vadd.f32 %v7724_v26, %v7709_v32  ;;  %v7710_v37 = vmul.f32 %v7702_v28, %v7684_v33 }
 0x4fb   :  { %vm7737_vm0 = vcmp.ge.f32.partialorder %v7733_v34, 0.0  ;;  %v7741_v55 = vmul.f32 0.2, %v7733_v34  ;;  %v7734_v38 = vadd.f32 %v7720_v31, %v7708_v35 }
 0x4fc   :  { %vm7739_vm1 = vcmp.ge.f32.partialorder %v7735_v30, 0.0  ;;  %v7743_v27 = vmul.f32 0.2, %v7735_v30  ;;  %v7736_v40 = vadd.f32 %v7728_v45, %v7710_v37 }
 0x4fd   :  { %v7745_v41 = vsel %vm7737_vm0, %v7733_v34, %v7741_v55  ;;  %vm7738_vm2 = vcmp.ge.f32.partialorder %v7734_v38, 0.0  ;;  %v7742_v48 = vmul.f32 0.2, %v7734_v38 }
 0x4fe   :  { %v7747_v36 = vsel %vm7739_vm1, %v7735_v30, %v7743_v27  ;;  %vm7740_vm3 = vcmp.ge.f32.partialorder %v7736_v40, 0.0  ;;  %v7744_v43 = vmul.f32 0.2, %v7736_v40 }
 0x4ff   :  { %v7746_v44 = vsel %vm7738_vm2, %v7734_v38, %v7742_v48 }
 0x500   :  { %v8829_v39 = vpack.c.bf16 %v7746_v44, %v7745_v41  ;;  %v7748_v46 = vsel %vm7740_vm3, %v7736_v40, %v7744_v43 }
 0x501   :  { %v8830_v47 = vpack.c.bf16 %v7748_v46, %v7747_v36 }
 0x502   :  { %7765 = vst [vmem:[%s13806_s4] sm:$0xff] %v8829_v39 }
 0x503   :  { %7766 = vst [vmem:[%s13806_s4 + $0x8] sm:$0xff] %v8830_v47 }

</bundles_post_ra>
